<compile_context>
chip_gen: v7x
topology: tpu7x:2x2x1
jax: 0.10.0
libtpu: 0.0.40
codegen_flags: <defaults>
</compile_context>

<pallas_src>
import functools

import jax
import jax.numpy as jnp
from jax.experimental import pallas as pl
from jax.experimental.pallas import tpu as pltpu

CPAD = 128  # lane-dense padded output-channel width


# ---------------------------------------------------------------------------
# Pallas kernels
# ---------------------------------------------------------------------------
def conv_bn_relu_kernel(xcol_ref, w_ref, g_ref, b_ref, o_ref, *, eps):
    """Fused 5x5 'same' conv (one im2col GEMM) + BatchNorm(train) + ReLU.

    xcol_ref : (M, K)     bf16  im2col patches, M = B*H*W, K = 25*Cin
    w_ref    : (K, CPAD)  bf16  conv weights, Cout zero-padded to 128 lanes
    g_ref    : (1, CPAD)  f32   BatchNorm gamma (zero-padded)
    b_ref    : (1, CPAD)  f32   BatchNorm beta  (zero-padded)
    o_ref    : (M, CPAD)  f32   normalized + ReLU'd activations (lane-dense)

    The whole batch is resident in this block, so the global (B,H,W) batch
    statistics are computed and applied in-kernel: no stats round trip and
    no second pallas_call.  Conv bias omitted (cancels through train-mode BN).
    """
    conv = jnp.dot(xcol_ref[...], w_ref[...],
                   preferred_element_type=jnp.float32)          # (M, CPAD) f32
    inv_m = 1.0 / conv.shape[0]
    mean = jnp.sum(conv, axis=0, keepdims=True) * inv_m          # (1, CPAD)
    var = jnp.sum(conv * conv, axis=0, keepdims=True) * inv_m - mean * mean
    scale = g_ref[...] * jax.lax.rsqrt(var + eps)                # (1, CPAD)
    shift = b_ref[...] - mean * scale
    o_ref[...] = jnp.maximum(conv * scale + shift, 0.0)


def linear_kernel(x_ref, w_ref, b_ref, o_ref):
    """o = x @ w + b.  bf16 inputs, f32 accumulation, N padded to 128 lanes."""
    o_ref[...] = (
        jnp.dot(x_ref[...], w_ref[...], preferred_element_type=jnp.float32)
        + b_ref[...]
    )


# ---------------------------------------------------------------------------
# Wrapper glue (cheap XLA layout ops) + pallas_call sites
# ---------------------------------------------------------------------------
def _im2col_5x5(x_nhwc):
    """(B,H,W,C) f32 -> (B*H*W, 25*C) bf16, K ordered as (ky, kx, cin)."""
    B, H, W, C = x_nhwc.shape
    xp = jnp.pad(x_nhwc, ((0, 0), (2, 2), (2, 2), (0, 0)))       # 'same' pad=2
    slabs = [xp[:, ky:ky + H, kx:kx + W, :]
             for ky in range(5) for kx in range(5)]              # 25x (B,H,W,C)
    xc = jnp.stack(slabs, axis=3)                                # (B,H,W,25,C)
    return xc.reshape(B * H * W, 25 * C).astype(jnp.bfloat16)


def conv_bn_relu_pool(x_nhwc, w_pad, g_pad, b_pad, cout):
    """Conv2d(5x5, pad=2) + BatchNorm2d(train) + ReLU (fused kernel) + MaxPool2.

    x_nhwc: (B,H,W,Cin) f32.  Returns (B, H//2, W//2, cout) f32 (NHWC).
    """
    B, H, W, Cin = x_nhwc.shape
    M, K = B * H * W, 25 * Cin
    xcol = _im2col_5x5(x_nhwc)                                   # (M, K) bf16

    act = pl.pallas_call(
        functools.partial(conv_bn_relu_kernel, eps=1e-5),
        out_shape=jax.ShapeDtypeStruct((M, CPAD), jnp.float32),
        grid=(1,),
        in_specs=[
            pl.BlockSpec((M, K), lambda i: (0, 0)),
            pl.BlockSpec((K, CPAD), lambda i: (0, 0)),
            pl.BlockSpec((1, CPAD), lambda i: (0, 0)),
            pl.BlockSpec((1, CPAD), lambda i: (0, 0)),
        ],
        out_specs=pl.BlockSpec((M, CPAD), lambda i: (0, 0)),
        compiler_params=pltpu.CompilerParams(
            dimension_semantics=("arbitrary",),
            vmem_limit_bytes=32 * 1024 * 1024),
    )(xcol, w_pad, g_pad, b_pad)                                 # (M, CPAD) f32

    act = act[:, :cout].reshape(B, H, W, cout)                   # drop pad lanes
    # 2x2 max-pool, stride 2 (even H/W guaranteed: 28 -> 14 -> 7).
    return act.reshape(B, H // 2, 2, W // 2, 2, cout).max(axis=(2, 4))


def linear(x, w_pad, b_pad, n_out):
    """x: (B, K) f32, w_pad: (K, 128) bf16 (prepped), b_pad: (1, 128) f32."""
    B, K = x.shape
    NP = w_pad.shape[1]
    out = pl.pallas_call(
        linear_kernel,
        out_shape=jax.ShapeDtypeStruct((B, NP), jnp.float32),
        grid=(1,),
        in_specs=[
            pl.BlockSpec((B, K), lambda i: (0, 0)),
            pl.BlockSpec((K, NP), lambda i: (0, 0)),
            pl.BlockSpec((1, NP), lambda i: (0, 0)),
        ],
        out_specs=pl.BlockSpec((B, NP), lambda i: (0, 0)),
        compiler_params=pltpu.CompilerParams(
            dimension_semantics=("arbitrary",)),
    )(x.astype(jnp.bfloat16), w_pad, b_pad)
    return out[:, :n_out]


def cnn_forward(x_nchw, kp):
    """Full CNN forward.  x_nchw: (B, 1, 28, 28) f32 -> (B, 10) f32."""
    x = jnp.transpose(x_nchw, (0, 2, 3, 1))                      # NCHW -> NHWC
    h = conv_bn_relu_pool(x, kp["w1"], kp["g1"], kp["be1"], 16)  # (B,14,14,16)
    h = conv_bn_relu_pool(h, kp["w2"], kp["g2"], kp["be2"], 32)  # (B,7,7,32)
    h = jnp.transpose(h, (0, 3, 1, 2))                           # NHWC -> NCHW
    flat = h.reshape(h.shape[0], -1)             # matches PyTorch out.view(B,-1)
    return linear(flat, kp["wfc"], kp["bfc"], 10)                # (B, 10)


# ---------------------------------------------------------------------------
# One-time parameter prep (hoisted out of the jitted forward)
# ---------------------------------------------------------------------------
def prepare_params(p):
    """PyTorch-layout params -> kernel-ready layouts (done once, outside jit)."""
    def conv_w(w):
        cout, cin, kh, kw = w.shape
        wk = jnp.transpose(w, (2, 3, 1, 0)).reshape(kh * kw * cin, cout)
        return (jnp.zeros((kh * kw * cin, CPAD), jnp.bfloat16)
                .at[:, :cout].set(wk.astype(jnp.bfloat16)))

    def pad_row(v):
        return (jnp.zeros((1, CPAD), jnp.float32)
                .at[0, :v.shape[0]].set(v.astype(jnp.float32)))

    n, k = p["wfc"].shape
    wfc = (jnp.zeros((k, CPAD), jnp.bfloat16)
           .at[:, :n].set(p["wfc"].T.astype(jnp.bfloat16)))
    # Conv biases b1/b2 are intentionally unused: they cancel exactly through
    # training-mode BatchNorm (only the unmodeled running_mean would see them).
    return {
        "w1": conv_w(p["w1"]), "g1": pad_row(p["g1"]), "be1": pad_row(p["be1"]),
        "w2": conv_w(p["w2"]), "g2": pad_row(p["g2"]), "be2": pad_row(p["be2"]),
        "wfc": wfc, "bfc": pad_row(p["bfc"]),
    }


def init_params(key):
    """Deterministic parameters in the original PyTorch layouts."""
    ks = jax.random.split(key, 6)
    return {
        # Conv2d(1, 16, k=5, pad=2): weight (Cout, Cin, 5, 5)
        "w1": 0.1 * jax.random.normal(ks[0], (16, 1, 5, 5), jnp.float32),
        "b1": 0.01 * jax.random.normal(ks[1], (16,), jnp.float32),
        "g1": jnp.ones((16,), jnp.float32),      # BatchNorm2d(16) weight
        "be1": jnp.zeros((16,), jnp.float32),    # BatchNorm2d(16) bias
        # Conv2d(16, 32, k=5, pad=2)
        "w2": 0.05 * jax.random.normal(ks[2], (32, 16, 5, 5), jnp.float32),
        "b2": 0.01 * jax.random.normal(ks[3], (32,), jnp.float32),
        "g2": jnp.ones((32,), jnp.float32),
        "be2": jnp.zeros((32,), jnp.float32),
        # Linear(7*7*32, 10): weight (N, K) as in PyTorch
        "wfc": 0.02 * jax.random.normal(ks[4], (10, 7 * 7 * 32), jnp.float32),
        "bfc": 0.01 * jax.random.normal(ks[5], (10,), jnp.float32),
    }


if __name__ == "__main__":
    key = jax.random.PRNGKey(0)
    k_in, k_par = jax.random.split(key)
    # MNIST-shaped input: fc expects 7*7*32, so spatial must be 28x28, Cin=1.
    x = jax.random.normal(k_in, (2, 1, 28, 28), jnp.float32)
    params = init_params(k_par)
    kparams = prepare_params(params)   # one-time weight prep, outside jit

    logits = jax.jit(cnn_forward)(x, kparams)
    logits = jax.block_until_ready(logits)
    assert logits.shape == (2, 10), logits.shape
    assert bool(jnp.all(jnp.isfinite(logits)))
    print("KERNEL_OK")
</pallas_src>

<mosaic_0001>
module attributes {stable_mosaic.version = 11 : i64} {
  func.func @conv_bn_relu_kernel(%arg0: i32, %arg1: memref<1568x25xbf16, #tpu.memory_space<vmem>>, %arg2: memref<25x128xbf16, #tpu.memory_space<vmem>>, %arg3: memref<1x128xf32, #tpu.memory_space<vmem>>, %arg4: memref<1x128xf32, #tpu.memory_space<vmem>>, %arg5: memref<1568x128xf32, #tpu.memory_space<vmem>>) attributes {dimension_semantics = [#tpu.dimension_semantics<arbitrary>], iteration_bounds = array<i64: 1>, scalar_prefetch = 0 : i64, scratch_operands = 0 : i64, tpu.core_type = #tpu.core_type<tc>, window_params = [{pipeline_mode = #tpu.pipeline_mode<synchronous>, transform_indices = @transform_0, window_bounds = array<i64: 1568, 25>}, {pipeline_mode = #tpu.pipeline_mode<synchronous>, transform_indices = @transform_1, window_bounds = array<i64: 25, 128>}, {pipeline_mode = #tpu.pipeline_mode<synchronous>, transform_indices = @transform_2, window_bounds = array<i64: 1, 128>}, {pipeline_mode = #tpu.pipeline_mode<synchronous>, transform_indices = @transform_3, window_bounds = array<i64: 1, 128>}, {pipeline_mode = #tpu.pipeline_mode<synchronous>, transform_indices = @transform_4, window_bounds = array<i64: 1568, 128>}]} {
    %c0 = arith.constant 0 : index
    %c0_0 = arith.constant 0 : index
    %0 = vector.load %arg1[%c0, %c0_0] : memref<1568x25xbf16, #tpu.memory_space<vmem>>, vector<1568x25xbf16>
    %c0_1 = arith.constant 0 : index
    %c0_2 = arith.constant 0 : index
    %1 = vector.load %arg2[%c0_1, %c0_2] : memref<25x128xbf16, #tpu.memory_space<vmem>>, vector<25x128xbf16>
    %cst = arith.constant dense<0.000000e+00> : vector<1568x128xf32>
    %2 = tpu.matmul %0, %1, %cst {dimension_numbers = #tpu.dot_dimension_numbers<[1], [0], [0], [1], [0, 0, 1, 1], [], []>} : vector<1568x25xbf16>, vector<25x128xbf16>, vector<1568x128xf32> -> vector<1568x128xf32>
    %cst_3 = arith.constant dense<0.000000e+00> : vector<128xf32>
    %3 = vector.multi_reduction <add>, %2, %cst_3 [0] : vector<1568x128xf32> to vector<128xf32>
    %4 = vector.shape_cast %3 : vector<128xf32> to vector<1x128xf32>
    %cst_4 = arith.constant 6.37755089E-4 : f32
    %5 = vector.broadcast %cst_4 : f32 to vector<1x128xf32>
    %6 = arith.mulf %4, %5 : vector<1x128xf32>
    %7 = arith.mulf %2, %2 : vector<1568x128xf32>
    %cst_5 = arith.constant dense<0.000000e+00> : vector<128xf32>
    %8 = vector.multi_reduction <add>, %7, %cst_5 [0] : vector<1568x128xf32> to vector<128xf32>
    %9 = vector.shape_cast %8 : vector<128xf32> to vector<1x128xf32>
    %cst_6 = arith.constant 6.37755089E-4 : f32
    %10 = vector.broadcast %cst_6 : f32 to vector<1x128xf32>
    %11 = arith.mulf %9, %10 : vector<1x128xf32>
    %12 = arith.mulf %6, %6 : vector<1x128xf32>
    %13 = arith.subf %11, %12 : vector<1x128xf32>
    %c0_7 = arith.constant 0 : index
    %c0_8 = arith.constant 0 : index
    %14 = vector.load %arg3[%c0_7, %c0_8] : memref<1x128xf32, #tpu.memory_space<vmem>>, vector<1x128xf32>
    %cst_9 = arith.constant 9.99999974E-6 : f32
    %15 = vector.broadcast %cst_9 : f32 to vector<1x128xf32>
    %16 = arith.addf %13, %15 : vector<1x128xf32>
    %17 = math.rsqrt %16 : vector<1x128xf32>
    %18 = arith.mulf %14, %17 : vector<1x128xf32>
    %c0_10 = arith.constant 0 : index
    %c0_11 = arith.constant 0 : index
    %19 = vector.load %arg4[%c0_10, %c0_11] : memref<1x128xf32, #tpu.memory_space<vmem>>, vector<1x128xf32>
    %20 = arith.mulf %6, %18 : vector<1x128xf32>
    %21 = arith.subf %19, %20 : vector<1x128xf32>
    %22 = vector.broadcast %18 : vector<1x128xf32> to vector<1568x128xf32>
    %23 = arith.mulf %2, %22 : vector<1568x128xf32>
    %24 = vector.broadcast %21 : vector<1x128xf32> to vector<1568x128xf32>
    %25 = arith.addf %23, %24 : vector<1568x128xf32>
    %cst_12 = arith.constant 0.000000e+00 : f32
    %26 = vector.broadcast %cst_12 : f32 to vector<1568x128xf32>
    %27 = arith.maximumf %25, %26 : vector<1568x128xf32>
    %c0_13 = arith.constant 0 : index
    %c0_14 = arith.constant 0 : index
    %28 = vector.load %arg5[%c0_13, %c0_14] : memref<1568x128xf32, #tpu.memory_space<vmem>>, vector<1568x128xf32>
    tpu.vector_store %arg5[%c0_13, %c0_14], %27 {strides = array<i32>} : memref<1568x128xf32, #tpu.memory_space<vmem>>, vector<1568x128xf32>,
    return
  }
  func.func @transform_0(%arg0: i32) -> (i32, i32) {
    %c0_i32 = arith.constant 0 : i32
    %c0_i32_0 = arith.constant 0 : i32
    %c0_i32_1 = arith.constant 0 : i32
    return %c0_i32, %c0_i32_0 : i32, i32
  }
  func.func @transform_1(%arg0: i32) -> (i32, i32) {
    %c0_i32 = arith.constant 0 : i32
    %c0_i32_0 = arith.constant 0 : i32
    %c0_i32_1 = arith.constant 0 : i32
    return %c0_i32, %c0_i32_0 : i32, i32
  }
  func.func @transform_2(%arg0: i32) -> (i32, i32) {
    %c0_i32 = arith.constant 0 : i32
    %c0_i32_0 = arith.constant 0 : i32
    %c0_i32_1 = arith.constant 0 : i32
    return %c0_i32, %c0_i32_0 : i32, i32
  }
  func.func @transform_3(%arg0: i32) -> (i32, i32) {
    %c0_i32 = arith.constant 0 : i32
    %c0_i32_0 = arith.constant 0 : i32
    %c0_i32_1 = arith.constant 0 : i32
    return %c0_i32, %c0_i32_0 : i32, i32
  }
  func.func @transform_4(%arg0: i32) -> (i32, i32) {
    %c0_i32 = arith.constant 0 : i32
    %c0_i32_0 = arith.constant 0 : i32
    %c0_i32_1 = arith.constant 0 : i32
    return %c0_i32, %c0_i32_0 : i32, i32
  }
}

module attributes {stable_mosaic.version = 11 : i64} {
  func.func @conv_bn_relu_kernel(%arg0: i32, %arg1: memref<392x400xbf16, #tpu.memory_space<vmem>>, %arg2: memref<400x128xbf16, #tpu.memory_space<vmem>>, %arg3: memref<1x128xf32, #tpu.memory_space<vmem>>, %arg4: memref<1x128xf32, #tpu.memory_space<vmem>>, %arg5: memref<392x128xf32, #tpu.memory_space<vmem>>) attributes {dimension_semantics = [#tpu.dimension_semantics<arbitrary>], iteration_bounds = array<i64: 1>, scalar_prefetch = 0 : i64, scratch_operands = 0 : i64, tpu.core_type = #tpu.core_type<tc>, window_params = [{pipeline_mode = #tpu.pipeline_mode<synchronous>, transform_indices = @transform_0, window_bounds = array<i64: 392, 400>}, {pipeline_mode = #tpu.pipeline_mode<synchronous>, transform_indices = @transform_1, window_bounds = array<i64: 400, 128>}, {pipeline_mode = #tpu.pipeline_mode<synchronous>, transform_indices = @transform_2, window_bounds = array<i64: 1, 128>}, {pipeline_mode = #tpu.pipeline_mode<synchronous>, transform_indices = @transform_3, window_bounds = array<i64: 1, 128>}, {pipeline_mode = #tpu.pipeline_mode<synchronous>, transform_indices = @transform_4, window_bounds = array<i64: 392, 128>}]} {
    %c0 = arith.constant 0 : index
    %c0_0 = arith.constant 0 : index
    %0 = vector.load %arg1[%c0, %c0_0] : memref<392x400xbf16, #tpu.memory_space<vmem>>, vector<392x400xbf16>
    %c0_1 = arith.constant 0 : index
    %c0_2 = arith.constant 0 : index
    %1 = vector.load %arg2[%c0_1, %c0_2] : memref<400x128xbf16, #tpu.memory_space<vmem>>, vector<400x128xbf16>
    %cst = arith.constant dense<0.000000e+00> : vector<392x128xf32>
    %2 = tpu.matmul %0, %1, %cst {dimension_numbers = #tpu.dot_dimension_numbers<[1], [0], [0], [1], [0, 0, 1, 1], [], []>} : vector<392x400xbf16>, vector<400x128xbf16>, vector<392x128xf32> -> vector<392x128xf32>
    %cst_3 = arith.constant dense<0.000000e+00> : vector<128xf32>
    %3 = vector.multi_reduction <add>, %2, %cst_3 [0] : vector<392x128xf32> to vector<128xf32>
    %4 = vector.shape_cast %3 : vector<128xf32> to vector<1x128xf32>
    %cst_4 = arith.constant 0.00255102036 : f32
    %5 = vector.broadcast %cst_4 : f32 to vector<1x128xf32>
    %6 = arith.mulf %4, %5 : vector<1x128xf32>
    %7 = arith.mulf %2, %2 : vector<392x128xf32>
    %cst_5 = arith.constant dense<0.000000e+00> : vector<128xf32>
    %8 = vector.multi_reduction <add>, %7, %cst_5 [0] : vector<392x128xf32> to vector<128xf32>
    %9 = vector.shape_cast %8 : vector<128xf32> to vector<1x128xf32>
    %cst_6 = arith.constant 0.00255102036 : f32
    %10 = vector.broadcast %cst_6 : f32 to vector<1x128xf32>
    %11 = arith.mulf %9, %10 : vector<1x128xf32>
    %12 = arith.mulf %6, %6 : vector<1x128xf32>
    %13 = arith.subf %11, %12 : vector<1x128xf32>
    %c0_7 = arith.constant 0 : index
    %c0_8 = arith.constant 0 : index
    %14 = vector.load %arg3[%c0_7, %c0_8] : memref<1x128xf32, #tpu.memory_space<vmem>>, vector<1x128xf32>
    %cst_9 = arith.constant 9.99999974E-6 : f32
    %15 = vector.broadcast %cst_9 : f32 to vector<1x128xf32>
    %16 = arith.addf %13, %15 : vector<1x128xf32>
    %17 = math.rsqrt %16 : vector<1x128xf32>
    %18 = arith.mulf %14, %17 : vector<1x128xf32>
    %c0_10 = arith.constant 0 : index
    %c0_11 = arith.constant 0 : index
    %19 = vector.load %arg4[%c0_10, %c0_11] : memref<1x128xf32, #tpu.memory_space<vmem>>, vector<1x128xf32>
    %20 = arith.mulf %6, %18 : vector<1x128xf32>
    %21 = arith.subf %19, %20 : vector<1x128xf32>
    %22 = vector.broadcast %18 : vector<1x128xf32> to vector<392x128xf32>
    %23 = arith.mulf %2, %22 : vector<392x128xf32>
    %24 = vector.broadcast %21 : vector<1x128xf32> to vector<392x128xf32>
    %25 = arith.addf %23, %24 : vector<392x128xf32>
    %cst_12 = arith.constant 0.000000e+00 : f32
    %26 = vector.broadcast %cst_12 : f32 to vector<392x128xf32>
    %27 = arith.maximumf %25, %26 : vector<392x128xf32>
    %c0_13 = arith.constant 0 : index
    %c0_14 = arith.constant 0 : index
    %28 = vector.load %arg5[%c0_13, %c0_14] : memref<392x128xf32, #tpu.memory_space<vmem>>, vector<392x128xf32>
    tpu.vector_store %arg5[%c0_13, %c0_14], %27 {strides = array<i32>} : memref<392x128xf32, #tpu.memory_space<vmem>>, vector<392x128xf32>,
    return
  }
  func.func @transform_0(%arg0: i32) -> (i32, i32) {
    %c0_i32 = arith.constant 0 : i32
    %c0_i32_0 = arith.constant 0 : i32
    %c0_i32_1 = arith.constant 0 : i32
    return %c0_i32, %c0_i32_0 : i32, i32
  }
  func.func @transform_1(%arg0: i32) -> (i32, i32) {
    %c0_i32 = arith.constant 0 : i32
    %c0_i32_0 = arith.constant 0 : i32
    %c0_i32_1 = arith.constant 0 : i32
    return %c0_i32, %c0_i32_0 : i32, i32
  }
  func.func @transform_2(%arg0: i32) -> (i32, i32) {
    %c0_i32 = arith.constant 0 : i32
    %c0_i32_0 = arith.constant 0 : i32
    %c0_i32_1 = arith.constant 0 : i32
    return %c0_i32, %c0_i32_0 : i32, i32
  }
  func.func @transform_3(%arg0: i32) -> (i32, i32) {
    %c0_i32 = arith.constant 0 : i32
    %c0_i32_0 = arith.constant 0 : i32
    %c0_i32_1 = arith.constant 0 : i32
    return %c0_i32, %c0_i32_0 : i32, i32
  }
  func.func @transform_4(%arg0: i32) -> (i32, i32) {
    %c0_i32 = arith.constant 0 : i32
    %c0_i32_0 = arith.constant 0 : i32
    %c0_i32_1 = arith.constant 0 : i32
    return %c0_i32, %c0_i32_0 : i32, i32
  }
}

module attributes {stable_mosaic.version = 11 : i64} {
  func.func @linear_kernel(%arg0: i32, %arg1: memref<2x1568xbf16, #tpu.memory_space<vmem>>, %arg2: memref<1568x128xbf16, #tpu.memory_space<vmem>>, %arg3: memref<1x128xf32, #tpu.memory_space<vmem>>, %arg4: memref<2x128xf32, #tpu.memory_space<vmem>>) attributes {dimension_semantics = [#tpu.dimension_semantics<arbitrary>], iteration_bounds = array<i64: 1>, scalar_prefetch = 0 : i64, scratch_operands = 0 : i64, tpu.core_type = #tpu.core_type<tc>, window_params = [{pipeline_mode = #tpu.pipeline_mode<synchronous>, transform_indices = @transform_0, window_bounds = array<i64: 2, 1568>}, {pipeline_mode = #tpu.pipeline_mode<synchronous>, transform_indices = @transform_1, window_bounds = array<i64: 1568, 128>}, {pipeline_mode = #tpu.pipeline_mode<synchronous>, transform_indices = @transform_2, window_bounds = array<i64: 1, 128>}, {pipeline_mode = #tpu.pipeline_mode<synchronous>, transform_indices = @transform_3, window_bounds = array<i64: 2, 128>}]} {
    %c0 = arith.constant 0 : index
    %c0_0 = arith.constant 0 : index
    %0 = vector.load %arg1[%c0, %c0_0] : memref<2x1568xbf16, #tpu.memory_space<vmem>>, vector<2x1568xbf16>
    %c0_1 = arith.constant 0 : index
    %c0_2 = arith.constant 0 : index
    %1 = vector.load %arg2[%c0_1, %c0_2] : memref<1568x128xbf16, #tpu.memory_space<vmem>>, vector<1568x128xbf16>
    %cst = arith.constant dense<0.000000e+00> : vector<2x128xf32>
    %2 = tpu.matmul %0, %1, %cst {dimension_numbers = #tpu.dot_dimension_numbers<[1], [0], [0], [1], [0, 0, 1, 1], [], []>} : vector<2x1568xbf16>, vector<1568x128xbf16>, vector<2x128xf32> -> vector<2x128xf32>
    %c0_3 = arith.constant 0 : index
    %c0_4 = arith.constant 0 : index
    %3 = vector.load %arg3[%c0_3, %c0_4] : memref<1x128xf32, #tpu.memory_space<vmem>>, vector<1x128xf32>
    %4 = vector.broadcast %3 : vector<1x128xf32> to vector<2x128xf32>
    %5 = arith.addf %2, %4 : vector<2x128xf32>
    %c0_5 = arith.constant 0 : index
    %c0_6 = arith.constant 0 : index
    %6 = vector.load %arg4[%c0_5, %c0_6] : memref<2x128xf32, #tpu.memory_space<vmem>>, vector<2x128xf32>
    tpu.vector_store %arg4[%c0_5, %c0_6], %5 {strides = array<i32>} : memref<2x128xf32, #tpu.memory_space<vmem>>, vector<2x128xf32>,
    return
  }
  func.func @transform_0(%arg0: i32) -> (i32, i32) {
    %c0_i32 = arith.constant 0 : i32
    %c0_i32_0 = arith.constant 0 : i32
    %c0_i32_1 = arith.constant 0 : i32
    return %c0_i32, %c0_i32_0 : i32, i32
  }
  func.func @transform_1(%arg0: i32) -> (i32, i32) {
    %c0_i32 = arith.constant 0 : i32
    %c0_i32_0 = arith.constant 0 : i32
    %c0_i32_1 = arith.constant 0 : i32
    return %c0_i32, %c0_i32_0 : i32, i32
  }
  func.func @transform_2(%arg0: i32) -> (i32, i32) {
    %c0_i32 = arith.constant 0 : i32
    %c0_i32_0 = arith.constant 0 : i32
    %c0_i32_1 = arith.constant 0 : i32
    return %c0_i32, %c0_i32_0 : i32, i32
  }
  func.func @transform_3(%arg0: i32) -> (i32, i32) {
    %c0_i32 = arith.constant 0 : i32
    %c0_i32_0 = arith.constant 0 : i32
    %c0_i32_1 = arith.constant 0 : i32
    return %c0_i32, %c0_i32_0 : i32, i32
  }
}

</mosaic_0001>

<bundles_post_ra>
// kernel: cnn_forward.3
= control target key start
LH: loop header
LB: loop body
LE: loop exit
PB: predicated region body
PF: predicated region fallthrough
CT: control target
= control target key end

     0   :  { %9 = vsyncpa [#allocation3], 0  ;;  %s7784_s0 = inlined_call_operand.vmem [shape: bf16[1568,25], index: 0, kind: input, shape index: {}]   ;;  %s7785_s1 = inlined_call_operand.hbm [shape: bf16[25,128], index: 1, kind: input, shape index: {}]   ;;  %s7786_s2 = inlined_call_operand.hbm [shape: f32[1,128], index: 2, kind: input, shape index: {}]   ;;  %s7787_s3 = inlined_call_operand.hbm [shape: f32[1,128], index: 3, kind: input, shape index: {}]   ;;  %s7788_s4 = inlined_call_operand.vmem [shape: f32[1568,128], index: 4, kind: output, shape index: {}]  }
   0x1   :  { %10 = vsyncpa [#allocation5], 0  ;;  %s3966_s15 = smov [#allocation4]   ;;  %s3967_s17 = smov [#allocation2]  }
   0x2   :  { %s31_s16 = sshll.u32 %s3966_s15, 4  ;;  %s18_s18 = sshll.u32 %s3967_s17, 4  ;;  %s32_s16 = int_to_ptr.vmem [resolvable:$true] %s31_s16  ;;  %s3997_s18 = int_to_ptr.vmem [resolvable:$true] %s18_s18 }
   0x3   :  { %s3896_s21 = scalar_lea.hbm %s7786_s2, 16 }
   0x4   :  { %p3897_p0 = scmp.ne.s32.totalorder %s7786_s2, %s3896_s21  ;;  %p3900_p1 = scmp.lt.u32.totalorder %s3896_s21, %s7786_s2 }
   0x6   :  { %p3902_p2 = pnand %p3900_p1, %p3897_p0 }
   0x8   :  { %3905 = shalt.err (!%p3902_p2)
}
   0x9   :  { %s3906_s26 = scalar_lea.vmem %s32_s16, 16  ;;  %s3910_s27 = scalar_lea.vmem %s32_s16, 32 }
   0xa   :  { %p3907_p3 = scmp.ne.s32.totalorder %s32_s16, %s3906_s26  ;;  %p3911_p4 = scmp.lt.s32.totalorder %s32_s16, %s32_s16 }
   0xb   :  { %p3912_p5 = scmp.lt.s32.totalorder %s3910_s27, %s3906_s26 }
   0xd   :  { %p3913_p6 = por %p3912_p5, %p3911_p4 }
   0xf   :  { %p3914_p7 = pnand %p3913_p6, %p3907_p3 }
  0x11   :  { %3917 = shalt.err (!%p3914_p7)
}
  0x12   :  { %34 = dma.hbm_to_vmem [thread:$0]  %s7786_s2, 16, %s32_s16, [#allocation5]  }
  0x13   :  { %s3918_s6 = scalar_lea.hbm %s7785_s1, 256 }
  0x14   :  { %p3919_p8 = scmp.ne.s32.totalorder %s7785_s1, %s3918_s6  ;;  %p3922_p9 = scmp.lt.u32.totalorder %s3918_s6, %s7785_s1 }
  0x16   :  { %p3924_p10 = pnand %p3922_p9, %p3919_p8 }
  0x18   :  { %3927 = shalt.err (!%p3924_p10)
}
  0x19   :  { %s3928_s11 = scalar_lea.vmem %s3997_s18, 256  ;;  %p3933_p12 = scmp.lt.s32.totalorder %s3997_s18, %s3997_s18 }
  0x1a   :  { %p3929_p11 = scmp.ne.s32.totalorder %s3997_s18, %s3928_s11  ;;  %p3934_p13 = scmp.lt.s32.totalorder %s3928_s11, %s3928_s11 }
  0x1c   :  { %p3935_p0 = por %p3934_p13, %p3933_p12 }
  0x1e   :  { %p3936_p1 = pnand %p3935_p0, %p3929_p11 }
  0x20   :  { %3939 = shalt.err (!%p3936_p1)
}
  0x21   :  { %s3968_s2 = smov 64   ;;  %s3969_s12 = smov 4  }
  0x22   :  { %24 = dma.hbm_to_vmem [thread:$0]  %s7785_s1, 256, %s3997_s18, [#allocation3], %s3968_s2, %s3968_s2, %s3969_s12  }
  0x23   :  { %s3970_s15 = smov [#allocation6]   ;;  %s3940_s20 = scalar_lea.hbm %s7787_s3, 16 }
  0x24   :  { %s41_s16 = sshll.u32 %s3970_s15, 4  ;;  %p3941_p2 = scmp.ne.s32.totalorder %s7787_s3, %s3940_s20  ;;  %s42_s16 = int_to_ptr.vmem [resolvable:$true] %s41_s16 }
  0x25   :  { %p3944_p3 = scmp.lt.u32.totalorder %s3940_s20, %s7787_s3 }
  0x27   :  { %p3946_p4 = pnand %p3944_p3, %p3941_p2 }
  0x29   :  { %3949 = shalt.err (!%p3946_p4)
}
  0x2a   :  { %s3950_s25 = scalar_lea.vmem %s42_s16, 16  ;;  %s3954_s1 = scalar_lea.vmem %s42_s16, 32 }
  0x2b   :  { %p3951_p5 = scmp.ne.s32.totalorder %s42_s16, %s3950_s25  ;;  %p3955_p6 = scmp.lt.s32.totalorder %s42_s16, %s42_s16 }
  0x2c   :  { %p3956_p7 = scmp.lt.s32.totalorder %s3954_s1, %s3950_s25 }
  0x2e   :  { %p3957_p8 = por %p3956_p7, %p3955_p6 }
  0x30   :  { %p3958_p9 = pnand %p3957_p8, %p3951_p5 }
  0x32   :  { %3961 = shalt.err (!%p3958_p9)
}
  0x33   :  { %44 = dma.hbm_to_vmem [thread:$0]  %s7787_s3, 16, %s42_s16, [#allocation5]  }
  0x34   :  { %3962 = dma.done.wait [#allocation3], 256  }
  0x35   :  { %3963 = vsyncadd [#allocation3], 4294967040 }
  0x36   :  { %3964 = dma.done.wait [#allocation5], 32  }
  0x37   :  { %3965 = vsyncadd [#allocation5], 4294967264  ;;  %vm1051_vm0 = vcmask 1043456   ;;  %vm1052_vm1 = vcmask 1044480   ;;  %v3971_v0 = vmov 65535   ;;  %vm756_vm2 = vcmask 203776  }
  0x38   :  { %v1053_v1 = vsel %vm1051_vm0, 4294967295, %v3971_v0  ;;  %v3794_v2 = vld [vmem:[#allocation2] sm:$0xff]   ;;  %v3795_v4 = vld [vmem:[#allocation2 + $0x8] sm:$0x1f]   ;;  %v3798_v8 = vld [vmem:[%s7784_s0 + $0x10] sm:$0xff]  }
  0x39   :  { %v1054_v3 = vsel %vm1052_vm1, %v1053_v1, 0  ;;  %3584 = vmatprep.subr.bf16.mxu0 %v3794_v2  ;;  %v3796_v5 = vld [vmem:[%s7784_s0] sm:$0xff]   ;;  %3784 = vmatprep.subr.bf16.mxu1 %v3794_v2  ;;  %v3797_v7 = vld [vmem:[%s7784_s0 + $0x8] sm:$0xff]   ;;  %v3799_v9 = vld [vmem:[%s7784_s0 + $0x18] sm:$0xff]  }
  0x3a   :  { %3585 = vmatpush3.bf16.msra.mxu0 %v3794_v2  ;;  %v1056_v6 = vand.u32 %v3795_v4, %v1054_v3  ;;  %3786 = vmatpush3.bf16.msra.mxu1 %v3794_v2  ;;  %v3800_v10 = vld [vmem:[%s7784_s0 + $0x20] sm:$0xff]   ;;  %v3801_v11 = vld [vmem:[%s7784_s0 + $0x28] sm:$0xff]   ;;  %v3802_v12 = vld [vmem:[%s7784_s0 + $0x30] sm:$0xff]  }
  0x3b   :  { %3588 = vmatprep.mubr.msk.bf16.mxu0 %vm756_vm2, %v3796_v5  ;;  %v3803_v13 = vld [vmem:[%s7784_s0 + $0x38] sm:$0xff]   ;;  %v3804_v14 = vld [vmem:[%s7784_s0 + $0x40] sm:$0xff]   ;;  %v3805_v15 = vld [vmem:[%s7784_s0 + $0x48] sm:$0xff]  }
  0x3c   :  { %3586 = vmatprep.subr.bf16.mxu0 %v1056_v6  ;;  %3785 = vmatprep.subr.bf16.mxu1 %v1056_v6  ;;  %v3806_v16 = vld [vmem:[%s7784_s0 + $0x50] sm:$0xff]   ;;  %v3807_v17 = vld [vmem:[%s7784_s0 + $0x58] sm:$0xff]   ;;  %v3808_v18 = vld [vmem:[%s7784_s0 + $0x60] sm:$0xff]  }
  0x3d   :  { %v3809_v19 = vld [vmem:[%s7784_s0 + $0x68] sm:$0xff]   ;;  %v3810_v20 = vld [vmem:[%s7784_s0 + $0x70] sm:$0xff]   ;;  %v3811_v21 = vld [vmem:[%s7784_s0 + $0x78] sm:$0xff]  }
  0x3e   :  { %3587 = vmatpush3.bf16.msra.mxu0 %v1056_v6  ;;  %3787 = vmatpush3.bf16.msra.mxu1 %v1056_v6  ;;  %v3812_v22 = vld [vmem:[%s7784_s0 + $0x80] sm:$0xff]   ;;  %v3813_v23 = vld [vmem:[%s7784_s0 + $0x88] sm:$0xff]   ;;  %v3814_v24 = vld [vmem:[%s7784_s0 + $0x90] sm:$0xff]  }
  0x3f   :  { %v3846_v25 = vld [vmem:[%s7784_s0 + $0x190] sm:$0xff]   ;;  %v3847_v26 = vld [vmem:[%s7784_s0 + $0x198] sm:$0xff]   ;;  %v3848_v27 = vld [vmem:[%s7784_s0 + $0x1a0] sm:$0xff]  }
  0x40   :  { %v3815_v28 = vld [vmem:[%s7784_s0 + $0x98] sm:$0xff]   ;;  %3688 = vmatprep.mubr.msk.bf16.mxu1 %vm756_vm2, %v3846_v25  ;;  %v3816_v29 = vld [vmem:[%s7784_s0 + $0xa0] sm:$0xff]   ;;  %v3849_v30 = vld [vmem:[%s7784_s0 + $0x1a8] sm:$0xff]  }
  0x41   :  { %3589 = vmatmul.mubr.msk.bf16.vlgmr.msra.gmra.mrb[0].mxu0 %vm756_vm2, %v3797_v7  ;;  %3689 = vmatmul.mubr.msk.bf16.vlgmr.msra.gmra.mrb[0].mxu1 %vm756_vm2, %v3847_v26  ;;  %v3817_v31 = vld [vmem:[%s7784_s0 + $0xa8] sm:$0xff]   ;;  %v3818_v32 = vld [vmem:[%s7784_s0 + $0xb0] sm:$0xff]   ;;  %v3851_v34 = vld [vmem:[%s7784_s0 + $0x1b8] sm:$0xff]  }
  0x42   :  { %3592 = vmatprep.mubr.msk.bf16.mxu0 %vm756_vm2, %v3798_v8  ;;  %3692 = vmatprep.mubr.msk.bf16.mxu1 %vm756_vm2, %v3848_v27  ;;  %v3850_v33 = vld [vmem:[%s7784_s0 + $0x1b0] sm:$0xff]   ;;  %v3819_v35 = vld [vmem:[%s7784_s0 + $0xb8] sm:$0xff]   ;;  %v3820_v36 = vld [vmem:[%s7784_s0 + $0xc0] sm:$0xff]  }
  0x43   :  { %v3852_v37 = vld [vmem:[%s7784_s0 + $0x1c0] sm:$0xff]   ;;  %v3853_v38 = vld [vmem:[%s7784_s0 + $0x1c8] sm:$0xff]   ;;  %v3822_v40 = vld [vmem:[%s7784_s0 + $0xd0] sm:$0xff]  }
  0x44   :  { %v3821_v39 = vld [vmem:[%s7784_s0 + $0xc8] sm:$0xff]   ;;  %v3854_v41 = vld [vmem:[%s7784_s0 + $0x1d0] sm:$0xff]   ;;  %v3855_v42 = vld [vmem:[%s7784_s0 + $0x1d8] sm:$0xff]  }
  0x45   :  { %v3823_v43 = vld [vmem:[%s7784_s0 + $0xd8] sm:$0xff]   ;;  %v3824_v44 = vld [vmem:[%s7784_s0 + $0xe0] sm:$0xff]   ;;  %v3857_v46 = vld [vmem:[%s7784_s0 + $0x1e8] sm:$0xff]  }
  0x46   :  { %v3856_v45 = vld [vmem:[%s7784_s0 + $0x1e0] sm:$0xff]   ;;  %v3825_v47 = vld [vmem:[%s7784_s0 + $0xe8] sm:$0xff]   ;;  %v3826_v48 = vld [vmem:[%s7784_s0 + $0xf0] sm:$0xff]  }
  0x47   :  { %v3858_v49 = vld [vmem:[%s7784_s0 + $0x1f0] sm:$0xff]   ;;  %v3859_v50 = vld [vmem:[%s7784_s0 + $0x1f8] sm:$0xff]   ;;  %v3828_v52 = vld [vmem:[%s7784_s0 + $0x100] sm:$0xff]  }
  0x48   :  { %v3827_v51 = vld [vmem:[%s7784_s0 + $0xf8] sm:$0xff]   ;;  %v3860_v53 = vld [vmem:[%s7784_s0 + $0x200] sm:$0xff]   ;;  %v3861_v54 = vld [vmem:[%s7784_s0 + $0x208] sm:$0xff]  }
  0x49   :  { %3593 = vmatmul.mubr.msk.bf16.gmra.mrb[4].mxu0 %vm756_vm2, %v3799_v9  ;;  %3693 = vmatmul.mubr.msk.bf16.gmra.mrb[4].mxu1 %vm756_vm2, %v3849_v30  ;;  %v3829_v55 = vld [vmem:[%s7784_s0 + $0x108] sm:$0xff]   ;;  %v3830_v56 = vld [vmem:[%s7784_s0 + $0x110] sm:$0xff]   ;;  %v3863_v58 = vld [vmem:[%s7784_s0 + $0x218] sm:$0xff]  }
  0x4a   :  { %3596 = vmatprep.mubr.msk.bf16.mxu0 %vm756_vm2, %v3800_v10  ;;  %3696 = vmatprep.mubr.msk.bf16.mxu1 %vm756_vm2, %v3850_v33  ;;  %v3862_v57 = vld [vmem:[%s7784_s0 + $0x210] sm:$0xff]   ;;  %v3831_v59 = vld [vmem:[%s7784_s0 + $0x118] sm:$0xff]   ;;  %v3832_v60 = vld [vmem:[%s7784_s0 + $0x120] sm:$0xff]  }
  0x4b   :  { %v3864_v61 = vld [vmem:[%s7784_s0 + $0x220] sm:$0xff]   ;;  %v3865_v62 = vld [vmem:[%s7784_s0 + $0x228] sm:$0xff]   ;;  %v3834_v0 = vld [vmem:[%s7784_s0 + $0x130] sm:$0xff]  }
  0x4c   :  { %v3833_v63 = vld [vmem:[%s7784_s0 + $0x128] sm:$0xff]   ;;  %v3866_v1 = vld [vmem:[%s7784_s0 + $0x230] sm:$0xff]   ;;  %v3867_v2 = vld [vmem:[%s7784_s0 + $0x238] sm:$0xff]  }
  0x4d   :  { %v3835_v3 = vld [vmem:[%s7784_s0 + $0x138] sm:$0xff]   ;;  %v3836_v4 = vld [vmem:[%s7784_s0 + $0x140] sm:$0xff]   ;;  %v3869_v6 = vld [vmem:[%s7784_s0 + $0x248] sm:$0xff]  }
  0x4e   :  { %v3868_v5 = vld [vmem:[%s7784_s0 + $0x240] sm:$0xff]   ;;  %v3837_v7 = vld [vmem:[%s7784_s0 + $0x148] sm:$0xff]   ;;  %v3838_v8 = vld [vmem:[%s7784_s0 + $0x150] sm:$0xff]  }
  0x4f   :  { %v3870_v9 = vld [vmem:[%s7784_s0 + $0x250] sm:$0xff]   ;;  %v3871_v10 = vld [vmem:[%s7784_s0 + $0x258] sm:$0xff]   ;;  %v3880_v26 = vld [vmem:[%s7784_s0 + $0x2a0] sm:$0xff]  }
  0x50   :  { %v3879_v25 = vld [vmem:[%s7784_s0 + $0x298] sm:$0xff]   ;;  %v3881_v27 = vld [vmem:[%s7784_s0 + $0x2a8] sm:$0xff]  }
  0x51   :  { %3597 = vmatmul.mubr.msk.bf16.gmra.mrb[8].mxu0 %vm756_vm2, %v3801_v11  ;;  %3697 = vmatmul.mubr.msk.bf16.gmra.mrb[8].mxu1 %vm756_vm2, %v3851_v34  ;;  %v3839_v11 = vld [vmem:[%s7784_s0 + $0x158] sm:$0xff]  }
  0x52   :  { %3600 = vmatprep.mubr.msk.bf16.mxu0 %vm756_vm2, %v3802_v12  ;;  %3700 = vmatprep.mubr.msk.bf16.mxu1 %vm756_vm2, %v3852_v37  ;;  %v3840_v12 = vld [vmem:[%s7784_s0 + $0x160] sm:$0xff]   ;;  %v3883_v30 = vld [vmem:[%s7784_s0 + $0x2b8] sm:$0xff]  }
  0x59   :  { %3601 = vmatmul.mubr.msk.bf16.gmra.mrb[12].mxu0 %vm756_vm2, %v3803_v13  ;;  %3701 = vmatmul.mubr.msk.bf16.gmra.mrb[12].mxu1 %vm756_vm2, %v3853_v38  ;;  %v3872_v13 = vld [vmem:[%s7784_s0 + $0x260] sm:$0xff]  }
  0x5a   :  { %3604 = vmatprep.mubr.msk.bf16.mxu0 %vm756_vm2, %v3804_v14  ;;  %3704 = vmatprep.mubr.msk.bf16.mxu1 %vm756_vm2, %v3854_v41  ;;  %v3873_v14 = vld [vmem:[%s7784_s0 + $0x268] sm:$0xff]  }
  0x61   :  { %3605 = vmatmul.mubr.msk.bf16.gmra.mrb[16].mxu0 %vm756_vm2, %v3805_v15  ;;  %3705 = vmatmul.mubr.msk.bf16.gmra.mrb[16].mxu1 %vm756_vm2, %v3855_v42  ;;  %v3841_v15 = vld [vmem:[%s7784_s0 + $0x168] sm:$0xff]  }
  0x62   :  { %3608 = vmatprep.mubr.msk.bf16.mxu0 %vm756_vm2, %v3806_v16  ;;  %3708 = vmatprep.mubr.msk.bf16.mxu1 %vm756_vm2, %v3856_v45  ;;  %v3842_v16 = vld [vmem:[%s7784_s0 + $0x170] sm:$0xff]   ;;  %v3885_v45 = vld [vmem:[%s7784_s0 + $0x2c8] sm:$0xff]  }
  0x69   :  { %3609 = vmatmul.mubr.msk.bf16.gmra.mrb[20].mxu0 %vm756_vm2, %v3807_v17  ;;  %3709 = vmatmul.mubr.msk.bf16.gmra.mrb[20].mxu1 %vm756_vm2, %v3857_v46  ;;  %v3874_v17 = vld [vmem:[%s7784_s0 + $0x270] sm:$0xff]  }
  0x6a   :  { %3612 = vmatprep.mubr.msk.bf16.mxu0 %vm756_vm2, %v3808_v18  ;;  %3712 = vmatprep.mubr.msk.bf16.mxu1 %vm756_vm2, %v3858_v49  ;;  %v3875_v18 = vld [vmem:[%s7784_s0 + $0x278] sm:$0xff]  }
  0x71   :  { %3613 = vmatmul.mubr.msk.bf16.gmra.mrb[24].mxu0 %vm756_vm2, %v3809_v19  ;;  %3713 = vmatmul.mubr.msk.bf16.gmra.mrb[24].mxu1 %vm756_vm2, %v3859_v50  ;;  %v3843_v19 = vld [vmem:[%s7784_s0 + $0x178] sm:$0xff]  }
  0x72   :  { %3616 = vmatprep.mubr.msk.bf16.mxu0 %vm756_vm2, %v3810_v20  ;;  %3716 = vmatprep.mubr.msk.bf16.mxu1 %vm756_vm2, %v3860_v53  ;;  %v3844_v20 = vld [vmem:[%s7784_s0 + $0x180] sm:$0xff]  }
  0x79   :  { %3617 = vmatmul.mubr.msk.bf16.gmra.mrb[28].mxu0 %vm756_vm2, %v3811_v21  ;;  %3717 = vmatmul.mubr.msk.bf16.gmra.mrb[28].mxu1 %vm756_vm2, %v3861_v54  ;;  %v3876_v21 = vld [vmem:[%s7784_s0 + $0x280] sm:$0xff]  }
  0x7a   :  { %3620 = vmatprep.mubr.msk.bf16.mxu0 %vm756_vm2, %v3812_v22  ;;  %3720 = vmatprep.mubr.msk.bf16.mxu1 %vm756_vm2, %v3862_v57  ;;  %v3877_v22 = vld [vmem:[%s7784_s0 + $0x288] sm:$0xff]  }
  0x81   :  { %3621 = vmatmul.mubr.msk.bf16.gmra.mrb[32].mxu0 %vm756_vm2, %v3813_v23  ;;  %3721 = vmatmul.mubr.msk.bf16.gmra.mrb[32].mxu1 %vm756_vm2, %v3863_v58  ;;  %v3845_v23 = vld [vmem:[%s7784_s0 + $0x188] sm:$0xff]   ;;  %v3886_v58 = vld [vmem:[%s7784_s0 + $0x2d0] sm:$0xff]  }
  0x82   :  { %3624 = vmatprep.mubr.msk.bf16.mxu0 %vm756_vm2, %v3814_v24  ;;  %3724 = vmatprep.mubr.msk.bf16.mxu1 %vm756_vm2, %v3864_v61  ;;  %v3878_v24 = vld [vmem:[%s7784_s0 + $0x290] sm:$0xff]  }
  0x89   :  { %3625 = vmatmul.mubr.msk.bf16.gmra.mrb[36].mxu0 %vm756_vm2, %v3815_v28  ;;  %3725 = vmatmul.mubr.msk.bf16.gmra.mrb[36].mxu1 %vm756_vm2, %v3865_v62  ;;  %v3882_v28 = vld [vmem:[%s7784_s0 + $0x2b0] sm:$0xff]  }
  0x8a   :  { %3628 = vmatprep.mubr.msk.bf16.mxu0 %vm756_vm2, %v3816_v29  ;;  %3728 = vmatprep.mubr.msk.bf16.mxu1 %vm756_vm2, %v3866_v1 }
  0x91   :  { %3629 = vmatmul.mubr.msk.bf16.gmra.mrb[40].mxu0 %vm756_vm2, %v3817_v31  ;;  %3729 = vmatmul.mubr.msk.bf16.gmra.mrb[40].mxu1 %vm756_vm2, %v3867_v2 }
  0x92   :  { %3632 = vmatprep.mubr.msk.bf16.mxu0 %vm756_vm2, %v3818_v32  ;;  %3732 = vmatprep.mubr.msk.bf16.mxu1 %vm756_vm2, %v3868_v5 }
  0x99   :  { %3633 = vmatmul.mubr.msk.bf16.gmra.mrb[44].mxu0 %vm756_vm2, %v3819_v35  ;;  %3733 = vmatmul.mubr.msk.bf16.gmra.mrb[44].mxu1 %vm756_vm2, %v3869_v6 }
  0x9a   :  { %3636 = vmatprep.mubr.msk.bf16.mxu0 %vm756_vm2, %v3820_v36  ;;  %3736 = vmatprep.mubr.msk.bf16.mxu1 %vm756_vm2, %v3870_v9 }
  0xa1   :  { %3637 = vmatmul.mubr.msk.bf16.gmra.mrb[48].mxu0 %vm756_vm2, %v3821_v39  ;;  %3737 = vmatmul.mubr.msk.bf16.gmra.mrb[48].mxu1 %vm756_vm2, %v3871_v10 }
  0xa2   :  { %3640 = vmatprep.mubr.msk.bf16.mxu0 %vm756_vm2, %v3822_v40  ;;  %3740 = vmatprep.mubr.msk.bf16.mxu1 %vm756_vm2, %v3872_v13  ;;  %v3884_v40 = vld [vmem:[%s7784_s0 + $0x2c0] sm:$0xff]  }
  0xa9   :  { %3641 = vmatmul.mubr.msk.bf16.gmra.mrb[52].mxu0 %vm756_vm2, %v3823_v43  ;;  %3741 = vmatmul.mubr.msk.bf16.gmra.mrb[52].mxu1 %vm756_vm2, %v3873_v14 }
  0xaa   :  { %3644 = vmatprep.mubr.msk.bf16.mxu0 %vm756_vm2, %v3824_v44  ;;  %3744 = vmatprep.mubr.msk.bf16.mxu1 %vm756_vm2, %v3874_v17  ;;  %v3889_v17 = vld [vmem:[%s7784_s0 + $0x2e8] sm:$0xff]  }
  0xb1   :  { %3645 = vmatmul.mubr.msk.bf16.gmra.mrb[56].mxu0 %vm756_vm2, %v3825_v47  ;;  %3745 = vmatmul.mubr.msk.bf16.gmra.mrb[56].mxu1 %vm756_vm2, %v3875_v18 }
  0xb2   :  { %3648 = vmatprep.mubr.msk.bf16.mxu0 %vm756_vm2, %v3826_v48  ;;  %3748 = vmatprep.mubr.msk.bf16.mxu1 %vm756_vm2, %v3876_v21 }
  0xb9   :  { %3649 = vmatmul.mubr.msk.bf16.gmra.mrb[60].mxu0 %vm756_vm2, %v3827_v51  ;;  %3749 = vmatmul.mubr.msk.bf16.gmra.mrb[60].mxu1 %vm756_vm2, %v3877_v22 }
  0xba   :  { %3652 = vmatprep.mubr.msk.bf16.mxu0 %vm756_vm2, %v3828_v52  ;;  %3752 = vmatprep.mubr.msk.bf16.mxu1 %vm756_vm2, %v3878_v24 }
  0xc1   :  { %3653 = vmatmul.mubr.msk.bf16.gmra.mrb[64].mxu0 %vm756_vm2, %v3829_v55  ;;  %3753 = vmatmul.mubr.msk.bf16.gmra.mrb[64].mxu1 %vm756_vm2, %v3879_v25 }
  0xc2   :  { %3656 = vmatprep.mubr.msk.bf16.mxu0 %vm756_vm2, %v3830_v56  ;;  %3756 = vmatprep.mubr.msk.bf16.mxu1 %vm756_vm2, %v3880_v26 }
  0xc9   :  { %3657 = vmatmul.mubr.msk.bf16.gmra.mrb[68].mxu0 %vm756_vm2, %v3831_v59  ;;  %3757 = vmatmul.mubr.msk.bf16.gmra.mrb[68].mxu1 %vm756_vm2, %v3881_v27 }
  0xca   :  { %3660 = vmatprep.mubr.msk.bf16.mxu0 %vm756_vm2, %v3832_v60  ;;  %3760 = vmatprep.mubr.msk.bf16.mxu1 %vm756_vm2, %v3882_v28 }
  0xd1   :  { %3661 = vmatmul.mubr.msk.bf16.gmra.mrb[72].mxu0 %vm756_vm2, %v3833_v63  ;;  %3761 = vmatmul.mubr.msk.bf16.gmra.mrb[72].mxu1 %vm756_vm2, %v3883_v30  ;;  %v3887_v63 = vld [vmem:[%s7784_s0 + $0x2d8] sm:$0xff]  }
  0xd2   :  { %3664 = vmatprep.mubr.msk.bf16.mxu0 %vm756_vm2, %v3834_v0  ;;  %3764 = vmatprep.mubr.msk.bf16.mxu1 %vm756_vm2, %v3884_v40 }
  0xd9   :  { %3665 = vmatmul.mubr.msk.bf16.gmra.mrb[76].mxu0 %vm756_vm2, %v3835_v3  ;;  %3765 = vmatmul.mubr.msk.bf16.gmra.mrb[76].mxu1 %vm756_vm2, %v3885_v45 }
  0xda   :  { %3668 = vmatprep.mubr.msk.bf16.mxu0 %vm756_vm2, %v3836_v4  ;;  %3768 = vmatprep.mubr.msk.bf16.mxu1 %vm756_vm2, %v3886_v58 }
  0xe1   :  { %3669 = vmatmul.mubr.msk.bf16.gmra.mrb[80].mxu0 %vm756_vm2, %v3837_v7  ;;  %3769 = vmatmul.mubr.msk.bf16.gmra.mrb[80].mxu1 %vm756_vm2, %v3887_v63 }
  0xe2   :  { %3672 = vmatprep.mubr.msk.bf16.mxu0 %vm756_vm2, %v3838_v8 }
  0xe9   :  { %3673 = vmatmul.mubr.msk.bf16.gmra.mrb[84].mxu0 %vm756_vm2, %v3839_v11 }
  0xea   :  { %3676 = vmatprep.mubr.msk.bf16.mxu0 %vm756_vm2, %v3840_v12  ;;  %v3888_v12 = vld [vmem:[%s7784_s0 + $0x2e0] sm:$0xff]  }
  0xeb   :  { %3772 = vmatprep.mubr.msk.bf16.mxu1 %vm756_vm2, %v3888_v12 }
  0xec   :  { %3773 = vmatmul.mubr.msk.bf16.gmra.mrb[84].mxu1 %vm756_vm2, %v3889_v17 }
  0xf1   :  { %3677 = vmatmul.mubr.msk.bf16.gmra.mrb[88].mxu0 %vm756_vm2, %v3841_v15 }
  0xf2   :  { %3680 = vmatprep.mubr.msk.bf16.mxu0 %vm756_vm2, %v3842_v16 }
  0xf9   :  { %3681 = vmatmul.mubr.msk.bf16.gmra.mrb[92].mxu0 %vm756_vm2, %v3843_v19 }
  0xfa   :  { %3684 = vmatprep.mubr.msk.bf16.mxu0 %vm756_vm2, %v3844_v20 }
 0x101   :  { %3685 = vmatmul.mubr.msk.bf16.gmra.mrb[96].mxu0 %vm756_vm2, %v3845_v23 }
 0x114   :  { %v4387_v29 = vpop.f32.mrb[0].mxu0 }
 0x115   :  { %7965 = vst [vmem:[#allocation9_spill] sm:$0xff] %v4387_v29  ;;  %v4392_v31 = vpop.f32.mrb[1].mxu0  ;;  %v2079_v37 = vmul.f32 %v4387_v29, %v4387_v29 }
 0x116   :  { %7966 = vst [vmem:[#allocation10_spill] sm:$0xff] %v4392_v31  ;;  %v4395_v32 = vpop.f32.mrb[2].mxu0  ;;  %v2077_v34 = vmul.f32 %v4392_v31, %v4392_v31 }
 0x117   :  { %7967 = vst [vmem:[#allocation11_spill] sm:$0xff] %v4395_v32  ;;  %v4398_v33 = vpop.f32.mrb[3].mxu0  ;;  %v2080_v41 = vmul.f32 %v4395_v32, %v4395_v32 }
 0x118   :  { %7968 = vst [vmem:[#allocation12_spill] sm:$0xff] %v4398_v33  ;;  %v1875_v35 = vadd.f32 %v4398_v33, %v4392_v31  ;;  %v2078_v36 = vmul.f32 %v4398_v33, %v4398_v33 }
 0x11a   :  { %v1876_v38 = vadd.f32 %v4387_v29, %v1875_v35  ;;  %v2273_v39 = vadd.f32 %v2078_v36, %v2077_v34  ;;  %v3890_v34 = vld [vmem:[%s7784_s0 + $0x2f0] sm:$0xff]  }
 0x11b   :  { %3776 = vmatprep.mubr.msk.bf16.mxu1 %vm756_vm2, %v3890_v34 }
 0x11c   :  { %v1877_v42 = vadd.f32 %v4395_v32, %v1876_v38  ;;  %v2274_v43 = vadd.f32 %v2273_v39, %v2079_v37  ;;  %v4415_v44 = vpop.f32.mrb[4].mxu0  ;;  %v3891_v39 = vld [vmem:[%s7784_s0 + $0x2f8] sm:$0xff]  }
 0x11d   :  { %7969 = vst [vmem:[#allocation13_spill] sm:$0xff] %v4415_v44  ;;  %v4420_v46 = vpop.f32.mrb[5].mxu0  ;;  %v2083_v55 = vmul.f32 %v4415_v44, %v4415_v44  ;;  %3777 = vmatmul.mubr.msk.bf16.gmra.mrb[88].mxu1 %vm756_vm2, %v3891_v39 }
 0x11e   :  { %7970 = vst [vmem:[#allocation14_spill] sm:$0xff] %v4420_v46  ;;  %v2275_v47 = vadd.f32 %v2274_v43, %v2080_v41  ;;  %v1878_v48 = vadd.f32 %v1877_v42, %v4420_v46  ;;  %v2081_v49 = vmul.f32 %v4420_v46, %v4420_v46  ;;  %v4426_v50 = vpop.f32.mrb[6].mxu0 }
 0x11f   :  { %7971 = vst [vmem:[#allocation15_spill] sm:$0xff] %v4426_v50  ;;  %v4429_v51 = vpop.f32.mrb[7].mxu0  ;;  %v2084_v59 = vmul.f32 %v4426_v50, %v4426_v50 }
 0x120   :  { %7972 = vst [vmem:[#allocation16_spill] sm:$0xff] %v4429_v51  ;;  %v2276_v52 = vadd.f32 %v2275_v47, %v2081_v49  ;;  %v1879_v53 = vadd.f32 %v1878_v48, %v4429_v51  ;;  %v2082_v54 = vmul.f32 %v4429_v51, %v4429_v51 }
 0x122   :  { %v1880_v56 = vadd.f32 %v4415_v44, %v1879_v53  ;;  %v2277_v57 = vadd.f32 %v2276_v52, %v2082_v54 }
 0x124   :  { %v1881_v60 = vadd.f32 %v4426_v50, %v1880_v56  ;;  %v2278_v61 = vadd.f32 %v2277_v57, %v2083_v55  ;;  %v4443_v62 = vpop.f32.mrb[8].mxu0  ;;  %v3892_v56 = vld [vmem:[%s7784_s0 + $0x300] sm:$0xff]  }
 0x125   :  { %7973 = vst [vmem:[#allocation17_spill] sm:$0xff] %v4443_v62  ;;  %v4448_v0 = vpop.f32.mrb[9].mxu0  ;;  %v2087_v9 = vmul.f32 %v4443_v62, %v4443_v62  ;;  %3780 = vmatprep.mubr.msk.bf16.mxu1 %vm756_vm2, %v3892_v56 }
 0x126   :  { %7974 = vst [vmem:[#allocation18_spill] sm:$0xff] %v4448_v0  ;;  %v2279_v1 = vadd.f32 %v2278_v61, %v2084_v59  ;;  %v1882_v2 = vadd.f32 %v1881_v60, %v4448_v0  ;;  %v2085_v3 = vmul.f32 %v4448_v0, %v4448_v0  ;;  %v4454_v4 = vpop.f32.mrb[10].mxu0  ;;  %v3893_v61 = vld [vmem:[%s7784_s0 + $0x308] sm:$0xff]  }
 0x127   :  { %7975 = vst [vmem:[#allocation19_spill] sm:$0xff] %v4454_v4  ;;  %v4457_v5 = vpop.f32.mrb[11].mxu0  ;;  %v2088_v13 = vmul.f32 %v4454_v4, %v4454_v4  ;;  %3781 = vmatmul.mubr.msk.bf16.gmra.mrb[92].mxu1 %vm756_vm2, %v3893_v61 }
 0x128   :  { %7976 = vst [vmem:[#allocation20_spill] sm:$0xff] %v4457_v5  ;;  %v2280_v6 = vadd.f32 %v2279_v1, %v2085_v3  ;;  %v1883_v7 = vadd.f32 %v1882_v2, %v4457_v5  ;;  %v2086_v8 = vmul.f32 %v4457_v5, %v4457_v5 }
 0x12a   :  { %v1884_v10 = vadd.f32 %v4443_v62, %v1883_v7  ;;  %v2281_v11 = vadd.f32 %v2280_v6, %v2086_v8 }
 0x12c   :  { %v1885_v14 = vadd.f32 %v4454_v4, %v1884_v10  ;;  %v2282_v15 = vadd.f32 %v2281_v11, %v2087_v9  ;;  %v4471_v16 = vpop.f32.mrb[12].mxu0 }
 0x12d   :  { %7977 = vst [vmem:[#allocation21_spill] sm:$0xff] %v4471_v16  ;;  %v4476_v18 = vpop.f32.mrb[13].mxu0  ;;  %v2091_v27 = vmul.f32 %v4471_v16, %v4471_v16 }
 0x12e   :  { %7978 = vst [vmem:[#allocation22_spill] sm:$0xff] %v4476_v18  ;;  %v2283_v19 = vadd.f32 %v2282_v15, %v2088_v13  ;;  %v1886_v20 = vadd.f32 %v1885_v14, %v4476_v18  ;;  %v2089_v21 = vmul.f32 %v4476_v18, %v4476_v18  ;;  %v4482_v22 = vpop.f32.mrb[14].mxu0 }
 0x12f   :  { %7979 = vst [vmem:[#allocation23_spill] sm:$0xff] %v4482_v22  ;;  %v4485_v23 = vpop.f32.mrb[15].mxu0  ;;  %v2092_v35 = vmul.f32 %v4482_v22, %v4482_v22 }
 0x130   :  { %7980 = vst [vmem:[#allocation24_spill] sm:$0xff] %v4485_v23  ;;  %v2284_v24 = vadd.f32 %v2283_v19, %v2089_v21  ;;  %v1887_v25 = vadd.f32 %v1886_v20, %v4485_v23  ;;  %v2090_v26 = vmul.f32 %v4485_v23, %v4485_v23 }
 0x132   :  { %v1888_v28 = vadd.f32 %v4471_v16, %v1887_v25  ;;  %v2285_v30 = vadd.f32 %v2284_v24, %v2090_v26 }
 0x134   :  { %v1889_v36 = vadd.f32 %v4482_v22, %v1888_v28  ;;  %v2286_v37 = vadd.f32 %v2285_v30, %v2091_v27  ;;  %v4499_v38 = vpop.f32.mrb[16].mxu0 }
 0x135   :  { %7981 = vst [vmem:[#allocation25_spill] sm:$0xff] %v4499_v38  ;;  %v4504_v40 = vpop.f32.mrb[17].mxu0  ;;  %v2095_v53 = vmul.f32 %v4499_v38, %v4499_v38 }
 0x136   :  { %7982 = vst [vmem:[#allocation26_spill] sm:$0xff] %v4504_v40  ;;  %v2287_v41 = vadd.f32 %v2286_v37, %v2092_v35  ;;  %v1890_v42 = vadd.f32 %v1889_v36, %v4504_v40  ;;  %v2093_v43 = vmul.f32 %v4504_v40, %v4504_v40  ;;  %v4510_v45 = vpop.f32.mrb[18].mxu0 }
 0x137   :  { %7983 = vst [vmem:[#allocation27_spill] sm:$0xff] %v4510_v45  ;;  %v4513_v47 = vpop.f32.mrb[19].mxu0  ;;  %v2096_v57 = vmul.f32 %v4510_v45, %v4510_v45 }
 0x138   :  { %7984 = vst [vmem:[#allocation28_spill] sm:$0xff] %v4513_v47  ;;  %v2288_v48 = vadd.f32 %v2287_v41, %v2093_v43  ;;  %v1891_v49 = vadd.f32 %v1890_v42, %v4513_v47  ;;  %v2094_v52 = vmul.f32 %v4513_v47, %v4513_v47 }
 0x13a   :  { %v1892_v54 = vadd.f32 %v4499_v38, %v1891_v49  ;;  %v2289_v55 = vadd.f32 %v2288_v48, %v2094_v52 }
 0x13c   :  { %v1893_v58 = vadd.f32 %v4510_v45, %v1892_v54  ;;  %v2290_v59 = vadd.f32 %v2289_v55, %v2095_v53  ;;  %v4527_v60 = vpop.f32.mrb[20].mxu0 }
 0x13d   :  { %7985 = vst [vmem:[#allocation29_spill] sm:$0xff] %v4527_v60  ;;  %v4532_v63 = vpop.f32.mrb[21].mxu0  ;;  %v2099_v11 = vmul.f32 %v4527_v60, %v4527_v60 }
 0x13e   :  { %7986 = vst [vmem:[#allocation30_spill] sm:$0xff] %v4532_v63  ;;  %v2291_v1 = vadd.f32 %v2290_v59, %v2096_v57  ;;  %v1894_v2 = vadd.f32 %v1893_v58, %v4532_v63  ;;  %v2097_v3 = vmul.f32 %v4532_v63, %v4532_v63  ;;  %v4538_v6 = vpop.f32.mrb[22].mxu0 }
 0x13f   :  { %7987 = vst [vmem:[#allocation31_spill] sm:$0xff] %v4538_v6  ;;  %v4541_v7 = vpop.f32.mrb[23].mxu0  ;;  %v2100_v14 = vmul.f32 %v4538_v6, %v4538_v6 }
 0x140   :  { %7988 = vst [vmem:[#allocation32_spill] sm:$0xff] %v4541_v7  ;;  %v2292_v8 = vadd.f32 %v2291_v1, %v2097_v3  ;;  %v1895_v9 = vadd.f32 %v1894_v2, %v4541_v7  ;;  %v2098_v10 = vmul.f32 %v4541_v7, %v4541_v7 }
 0x142   :  { %v1896_v12 = vadd.f32 %v4527_v60, %v1895_v9  ;;  %v2293_v13 = vadd.f32 %v2292_v8, %v2098_v10 }
 0x144   :  { %v1897_v15 = vadd.f32 %v4538_v6, %v1896_v12  ;;  %v2294_v17 = vadd.f32 %v2293_v13, %v2099_v11  ;;  %v4552_v19 = vpop.f32.mrb[24].mxu0 }
 0x145   :  { %7989 = vst [vmem:[#allocation33_spill] sm:$0xff] %v4552_v19  ;;  %v4554_v20 = vpop.f32.mrb[25].mxu0  ;;  %v2103_v35 = vmul.f32 %v4552_v19, %v4552_v19 }
 0x146   :  { %7990 = vst [vmem:[#allocation34_spill] sm:$0xff] %v4554_v20  ;;  %v2295_v21 = vadd.f32 %v2294_v17, %v2100_v14  ;;  %v1898_v24 = vadd.f32 %v1897_v15, %v4554_v20  ;;  %v2101_v25 = vmul.f32 %v4554_v20, %v4554_v20  ;;  %v4559_v26 = vpop.f32.mrb[26].mxu0 }
 0x147   :  { %7991 = vst [vmem:[#allocation35_spill] sm:$0xff] %v4559_v26  ;;  %v4561_v27 = vpop.f32.mrb[27].mxu0  ;;  %v2104_v39 = vmul.f32 %v4559_v26, %v4559_v26 }
 0x148   :  { %7992 = vst [vmem:[#allocation36_spill] sm:$0xff] %v4561_v27  ;;  %v2296_v28 = vadd.f32 %v2295_v21, %v2101_v25  ;;  %v1899_v30 = vadd.f32 %v1898_v24, %v4561_v27  ;;  %v2102_v34 = vmul.f32 %v4561_v27, %v4561_v27  ;;  %v4606_v25 = vpop.f32.mrb[0].mxu1 }
 0x149   :  { %8001 = vst [vmem:[#allocation45_spill] sm:$0xff] %v4606_v25 }
 0x14a   :  { %v1900_v36 = vadd.f32 %v4552_v19, %v1899_v30  ;;  %v2297_v37 = vadd.f32 %v2296_v28, %v2102_v34 }
 0x14c   :  { %v1901_v41 = vadd.f32 %v4559_v26, %v1900_v36  ;;  %v2298_v42 = vadd.f32 %v2297_v37, %v2103_v35  ;;  %v4572_v43 = vpop.f32.mrb[28].mxu0  ;;  %v4611_v35 = vpop.f32.mrb[1].mxu1 }
 0x14d   :  { %7993 = vst [vmem:[#allocation37_spill] sm:$0xff] %v4572_v43  ;;  %v4574_v48 = vpop.f32.mrb[29].mxu0  ;;  %v2107_v59 = vmul.f32 %v4572_v43, %v4572_v43  ;;  %8002 = vst [vmem:[#allocation46_spill] sm:$0xff] %v4611_v35  ;;  %v4613_v36 = vpop.f32.mrb[2].mxu1 }
 0x14e   :  { %7994 = vst [vmem:[#allocation38_spill] sm:$0xff] %v4574_v48  ;;  %v2299_v49 = vadd.f32 %v2298_v42, %v2104_v39  ;;  %v1902_v52 = vadd.f32 %v1901_v41, %v4574_v48  ;;  %v2105_v53 = vmul.f32 %v4574_v48, %v4574_v48  ;;  %v4579_v54 = vpop.f32.mrb[30].mxu0  ;;  %8003 = vst [vmem:[#allocation47_spill] sm:$0xff] %v4613_v36 }
 0x14f   :  { %7995 = vst [vmem:[#allocation39_spill] sm:$0xff] %v4579_v54  ;;  %v4581_v55 = vpop.f32.mrb[31].mxu0  ;;  %v2108_v2 = vmul.f32 %v4579_v54, %v4579_v54 }
 0x150   :  { %7996 = vst [vmem:[#allocation40_spill] sm:$0xff] %v4581_v55  ;;  %v2300_v56 = vadd.f32 %v2299_v49, %v2105_v53  ;;  %v1903_v57 = vadd.f32 %v1902_v52, %v4581_v55  ;;  %v2106_v58 = vmul.f32 %v4581_v55, %v4581_v55  ;;  %v4620_v49 = vpop.f32.mrb[3].mxu1 }
 0x151   :  { %8005 = vst [vmem:[#allocation49_spill] sm:$0xff] %v4620_v49 }
 0x152   :  { %v1904_v61 = vadd.f32 %v4572_v43, %v1903_v57  ;;  %v2301_v1 = vadd.f32 %v2300_v56, %v2106_v58 }
 0x154   :  { %v1905_v3 = vadd.f32 %v4579_v54, %v1904_v61  ;;  %v2302_v8 = vadd.f32 %v2301_v1, %v2107_v59  ;;  %v4592_v9 = vpop.f32.mrb[32].mxu0 }
 0x155   :  { %7997 = vst [vmem:[#allocation41_spill] sm:$0xff] %v4592_v9  ;;  %v4594_v10 = vpop.f32.mrb[33].mxu0  ;;  %v2111_v28 = vmul.f32 %v4592_v9, %v4592_v9 }
 0x156   :  { %7998 = vst [vmem:[#allocation42_spill] sm:$0xff] %v4594_v10  ;;  %v2303_v11 = vadd.f32 %v2302_v8, %v2108_v2  ;;  %v1906_v12 = vadd.f32 %v1905_v3, %v4594_v10  ;;  %v2109_v13 = vmul.f32 %v4594_v10, %v4594_v10  ;;  %v4599_v14 = vpop.f32.mrb[34].mxu0  ;;  %v4634_v3 = vpop.f32.mrb[4].mxu1 }
 0x157   :  { %7999 = vst [vmem:[#allocation43_spill] sm:$0xff] %v4599_v14  ;;  %v4601_v15 = vpop.f32.mrb[35].mxu0  ;;  %v2112_v37 = vmul.f32 %v4599_v14, %v4599_v14  ;;  %8009 = vst [vmem:[#allocation53_spill] sm:$0xff] %v4634_v3 }
 0x158   :  { %8000 = vst [vmem:[#allocation44_spill] sm:$0xff] %v4601_v15  ;;  %v2304_v17 = vadd.f32 %v2303_v11, %v2109_v13  ;;  %v1907_v21 = vadd.f32 %v1906_v12, %v4601_v15  ;;  %v2110_v24 = vmul.f32 %v4601_v15, %v4601_v15  ;;  %v4639_v13 = vpop.f32.mrb[5].mxu1 }
 0x159   :  { %8010 = vst [vmem:[#allocation54_spill] sm:$0xff] %v4639_v13 }
 0x15a   :  { %v1908_v30 = vadd.f32 %v4592_v9, %v1907_v21  ;;  %v2305_v34 = vadd.f32 %v2304_v17, %v2110_v24  ;;  %v4641_v17 = vpop.f32.mrb[6].mxu1 }
 0x15b   :  { %8011 = vst [vmem:[#allocation55_spill] sm:$0xff] %v4641_v17 }
 0x15c   :  { %v1909_v39 = vadd.f32 %v4599_v14, %v1908_v30  ;;  %v2306_v41 = vadd.f32 %v2305_v34, %v2111_v28  ;;  %v4618_v42 = vpop.f32.mrb[36].mxu0  ;;  %v4648_v34 = vpop.f32.mrb[7].mxu1 }
 0x15d   :  { %8004 = vst [vmem:[#allocation48_spill] sm:$0xff] %v4618_v42  ;;  %v4622_v52 = vpop.f32.mrb[37].mxu0  ;;  %v2115_v8 = vmul.f32 %v4618_v42, %v4618_v42  ;;  %8013 = vst [vmem:[#allocation57_spill] sm:$0xff] %v4648_v34 }
 0x15e   :  { %8006 = vst [vmem:[#allocation50_spill] sm:$0xff] %v4622_v52  ;;  %v2307_v53 = vadd.f32 %v2306_v41, %v2112_v37  ;;  %v1910_v56 = vadd.f32 %v1909_v39, %v4622_v52  ;;  %v2113_v57 = vmul.f32 %v4622_v52, %v4622_v52  ;;  %v4627_v58 = vpop.f32.mrb[38].mxu0 }
 0x15f   :  { %8007 = vst [vmem:[#allocation51_spill] sm:$0xff] %v4627_v58  ;;  %v4629_v59 = vpop.f32.mrb[39].mxu0  ;;  %v2116_v21 = vmul.f32 %v4627_v58, %v4627_v58 }
 0x160   :  { %8008 = vst [vmem:[#allocation52_spill] sm:$0xff] %v4629_v59  ;;  %v2308_v61 = vadd.f32 %v2307_v53, %v2113_v57  ;;  %v1911_v1 = vadd.f32 %v1910_v56, %v4629_v59  ;;  %v2114_v2 = vmul.f32 %v4629_v59, %v4629_v59 }
 0x162   :  { %v1912_v11 = vadd.f32 %v4618_v42, %v1911_v1  ;;  %v2309_v12 = vadd.f32 %v2308_v61, %v2114_v2 }
 0x164   :  { %v1913_v24 = vadd.f32 %v4627_v58, %v1912_v11  ;;  %v2310_v28 = vadd.f32 %v2309_v12, %v2115_v8  ;;  %v4646_v30 = vpop.f32.mrb[40].mxu0  ;;  %v4662_v8 = vpop.f32.mrb[8].mxu1 }
 0x165   :  { %8012 = vst [vmem:[#allocation56_spill] sm:$0xff] %v4646_v30  ;;  %v4650_v37 = vpop.f32.mrb[41].mxu0  ;;  %8017 = vst [vmem:[#allocation61_spill] sm:$0xff] %v4662_v8  ;;  %v2119_v11 = vmul.f32 %v4646_v30, %v4646_v30 }
 0x166   :  { %8014 = vst [vmem:[#allocation58_spill] sm:$0xff] %v4650_v37  ;;  %v2311_v39 = vadd.f32 %v2310_v28, %v2116_v21  ;;  %v1914_v41 = vadd.f32 %v1913_v24, %v4650_v37  ;;  %v2117_v53 = vmul.f32 %v4650_v37, %v4650_v37  ;;  %v4655_v56 = vpop.f32.mrb[42].mxu0  ;;  %v4667_v24 = vpop.f32.mrb[9].mxu1 }
 0x167   :  { %8015 = vst [vmem:[#allocation59_spill] sm:$0xff] %v4655_v56  ;;  %v4657_v57 = vpop.f32.mrb[43].mxu0  ;;  %8018 = vst [vmem:[#allocation62_spill] sm:$0xff] %v4667_v24  ;;  %v4669_v28 = vpop.f32.mrb[10].mxu1 }
 0x168   :  { %8016 = vst [vmem:[#allocation60_spill] sm:$0xff] %v4657_v57  ;;  %v2312_v61 = vadd.f32 %v2311_v39, %v2117_v53  ;;  %v1915_v1 = vadd.f32 %v1914_v41, %v4657_v57  ;;  %v2118_v2 = vmul.f32 %v4657_v57, %v4657_v57  ;;  %8019 = vst [vmem:[#allocation63_spill] sm:$0xff] %v4669_v28  ;;  %v4676_v37 = vpop.f32.mrb[11].mxu1 }
 0x169   :  { %v2120_v39 = vmul.f32 %v4655_v56, %v4655_v56  ;;  %8021 = vst [vmem:[#allocation65_spill] sm:$0xff] %v4676_v37 }
 0x16a   :  { %v1916_v12 = vadd.f32 %v4646_v30, %v1915_v1  ;;  %v2313_v21 = vadd.f32 %v2312_v61, %v2118_v2 }
 0x16c   :  { %v2314_v53 = vadd.f32 %v2313_v21, %v2119_v11  ;;  %v4673_v41 = vpop.f32.mrb[44].mxu0  ;;  %v1917_v57 = vadd.f32 %v4655_v56, %v1916_v12  ;;  %v4690_v21 = vpop.f32.mrb[12].mxu1 }
 0x16d   :  { %8020 = vst [vmem:[#allocation64_spill] sm:$0xff] %v4673_v41  ;;  %v4678_v58 = vpop.f32.mrb[45].mxu0  ;;  %8025 = vst [vmem:[#allocation69_spill] sm:$0xff] %v4690_v21  ;;  %v2123_v56 = vmul.f32 %v4673_v41, %v4673_v41 }
 0x16e   :  { %8022 = vst [vmem:[#allocation66_spill] sm:$0xff] %v4678_v58  ;;  %v1918_v42 = vadd.f32 %v1917_v57, %v4678_v58  ;;  %v2121_v61 = vmul.f32 %v4678_v58, %v4678_v58  ;;  %v2315_v1 = vadd.f32 %v2314_v53, %v2120_v39  ;;  %v4683_v2 = vpop.f32.mrb[46].mxu0  ;;  %v4695_v58 = vpop.f32.mrb[13].mxu1 }
 0x16f   :  { %8023 = vst [vmem:[#allocation67_spill] sm:$0xff] %v4683_v2  ;;  %v4685_v30 = vpop.f32.mrb[47].mxu0  ;;  %8026 = vst [vmem:[#allocation70_spill] sm:$0xff] %v4695_v58  ;;  %v4697_v39 = vpop.f32.mrb[14].mxu1  ;;  %v2124_v53 = vmul.f32 %v4683_v2, %v4683_v2 }
 0x170   :  { %8024 = vst [vmem:[#allocation68_spill] sm:$0xff] %v4685_v30  ;;  %v2316_v59 = vadd.f32 %v2315_v1, %v2121_v61  ;;  %v1919_v11 = vadd.f32 %v1918_v42, %v4685_v30  ;;  %v2122_v12 = vmul.f32 %v4685_v30, %v4685_v30  ;;  %8027 = vst [vmem:[#allocation71_spill] sm:$0xff] %v4697_v39  ;;  %v4704_v30 = vpop.f32.mrb[15].mxu1 }
 0x171   :  { %8029 = vst [vmem:[#allocation73_spill] sm:$0xff] %v4704_v30 }
 0x172   :  { %v1920_v57 = vadd.f32 %v4673_v41, %v1919_v11  ;;  %v2317_v52 = vadd.f32 %v2316_v59, %v2122_v12 }
 0x174   :  { %v2318_v61 = vadd.f32 %v2317_v52, %v2123_v56  ;;  %v4701_v42 = vpop.f32.mrb[48].mxu0  ;;  %v1921_v1 = vadd.f32 %v4683_v2, %v1920_v57  ;;  %v4718_v57 = vpop.f32.mrb[16].mxu1 }
 0x175   :  { %8028 = vst [vmem:[#allocation72_spill] sm:$0xff] %v4701_v42  ;;  %v4706_v14 = vpop.f32.mrb[49].mxu0  ;;  %8033 = vst [vmem:[#allocation77_spill] sm:$0xff] %v4718_v57  ;;  %v2127_v2 = vmul.f32 %v4701_v42, %v4701_v42 }
 0x176   :  { %8030 = vst [vmem:[#allocation74_spill] sm:$0xff] %v4706_v14  ;;  %v1922_v9 = vadd.f32 %v1921_v1, %v4706_v14  ;;  %v2125_v59 = vmul.f32 %v4706_v14, %v4706_v14  ;;  %v2319_v11 = vadd.f32 %v2318_v61, %v2124_v53  ;;  %v4711_v12 = vpop.f32.mrb[50].mxu0  ;;  %v4723_v14 = vpop.f32.mrb[17].mxu1 }
 0x177   :  { %8031 = vst [vmem:[#allocation75_spill] sm:$0xff] %v4711_v12  ;;  %v4713_v41 = vpop.f32.mrb[51].mxu0  ;;  %8034 = vst [vmem:[#allocation78_spill] sm:$0xff] %v4723_v14  ;;  %v4725_v53 = vpop.f32.mrb[18].mxu1  ;;  %v2128_v61 = vmul.f32 %v4711_v12, %v4711_v12 }
 0x178   :  { %8032 = vst [vmem:[#allocation76_spill] sm:$0xff] %v4713_v41  ;;  %v2320_v15 = vadd.f32 %v2319_v11, %v2125_v59  ;;  %v1923_v52 = vadd.f32 %v1922_v9, %v4713_v41  ;;  %v2126_v56 = vmul.f32 %v4713_v41, %v4713_v41  ;;  %8035 = vst [vmem:[#allocation79_spill] sm:$0xff] %v4725_v53  ;;  %v4732_v41 = vpop.f32.mrb[19].mxu1 }
 0x179   :  { %8037 = vst [vmem:[#allocation81_spill] sm:$0xff] %v4732_v41 }
 0x17a   :  { %v1924_v1 = vadd.f32 %v4701_v42, %v1923_v52  ;;  %v2321_v10 = vadd.f32 %v2320_v15, %v2126_v56 }
 0x17c   :  { %v2322_v59 = vadd.f32 %v2321_v10, %v2127_v2  ;;  %v4729_v9 = vpop.f32.mrb[52].mxu0  ;;  %v1925_v11 = vadd.f32 %v4711_v12, %v1924_v1  ;;  %v4746_v1 = vpop.f32.mrb[20].mxu1 }
 0x17d   :  { %8036 = vst [vmem:[#allocation80_spill] sm:$0xff] %v4729_v9  ;;  %v4734_v54 = vpop.f32.mrb[53].mxu0  ;;  %8041 = vst [vmem:[#allocation85_spill] sm:$0xff] %v4746_v1  ;;  %v2131_v12 = vmul.f32 %v4729_v9, %v4729_v9 }
 0x17e   :  { %8038 = vst [vmem:[#allocation82_spill] sm:$0xff] %v4734_v54  ;;  %v1926_v43 = vadd.f32 %v1925_v11, %v4734_v54  ;;  %v2129_v15 = vmul.f32 %v4734_v54, %v4734_v54  ;;  %v2323_v52 = vadd.f32 %v2322_v59, %v2128_v61  ;;  %v4739_v56 = vpop.f32.mrb[54].mxu0  ;;  %v4751_v54 = vpop.f32.mrb[21].mxu1 }
 0x17f   :  { %8039 = vst [vmem:[#allocation83_spill] sm:$0xff] %v4739_v56  ;;  %v4741_v42 = vpop.f32.mrb[55].mxu0  ;;  %8042 = vst [vmem:[#allocation86_spill] sm:$0xff] %v4751_v54  ;;  %v4753_v61 = vpop.f32.mrb[22].mxu1  ;;  %v2132_v59 = vmul.f32 %v4739_v56, %v4739_v56 }
 0x180   :  { %8040 = vst [vmem:[#allocation84_spill] sm:$0xff] %v4741_v42  ;;  %v2324_v55 = vadd.f32 %v2323_v52, %v2129_v15  ;;  %v1927_v10 = vadd.f32 %v1926_v43, %v4741_v42  ;;  %v2130_v2 = vmul.f32 %v4741_v42, %v4741_v42  ;;  %8043 = vst [vmem:[#allocation87_spill] sm:$0xff] %v4753_v61  ;;  %v4760_v42 = vpop.f32.mrb[23].mxu1 }
 0x181   :  { %8045 = vst [vmem:[#allocation89_spill] sm:$0xff] %v4760_v42 }
 0x182   :  { %v1928_v11 = vadd.f32 %v4729_v9, %v1927_v10  ;;  %v2325_v48 = vadd.f32 %v2324_v55, %v2130_v2 }
 0x184   :  { %v2326_v15 = vadd.f32 %v2325_v48, %v2131_v12  ;;  %v4757_v43 = vpop.f32.mrb[56].mxu0  ;;  %v1929_v52 = vadd.f32 %v4739_v56, %v1928_v11  ;;  %v4774_v11 = vpop.f32.mrb[24].mxu1 }
 0x185   :  { %8044 = vst [vmem:[#allocation88_spill] sm:$0xff] %v4757_v43  ;;  %v4762_v26 = vpop.f32.mrb[57].mxu0  ;;  %8049 = vst [vmem:[#allocation93_spill] sm:$0xff] %v4774_v11  ;;  %v2135_v56 = vmul.f32 %v4757_v43, %v4757_v43 }
 0x186   :  { %8046 = vst [vmem:[#allocation90_spill] sm:$0xff] %v4762_v26  ;;  %v1930_v19 = vadd.f32 %v1929_v52, %v4762_v26  ;;  %v2133_v55 = vmul.f32 %v4762_v26, %v4762_v26  ;;  %v2327_v10 = vadd.f32 %v2326_v15, %v2132_v59  ;;  %v4767_v2 = vpop.f32.mrb[58].mxu0  ;;  %v4779_v26 = vpop.f32.mrb[25].mxu1 }
 0x187   :  { %8047 = vst [vmem:[#allocation91_spill] sm:$0xff] %v4767_v2  ;;  %v4769_v9 = vpop.f32.mrb[59].mxu0  ;;  %v4781_v59 = vpop.f32.mrb[26].mxu1  ;;  %v2136_v15 = vmul.f32 %v4767_v2, %v4767_v2 }
 0x188   :  { %8048 = vst [vmem:[#allocation92_spill] sm:$0xff] %v4769_v9  ;;  %v2328_v27 = vadd.f32 %v2327_v10, %v2133_v55  ;;  %v1931_v48 = vadd.f32 %v1930_v19, %v4769_v9  ;;  %v2134_v12 = vmul.f32 %v4769_v9, %v4769_v9  ;;  %8050 = vst [vmem:[#allocation94_spill] sm:$0xff] %v4781_v59  ;;  %v4788_v9 = vpop.f32.mrb[27].mxu1 }
 0x189   :  { %8052 = vst [vmem:[#allocation96_spill] sm:$0xff] %v4788_v9 }
 0x18a   :  { %v1932_v52 = vadd.f32 %v4757_v43, %v1931_v48  ;;  %v2329_v20 = vadd.f32 %v2328_v27, %v2134_v12 }
 0x18c   :  { %v2330_v55 = vadd.f32 %v2329_v20, %v2135_v56  ;;  %v4785_v19 = vpop.f32.mrb[60].mxu0  ;;  %v1933_v10 = vadd.f32 %v4767_v2, %v1932_v52  ;;  %v4802_v52 = vpop.f32.mrb[28].mxu1 }
 0x18d   :  { %8051 = vst [vmem:[#allocation95_spill] sm:$0xff] %v4785_v19  ;;  %v4790_v6 = vpop.f32.mrb[61].mxu0  ;;  %v2139_v2 = vmul.f32 %v4785_v19, %v4785_v19 }
 0x18e   :  { %8053 = vst [vmem:[#allocation97_spill] sm:$0xff] %v4790_v6  ;;  %v1934_v60 = vadd.f32 %v1933_v10, %v4790_v6  ;;  %v2137_v27 = vmul.f32 %v4790_v6, %v4790_v6  ;;  %v2331_v48 = vadd.f32 %v2330_v55, %v2136_v15  ;;  %v4795_v12 = vpop.f32.mrb[62].mxu0  ;;  %v4807_v6 = vpop.f32.mrb[29].mxu1 }
 0x18f   :  { %8054 = vst [vmem:[#allocation98_spill] sm:$0xff] %v4795_v12  ;;  %v4797_v43 = vpop.f32.mrb[63].mxu0  ;;  %v4809_v15 = vpop.f32.mrb[30].mxu1  ;;  %v2140_v55 = vmul.f32 %v4795_v12, %v4795_v12 }
 0x190   :  { %8055 = vst [vmem:[#allocation99_spill] sm:$0xff] %v4797_v43  ;;  %v2332_v7 = vadd.f32 %v2331_v48, %v2137_v27  ;;  %v1935_v20 = vadd.f32 %v1934_v60, %v4797_v43  ;;  %v2138_v56 = vmul.f32 %v4797_v43, %v4797_v43  ;;  %v4816_v43 = vpop.f32.mrb[31].mxu1 }
 0x191   :  { %8057 = vst [vmem:[#allocation101_spill] sm:$0xff] %v4816_v43 }
 0x192   :  { %v1936_v10 = vadd.f32 %v4785_v19, %v1935_v20  ;;  %v2333_v63 = vadd.f32 %v2332_v7, %v2138_v56 }
 0x194   :  { %v2334_v27 = vadd.f32 %v2333_v63, %v2139_v2  ;;  %v4813_v60 = vpop.f32.mrb[64].mxu0  ;;  %v1937_v48 = vadd.f32 %v4795_v12, %v1936_v10  ;;  %v4830_v10 = vpop.f32.mrb[32].mxu1 }
 0x195   :  { %8056 = vst [vmem:[#allocation100_spill] sm:$0xff] %v4813_v60  ;;  %v4818_v45 = vpop.f32.mrb[65].mxu0  ;;  %v2143_v12 = vmul.f32 %v4813_v60, %v4813_v60 }
 0x196   :  { %8058 = vst [vmem:[#allocation102_spill] sm:$0xff] %v4818_v45  ;;  %v1938_v38 = vadd.f32 %v1937_v48, %v4818_v45  ;;  %v2141_v7 = vmul.f32 %v4818_v45, %v4818_v45  ;;  %v2335_v20 = vadd.f32 %v2334_v27, %v2140_v55  ;;  %v4823_v56 = vpop.f32.mrb[66].mxu0  ;;  %v4835_v45 = vpop.f32.mrb[33].mxu1 }
 0x197   :  { %8059 = vst [vmem:[#allocation103_spill] sm:$0xff] %v4823_v56  ;;  %v4825_v19 = vpop.f32.mrb[67].mxu0  ;;  %v4837_v55 = vpop.f32.mrb[34].mxu1  ;;  %v2144_v27 = vmul.f32 %v4823_v56, %v4823_v56 }
 0x198   :  { %8060 = vst [vmem:[#allocation104_spill] sm:$0xff] %v4825_v19  ;;  %v2336_v47 = vadd.f32 %v2335_v20, %v2141_v7  ;;  %v1939_v63 = vadd.f32 %v1938_v38, %v4825_v19  ;;  %v2142_v2 = vmul.f32 %v4825_v19, %v4825_v19  ;;  %v4844_v19 = vpop.f32.mrb[35].mxu1 }
 0x19a   :  { %v1940_v48 = vadd.f32 %v4813_v60, %v1939_v63  ;;  %v2337_v40 = vadd.f32 %v2336_v47, %v2142_v2 }
 0x19c   :  { %v2338_v7 = vadd.f32 %v2337_v40, %v2143_v12  ;;  %v4841_v38 = vpop.f32.mrb[68].mxu0  ;;  %v1941_v20 = vadd.f32 %v4823_v56, %v1940_v48  ;;  %v4858_v48 = vpop.f32.mrb[36].mxu1 }
 0x19d   :  { %8061 = vst [vmem:[#allocation105_spill] sm:$0xff] %v4841_v38  ;;  %v4846_v22 = vpop.f32.mrb[69].mxu0  ;;  %v2147_v56 = vmul.f32 %v4841_v38, %v4841_v38 }
 0x19e   :  { %8062 = vst [vmem:[#allocation106_spill] sm:$0xff] %v4846_v22  ;;  %v1942_v16 = vadd.f32 %v1941_v20, %v4846_v22  ;;  %v2145_v47 = vmul.f32 %v4846_v22, %v4846_v22  ;;  %v2339_v63 = vadd.f32 %v2338_v7, %v2144_v27  ;;  %v4851_v2 = vpop.f32.mrb[70].mxu0  ;;  %v4863_v22 = vpop.f32.mrb[37].mxu1 }
 0x19f   :  { %8063 = vst [vmem:[#allocation107_spill] sm:$0xff] %v4851_v2  ;;  %v4853_v60 = vpop.f32.mrb[71].mxu0  ;;  %v4865_v27 = vpop.f32.mrb[38].mxu1  ;;  %v2148_v7 = vmul.f32 %v4851_v2, %v4851_v2 }
 0x1a0   :  { %8064 = vst [vmem:[#allocation108_spill] sm:$0xff] %v4853_v60  ;;  %v2340_v23 = vadd.f32 %v2339_v63, %v2145_v47  ;;  %v1943_v40 = vadd.f32 %v1942_v16, %v4853_v60  ;;  %v2146_v12 = vmul.f32 %v4853_v60, %v4853_v60  ;;  %v4872_v60 = vpop.f32.mrb[39].mxu1 }
 0x1a2   :  { %v1944_v20 = vadd.f32 %v4841_v38, %v1943_v40  ;;  %v2341_v18 = vadd.f32 %v2340_v23, %v2146_v12 }
 0x1a4   :  { %v2342_v47 = vadd.f32 %v2341_v18, %v2147_v56  ;;  %v4869_v16 = vpop.f32.mrb[72].mxu0  ;;  %v1945_v63 = vadd.f32 %v4851_v2, %v1944_v20  ;;  %v4886_v20 = vpop.f32.mrb[40].mxu1 }
 0x1a5   :  { %8065 = vst [vmem:[#allocation109_spill] sm:$0xff] %v4869_v16  ;;  %v4874_v4 = vpop.f32.mrb[73].mxu0  ;;  %v2151_v2 = vmul.f32 %v4869_v16, %v4869_v16 }
 0x1a6   :  { %8066 = vst [vmem:[#allocation110_spill] sm:$0xff] %v4874_v4  ;;  %v1946_v62 = vadd.f32 %v1945_v63, %v4874_v4  ;;  %v2149_v23 = vmul.f32 %v4874_v4, %v4874_v4  ;;  %v2343_v40 = vadd.f32 %v2342_v47, %v2148_v7  ;;  %v4879_v12 = vpop.f32.mrb[74].mxu0  ;;  %v4891_v4 = vpop.f32.mrb[41].mxu1 }
 0x1a7   :  { %8067 = vst [vmem:[#allocation111_spill] sm:$0xff] %v4879_v12  ;;  %v4881_v38 = vpop.f32.mrb[75].mxu0  ;;  %v4893_v7 = vpop.f32.mrb[42].mxu1  ;;  %v2152_v47 = vmul.f32 %v4879_v12, %v4879_v12 }
 0x1a8   :  { %8068 = vst [vmem:[#allocation112_spill] sm:$0xff] %v4881_v38  ;;  %v2344_v5 = vadd.f32 %v2343_v40, %v2149_v23  ;;  %v1947_v18 = vadd.f32 %v1946_v62, %v4881_v38  ;;  %v2150_v56 = vmul.f32 %v4881_v38, %v4881_v38  ;;  %8069 = vst [vmem:[#allocation113_spill] sm:$0xff] %v4893_v7  ;;  %v4900_v38 = vpop.f32.mrb[43].mxu1 }
 0x1aa   :  { %v1948_v63 = vadd.f32 %v4869_v16, %v1947_v18  ;;  %v2345_v0 = vadd.f32 %v2344_v5, %v2150_v56 }
 0x1ac   :  { %v2346_v23 = vadd.f32 %v2345_v0, %v2151_v2  ;;  %v4897_v62 = vpop.f32.mrb[76].mxu0  ;;  %v1949_v40 = vadd.f32 %v4879_v12, %v1948_v63  ;;  %v4914_v63 = vpop.f32.mrb[44].mxu1 }
 0x1ad   :  { %8070 = vst [vmem:[#allocation114_spill] sm:$0xff] %v4897_v62  ;;  %v4902_v50 = vpop.f32.mrb[77].mxu0  ;;  %8074 = vst [vmem:[#allocation118_spill] sm:$0xff] %v4914_v63  ;;  %v2155_v12 = vmul.f32 %v4897_v62, %v4897_v62 }
 0x1ae   :  { %8071 = vst [vmem:[#allocation115_spill] sm:$0xff] %v4902_v50  ;;  %v1950_v44 = vadd.f32 %v1949_v40, %v4902_v50  ;;  %v2153_v5 = vmul.f32 %v4902_v50, %v4902_v50  ;;  %v2347_v18 = vadd.f32 %v2346_v23, %v2152_v47  ;;  %v4907_v56 = vpop.f32.mrb[78].mxu0  ;;  %v4919_v50 = vpop.f32.mrb[45].mxu1 }
 0x1af   :  { %8072 = vst [vmem:[#allocation116_spill] sm:$0xff] %v4907_v56  ;;  %v4909_v16 = vpop.f32.mrb[79].mxu0  ;;  %8075 = vst [vmem:[#allocation119_spill] sm:$0xff] %v4919_v50  ;;  %v4921_v47 = vpop.f32.mrb[46].mxu1  ;;  %v2156_v23 = vmul.f32 %v4907_v56, %v4907_v56 }
 0x1b0   :  { %8073 = vst [vmem:[#allocation117_spill] sm:$0xff] %v4909_v16  ;;  %v2348_v51 = vadd.f32 %v2347_v18, %v2153_v5  ;;  %v1951_v0 = vadd.f32 %v1950_v44, %v4909_v16  ;;  %v2154_v2 = vmul.f32 %v4909_v16, %v4909_v16  ;;  %8076 = vst [vmem:[#allocation120_spill] sm:$0xff] %v4921_v47  ;;  %v4928_v16 = vpop.f32.mrb[47].mxu1 }
 0x1b1   :  { %8078 = vst [vmem:[#allocation122_spill] sm:$0xff] %v4928_v16 }
 0x1b2   :  { %v1952_v40 = vadd.f32 %v4897_v62, %v1951_v0  ;;  %v2349_v46 = vadd.f32 %v2348_v51, %v2154_v2 }
 0x1b4   :  { %v2350_v5 = vadd.f32 %v2349_v46, %v2155_v12  ;;  %v4925_v44 = vpop.f32.mrb[80].mxu0  ;;  %v1953_v18 = vadd.f32 %v4907_v56, %v1952_v40  ;;  %v4942_v40 = vpop.f32.mrb[48].mxu1 }
 0x1b5   :  { %8077 = vst [vmem:[#allocation121_spill] sm:$0xff] %v4925_v44  ;;  %v4930_v32 = vpop.f32.mrb[81].mxu0  ;;  %8082 = vst [vmem:[#allocation126_spill] sm:$0xff] %v4942_v40  ;;  %v2159_v56 = vmul.f32 %v4925_v44, %v4925_v44 }
 0x1b6   :  { %8079 = vst [vmem:[#allocation123_spill] sm:$0xff] %v4930_v32  ;;  %v1954_v29 = vadd.f32 %v1953_v18, %v4930_v32  ;;  %v2157_v51 = vmul.f32 %v4930_v32, %v4930_v32  ;;  %v2351_v0 = vadd.f32 %v2350_v5, %v2156_v23  ;;  %v4935_v2 = vpop.f32.mrb[82].mxu0  ;;  %v4947_v32 = vpop.f32.mrb[49].mxu1 }
 0x1b7   :  { %8080 = vst [vmem:[#allocation124_spill] sm:$0xff] %v4935_v2  ;;  %v4937_v62 = vpop.f32.mrb[83].mxu0  ;;  %8083 = vst [vmem:[#allocation127_spill] sm:$0xff] %v4947_v32  ;;  %v4949_v23 = vpop.f32.mrb[50].mxu1  ;;  %v2160_v5 = vmul.f32 %v4935_v2, %v4935_v2 }
 0x1b8   :  { %8081 = vst [vmem:[#allocation125_spill] sm:$0xff] %v4937_v62  ;;  %v2352_v33 = vadd.f32 %v2351_v0, %v2157_v51  ;;  %v1955_v46 = vadd.f32 %v1954_v29, %v4937_v62  ;;  %v2158_v12 = vmul.f32 %v4937_v62, %v4937_v62  ;;  %8084 = vst [vmem:[#allocation128_spill] sm:$0xff] %v4949_v23  ;;  %v4956_v62 = vpop.f32.mrb[51].mxu1 }
 0x1b9   :  { %8086 = vst [vmem:[#allocation130_spill] sm:$0xff] %v4956_v62 }
 0x1ba   :  { %v1956_v18 = vadd.f32 %v4925_v44, %v1955_v46  ;;  %v2353_v31 = vadd.f32 %v2352_v33, %v2158_v12 }
 0x1bc   :  { %v2354_v51 = vadd.f32 %v2353_v31, %v2159_v56  ;;  %v4953_v29 = vpop.f32.mrb[84].mxu0  ;;  %v1957_v0 = vadd.f32 %v4935_v2, %v1956_v18  ;;  %v4970_v18 = vpop.f32.mrb[52].mxu1 }
 0x1bd   :  { %8085 = vst [vmem:[#allocation129_spill] sm:$0xff] %v4953_v29  ;;  %v4958_v40 = vpop.f32.mrb[85].mxu0  ;;  %8090 = vst [vmem:[#allocation134_spill] sm:$0xff] %v4970_v18  ;;  %v2163_v2 = vmul.f32 %v4953_v29, %v4953_v29 }
 0x1be   :  { %8087 = vst [vmem:[#allocation131_spill] sm:$0xff] %v4958_v40  ;;  %v1958_v47 = vadd.f32 %v1957_v0, %v4958_v40  ;;  %v2161_v33 = vmul.f32 %v4958_v40, %v4958_v40  ;;  %v2355_v46 = vadd.f32 %v2354_v51, %v2160_v5  ;;  %v4963_v12 = vpop.f32.mrb[86].mxu0  ;;  %v4975_v40 = vpop.f32.mrb[53].mxu1 }
 0x1bf   :  { %8088 = vst [vmem:[#allocation132_spill] sm:$0xff] %v4963_v12  ;;  %v4965_v44 = vpop.f32.mrb[87].mxu0  ;;  %8091 = vst [vmem:[#allocation135_spill] sm:$0xff] %v4975_v40  ;;  %v4977_v5 = vpop.f32.mrb[54].mxu1  ;;  %v2164_v51 = vmul.f32 %v4963_v12, %v4963_v12 }
 0x1c0   :  { %8089 = vst [vmem:[#allocation133_spill] sm:$0xff] %v4965_v44  ;;  %v2356_v23 = vadd.f32 %v2355_v46, %v2161_v33  ;;  %v1959_v31 = vadd.f32 %v1958_v47, %v4965_v44  ;;  %v2162_v56 = vmul.f32 %v4965_v44, %v4965_v44  ;;  %8092 = vst [vmem:[#allocation136_spill] sm:$0xff] %v4977_v5  ;;  %v4984_v44 = vpop.f32.mrb[55].mxu1 }
 0x1c1   :  { %8094 = vst [vmem:[#allocation138_spill] sm:$0xff] %v4984_v44 }
 0x1c2   :  { %v1960_v0 = vadd.f32 %v4953_v29, %v1959_v31  ;;  %v2357_v62 = vadd.f32 %v2356_v23, %v2162_v56 }
 0x1c4   :  { %v2358_v33 = vadd.f32 %v2357_v62, %v2163_v2  ;;  %v4981_v47 = vpop.f32.mrb[88].mxu0  ;;  %v1961_v46 = vadd.f32 %v4963_v12, %v1960_v0  ;;  %v4998_v0 = vpop.f32.mrb[56].mxu1 }
 0x1c5   :  { %8093 = vst [vmem:[#allocation137_spill] sm:$0xff] %v4981_v47  ;;  %v4986_v18 = vpop.f32.mrb[89].mxu0  ;;  %8098 = vst [vmem:[#allocation142_spill] sm:$0xff] %v4998_v0  ;;  %v2167_v12 = vmul.f32 %v4981_v47, %v4981_v47 }
 0x1c6   :  { %8095 = vst [vmem:[#allocation139_spill] sm:$0xff] %v4986_v18  ;;  %v1962_v32 = vadd.f32 %v1961_v46, %v4986_v18  ;;  %v2165_v23 = vmul.f32 %v4986_v18, %v4986_v18  ;;  %v2359_v31 = vadd.f32 %v2358_v33, %v2164_v51  ;;  %v4991_v56 = vpop.f32.mrb[90].mxu0  ;;  %v5003_v18 = vpop.f32.mrb[57].mxu1 }
 0x1c7   :  { %8096 = vst [vmem:[#allocation140_spill] sm:$0xff] %v4991_v56  ;;  %v4993_v29 = vpop.f32.mrb[91].mxu0  ;;  %8099 = vst [vmem:[#allocation143_spill] sm:$0xff] %v5003_v18  ;;  %v5005_v51 = vpop.f32.mrb[58].mxu1  ;;  %v2168_v33 = vmul.f32 %v4991_v56, %v4991_v56 }
 0x1c8   :  { %8097 = vst [vmem:[#allocation141_spill] sm:$0xff] %v4993_v29  ;;  %v2360_v5 = vadd.f32 %v2359_v31, %v2165_v23  ;;  %v1963_v62 = vadd.f32 %v1962_v32, %v4993_v29  ;;  %v2166_v2 = vmul.f32 %v4993_v29, %v4993_v29  ;;  %8100 = vst [vmem:[#allocation144_spill] sm:$0xff] %v5005_v51  ;;  %v5012_v29 = vpop.f32.mrb[59].mxu1 }
 0x1c9   :  { %8102 = vst [vmem:[#allocation146_spill] sm:$0xff] %v5012_v29 }
 0x1ca   :  { %v1964_v46 = vadd.f32 %v4981_v47, %v1963_v62  ;;  %v2361_v44 = vadd.f32 %v2360_v5, %v2166_v2 }
 0x1cc   :  { %v2362_v23 = vadd.f32 %v2361_v44, %v2167_v12  ;;  %v5009_v32 = vpop.f32.mrb[92].mxu0  ;;  %v1965_v31 = vadd.f32 %v4991_v56, %v1964_v46  ;;  %v5026_v46 = vpop.f32.mrb[60].mxu1 }
 0x1cd   :  { %8101 = vst [vmem:[#allocation145_spill] sm:$0xff] %v5009_v32  ;;  %v5014_v0 = vpop.f32.mrb[93].mxu0  ;;  %8106 = vst [vmem:[#allocation150_spill] sm:$0xff] %v5026_v46  ;;  %v2171_v56 = vmul.f32 %v5009_v32, %v5009_v32 }
 0x1ce   :  { %8103 = vst [vmem:[#allocation147_spill] sm:$0xff] %v5014_v0  ;;  %v1966_v40 = vadd.f32 %v1965_v31, %v5014_v0  ;;  %v2169_v5 = vmul.f32 %v5014_v0, %v5014_v0  ;;  %v2363_v62 = vadd.f32 %v2362_v23, %v2168_v33  ;;  %v5019_v2 = vpop.f32.mrb[94].mxu0  ;;  %v5031_v0 = vpop.f32.mrb[61].mxu1 }
 0x1cf   :  { %8104 = vst [vmem:[#allocation148_spill] sm:$0xff] %v5019_v2  ;;  %v5021_v47 = vpop.f32.mrb[95].mxu0  ;;  %8107 = vst [vmem:[#allocation151_spill] sm:$0xff] %v5031_v0  ;;  %v5033_v33 = vpop.f32.mrb[62].mxu1  ;;  %v2172_v23 = vmul.f32 %v5019_v2, %v5019_v2 }
 0x1d0   :  { %8105 = vst [vmem:[#allocation149_spill] sm:$0xff] %v5021_v47  ;;  %v2364_v51 = vadd.f32 %v2363_v62, %v2169_v5  ;;  %v1967_v44 = vadd.f32 %v1966_v40, %v5021_v47  ;;  %v2170_v12 = vmul.f32 %v5021_v47, %v5021_v47  ;;  %8108 = vst [vmem:[#allocation152_spill] sm:$0xff] %v5033_v33  ;;  %v5040_v47 = vpop.f32.mrb[63].mxu1 }
 0x1d1   :  { %8110 = vst [vmem:[#allocation154_spill] sm:$0xff] %v5040_v47 }
 0x1d2   :  { %v1968_v31 = vadd.f32 %v5009_v32, %v1967_v44  ;;  %v2365_v29 = vadd.f32 %v2364_v51, %v2170_v12 }
 0x1d4   :  { %v2366_v5 = vadd.f32 %v2365_v29, %v2171_v56  ;;  %v5037_v40 = vpop.f32.mrb[96].mxu0  ;;  %v1969_v62 = vadd.f32 %v5019_v2, %v1968_v31  ;;  %v5054_v31 = vpop.f32.mrb[64].mxu1 }
 0x1d5   :  { %8109 = vst [vmem:[#allocation153_spill] sm:$0xff] %v5037_v40  ;;  %v5042_v46 = vpop.f32.mrb[97].mxu0  ;;  %8114 = vst [vmem:[#allocation158_spill] sm:$0xff] %v5054_v31  ;;  %v2175_v2 = vmul.f32 %v5037_v40, %v5037_v40 }
 0x1d6   :  { %8111 = vst [vmem:[#allocation155_spill] sm:$0xff] %v5042_v46  ;;  %v1970_v18 = vadd.f32 %v1969_v62, %v5042_v46  ;;  %v2173_v51 = vmul.f32 %v5042_v46, %v5042_v46  ;;  %v2367_v44 = vadd.f32 %v2366_v5, %v2172_v23  ;;  %v5047_v12 = vpop.f32.mrb[98].mxu0  ;;  %v5059_v46 = vpop.f32.mrb[65].mxu1 }
 0x1d7   :  { %8112 = vst [vmem:[#allocation156_spill] sm:$0xff] %v5047_v12  ;;  %v5049_v32 = vpop.f32.mrb[99].mxu0  ;;  %v5061_v23 = vpop.f32.mrb[66].mxu1  ;;  %v2176_v5 = vmul.f32 %v5047_v12, %v5047_v12 }
 0x1d8   :  { %8113 = vst [vmem:[#allocation157_spill] sm:$0xff] %v5049_v32  ;;  %v2368_v33 = vadd.f32 %v2367_v44, %v2173_v51  ;;  %v1971_v29 = vadd.f32 %v1970_v18, %v5049_v32  ;;  %v2174_v56 = vmul.f32 %v5049_v32, %v5049_v32  ;;  %8115 = vst [vmem:[#allocation159_spill] sm:$0xff] %v5061_v23  ;;  %v5068_v32 = vpop.f32.mrb[67].mxu1 }
 0x1d9   :  { %v2177_v44 = vmul.f32 %v4611_v35, %v4611_v35 }
 0x1da   :  { %v1972_v62 = vadd.f32 %v5037_v40, %v1971_v29  ;;  %v2369_v47 = vadd.f32 %v2368_v33, %v2174_v56  ;;  %v2178_v56 = vmul.f32 %v4620_v49, %v4620_v49  ;;  %v5074_v40 = vpop.f32.mrb[68].mxu1 }
 0x1dc   :  { %v1973_v18 = vadd.f32 %v5047_v12, %v1972_v62  ;;  %v2370_v51 = vadd.f32 %v2369_v47, %v2175_v2  ;;  %v2179_v62 = vmul.f32 %v4606_v25, %v4606_v25  ;;  %v5079_v12 = vpop.f32.mrb[69].mxu1 }
 0x1dd   :  { %v5081_v23 = vpop.f32.mrb[70].mxu1 }
 0x1de   :  { %v2371_v31 = vadd.f32 %v2370_v51, %v2176_v5  ;;  %v1974_v0 = vadd.f32 %v1973_v18, %v4611_v35  ;;  %v2181_v18 = vmul.f32 %v4639_v13, %v4639_v13  ;;  %v5088_v51 = vpop.f32.mrb[71].mxu1 }
 0x1e0   :  { %v2372_v29 = vadd.f32 %v2371_v31, %v2177_v44  ;;  %v1975_v33 = vadd.f32 %v1974_v0, %v4620_v49  ;;  %v2180_v31 = vmul.f32 %v4613_v36, %v4613_v36 }
 0x1e2   :  { %v1976_v47 = vadd.f32 %v4606_v25, %v1975_v33  ;;  %v2373_v2 = vadd.f32 %v2372_v29, %v2178_v56  ;;  %v2182_v56 = vmul.f32 %v4648_v34, %v4648_v34  ;;  %v5094_v25 = vpop.f32.mrb[72].mxu1 }
 0x1e4   :  { %v1977_v0 = vadd.f32 %v4613_v36, %v1976_v47  ;;  %v2374_v5 = vadd.f32 %v2373_v2, %v2179_v62  ;;  %v2183_v47 = vmul.f32 %v4634_v3, %v4634_v3  ;;  %v5099_v36 = vpop.f32.mrb[73].mxu1 }
 0x1e5   :  { %v5101_v35 = vpop.f32.mrb[74].mxu1 }
 0x1e6   :  { %v2375_v44 = vadd.f32 %v2374_v5, %v2180_v31  ;;  %v1978_v49 = vadd.f32 %v1977_v0, %v4639_v13  ;;  %v2184_v31 = vmul.f32 %v4641_v17, %v4641_v17  ;;  %v2185_v5 = vmul.f32 %v4667_v24, %v4667_v24 }
 0x1e8   :  { %v2376_v33 = vadd.f32 %v2375_v44, %v2181_v18  ;;  %v1979_v29 = vadd.f32 %v1978_v49, %v4648_v34  ;;  %v5108_v18 = vpop.f32.mrb[75].mxu1 }
 0x1ea   :  { %v1980_v62 = vadd.f32 %v4634_v3, %v1979_v29  ;;  %v2377_v2 = vadd.f32 %v2376_v33, %v2182_v56  ;;  %v2186_v56 = vmul.f32 %v4676_v37, %v4676_v37  ;;  %v5114_v3 = vpop.f32.mrb[76].mxu1 }
 0x1ec   :  { %v1981_v49 = vadd.f32 %v4641_v17, %v1980_v62  ;;  %v2378_v0 = vadd.f32 %v2377_v2, %v2183_v47  ;;  %v2187_v62 = vmul.f32 %v4662_v8, %v4662_v8  ;;  %v5119_v17 = vpop.f32.mrb[77].mxu1 }
 0x1ed   :  { %v5121_v13 = vpop.f32.mrb[78].mxu1 }
 0x1ee   :  { %v2379_v44 = vadd.f32 %v2378_v0, %v2184_v31  ;;  %v1982_v34 = vadd.f32 %v1981_v49, %v4667_v24  ;;  %v2188_v31 = vmul.f32 %v4669_v28, %v4669_v28  ;;  %v2189_v0 = vmul.f32 %v4695_v58, %v4695_v58 }
 0x1f0   :  { %v2380_v29 = vadd.f32 %v2379_v44, %v2185_v5  ;;  %v1983_v33 = vadd.f32 %v1982_v34, %v4676_v37  ;;  %v5128_v5 = vpop.f32.mrb[79].mxu1 }
 0x1f2   :  { %v1984_v47 = vadd.f32 %v4662_v8, %v1983_v33  ;;  %v2381_v2 = vadd.f32 %v2380_v29, %v2186_v56  ;;  %v2190_v56 = vmul.f32 %v4704_v30, %v4704_v30  ;;  %v5134_v8 = vpop.f32.mrb[80].mxu1 }
 0x1f4   :  { %v1985_v34 = vadd.f32 %v4669_v28, %v1984_v47  ;;  %v2382_v49 = vadd.f32 %v2381_v2, %v2187_v62  ;;  %v2191_v47 = vmul.f32 %v4690_v21, %v4690_v21  ;;  %v5139_v28 = vpop.f32.mrb[81].mxu1 }
 0x1f5   :  { %v5141_v24 = vpop.f32.mrb[82].mxu1 }
 0x1f6   :  { %v2383_v44 = vadd.f32 %v2382_v49, %v2188_v31  ;;  %v1986_v37 = vadd.f32 %v1985_v34, %v4695_v58  ;;  %v2192_v31 = vmul.f32 %v4697_v39, %v4697_v39  ;;  %v2193_v49 = vmul.f32 %v4723_v14, %v4723_v14 }
 0x1f8   :  { %v2384_v33 = vadd.f32 %v2383_v44, %v2189_v0  ;;  %v1987_v29 = vadd.f32 %v1986_v37, %v4704_v30  ;;  %v5148_v0 = vpop.f32.mrb[83].mxu1 }
 0x1fa   :  { %v1988_v62 = vadd.f32 %v4690_v21, %v1987_v29  ;;  %v2385_v2 = vadd.f32 %v2384_v33, %v2190_v56  ;;  %v2194_v56 = vmul.f32 %v4732_v41, %v4732_v41  ;;  %v5154_v21 = vpop.f32.mrb[84].mxu1 }
 0x1fb   :  { %8116 = vst [vmem:[#allocation160_spill] sm:$0xff] %v5154_v21 }
 0x1fc   :  { %v1989_v37 = vadd.f32 %v4697_v39, %v1988_v62  ;;  %v2386_v34 = vadd.f32 %v2385_v2, %v2191_v47  ;;  %v2195_v62 = vmul.f32 %v4718_v57, %v4718_v57  ;;  %v5159_v39 = vpop.f32.mrb[85].mxu1 }
 0x1fd   :  { %v5161_v58 = vpop.f32.mrb[86].mxu1 }
 0x1fe   :  { %v2387_v44 = vadd.f32 %v2386_v34, %v2192_v31  ;;  %v1990_v30 = vadd.f32 %v1989_v37, %v4723_v14  ;;  %8117 = vst [vmem:[#allocation161_spill] sm:$0xff] %v5161_v58  ;;  %v2196_v31 = vmul.f32 %v4725_v53, %v4725_v53  ;;  %v2197_v34 = vmul.f32 %v4751_v54, %v4751_v54 }
 0x200   :  { %v2388_v29 = vadd.f32 %v2387_v44, %v2193_v49  ;;  %v1991_v33 = vadd.f32 %v1990_v30, %v4732_v41  ;;  %v5168_v49 = vpop.f32.mrb[87].mxu1 }
 0x202   :  { %v1992_v47 = vadd.f32 %v4718_v57, %v1991_v33  ;;  %v2389_v2 = vadd.f32 %v2388_v29, %v2194_v56  ;;  %v2198_v56 = vmul.f32 %v4760_v42, %v4760_v42  ;;  %v5174_v57 = vpop.f32.mrb[88].mxu1 }
 0x203   :  { %8118 = vst [vmem:[#allocation162_spill] sm:$0xff] %v5174_v57 }
 0x204   :  { %v1993_v30 = vadd.f32 %v4725_v53, %v1992_v47  ;;  %v2390_v37 = vadd.f32 %v2389_v2, %v2195_v62  ;;  %v2199_v47 = vmul.f32 %v4746_v1, %v4746_v1  ;;  %v5179_v53 = vpop.f32.mrb[89].mxu1 }
 0x205   :  { %8119 = vst [vmem:[#allocation163_spill] sm:$0xff] %v5179_v53  ;;  %v5181_v14 = vpop.f32.mrb[90].mxu1 }
 0x206   :  { %v2391_v44 = vadd.f32 %v2390_v37, %v2196_v31  ;;  %v1994_v41 = vadd.f32 %v1993_v30, %v4751_v54  ;;  %8120 = vst [vmem:[#allocation164_spill] sm:$0xff] %v5181_v14  ;;  %v2200_v31 = vmul.f32 %v4753_v61, %v4753_v61  ;;  %v2201_v37 = vmul.f32 %v4779_v26, %v4779_v26 }
 0x208   :  { %v2392_v33 = vadd.f32 %v2391_v44, %v2197_v34  ;;  %v1995_v29 = vadd.f32 %v1994_v41, %v4760_v42  ;;  %v5188_v34 = vpop.f32.mrb[91].mxu1 }
 0x209   :  { %8121 = vst [vmem:[#allocation165_spill] sm:$0xff] %v5188_v34 }
 0x20a   :  { %v1996_v62 = vadd.f32 %v4746_v1, %v1995_v29  ;;  %v2393_v2 = vadd.f32 %v2392_v33, %v2198_v56  ;;  %v2202_v56 = vmul.f32 %v4788_v9, %v4788_v9  ;;  %v5194_v1 = vpop.f32.mrb[92].mxu1 }
 0x20b   :  { %8122 = vst [vmem:[#allocation166_spill] sm:$0xff] %v5194_v1 }
 0x20c   :  { %v1997_v41 = vadd.f32 %v4753_v61, %v1996_v62  ;;  %v2394_v30 = vadd.f32 %v2393_v2, %v2199_v47  ;;  %v2203_v62 = vmul.f32 %v4774_v11, %v4774_v11  ;;  %v5199_v61 = vpop.f32.mrb[93].mxu1 }
 0x20d   :  { %8123 = vst [vmem:[#allocation167_spill] sm:$0xff] %v5199_v61  ;;  %v5201_v54 = vpop.f32.mrb[94].mxu1 }
 0x20e   :  { %v2395_v44 = vadd.f32 %v2394_v30, %v2200_v31  ;;  %v1998_v42 = vadd.f32 %v1997_v41, %v4779_v26  ;;  %v2204_v31 = vmul.f32 %v4781_v59, %v4781_v59  ;;  %v2205_v30 = vmul.f32 %v4807_v6, %v4807_v6 }
 0x210   :  { %v2396_v29 = vadd.f32 %v2395_v44, %v2201_v37  ;;  %v1999_v33 = vadd.f32 %v1998_v42, %v4788_v9  ;;  %v5208_v37 = vpop.f32.mrb[95].mxu1 }
 0x211   :  { %8124 = vst [vmem:[#allocation168_spill] sm:$0xff] %v5208_v37 }
 0x212   :  { %v2000_v47 = vadd.f32 %v4774_v11, %v1999_v33  ;;  %v2397_v2 = vadd.f32 %v2396_v29, %v2202_v56  ;;  %v2206_v56 = vmul.f32 %v4816_v43, %v4816_v43  ;;  %v2207_v11 = vmul.f32 %v4802_v52, %v4802_v52 }
 0x214   :  { %v2001_v42 = vadd.f32 %v4781_v59, %v2000_v47  ;;  %v2398_v41 = vadd.f32 %v2397_v2, %v2203_v62  ;;  %v2208_v2 = vmul.f32 %v4809_v15, %v4809_v15 }
 0x216   :  { %v2399_v44 = vadd.f32 %v2398_v41, %v2204_v31  ;;  %v2002_v9 = vadd.f32 %v2001_v42, %v4807_v6  ;;  %v2209_v42 = vmul.f32 %v4835_v45, %v4835_v45 }
 0x218   :  { %v2400_v33 = vadd.f32 %v2399_v44, %v2205_v30  ;;  %v2003_v29 = vadd.f32 %v2002_v9, %v4816_v43  ;;  %v2210_v43 = vmul.f32 %v4844_v19, %v4844_v19 }
 0x21a   :  { %v2004_v47 = vadd.f32 %v4802_v52, %v2003_v29  ;;  %v2401_v62 = vadd.f32 %v2400_v33, %v2206_v56  ;;  %v2211_v33 = vmul.f32 %v4830_v10, %v4830_v10 }
 0x21c   :  { %v2005_v59 = vadd.f32 %v4809_v15, %v2004_v47  ;;  %v2402_v31 = vadd.f32 %v2401_v62, %v2207_v11  ;;  %v2212_v11 = vmul.f32 %v4837_v55, %v4837_v55 }
 0x21e   :  { %v2403_v41 = vadd.f32 %v2402_v31, %v2208_v2  ;;  %v2006_v9 = vadd.f32 %v2005_v59, %v4835_v45  ;;  %v2213_v59 = vmul.f32 %v4863_v22, %v4863_v22 }
 0x220   :  { %v2404_v30 = vadd.f32 %v2403_v41, %v2209_v42  ;;  %v2007_v44 = vadd.f32 %v2006_v9, %v4844_v19  ;;  %v2214_v9 = vmul.f32 %v4872_v60, %v4872_v60 }
 0x222   :  { %v2008_v29 = vadd.f32 %v4830_v10, %v2007_v44  ;;  %v2405_v56 = vadd.f32 %v2404_v30, %v2210_v43  ;;  %v2215_v43 = vmul.f32 %v4858_v48, %v4858_v48 }
 0x224   :  { %v2406_v47 = vadd.f32 %v2405_v56, %v2211_v33  ;;  %v2009_v62 = vadd.f32 %v4837_v55, %v2008_v29  ;;  %v2216_v33 = vmul.f32 %v4865_v27, %v4865_v27 }
 0x226   :  { %v2010_v2 = vadd.f32 %v2009_v62, %v4863_v22  ;;  %v2407_v31 = vadd.f32 %v2406_v47, %v2212_v11  ;;  %v2217_v11 = vmul.f32 %v4891_v4, %v4891_v4 }
 0x228   :  { %v2408_v42 = vadd.f32 %v2407_v31, %v2213_v59  ;;  %v2011_v41 = vadd.f32 %v2010_v2, %v4872_v60  ;;  %v2218_v31 = vmul.f32 %v4900_v38, %v4900_v38 }
 0x22a   :  { %v2012_v30 = vadd.f32 %v4858_v48, %v2011_v41  ;;  %v2409_v44 = vadd.f32 %v2408_v42, %v2214_v9  ;;  %v2219_v42 = vmul.f32 %v4886_v20, %v4886_v20 }
 0x22c   :  { %v2410_v29 = vadd.f32 %v2409_v44, %v2215_v43  ;;  %v2013_v56 = vadd.f32 %v4865_v27, %v2012_v30  ;;  %v2220_v43 = vmul.f32 %v4893_v7, %v4893_v7 }
 0x22e   :  { %v2014_v47 = vadd.f32 %v2013_v56, %v4891_v4  ;;  %v2411_v62 = vadd.f32 %v2410_v29, %v2216_v33  ;;  %v2221_v33 = vmul.f32 %v4919_v50, %v4919_v50 }
 0x230   :  { %v2412_v59 = vadd.f32 %v2411_v62, %v2217_v11  ;;  %v2015_v2 = vadd.f32 %v2014_v47, %v4900_v38  ;;  %v2222_v62 = vmul.f32 %v4928_v16, %v4928_v16 }
 0x232   :  { %v2016_v41 = vadd.f32 %v4886_v20, %v2015_v2  ;;  %v2413_v9 = vadd.f32 %v2412_v59, %v2218_v31  ;;  %v2223_v59 = vmul.f32 %v4914_v63, %v4914_v63 }
 0x234   :  { %v2414_v30 = vadd.f32 %v2413_v9, %v2219_v42  ;;  %v2017_v44 = vadd.f32 %v4893_v7, %v2016_v41  ;;  %v8125_v42 = vld [vmem:[#allocation120_spill] sm:$0xff] }
 0x235   :  { %v2224_v41 = vmul.f32 %v8125_v42, %v8125_v42 }
 0x236   :  { %v2018_v29 = vadd.f32 %v2017_v44, %v4919_v50  ;;  %v2415_v56 = vadd.f32 %v2414_v30, %v2220_v43  ;;  %v8126_v44 = vld [vmem:[#allocation127_spill] sm:$0xff] }
 0x237   :  { %v2225_v43 = vmul.f32 %v8126_v44, %v8126_v44 }
 0x238   :  { %v2416_v11 = vadd.f32 %v2415_v56, %v2221_v33  ;;  %v2019_v47 = vadd.f32 %v2018_v29, %v4928_v16  ;;  %v8127_v56 = vld [vmem:[#allocation130_spill] sm:$0xff] }
 0x239   :  { %v2226_v50 = vmul.f32 %v8127_v56, %v8127_v56 }
 0x23a   :  { %v2020_v2 = vadd.f32 %v4914_v63, %v2019_v47  ;;  %v2417_v31 = vadd.f32 %v2416_v11, %v2222_v62  ;;  %v8128_v47 = vld [vmem:[#allocation126_spill] sm:$0xff] }
 0x23b   :  { %v2227_v11 = vmul.f32 %v8128_v47, %v8128_v47 }
 0x23c   :  { %v2418_v9 = vadd.f32 %v2417_v31, %v2223_v59  ;;  %v2021_v7 = vadd.f32 %v8125_v42, %v2020_v2  ;;  %v8129_v31 = vld [vmem:[#allocation128_spill] sm:$0xff] }
 0x23d   :  { %v2228_v2 = vmul.f32 %v8129_v31, %v8129_v31 }
 0x23e   :  { %v2022_v30 = vadd.f32 %v2021_v7, %v8126_v44  ;;  %v2419_v33 = vadd.f32 %v2418_v9, %v2224_v41  ;;  %v8130_v7 = vld [vmem:[#allocation135_spill] sm:$0xff] }
 0x23f   :  { %v2229_v41 = vmul.f32 %v8130_v7, %v8130_v7 }
 0x240   :  { %v2420_v29 = vadd.f32 %v2419_v33, %v2225_v43  ;;  %v2023_v16 = vadd.f32 %v2022_v30, %v8127_v56  ;;  %v8131_v33 = vld [vmem:[#allocation138_spill] sm:$0xff] }
 0x241   :  { %v2230_v44 = vmul.f32 %v8131_v33, %v8131_v33 }
 0x242   :  { %v2024_v62 = vadd.f32 %v8128_v47, %v2023_v16  ;;  %v2421_v59 = vadd.f32 %v2420_v29, %v2226_v50  ;;  %v8132_v16 = vld [vmem:[#allocation134_spill] sm:$0xff] }
 0x243   :  { %v2231_v50 = vmul.f32 %v8132_v16, %v8132_v16 }
 0x244   :  { %v2422_v42 = vadd.f32 %v2421_v59, %v2227_v11  ;;  %v2025_v63 = vadd.f32 %v8129_v31, %v2024_v62  ;;  %v8133_v59 = vld [vmem:[#allocation136_spill] sm:$0xff] }
 0x245   :  { %v2232_v62 = vmul.f32 %v8133_v59, %v8133_v59 }
 0x246   :  { %v2026_v9 = vadd.f32 %v2025_v63, %v8130_v7  ;;  %v2423_v43 = vadd.f32 %v2422_v42, %v2228_v2  ;;  %v8134_v63 = vld [vmem:[#allocation143_spill] sm:$0xff] }
 0x247   :  { %v2233_v42 = vmul.f32 %v8134_v63, %v8134_v63 }
 0x248   :  { %v2424_v30 = vadd.f32 %v2423_v43, %v2229_v41  ;;  %v2027_v56 = vadd.f32 %v2026_v9, %v8131_v33  ;;  %v8135_v43 = vld [vmem:[#allocation146_spill] sm:$0xff] }
 0x249   :  { %v2234_v7 = vmul.f32 %v8135_v43, %v8135_v43 }
 0x24a   :  { %v2028_v29 = vadd.f32 %v8132_v16, %v2027_v56  ;;  %v2425_v11 = vadd.f32 %v2424_v30, %v2230_v44  ;;  %v8136_v56 = vld [vmem:[#allocation142_spill] sm:$0xff] }
 0x24b   :  { %v2235_v44 = vmul.f32 %v8136_v56, %v8136_v56 }
 0x24c   :  { %v2426_v31 = vadd.f32 %v2425_v11, %v2231_v50  ;;  %v2029_v47 = vadd.f32 %v8133_v59, %v2028_v29  ;;  %v8137_v11 = vld [vmem:[#allocation144_spill] sm:$0xff] }
 0x24d   :  { %v2236_v29 = vmul.f32 %v8137_v11, %v8137_v11 }
 0x24e   :  { %v2030_v2 = vadd.f32 %v2029_v47, %v8134_v63  ;;  %v2427_v41 = vadd.f32 %v2426_v31, %v2232_v62  ;;  %v8138_v47 = vld [vmem:[#allocation151_spill] sm:$0xff] }
 0x24f   :  { %v2237_v31 = vmul.f32 %v8138_v47, %v8138_v47 }
 0x250   :  { %v2428_v9 = vadd.f32 %v2427_v41, %v2233_v42  ;;  %v2031_v33 = vadd.f32 %v2030_v2, %v8135_v43  ;;  %v8139_v41 = vld [vmem:[#allocation154_spill] sm:$0xff] }
 0x251   :  { %v2238_v63 = vmul.f32 %v8139_v41, %v8139_v41 }
 0x252   :  { %v2032_v30 = vadd.f32 %v8136_v56, %v2031_v33  ;;  %v2429_v50 = vadd.f32 %v2428_v9, %v2234_v7  ;;  %v8140_v33 = vld [vmem:[#allocation150_spill] sm:$0xff] }
 0x253   :  { %v2239_v7 = vmul.f32 %v8140_v33, %v8140_v33 }
 0x254   :  { %v2430_v59 = vadd.f32 %v2429_v50, %v2235_v44  ;;  %v2033_v16 = vadd.f32 %v8137_v11, %v2032_v30  ;;  %v8141_v50 = vld [vmem:[#allocation152_spill] sm:$0xff] }
 0x255   :  { %v2240_v30 = vmul.f32 %v8141_v50, %v8141_v50 }
 0x256   :  { %v2034_v62 = vadd.f32 %v2033_v16, %v8138_v47  ;;  %v2431_v42 = vadd.f32 %v2430_v59, %v2236_v29  ;;  %v2241_v16 = vmul.f32 %v5059_v46, %v5059_v46 }
 0x258   :  { %v2432_v2 = vadd.f32 %v2431_v42, %v2237_v31  ;;  %v2035_v43 = vadd.f32 %v2034_v62, %v8139_v41  ;;  %v2242_v42 = vmul.f32 %v5068_v32, %v5068_v32 }
 0x25a   :  { %v2036_v9 = vadd.f32 %v8140_v33, %v2035_v43  ;;  %v2433_v44 = vadd.f32 %v2432_v2, %v2238_v63  ;;  %v8142_v43 = vld [vmem:[#allocation158_spill] sm:$0xff] }
 0x25b   :  { %v2243_v63 = vmul.f32 %v8142_v43, %v8142_v43 }
 0x25c   :  { %v2434_v11 = vadd.f32 %v2433_v44, %v2239_v7  ;;  %v2037_v56 = vadd.f32 %v8141_v50, %v2036_v9  ;;  %v8143_v44 = vld [vmem:[#allocation159_spill] sm:$0xff] }
 0x25d   :  { %v2244_v9 = vmul.f32 %v8143_v44, %v8143_v44 }
 0x25e   :  { %v2038_v59 = vadd.f32 %v2037_v56, %v5059_v46  ;;  %v2435_v29 = vadd.f32 %v2434_v11, %v2240_v30  ;;  %v2245_v56 = vmul.f32 %v5079_v12, %v5079_v12 }
 0x260   :  { %v2436_v31 = vadd.f32 %v2435_v29, %v2241_v16  ;;  %v2039_v62 = vadd.f32 %v2038_v59, %v5068_v32  ;;  %v2246_v29 = vmul.f32 %v5088_v51, %v5088_v51 }
 0x262   :  { %v2040_v2 = vadd.f32 %v8142_v43, %v2039_v62  ;;  %v2437_v7 = vadd.f32 %v2436_v31, %v2242_v42  ;;  %v2247_v31 = vmul.f32 %v5074_v40, %v5074_v40 }
 0x264   :  { %v2438_v50 = vadd.f32 %v2437_v7, %v2243_v63  ;;  %v2041_v33 = vadd.f32 %v8143_v44, %v2040_v2  ;;  %v2248_v63 = vmul.f32 %v5081_v23, %v5081_v23 }
 0x266   :  { %v2042_v11 = vadd.f32 %v2041_v33, %v5079_v12  ;;  %v2439_v30 = vadd.f32 %v2438_v50, %v2244_v9  ;;  %v2249_v33 = vmul.f32 %v5099_v36, %v5099_v36 }
 0x268   :  { %v2440_v16 = vadd.f32 %v2439_v30, %v2245_v56  ;;  %v2043_v59 = vadd.f32 %v2042_v11, %v5088_v51  ;;  %v2250_v30 = vmul.f32 %v5108_v18, %v5108_v18 }
 0x26a   :  { %v2044_v62 = vadd.f32 %v5074_v40, %v2043_v59  ;;  %v2441_v42 = vadd.f32 %v2440_v16, %v2246_v29  ;;  %v2251_v16 = vmul.f32 %v5094_v25, %v5094_v25 }
 0x26c   :  { %v2442_v2 = vadd.f32 %v2441_v42, %v2247_v31  ;;  %v2045_v7 = vadd.f32 %v5081_v23, %v2044_v62  ;;  %v2252_v31 = vmul.f32 %v5101_v35, %v5101_v35 }
 0x26e   :  { %v2046_v50 = vadd.f32 %v2045_v7, %v5099_v36  ;;  %v2443_v9 = vadd.f32 %v2442_v2, %v2248_v63  ;;  %v2253_v63 = vmul.f32 %v5119_v17, %v5119_v17 }
 0x270   :  { %v2444_v56 = vadd.f32 %v2443_v9, %v2249_v33  ;;  %v2047_v11 = vadd.f32 %v2046_v50, %v5108_v18  ;;  %v2254_v9 = vmul.f32 %v5128_v5, %v5128_v5 }
 0x272   :  { %v2048_v59 = vadd.f32 %v5094_v25, %v2047_v11  ;;  %v2445_v29 = vadd.f32 %v2444_v56, %v2250_v30  ;;  %v2255_v56 = vmul.f32 %v5114_v3, %v5114_v3 }
 0x274   :  { %v2446_v62 = vadd.f32 %v2445_v29, %v2251_v16  ;;  %v2049_v42 = vadd.f32 %v5101_v35, %v2048_v59  ;;  %v2256_v16 = vmul.f32 %v5121_v13, %v5121_v13 }
 0x276   :  { %v2050_v2 = vadd.f32 %v2049_v42, %v5119_v17  ;;  %v2447_v7 = vadd.f32 %v2446_v62, %v2252_v31  ;;  %v2257_v31 = vmul.f32 %v5139_v28, %v5139_v28 }
 0x278   :  { %v2448_v33 = vadd.f32 %v2447_v7, %v2253_v63  ;;  %v2051_v50 = vadd.f32 %v2050_v2, %v5128_v5  ;;  %v2258_v7 = vmul.f32 %v5148_v0, %v5148_v0 }
 0x27a   :  { %v2052_v11 = vadd.f32 %v5114_v3, %v2051_v50  ;;  %v2449_v30 = vadd.f32 %v2448_v33, %v2254_v9  ;;  %v2259_v33 = vmul.f32 %v5134_v8, %v5134_v8 }
 0x27c   :  { %v2450_v59 = vadd.f32 %v2449_v30, %v2255_v56  ;;  %v2053_v29 = vadd.f32 %v5121_v13, %v2052_v11  ;;  %v2260_v56 = vmul.f32 %v5141_v24, %v5141_v24 }
 0x27e   :  { %v2054_v62 = vadd.f32 %v2053_v29, %v5139_v28  ;;  %v2451_v42 = vadd.f32 %v2450_v59, %v2256_v16  ;;  %v2261_v16 = vmul.f32 %v5159_v39, %v5159_v39 }
 0x280   :  { %v2452_v63 = vadd.f32 %v2451_v42, %v2257_v31  ;;  %v2055_v2 = vadd.f32 %v2054_v62, %v5148_v0  ;;  %v2262_v42 = vmul.f32 %v5168_v49, %v5168_v49 }
 0x282   :  { %v2056_v50 = vadd.f32 %v5134_v8, %v2055_v2  ;;  %v2453_v9 = vadd.f32 %v2452_v63, %v2258_v7  ;;  %v2263_v63 = vmul.f32 %v5154_v21, %v5154_v21 }
 0x284   :  { %v2454_v11 = vadd.f32 %v2453_v9, %v2259_v33  ;;  %v2057_v30 = vadd.f32 %v5141_v24, %v2056_v50  ;;  %v2264_v33 = vmul.f32 %v5161_v58, %v5161_v58 }
 0x286   :  { %v2058_v59 = vadd.f32 %v2057_v30, %v5159_v39  ;;  %v2455_v29 = vadd.f32 %v2454_v11, %v2260_v56  ;;  %v2265_v56 = vmul.f32 %v5179_v53, %v5179_v53 }
 0x288   :  { %v2456_v31 = vadd.f32 %v2455_v29, %v2261_v16  ;;  %v2059_v62 = vadd.f32 %v2058_v59, %v5168_v49  ;;  %v2266_v29 = vmul.f32 %v5188_v34, %v5188_v34 }
 0x28a   :  { %v2060_v2 = vadd.f32 %v5154_v21, %v2059_v62  ;;  %v2457_v7 = vadd.f32 %v2456_v31, %v2262_v42  ;;  %v2267_v31 = vmul.f32 %v5174_v57, %v5174_v57 }
 0x28c   :  { %v2458_v50 = vadd.f32 %v2457_v7, %v2263_v63  ;;  %v2061_v9 = vadd.f32 %v5161_v58, %v2060_v2  ;;  %v2268_v63 = vmul.f32 %v5181_v14, %v5181_v14 }
 0x28e   :  { %v2062_v11 = vadd.f32 %v2061_v9, %v5179_v53  ;;  %v2459_v30 = vadd.f32 %v2458_v50, %v2264_v33  ;;  %v2269_v33 = vmul.f32 %v5199_v61, %v5199_v61 }
 0x290   :  { %v2460_v16 = vadd.f32 %v2459_v30, %v2265_v56  ;;  %v2063_v59 = vadd.f32 %v2062_v11, %v5188_v34  ;;  %v2270_v30 = vmul.f32 %v5208_v37, %v5208_v37 }
 0x292   :  { %v2064_v62 = vadd.f32 %v5174_v57, %v2063_v59  ;;  %v2461_v42 = vadd.f32 %v2460_v16, %v2266_v29  ;;  %v2271_v16 = vmul.f32 %v5194_v1, %v5194_v1 }
 0x294   :  { %v2462_v2 = vadd.f32 %v2461_v42, %v2267_v31  ;;  %v2065_v7 = vadd.f32 %v5181_v14, %v2064_v62  ;;  %v2272_v31 = vmul.f32 %v5201_v54, %v5201_v54 }
 0x296   :  { %v2066_v50 = vadd.f32 %v2065_v7, %v5199_v61  ;;  %v2463_v9 = vadd.f32 %v2462_v2, %v2268_v63 }
 0x298   :  { %v2464_v56 = vadd.f32 %v2463_v9, %v2269_v33  ;;  %v2067_v11 = vadd.f32 %v2066_v50, %v5208_v37 }
 0x29a   :  { %v2068_v59 = vadd.f32 %v5194_v1, %v2067_v11  ;;  %v2465_v29 = vadd.f32 %v2464_v56, %v2270_v30 }
 0x29c   :  { %v2069_v62 = vadd.f32 %v5201_v54, %v2068_v59  ;;  %v2466_v42 = vadd.f32 %v2465_v29, %v2271_v16  ;;  %v2485_v16 = vlaneseq  ;;  %v2477_v29 = vld [vmem:[#allocation4] sm:$0x1] }
 0x29e   :  { %v2070_v7 = vrot.slane %v2069_v62, 4  ;;  %v2467_v63 = vadd.f32 %v2466_v42, %v2272_v31  ;;  %v5412_v59 = vshrl.u32 %v2485_v16, 7  ;;  %v8151_v16 = vld [vmem:[#allocation15_spill] sm:$0xff] }
 0x2a0   :  { %v2071_v2 = vadd.f32 %v2070_v7, %v2069_v62  ;;  %v2468_v33 = vrot.slane %v2467_v63, 4  ;;  %v7964_v31 = vsub.s32 0, %v5412_v59  ;;  %v5415_v7 = vld [vmem:[#allocation6] sm:$0x1] }
 0x2a2   :  { %v2072_v50 = vrot.slane %v2071_v2, 2  ;;  %v2469_v9 = vadd.f32 %v2468_v33, %v2467_v63  ;;  %v8147_v63 = vld [vmem:[#allocation11_spill] sm:$0xff]  ;;  %v8148_v33 = vld [vmem:[#allocation14_spill] sm:$0xff] }
 0x2a4   :  { %v2073_v61 = vadd.f32 %v2072_v50, %v2071_v2  ;;  %v2470_v37 = vrot.slane %v2469_v9, 2 }
 0x2a6   :  { %v2074_v14 = vrot.slane %v2073_v61, 1  ;;  %v2471_v57 = vadd.f32 %v2470_v37, %v2469_v9  ;;  %v8149_v9 = vld [vmem:[#allocation16_spill] sm:$0xff] }
 0x2a8   :  { %v2075_v34 = vadd.f32 %v2074_v14, %v2073_v61  ;;  %v2472_v53 = vrot.slane %v2471_v57, 1  ;;  %v8146_v61 = vld [vmem:[#allocation9_spill] sm:$0xff] }
 0x2aa   :  { %v2076_v11 = vmul.f32 0.0006377551, %v2075_v34  ;;  %v2473_v56 = vadd.f32 %v2472_v53, %v2471_v57  ;;  %v8145_v53 = vld [vmem:[#allocation12_spill] sm:$0xff] }
 0x2ac   :  { %v2474_v30 = vmul.f32 0.0006377551, %v2473_v56  ;;  %v2475_v1 = vmul.f32 %v2076_v11, %v2076_v11  ;;  %v8150_v56 = vld [vmem:[#allocation13_spill] sm:$0xff] }
 0x2ae   :  { %v2476_v58 = vsub.f32 %v2474_v30, %v2475_v1 }
 0x2b0   :  { %v2478_v21 = vadd.f32 1e-05, %v2476_v58  ;;  %v8161_v58 = vld [vmem:[#allocation24_spill] sm:$0xff] }
 0x2b2   :  { %3894 = vrsqrt.f32 %v2478_v21  ;;  %v8144_v21 = vld [vmem:[#allocation10_spill] sm:$0xff] }
 0x2bc   :  { %v3895_v62 = vpop.eup %3894 }
 0x2bd   :  { %v2480_v42 = vmul.f32 %v3895_v62, %v2477_v29  ;;  %v8152_v62 = vld [vmem:[#allocation18_spill] sm:$0xff] }
 0x2bf   :  { %v5417_v37 = vmul.f32 %v2480_v42, %v2076_v11  ;;  %v5421_v14 = vrot.slane %v2480_v42, %v7964_v31  ;;  %v8163_v31 = vld [vmem:[#allocation21_spill] sm:$0xff] }
 0x2c1   :  { %v5427_v57 = vmul.f32 %v5421_v14, %v8144_v21  ;;  %v5431_v1 = vmul.f32 %v5421_v14, %v8145_v53  ;;  %v5435_v34 = vmul.f32 %v8146_v61, %v5421_v14  ;;  %v5439_v2 = vmul.f32 %v8147_v63, %v5421_v14  ;;  %v8153_v21 = vld [vmem:[#allocation20_spill] sm:$0xff]  ;;  %v8155_v61 = vld [vmem:[#allocation17_spill] sm:$0xff] }
 0x2c2   :  { %v5443_v50 = vmul.f32 %v5421_v14, %v8148_v33  ;;  %v5447_v11 = vmul.f32 %v5421_v14, %v8149_v9  ;;  %v5451_v30 = vmul.f32 %v8150_v56, %v5421_v14  ;;  %v5455_v29 = vmul.f32 %v8151_v16, %v5421_v14  ;;  %v8157_v33 = vld [vmem:[#allocation19_spill] sm:$0xff]  ;;  %v8159_v56 = vld [vmem:[#allocation22_spill] sm:$0xff] }
 0x2c3   :  { %v5459_v42 = vmul.f32 %v5421_v14, %v8152_v62  ;;  %v5463_v53 = vmul.f32 %v5421_v14, %v8153_v21  ;;  %v5467_v63 = vmul.f32 %v8155_v61, %v5421_v14  ;;  %v5471_v9 = vmul.f32 %v8157_v33, %v5421_v14 }
 0x2c4   :  { %v5475_v16 = vmul.f32 %v5421_v14, %v8159_v56  ;;  %v5479_v62 = vmul.f32 %v5421_v14, %v8161_v58  ;;  %v5483_v21 = vmul.f32 %v8163_v31, %v5421_v14 }
 0x2c5   :  { %8154 = vst [vmem:[#allocation151_spill] sm:$0xff] %v5463_v53  ;;  %8156 = vst [vmem:[#allocation154_spill] sm:$0xff] %v5467_v63  ;;  %v8165_v53 = vld [vmem:[#allocation23_spill] sm:$0xff]  ;;  %v8167_v63 = vld [vmem:[#allocation26_spill] sm:$0xff] }
 0x2c6   :  { %8158 = vst [vmem:[#allocation158_spill] sm:$0xff] %v5471_v9  ;;  %8160 = vst [vmem:[#allocation159_spill] sm:$0xff] %v5475_v16  ;;  %v5487_v61 = vmul.f32 %v8165_v53, %v5421_v14  ;;  %v5491_v33 = vmul.f32 %v5421_v14, %v8167_v63  ;;  %v8169_v9 = vld [vmem:[#allocation28_spill] sm:$0xff]  ;;  %v8171_v16 = vld [vmem:[#allocation25_spill] sm:$0xff] }
 0x2c7   :  { %8162 = vst [vmem:[#allocation10_spill] sm:$0xff] %v5479_v62  ;;  %8164 = vst [vmem:[#allocation12_spill] sm:$0xff] %v5483_v21  ;;  %v5495_v56 = vmul.f32 %v5421_v14, %v8169_v9  ;;  %v5499_v58 = vmul.f32 %v8171_v16, %v5421_v14  ;;  %v8173_v62 = vld [vmem:[#allocation27_spill] sm:$0xff]  ;;  %v8175_v21 = vld [vmem:[#allocation30_spill] sm:$0xff] }
 0x2c8   :  { %8166 = vst [vmem:[#allocation9_spill] sm:$0xff] %v5487_v61  ;;  %8168 = vst [vmem:[#allocation11_spill] sm:$0xff] %v5491_v33  ;;  %v5503_v31 = vmul.f32 %v8173_v62, %v5421_v14  ;;  %v5507_v53 = vmul.f32 %v5421_v14, %v8175_v21  ;;  %v8177_v61 = vld [vmem:[#allocation32_spill] sm:$0xff]  ;;  %v8179_v33 = vld [vmem:[#allocation29_spill] sm:$0xff] }
 0x2c9   :  { %8170 = vst [vmem:[#allocation14_spill] sm:$0xff] %v5495_v56  ;;  %8172 = vst [vmem:[#allocation16_spill] sm:$0xff] %v5499_v58  ;;  %v5511_v63 = vmul.f32 %v5421_v14, %v8177_v61  ;;  %v5515_v9 = vmul.f32 %v8179_v33, %v5421_v14  ;;  %v8181_v56 = vld [vmem:[#allocation31_spill] sm:$0xff]  ;;  %v8183_v58 = vld [vmem:[#allocation34_spill] sm:$0xff] }
 0x2ca   :  { %8174 = vst [vmem:[#allocation13_spill] sm:$0xff] %v5503_v31  ;;  %8176 = vst [vmem:[#allocation15_spill] sm:$0xff] %v5507_v53  ;;  %v5519_v16 = vmul.f32 %v8181_v56, %v5421_v14  ;;  %v5523_v62 = vmul.f32 %v5421_v14, %v8183_v58  ;;  %v8185_v31 = vld [vmem:[#allocation36_spill] sm:$0xff]  ;;  %v8187_v53 = vld [vmem:[#allocation33_spill] sm:$0xff] }
 0x2cb   :  { %8178 = vst [vmem:[#allocation18_spill] sm:$0xff] %v5511_v63  ;;  %8180 = vst [vmem:[#allocation20_spill] sm:$0xff] %v5515_v9  ;;  %v5527_v21 = vmul.f32 %v5421_v14, %v8185_v31  ;;  %v5531_v61 = vmul.f32 %v8187_v53, %v5421_v14  ;;  %v8189_v63 = vld [vmem:[#allocation35_spill] sm:$0xff]  ;;  %v8191_v9 = vld [vmem:[#allocation38_spill] sm:$0xff] }
 0x2cc   :  { %8182 = vst [vmem:[#allocation17_spill] sm:$0xff] %v5519_v16  ;;  %8184 = vst [vmem:[#allocation19_spill] sm:$0xff] %v5523_v62  ;;  %v5535_v33 = vmul.f32 %v8189_v63, %v5421_v14  ;;  %v5539_v56 = vmul.f32 %v5421_v14, %v8191_v9  ;;  %v8193_v16 = vld [vmem:[#allocation40_spill] sm:$0xff]  ;;  %v8195_v62 = vld [vmem:[#allocation37_spill] sm:$0xff] }
 0x2cd   :  { %8186 = vst [vmem:[#allocation22_spill] sm:$0xff] %v5527_v21  ;;  %8188 = vst [vmem:[#allocation24_spill] sm:$0xff] %v5531_v61  ;;  %v5543_v58 = vmul.f32 %v5421_v14, %v8193_v16  ;;  %v5547_v31 = vmul.f32 %v8195_v62, %v5421_v14  ;;  %v8197_v21 = vld [vmem:[#allocation39_spill] sm:$0xff]  ;;  %v8199_v61 = vld [vmem:[#allocation42_spill] sm:$0xff] }
 0x2ce   :  { %8190 = vst [vmem:[#allocation21_spill] sm:$0xff] %v5535_v33  ;;  %8192 = vst [vmem:[#allocation23_spill] sm:$0xff] %v5539_v56  ;;  %v5551_v53 = vmul.f32 %v8197_v21, %v5421_v14  ;;  %v5555_v63 = vmul.f32 %v5421_v14, %v8199_v61  ;;  %v8201_v33 = vld [vmem:[#allocation44_spill] sm:$0xff]  ;;  %v8203_v56 = vld [vmem:[#allocation41_spill] sm:$0xff] }
 0x2cf   :  { %8194 = vst [vmem:[#allocation26_spill] sm:$0xff] %v5543_v58  ;;  %8196 = vst [vmem:[#allocation28_spill] sm:$0xff] %v5547_v31  ;;  %v5559_v9 = vmul.f32 %v5421_v14, %v8201_v33  ;;  %v5563_v16 = vmul.f32 %v8203_v56, %v5421_v14  ;;  %v8205_v58 = vld [vmem:[#allocation43_spill] sm:$0xff]  ;;  %v8207_v31 = vld [vmem:[#allocation50_spill] sm:$0xff] }
 0x2d0   :  { %8198 = vst [vmem:[#allocation25_spill] sm:$0xff] %v5551_v53  ;;  %8200 = vst [vmem:[#allocation27_spill] sm:$0xff] %v5555_v63  ;;  %v5567_v62 = vmul.f32 %v8205_v58, %v5421_v14  ;;  %v5571_v21 = vmul.f32 %v5421_v14, %v8207_v31  ;;  %v8209_v53 = vld [vmem:[#allocation52_spill] sm:$0xff] }
 0x2d1   :  { %8202 = vst [vmem:[#allocation30_spill] sm:$0xff] %v5559_v9  ;;  %8204 = vst [vmem:[#allocation32_spill] sm:$0xff] %v5563_v16  ;;  %v5575_v61 = vmul.f32 %v5421_v14, %v8209_v53  ;;  %v8211_v63 = vld [vmem:[#allocation48_spill] sm:$0xff]  ;;  %v8213_v9 = vld [vmem:[#allocation51_spill] sm:$0xff] }
 0x2d2   :  { %8206 = vst [vmem:[#allocation29_spill] sm:$0xff] %v5567_v62  ;;  %8208 = vst [vmem:[#allocation31_spill] sm:$0xff] %v5571_v21  ;;  %v5579_v33 = vmul.f32 %v8211_v63, %v5421_v14  ;;  %v5583_v56 = vmul.f32 %v8213_v9, %v5421_v14  ;;  %v8215_v16 = vld [vmem:[#allocation58_spill] sm:$0xff]  ;;  %v8217_v62 = vld [vmem:[#allocation60_spill] sm:$0xff] }
 0x2d3   :  { %8210 = vst [vmem:[#allocation34_spill] sm:$0xff] %v5575_v61  ;;  %v5587_v58 = vmul.f32 %v5421_v14, %v8215_v16  ;;  %v5591_v31 = vmul.f32 %v5421_v14, %v8217_v62  ;;  %v8219_v21 = vld [vmem:[#allocation56_spill] sm:$0xff]  ;;  %v8221_v61 = vld [vmem:[#allocation59_spill] sm:$0xff] }
 0x2d4   :  { %8212 = vst [vmem:[#allocation36_spill] sm:$0xff] %v5579_v33  ;;  %8214 = vst [vmem:[#allocation33_spill] sm:$0xff] %v5583_v56  ;;  %v5595_v53 = vmul.f32 %v8219_v21, %v5421_v14  ;;  %v5599_v63 = vmul.f32 %v8221_v61, %v5421_v14  ;;  %v8223_v33 = vld [vmem:[#allocation66_spill] sm:$0xff]  ;;  %v8225_v56 = vld [vmem:[#allocation68_spill] sm:$0xff] }
 0x2d5   :  { %8216 = vst [vmem:[#allocation35_spill] sm:$0xff] %v5587_v58  ;;  %8218 = vst [vmem:[#allocation38_spill] sm:$0xff] %v5591_v31  ;;  %v5603_v9 = vmul.f32 %v5421_v14, %v8223_v33  ;;  %v5607_v16 = vmul.f32 %v5421_v14, %v8225_v56  ;;  %v8227_v58 = vld [vmem:[#allocation64_spill] sm:$0xff]  ;;  %v8229_v31 = vld [vmem:[#allocation67_spill] sm:$0xff] }
 0x2d6   :  { %8220 = vst [vmem:[#allocation40_spill] sm:$0xff] %v5595_v53  ;;  %8222 = vst [vmem:[#allocation37_spill] sm:$0xff] %v5599_v63  ;;  %v5611_v62 = vmul.f32 %v8227_v58, %v5421_v14  ;;  %v5615_v21 = vmul.f32 %v8229_v31, %v5421_v14  ;;  %v8231_v53 = vld [vmem:[#allocation74_spill] sm:$0xff]  ;;  %v8233_v63 = vld [vmem:[#allocation76_spill] sm:$0xff] }
 0x2d7   :  { %8224 = vst [vmem:[#allocation39_spill] sm:$0xff] %v5603_v9  ;;  %8226 = vst [vmem:[#allocation42_spill] sm:$0xff] %v5607_v16  ;;  %v5619_v61 = vmul.f32 %v5421_v14, %v8231_v53  ;;  %v5623_v33 = vmul.f32 %v5421_v14, %v8233_v63  ;;  %v8235_v9 = vld [vmem:[#allocation72_spill] sm:$0xff]  ;;  %v8237_v16 = vld [vmem:[#allocation75_spill] sm:$0xff] }
 0x2d8   :  { %8228 = vst [vmem:[#allocation44_spill] sm:$0xff] %v5611_v62  ;;  %8230 = vst [vmem:[#allocation41_spill] sm:$0xff] %v5615_v21  ;;  %v5627_v56 = vmul.f32 %v8235_v9, %v5421_v14  ;;  %v5631_v58 = vmul.f32 %v8237_v16, %v5421_v14  ;;  %v8239_v62 = vld [vmem:[#allocation82_spill] sm:$0xff]  ;;  %v8241_v21 = vld [vmem:[#allocation84_spill] sm:$0xff] }
 0x2d9   :  { %8232 = vst [vmem:[#allocation43_spill] sm:$0xff] %v5619_v61  ;;  %8234 = vst [vmem:[#allocation50_spill] sm:$0xff] %v5623_v33  ;;  %v5635_v31 = vmul.f32 %v5421_v14, %v8239_v62  ;;  %v5639_v53 = vmul.f32 %v5421_v14, %v8241_v21  ;;  %v8243_v61 = vld [vmem:[#allocation80_spill] sm:$0xff]  ;;  %v8245_v33 = vld [vmem:[#allocation83_spill] sm:$0xff] }
 0x2da   :  { %8236 = vst [vmem:[#allocation52_spill] sm:$0xff] %v5627_v56  ;;  %8238 = vst [vmem:[#allocation48_spill] sm:$0xff] %v5631_v58  ;;  %v5643_v63 = vmul.f32 %v8243_v61, %v5421_v14  ;;  %v5647_v9 = vmul.f32 %v8245_v33, %v5421_v14  ;;  %v8247_v56 = vld [vmem:[#allocation90_spill] sm:$0xff]  ;;  %v8249_v58 = vld [vmem:[#allocation92_spill] sm:$0xff] }
 0x2db   :  { %8240 = vst [vmem:[#allocation51_spill] sm:$0xff] %v5635_v31  ;;  %8242 = vst [vmem:[#allocation58_spill] sm:$0xff] %v5639_v53  ;;  %v5651_v16 = vmul.f32 %v5421_v14, %v8247_v56  ;;  %v5655_v62 = vmul.f32 %v5421_v14, %v8249_v58  ;;  %v8251_v31 = vld [vmem:[#allocation88_spill] sm:$0xff]  ;;  %v8253_v53 = vld [vmem:[#allocation91_spill] sm:$0xff] }
 0x2dc   :  { %8244 = vst [vmem:[#allocation60_spill] sm:$0xff] %v5643_v63  ;;  %8246 = vst [vmem:[#allocation56_spill] sm:$0xff] %v5647_v9  ;;  %v5659_v21 = vmul.f32 %v8251_v31, %v5421_v14  ;;  %v5663_v61 = vmul.f32 %v8253_v53, %v5421_v14  ;;  %v8255_v63 = vld [vmem:[#allocation97_spill] sm:$0xff]  ;;  %v8257_v9 = vld [vmem:[#allocation99_spill] sm:$0xff] }
 0x2dd   :  { %8248 = vst [vmem:[#allocation59_spill] sm:$0xff] %v5651_v16  ;;  %8250 = vst [vmem:[#allocation66_spill] sm:$0xff] %v5655_v62  ;;  %v5667_v33 = vmul.f32 %v5421_v14, %v8255_v63  ;;  %v5671_v56 = vmul.f32 %v5421_v14, %v8257_v9  ;;  %v8259_v16 = vld [vmem:[#allocation95_spill] sm:$0xff]  ;;  %v8261_v62 = vld [vmem:[#allocation98_spill] sm:$0xff] }
 0x2de   :  { %8252 = vst [vmem:[#allocation68_spill] sm:$0xff] %v5659_v21  ;;  %8254 = vst [vmem:[#allocation64_spill] sm:$0xff] %v5663_v61  ;;  %v5675_v58 = vmul.f32 %v8259_v16, %v5421_v14  ;;  %v5679_v31 = vmul.f32 %v8261_v62, %v5421_v14  ;;  %v8263_v21 = vld [vmem:[#allocation102_spill] sm:$0xff]  ;;  %v8265_v61 = vld [vmem:[#allocation104_spill] sm:$0xff] }
 0x2df   :  { %8256 = vst [vmem:[#allocation67_spill] sm:$0xff] %v5667_v33  ;;  %8258 = vst [vmem:[#allocation74_spill] sm:$0xff] %v5671_v56  ;;  %v5683_v53 = vmul.f32 %v5421_v14, %v8263_v21  ;;  %v5687_v63 = vmul.f32 %v5421_v14, %v8265_v61  ;;  %v8267_v33 = vld [vmem:[#allocation100_spill] sm:$0xff]  ;;  %v8269_v56 = vld [vmem:[#allocation103_spill] sm:$0xff] }
 0x2e0   :  { %8260 = vst [vmem:[#allocation76_spill] sm:$0xff] %v5675_v58  ;;  %8262 = vst [vmem:[#allocation72_spill] sm:$0xff] %v5679_v31  ;;  %v5691_v9 = vmul.f32 %v8267_v33, %v5421_v14  ;;  %v5695_v16 = vmul.f32 %v8269_v56, %v5421_v14  ;;  %v8271_v58 = vld [vmem:[#allocation106_spill] sm:$0xff]  ;;  %v8273_v31 = vld [vmem:[#allocation108_spill] sm:$0xff] }
 0x2e1   :  { %8264 = vst [vmem:[#allocation75_spill] sm:$0xff] %v5683_v53  ;;  %8266 = vst [vmem:[#allocation82_spill] sm:$0xff] %v5687_v63  ;;  %v5699_v62 = vmul.f32 %v5421_v14, %v8271_v58  ;;  %v5703_v21 = vmul.f32 %v5421_v14, %v8273_v31  ;;  %v8275_v53 = vld [vmem:[#allocation105_spill] sm:$0xff]  ;;  %v8277_v63 = vld [vmem:[#allocation107_spill] sm:$0xff] }
 0x2e2   :  { %8268 = vst [vmem:[#allocation84_spill] sm:$0xff] %v5691_v9  ;;  %8270 = vst [vmem:[#allocation80_spill] sm:$0xff] %v5695_v16  ;;  %v5707_v61 = vmul.f32 %v8275_v53, %v5421_v14  ;;  %v5711_v33 = vmul.f32 %v8277_v63, %v5421_v14  ;;  %v8279_v9 = vld [vmem:[#allocation110_spill] sm:$0xff]  ;;  %v8281_v16 = vld [vmem:[#allocation112_spill] sm:$0xff] }
 0x2e3   :  { %8272 = vst [vmem:[#allocation83_spill] sm:$0xff] %v5699_v62  ;;  %8274 = vst [vmem:[#allocation90_spill] sm:$0xff] %v5703_v21  ;;  %v5715_v56 = vmul.f32 %v5421_v14, %v8279_v9  ;;  %v5719_v58 = vmul.f32 %v5421_v14, %v8281_v16  ;;  %v8283_v62 = vld [vmem:[#allocation109_spill] sm:$0xff]  ;;  %v8285_v21 = vld [vmem:[#allocation111_spill] sm:$0xff] }
 0x2e4   :  { %8276 = vst [vmem:[#allocation92_spill] sm:$0xff] %v5707_v61  ;;  %8278 = vst [vmem:[#allocation88_spill] sm:$0xff] %v5711_v33  ;;  %v5723_v31 = vmul.f32 %v8283_v62, %v5421_v14  ;;  %v5727_v53 = vmul.f32 %v8285_v21, %v5421_v14  ;;  %v8287_v61 = vld [vmem:[#allocation115_spill] sm:$0xff]  ;;  %v8289_v33 = vld [vmem:[#allocation117_spill] sm:$0xff] }
 0x2e5   :  { %8280 = vst [vmem:[#allocation91_spill] sm:$0xff] %v5715_v56  ;;  %8282 = vst [vmem:[#allocation97_spill] sm:$0xff] %v5719_v58  ;;  %v5731_v63 = vmul.f32 %v5421_v14, %v8287_v61  ;;  %v5735_v9 = vmul.f32 %v5421_v14, %v8289_v33  ;;  %v8291_v56 = vld [vmem:[#allocation114_spill] sm:$0xff]  ;;  %v8293_v58 = vld [vmem:[#allocation116_spill] sm:$0xff] }
 0x2e6   :  { %8284 = vst [vmem:[#allocation99_spill] sm:$0xff] %v5723_v31  ;;  %8286 = vst [vmem:[#allocation95_spill] sm:$0xff] %v5727_v53  ;;  %v5739_v16 = vmul.f32 %v8291_v56, %v5421_v14  ;;  %v5743_v62 = vmul.f32 %v8293_v58, %v5421_v14  ;;  %v8295_v31 = vld [vmem:[#allocation123_spill] sm:$0xff]  ;;  %v8297_v53 = vld [vmem:[#allocation125_spill] sm:$0xff] }
 0x2e7   :  { %8288 = vst [vmem:[#allocation98_spill] sm:$0xff] %v5731_v63  ;;  %8290 = vst [vmem:[#allocation102_spill] sm:$0xff] %v5735_v9  ;;  %v5747_v21 = vmul.f32 %v5421_v14, %v8295_v31  ;;  %v5751_v61 = vmul.f32 %v5421_v14, %v8297_v53  ;;  %v8299_v63 = vld [vmem:[#allocation121_spill] sm:$0xff]  ;;  %v8301_v9 = vld [vmem:[#allocation124_spill] sm:$0xff] }
 0x2e8   :  { %8292 = vst [vmem:[#allocation104_spill] sm:$0xff] %v5739_v16  ;;  %8294 = vst [vmem:[#allocation100_spill] sm:$0xff] %v5743_v62  ;;  %v5755_v33 = vmul.f32 %v8299_v63, %v5421_v14  ;;  %v5759_v56 = vmul.f32 %v8301_v9, %v5421_v14  ;;  %v8303_v16 = vld [vmem:[#allocation131_spill] sm:$0xff]  ;;  %v8305_v62 = vld [vmem:[#allocation133_spill] sm:$0xff] }
 0x2e9   :  { %8296 = vst [vmem:[#allocation103_spill] sm:$0xff] %v5747_v21  ;;  %8298 = vst [vmem:[#allocation106_spill] sm:$0xff] %v5751_v61  ;;  %v5763_v58 = vmul.f32 %v5421_v14, %v8303_v16  ;;  %v5767_v31 = vmul.f32 %v5421_v14, %v8305_v62  ;;  %v8307_v21 = vld [vmem:[#allocation129_spill] sm:$0xff]  ;;  %v8309_v61 = vld [vmem:[#allocation132_spill] sm:$0xff] }
 0x2ea   :  { %8300 = vst [vmem:[#allocation108_spill] sm:$0xff] %v5755_v33  ;;  %8302 = vst [vmem:[#allocation105_spill] sm:$0xff] %v5759_v56  ;;  %v5771_v53 = vmul.f32 %v8307_v21, %v5421_v14  ;;  %v5775_v63 = vmul.f32 %v8309_v61, %v5421_v14  ;;  %v8311_v33 = vld [vmem:[#allocation139_spill] sm:$0xff]  ;;  %v8313_v56 = vld [vmem:[#allocation141_spill] sm:$0xff] }
 0x2eb   :  { %8304 = vst [vmem:[#allocation107_spill] sm:$0xff] %v5763_v58  ;;  %8306 = vst [vmem:[#allocation110_spill] sm:$0xff] %v5767_v31  ;;  %v5779_v9 = vmul.f32 %v5421_v14, %v8311_v33  ;;  %v5783_v16 = vmul.f32 %v5421_v14, %v8313_v56  ;;  %v8315_v58 = vld [vmem:[#allocation137_spill] sm:$0xff]  ;;  %v8317_v31 = vld [vmem:[#allocation140_spill] sm:$0xff] }
 0x2ec   :  { %8308 = vst [vmem:[#allocation112_spill] sm:$0xff] %v5771_v53  ;;  %8310 = vst [vmem:[#allocation109_spill] sm:$0xff] %v5775_v63  ;;  %v5787_v62 = vmul.f32 %v8315_v58, %v5421_v14  ;;  %v5791_v21 = vmul.f32 %v8317_v31, %v5421_v14  ;;  %v8319_v53 = vld [vmem:[#allocation147_spill] sm:$0xff]  ;;  %v8321_v63 = vld [vmem:[#allocation149_spill] sm:$0xff] }
 0x2ed   :  { %8312 = vst [vmem:[#allocation111_spill] sm:$0xff] %v5779_v9  ;;  %8314 = vst [vmem:[#allocation115_spill] sm:$0xff] %v5783_v16  ;;  %v5795_v61 = vmul.f32 %v5421_v14, %v8319_v53  ;;  %v5799_v33 = vmul.f32 %v5421_v14, %v8321_v63  ;;  %v8323_v9 = vld [vmem:[#allocation145_spill] sm:$0xff]  ;;  %v8325_v16 = vld [vmem:[#allocation148_spill] sm:$0xff] }
 0x2ee   :  { %8316 = vst [vmem:[#allocation117_spill] sm:$0xff] %v5787_v62  ;;  %8318 = vst [vmem:[#allocation114_spill] sm:$0xff] %v5791_v21  ;;  %v5803_v56 = vmul.f32 %v8323_v9, %v5421_v14  ;;  %v5807_v58 = vmul.f32 %v8325_v16, %v5421_v14  ;;  %v8327_v62 = vld [vmem:[#allocation155_spill] sm:$0xff]  ;;  %v8329_v21 = vld [vmem:[#allocation157_spill] sm:$0xff] }
 0x2ef   :  { %8320 = vst [vmem:[#allocation116_spill] sm:$0xff] %v5795_v61  ;;  %8322 = vst [vmem:[#allocation123_spill] sm:$0xff] %v5799_v33  ;;  %v5811_v31 = vmul.f32 %v5421_v14, %v8327_v62  ;;  %v5815_v53 = vmul.f32 %v5421_v14, %v8329_v21  ;;  %v8331_v61 = vld [vmem:[#allocation153_spill] sm:$0xff]  ;;  %v8333_v33 = vld [vmem:[#allocation156_spill] sm:$0xff] }
 0x2f0   :  { %8324 = vst [vmem:[#allocation125_spill] sm:$0xff] %v5803_v56  ;;  %8326 = vst [vmem:[#allocation121_spill] sm:$0xff] %v5807_v58  ;;  %v5819_v63 = vmul.f32 %v8331_v61, %v5421_v14  ;;  %v5823_v9 = vmul.f32 %v8333_v33, %v5421_v14  ;;  %v8335_v56 = vld [vmem:[#allocation46_spill] sm:$0xff]  ;;  %v8337_v58 = vld [vmem:[#allocation49_spill] sm:$0xff] }
 0x2f1   :  { %8328 = vst [vmem:[#allocation124_spill] sm:$0xff] %v5811_v31  ;;  %8330 = vst [vmem:[#allocation131_spill] sm:$0xff] %v5815_v53  ;;  %v5827_v16 = vmul.f32 %v5421_v14, %v8335_v56  ;;  %v5831_v62 = vmul.f32 %v5421_v14, %v8337_v58  ;;  %v8339_v31 = vld [vmem:[#allocation45_spill] sm:$0xff]  ;;  %v8341_v53 = vld [vmem:[#allocation47_spill] sm:$0xff] }
 0x2f2   :  { %8332 = vst [vmem:[#allocation133_spill] sm:$0xff] %v5819_v63  ;;  %8334 = vst [vmem:[#allocation129_spill] sm:$0xff] %v5823_v9  ;;  %v5835_v21 = vmul.f32 %v8339_v31, %v5421_v14  ;;  %v5839_v61 = vmul.f32 %v8341_v53, %v5421_v14  ;;  %v8343_v63 = vld [vmem:[#allocation54_spill] sm:$0xff]  ;;  %v8345_v9 = vld [vmem:[#allocation57_spill] sm:$0xff] }
 0x2f3   :  { %8336 = vst [vmem:[#allocation132_spill] sm:$0xff] %v5827_v16  ;;  %8338 = vst [vmem:[#allocation139_spill] sm:$0xff] %v5831_v62  ;;  %v5843_v33 = vmul.f32 %v5421_v14, %v8343_v63  ;;  %v5847_v56 = vmul.f32 %v5421_v14, %v8345_v9  ;;  %v8347_v16 = vld [vmem:[#allocation53_spill] sm:$0xff]  ;;  %v8349_v62 = vld [vmem:[#allocation55_spill] sm:$0xff] }
 0x2f4   :  { %8340 = vst [vmem:[#allocation141_spill] sm:$0xff] %v5835_v21  ;;  %8342 = vst [vmem:[#allocation137_spill] sm:$0xff] %v5839_v61  ;;  %v5851_v58 = vmul.f32 %v8347_v16, %v5421_v14  ;;  %v5855_v31 = vmul.f32 %v8349_v62, %v5421_v14  ;;  %v8351_v21 = vld [vmem:[#allocation62_spill] sm:$0xff]  ;;  %v8353_v61 = vld [vmem:[#allocation65_spill] sm:$0xff] }
 0x2f5   :  { %8344 = vst [vmem:[#allocation140_spill] sm:$0xff] %v5843_v33  ;;  %8346 = vst [vmem:[#allocation147_spill] sm:$0xff] %v5847_v56  ;;  %v5859_v53 = vmul.f32 %v5421_v14, %v8351_v21  ;;  %v5863_v63 = vmul.f32 %v5421_v14, %v8353_v61  ;;  %v8355_v33 = vld [vmem:[#allocation61_spill] sm:$0xff]  ;;  %v8357_v56 = vld [vmem:[#allocation63_spill] sm:$0xff] }
 0x2f6   :  { %8348 = vst [vmem:[#allocation149_spill] sm:$0xff] %v5851_v58  ;;  %8350 = vst [vmem:[#allocation145_spill] sm:$0xff] %v5855_v31  ;;  %v5867_v9 = vmul.f32 %v8355_v33, %v5421_v14  ;;  %v5871_v16 = vmul.f32 %v8357_v56, %v5421_v14  ;;  %v8359_v58 = vld [vmem:[#allocation70_spill] sm:$0xff]  ;;  %v8361_v31 = vld [vmem:[#allocation73_spill] sm:$0xff] }
 0x2f7   :  { %8352 = vst [vmem:[#allocation148_spill] sm:$0xff] %v5859_v53  ;;  %8354 = vst [vmem:[#allocation155_spill] sm:$0xff] %v5863_v63  ;;  %v5875_v62 = vmul.f32 %v5421_v14, %v8359_v58  ;;  %v5879_v21 = vmul.f32 %v5421_v14, %v8361_v31  ;;  %v8363_v53 = vld [vmem:[#allocation69_spill] sm:$0xff]  ;;  %v8365_v63 = vld [vmem:[#allocation71_spill] sm:$0xff] }
 0x2f8   :  { %8356 = vst [vmem:[#allocation157_spill] sm:$0xff] %v5867_v9  ;;  %8358 = vst [vmem:[#allocation153_spill] sm:$0xff] %v5871_v16  ;;  %v5883_v61 = vmul.f32 %v8363_v53, %v5421_v14  ;;  %v5887_v33 = vmul.f32 %v8365_v63, %v5421_v14  ;;  %v8367_v9 = vld [vmem:[#allocation78_spill] sm:$0xff]  ;;  %v8369_v16 = vld [vmem:[#allocation81_spill] sm:$0xff] }
 0x2f9   :  { %8360 = vst [vmem:[#allocation156_spill] sm:$0xff] %v5875_v62  ;;  %8362 = vst [vmem:[#allocation46_spill] sm:$0xff] %v5879_v21  ;;  %v5891_v56 = vmul.f32 %v5421_v14, %v8367_v9  ;;  %v5895_v58 = vmul.f32 %v5421_v14, %v8369_v16  ;;  %v8371_v62 = vld [vmem:[#allocation77_spill] sm:$0xff]  ;;  %v8372_v21 = vld [vmem:[#allocation79_spill] sm:$0xff] }
 0x2fa   :  { %8364 = vst [vmem:[#allocation49_spill] sm:$0xff] %v5883_v61  ;;  %8366 = vst [vmem:[#allocation45_spill] sm:$0xff] %v5887_v33  ;;  %v5899_v31 = vmul.f32 %v8371_v62, %v5421_v14  ;;  %v5903_v53 = vmul.f32 %v8372_v21, %v5421_v14  ;;  %v8374_v61 = vld [vmem:[#allocation86_spill] sm:$0xff]  ;;  %v8376_v33 = vld [vmem:[#allocation89_spill] sm:$0xff]  ;;  %v5923_v21 = vmul.f32 %v5421_v14, %v4779_v26 }
 0x2fb   :  { %8368 = vst [vmem:[#allocation47_spill] sm:$0xff] %v5891_v56  ;;  %8370 = vst [vmem:[#allocation54_spill] sm:$0xff] %v5895_v58  ;;  %v5907_v63 = vmul.f32 %v5421_v14, %v8374_v61  ;;  %v5911_v9 = vmul.f32 %v5421_v14, %v8376_v33  ;;  %v8378_v56 = vld [vmem:[#allocation85_spill] sm:$0xff]  ;;  %v8379_v58 = vld [vmem:[#allocation87_spill] sm:$0xff] }
 0x2fc   :  { %8373 = vst [vmem:[#allocation57_spill] sm:$0xff] %v5903_v53  ;;  %v5915_v16 = vmul.f32 %v8378_v56, %v5421_v14  ;;  %v5919_v62 = vmul.f32 %v8379_v58, %v5421_v14  ;;  %v8381_v53 = vld [vmem:[#allocation96_spill] sm:$0xff]  ;;  %v5939_v58 = vmul.f32 %v5421_v14, %v4807_v6  ;;  %v5959_v6 = vmul.f32 %v5421_v14, %v4844_v19 }
 0x2fd   :  { %8375 = vst [vmem:[#allocation53_spill] sm:$0xff] %v5907_v63  ;;  %8377 = vst [vmem:[#allocation55_spill] sm:$0xff] %v5911_v9  ;;  %v5927_v61 = vmul.f32 %v5421_v14, %v8381_v53  ;;  %v8382_v63 = vld [vmem:[#allocation93_spill] sm:$0xff]  ;;  %v8383_v9 = vld [vmem:[#allocation94_spill] sm:$0xff]  ;;  %v5947_v53 = vmul.f32 %v4802_v52, %v5421_v14  ;;  %v5967_v52 = vmul.f32 %v4837_v55, %v5421_v14 }
 0x2fe   :  { %8380 = vst [vmem:[#allocation62_spill] sm:$0xff] %v5919_v62  ;;  %v5931_v33 = vmul.f32 %v8382_v63, %v5421_v14  ;;  %v5935_v56 = vmul.f32 %v8383_v9, %v5421_v14  ;;  %v8384_v62 = vld [vmem:[#allocation101_spill] sm:$0xff]  ;;  %v5951_v63 = vmul.f32 %v4809_v15, %v5421_v14  ;;  %v5955_v9 = vmul.f32 %v5421_v14, %v4835_v45 }
 0x2ff   :  { %v5943_v26 = vmul.f32 %v5421_v14, %v8384_v62  ;;  %v5963_v62 = vmul.f32 %v4830_v10, %v5421_v14  ;;  %v5971_v15 = vmul.f32 %v5421_v14, %v4863_v22  ;;  %v5975_v45 = vmul.f32 %v5421_v14, %v4872_v60 }
 0x300   :  { %v5979_v19 = vmul.f32 %v4858_v48, %v5421_v14  ;;  %v5983_v10 = vmul.f32 %v4865_v27, %v5421_v14  ;;  %v5987_v55 = vmul.f32 %v5421_v14, %v4891_v4  ;;  %v5991_v22 = vmul.f32 %v5421_v14, %v4900_v38 }
 0x301   :  { %8385 = vst [vmem:[#allocation65_spill] sm:$0xff] %v5975_v45  ;;  %v5995_v60 = vmul.f32 %v4886_v20, %v5421_v14  ;;  %v8391_v45 = vld [vmem:[#allocation113_spill] sm:$0xff] }
 0x302   :  { %8386 = vst [vmem:[#allocation61_spill] sm:$0xff] %v5979_v19  ;;  %8387 = vst [vmem:[#allocation63_spill] sm:$0xff] %v5983_v10  ;;  %v5999_v48 = vmul.f32 %v8391_v45, %v5421_v14  ;;  %v8393_v19 = vld [vmem:[#allocation119_spill] sm:$0xff]  ;;  %v8395_v10 = vld [vmem:[#allocation122_spill] sm:$0xff] }
 0x303   :  { %8388 = vst [vmem:[#allocation70_spill] sm:$0xff] %v5987_v55  ;;  %8389 = vst [vmem:[#allocation73_spill] sm:$0xff] %v5991_v22  ;;  %v6003_v27 = vmul.f32 %v5421_v14, %v8393_v19  ;;  %v6007_v4 = vmul.f32 %v5421_v14, %v8395_v10  ;;  %v8397_v55 = vld [vmem:[#allocation118_spill] sm:$0xff]  ;;  %v8399_v22 = vld [vmem:[#allocation120_spill] sm:$0xff] }
 0x304   :  { %8390 = vst [vmem:[#allocation69_spill] sm:$0xff] %v5995_v60  ;;  %8392 = vst [vmem:[#allocation71_spill] sm:$0xff] %v5999_v48  ;;  %v6011_v38 = vmul.f32 %v8397_v55, %v5421_v14  ;;  %v6015_v20 = vmul.f32 %v8399_v22, %v5421_v14  ;;  %v8401_v60 = vld [vmem:[#allocation127_spill] sm:$0xff]  ;;  %v8403_v48 = vld [vmem:[#allocation130_spill] sm:$0xff] }
 0x305   :  { %8394 = vst [vmem:[#allocation78_spill] sm:$0xff] %v6003_v27  ;;  %8396 = vst [vmem:[#allocation81_spill] sm:$0xff] %v6007_v4  ;;  %v6019_v45 = vmul.f32 %v5421_v14, %v8401_v60  ;;  %v6023_v19 = vmul.f32 %v5421_v14, %v8403_v48  ;;  %v8405_v27 = vld [vmem:[#allocation126_spill] sm:$0xff]  ;;  %v8407_v4 = vld [vmem:[#allocation128_spill] sm:$0xff] }
 0x306   :  { %8398 = vst [vmem:[#allocation77_spill] sm:$0xff] %v6011_v38  ;;  %8400 = vst [vmem:[#allocation79_spill] sm:$0xff] %v6015_v20  ;;  %v6027_v10 = vmul.f32 %v8405_v27, %v5421_v14  ;;  %v6031_v55 = vmul.f32 %v8407_v4, %v5421_v14  ;;  %v8409_v38 = vld [vmem:[#allocation135_spill] sm:$0xff]  ;;  %v8411_v20 = vld [vmem:[#allocation138_spill] sm:$0xff] }
 0x307   :  { %8402 = vst [vmem:[#allocation86_spill] sm:$0xff] %v6019_v45  ;;  %8404 = vst [vmem:[#allocation89_spill] sm:$0xff] %v6023_v19  ;;  %v6035_v22 = vmul.f32 %v5421_v14, %v8409_v38  ;;  %v6039_v60 = vmul.f32 %v5421_v14, %v8411_v20  ;;  %v8413_v45 = vld [vmem:[#allocation134_spill] sm:$0xff]  ;;  %v8414_v19 = vld [vmem:[#allocation136_spill] sm:$0xff] }
 0x308   :  { %8406 = vst [vmem:[#allocation85_spill] sm:$0xff] %v6027_v10  ;;  %8408 = vst [vmem:[#allocation87_spill] sm:$0xff] %v6031_v55  ;;  %v6043_v48 = vmul.f32 %v8413_v45, %v5421_v14  ;;  %v6047_v27 = vmul.f32 %v8414_v19, %v5421_v14  ;;  %v8415_v10 = vld [vmem:[#allocation143_spill] sm:$0xff]  ;;  %v8417_v55 = vld [vmem:[#allocation146_spill] sm:$0xff]  ;;  %v6067_v19 = vmul.f32 %v5421_v14, %v8138_v47 }
 0x309   :  { %8410 = vst [vmem:[#allocation96_spill] sm:$0xff] %v6035_v22  ;;  %8412 = vst [vmem:[#allocation93_spill] sm:$0xff] %v6039_v60  ;;  %v6051_v4 = vmul.f32 %v5421_v14, %v8415_v10  ;;  %v6055_v38 = vmul.f32 %v5421_v14, %v8417_v55  ;;  %v8419_v22 = vld [vmem:[#allocation142_spill] sm:$0xff]  ;;  %v8420_v60 = vld [vmem:[#allocation144_spill] sm:$0xff]  ;;  %v6071_v10 = vmul.f32 %v5421_v14, %v8139_v41 }
 0x30a   :  { %v6059_v20 = vmul.f32 %v8419_v22, %v5421_v14  ;;  %v6063_v45 = vmul.f32 %v8420_v60, %v5421_v14  ;;  %v6083_v60 = vmul.f32 %v5421_v14, %v5059_v46  ;;  %v6087_v47 = vmul.f32 %v5421_v14, %v5068_v32 }
 0x30b   :  { %8416 = vst [vmem:[#allocation94_spill] sm:$0xff] %v6051_v4  ;;  %8418 = vst [vmem:[#allocation101_spill] sm:$0xff] %v6055_v38  ;;  %v8421_v4 = vld [vmem:[#allocation150_spill] sm:$0xff]  ;;  %v8422_v38 = vld [vmem:[#allocation152_spill] sm:$0xff]  ;;  %v6091_v41 = vmul.f32 %v8142_v43, %v5421_v14  ;;  %v6103_v46 = vmul.f32 %v5421_v14, %v5088_v51  ;;  %v6107_v32 = vmul.f32 %v5074_v40, %v5421_v14 }
 0x30c   :  { %v6075_v55 = vmul.f32 %v8421_v4, %v5421_v14  ;;  %v6079_v22 = vmul.f32 %v8422_v38, %v5421_v14  ;;  %v6095_v4 = vmul.f32 %v8143_v44, %v5421_v14  ;;  %v6099_v38 = vmul.f32 %v5421_v14, %v5079_v12 }
 0x30d   :  { %v6111_v43 = vmul.f32 %v5081_v23, %v5421_v14  ;;  %v6115_v44 = vmul.f32 %v5421_v14, %v5099_v36  ;;  %v6119_v12 = vmul.f32 %v5421_v14, %v5108_v18  ;;  %v6123_v51 = vmul.f32 %v5094_v25, %v5421_v14 }
 0x30e   :  { %v6127_v40 = vmul.f32 %v5101_v35, %v5421_v14  ;;  %v6131_v23 = vmul.f32 %v5421_v14, %v5119_v17  ;;  %v6135_v36 = vmul.f32 %v5421_v14, %v5128_v5  ;;  %v6139_v18 = vmul.f32 %v5114_v3, %v5421_v14 }
 0x30f   :  { %v6143_v25 = vmul.f32 %v5121_v13, %v5421_v14  ;;  %v6147_v35 = vmul.f32 %v5421_v14, %v5139_v28  ;;  %v6151_v17 = vmul.f32 %v5421_v14, %v5148_v0  ;;  %v6155_v5 = vmul.f32 %v5134_v8, %v5421_v14 }
 0x310   :  { %v6159_v3 = vmul.f32 %v5141_v24, %v5421_v14  ;;  %v6163_v13 = vmul.f32 %v5421_v14, %v5159_v39  ;;  %v6167_v28 = vmul.f32 %v5421_v14, %v5168_v49 }
 0x311   :  { %8423 = vst [vmem:[#allocation113_spill] sm:$0xff] %v6147_v35  ;;  %8424 = vst [vmem:[#allocation119_spill] sm:$0xff] %v6151_v17  ;;  %v8429_v35 = vld [vmem:[#allocation160_spill] sm:$0xff]  ;;  %v8431_v17 = vld [vmem:[#allocation161_spill] sm:$0xff] }
 0x312   :  { %8425 = vst [vmem:[#allocation122_spill] sm:$0xff] %v6155_v5  ;;  %8426 = vst [vmem:[#allocation118_spill] sm:$0xff] %v6159_v3  ;;  %v6171_v0 = vmul.f32 %v8429_v35, %v5421_v14  ;;  %v6175_v8 = vmul.f32 %v8431_v17, %v5421_v14  ;;  %v8433_v5 = vld [vmem:[#allocation163_spill] sm:$0xff]  ;;  %v8435_v3 = vld [vmem:[#allocation165_spill] sm:$0xff] }
 0x313   :  { %8427 = vst [vmem:[#allocation120_spill] sm:$0xff] %v6163_v13  ;;  %8428 = vst [vmem:[#allocation127_spill] sm:$0xff] %v6167_v28  ;;  %v6179_v24 = vmul.f32 %v5421_v14, %v8433_v5  ;;  %v6183_v39 = vmul.f32 %v5421_v14, %v8435_v3  ;;  %v8436_v13 = vld [vmem:[#allocation162_spill] sm:$0xff]  ;;  %v8438_v28 = vld [vmem:[#allocation164_spill] sm:$0xff] }
 0x314   :  { %8430 = vst [vmem:[#allocation130_spill] sm:$0xff] %v6171_v0  ;;  %8432 = vst [vmem:[#allocation126_spill] sm:$0xff] %v6175_v8  ;;  %v6187_v49 = vmul.f32 %v8436_v13, %v5421_v14  ;;  %v6191_v35 = vmul.f32 %v8438_v28, %v5421_v14  ;;  %v8440_v0 = vld [vmem:[#allocation167_spill] sm:$0xff]  ;;  %v8441_v8 = vld [vmem:[#allocation168_spill] sm:$0xff]  ;;  %v6207_v13 = vmul.f32 %v5201_v54, %v5421_v14 }
 0x315   :  { %8434 = vst [vmem:[#allocation128_spill] sm:$0xff] %v6179_v24  ;;  %v6195_v17 = vmul.f32 %v5421_v14, %v8440_v0  ;;  %v6199_v5 = vmul.f32 %v5421_v14, %v8441_v8  ;;  %v8442_v24 = vld [vmem:[#allocation166_spill] sm:$0xff]  ;;  %v8444_v28 = vsub.f32 %v5415_v7, %v5417_v37 }
 0x316   :  { %8437 = vst [vmem:[#allocation135_spill] sm:$0xff] %v6187_v49  ;;  %8439 = vst [vmem:[#allocation138_spill] sm:$0xff] %v6191_v35  ;;  %v6203_v3 = vmul.f32 %v8442_v24, %v5421_v14  ;;  %v8443_v49 = vsub.s32 0, %v5412_v59 }
 0x318   :  { %v6214_v35 = vrot.slane %v8444_v28, %v8443_v49  ;;  %v8452_v49 = vld [vmem:[#allocation159_spill] sm:$0xff]  ;;  %v8454_v28 = vld [vmem:[#allocation10_spill] sm:$0xff] }
 0x31a   :  { %v6218_v0 = vadd.f32 %v6214_v35, %v5427_v57  ;;  %v6222_v8 = vadd.f32 %v6214_v35, %v5431_v1  ;;  %v6226_v24 = vadd.f32 %v6214_v35, %v5435_v34  ;;  %v6230_v54 = vadd.f32 %v6214_v35, %v5439_v2  ;;  %v8446_v1 = vld [vmem:[#allocation151_spill] sm:$0xff]  ;;  %v8448_v2 = vld [vmem:[#allocation154_spill] sm:$0xff] }
 0x31b   :  { %v6234_v59 = vadd.f32 %v6214_v35, %v5443_v50  ;;  %v6238_v7 = vadd.f32 %v6214_v35, %v5447_v11  ;;  %v6242_v37 = vadd.f32 %v6214_v35, %v5451_v30  ;;  %v6246_v14 = vadd.f32 %v6214_v35, %v5455_v29  ;;  %v8450_v11 = vld [vmem:[#allocation158_spill] sm:$0xff] }
 0x31c   :  { %v6250_v57 = vadd.f32 %v6214_v35, %v5459_v42  ;;  %v6254_v34 = vadd.f32 %v6214_v35, %v8446_v1  ;;  %v6258_v50 = vadd.f32 %v6214_v35, %v8448_v2  ;;  %v6262_v30 = vadd.f32 %v6214_v35, %v8450_v11 }
 0x31d   :  { %v6266_v29 = vadd.f32 %v6214_v35, %v8452_v49  ;;  %v6270_v42 = vadd.f32 %v6214_v35, %v8454_v28 }
 0x31e   :  { %8445 = vst [vmem:[#allocation134_spill] sm:$0xff] %v6250_v57  ;;  %8447 = vst [vmem:[#allocation136_spill] sm:$0xff] %v6254_v34  ;;  %v8456_v57 = vld [vmem:[#allocation12_spill] sm:$0xff]  ;;  %v8458_v34 = vld [vmem:[#allocation9_spill] sm:$0xff] }
 0x31f   :  { %8449 = vst [vmem:[#allocation143_spill] sm:$0xff] %v6258_v50  ;;  %8451 = vst [vmem:[#allocation146_spill] sm:$0xff] %v6262_v30  ;;  %v6274_v1 = vadd.f32 %v6214_v35, %v8456_v57  ;;  %v6278_v2 = vadd.f32 %v6214_v35, %v8458_v34  ;;  %v8460_v50 = vld [vmem:[#allocation11_spill] sm:$0xff]  ;;  %v8462_v30 = vld [vmem:[#allocation14_spill] sm:$0xff] }
 0x320   :  { %8453 = vst [vmem:[#allocation142_spill] sm:$0xff] %v6266_v29  ;;  %8455 = vst [vmem:[#allocation144_spill] sm:$0xff] %v6270_v42  ;;  %v6282_v11 = vadd.f32 %v6214_v35, %v8460_v50  ;;  %v6286_v49 = vadd.f32 %v6214_v35, %v8462_v30  ;;  %v8464_v29 = vld [vmem:[#allocation16_spill] sm:$0xff]  ;;  %v8466_v42 = vld [vmem:[#allocation13_spill] sm:$0xff] }
 0x321   :  { %8457 = vst [vmem:[#allocation150_spill] sm:$0xff] %v6274_v1  ;;  %8459 = vst [vmem:[#allocation152_spill] sm:$0xff] %v6278_v2  ;;  %v6290_v28 = vadd.f32 %v6214_v35, %v8464_v29  ;;  %v6294_v57 = vadd.f32 %v6214_v35, %v8466_v42  ;;  %v8468_v1 = vld [vmem:[#allocation15_spill] sm:$0xff]  ;;  %v8470_v2 = vld [vmem:[#allocation18_spill] sm:$0xff] }
 0x322   :  { %8461 = vst [vmem:[#allocation160_spill] sm:$0xff] %v6282_v11  ;;  %8463 = vst [vmem:[#allocation161_spill] sm:$0xff] %v6286_v49  ;;  %v6298_v34 = vadd.f32 %v6214_v35, %v8468_v1  ;;  %v6302_v50 = vadd.f32 %v6214_v35, %v8470_v2  ;;  %v8472_v11 = vld [vmem:[#allocation20_spill] sm:$0xff]  ;;  %v8474_v49 = vld [vmem:[#allocation17_spill] sm:$0xff] }
 0x323   :  { %8465 = vst [vmem:[#allocation163_spill] sm:$0xff] %v6290_v28  ;;  %8467 = vst [vmem:[#allocation165_spill] sm:$0xff] %v6294_v57  ;;  %v6306_v30 = vadd.f32 %v6214_v35, %v8472_v11  ;;  %v6310_v29 = vadd.f32 %v6214_v35, %v8474_v49  ;;  %v8476_v28 = vld [vmem:[#allocation19_spill] sm:$0xff]  ;;  %v8478_v57 = vld [vmem:[#allocation22_spill] sm:$0xff] }
 0x324   :  { %8469 = vst [vmem:[#allocation162_spill] sm:$0xff] %v6298_v34  ;;  %8471 = vst [vmem:[#allocation164_spill] sm:$0xff] %v6302_v50  ;;  %v6314_v42 = vadd.f32 %v6214_v35, %v8476_v28  ;;  %v6318_v1 = vadd.f32 %v6214_v35, %v8478_v57  ;;  %v8480_v34 = vld [vmem:[#allocation24_spill] sm:$0xff]  ;;  %v8482_v50 = vld [vmem:[#allocation21_spill] sm:$0xff] }
 0x325   :  { %8473 = vst [vmem:[#allocation167_spill] sm:$0xff] %v6306_v30  ;;  %8475 = vst [vmem:[#allocation168_spill] sm:$0xff] %v6310_v29  ;;  %v6322_v2 = vadd.f32 %v6214_v35, %v8480_v34  ;;  %v6326_v11 = vadd.f32 %v6214_v35, %v8482_v50  ;;  %v8484_v30 = vld [vmem:[#allocation23_spill] sm:$0xff]  ;;  %v8486_v29 = vld [vmem:[#allocation26_spill] sm:$0xff] }
 0x326   :  { %8477 = vst [vmem:[#allocation166_spill] sm:$0xff] %v6314_v42  ;;  %8479 = vst [vmem:[#allocation151_spill] sm:$0xff] %v6318_v1  ;;  %v6330_v49 = vadd.f32 %v6214_v35, %v8484_v30  ;;  %v6334_v28 = vadd.f32 %v6214_v35, %v8486_v29  ;;  %v8488_v42 = vld [vmem:[#allocation28_spill] sm:$0xff]  ;;  %v8490_v1 = vld [vmem:[#allocation25_spill] sm:$0xff] }
 0x327   :  { %8481 = vst [vmem:[#allocation154_spill] sm:$0xff] %v6322_v2  ;;  %8483 = vst [vmem:[#allocation158_spill] sm:$0xff] %v6326_v11  ;;  %v6338_v57 = vadd.f32 %v6214_v35, %v8488_v42  ;;  %v6342_v34 = vadd.f32 %v6214_v35, %v8490_v1  ;;  %v8492_v2 = vld [vmem:[#allocation27_spill] sm:$0xff]  ;;  %v8494_v11 = vld [vmem:[#allocation30_spill] sm:$0xff] }
 0x328   :  { %8485 = vst [vmem:[#allocation159_spill] sm:$0xff] %v6330_v49  ;;  %8487 = vst [vmem:[#allocation10_spill] sm:$0xff] %v6334_v28  ;;  %v6346_v50 = vadd.f32 %v6214_v35, %v8492_v2  ;;  %v6350_v30 = vadd.f32 %v6214_v35, %v8494_v11  ;;  %v8496_v49 = vld [vmem:[#allocation32_spill] sm:$0xff]  ;;  %v8498_v28 = vld [vmem:[#allocation29_spill] sm:$0xff] }
 0x329   :  { %8489 = vst [vmem:[#allocation12_spill] sm:$0xff] %v6338_v57  ;;  %8491 = vst [vmem:[#allocation9_spill] sm:$0xff] %v6342_v34  ;;  %v6354_v29 = vadd.f32 %v6214_v35, %v8496_v49  ;;  %v6358_v42 = vadd.f32 %v6214_v35, %v8498_v28  ;;  %v8500_v57 = vld [vmem:[#allocation31_spill] sm:$0xff]  ;;  %v8502_v34 = vld [vmem:[#allocation34_spill] sm:$0xff] }
 0x32a   :  { %8493 = vst [vmem:[#allocation11_spill] sm:$0xff] %v6346_v50  ;;  %8495 = vst [vmem:[#allocation14_spill] sm:$0xff] %v6350_v30  ;;  %v6362_v1 = vadd.f32 %v6214_v35, %v8500_v57  ;;  %v6366_v2 = vadd.f32 %v6214_v35, %v8502_v34  ;;  %v8504_v50 = vld [vmem:[#allocation36_spill] sm:$0xff]  ;;  %v8506_v30 = vld [vmem:[#allocation33_spill] sm:$0xff] }
 0x32b   :  { %8497 = vst [vmem:[#allocation16_spill] sm:$0xff] %v6354_v29  ;;  %8499 = vst [vmem:[#allocation13_spill] sm:$0xff] %v6358_v42  ;;  %v6370_v11 = vadd.f32 %v6214_v35, %v8504_v50  ;;  %v6374_v49 = vadd.f32 %v6214_v35, %v8506_v30  ;;  %v8508_v29 = vld [vmem:[#allocation35_spill] sm:$0xff]  ;;  %v8510_v42 = vld [vmem:[#allocation38_spill] sm:$0xff] }
 0x32c   :  { %8501 = vst [vmem:[#allocation15_spill] sm:$0xff] %v6362_v1  ;;  %8503 = vst [vmem:[#allocation18_spill] sm:$0xff] %v6366_v2  ;;  %v6378_v28 = vadd.f32 %v6214_v35, %v8508_v29  ;;  %v6382_v57 = vadd.f32 %v6214_v35, %v8510_v42  ;;  %v8512_v1 = vld [vmem:[#allocation40_spill] sm:$0xff]  ;;  %v8514_v2 = vld [vmem:[#allocation37_spill] sm:$0xff] }
 0x32d   :  { %8505 = vst [vmem:[#allocation20_spill] sm:$0xff] %v6370_v11  ;;  %8507 = vst [vmem:[#allocation17_spill] sm:$0xff] %v6374_v49  ;;  %v6386_v34 = vadd.f32 %v6214_v35, %v8512_v1  ;;  %v6390_v50 = vadd.f32 %v6214_v35, %v8514_v2  ;;  %v8516_v11 = vld [vmem:[#allocation39_spill] sm:$0xff]  ;;  %v8518_v49 = vld [vmem:[#allocation42_spill] sm:$0xff] }
 0x32e   :  { %8509 = vst [vmem:[#allocation19_spill] sm:$0xff] %v6378_v28  ;;  %8511 = vst [vmem:[#allocation22_spill] sm:$0xff] %v6382_v57  ;;  %v6394_v30 = vadd.f32 %v6214_v35, %v8516_v11  ;;  %v6398_v29 = vadd.f32 %v6214_v35, %v8518_v49  ;;  %v8520_v28 = vld [vmem:[#allocation44_spill] sm:$0xff]  ;;  %v8522_v57 = vld [vmem:[#allocation41_spill] sm:$0xff] }
 0x32f   :  { %8513 = vst [vmem:[#allocation24_spill] sm:$0xff] %v6386_v34  ;;  %8515 = vst [vmem:[#allocation21_spill] sm:$0xff] %v6390_v50  ;;  %v6402_v42 = vadd.f32 %v6214_v35, %v8520_v28  ;;  %v6406_v1 = vadd.f32 %v6214_v35, %v8522_v57  ;;  %v8524_v34 = vld [vmem:[#allocation43_spill] sm:$0xff]  ;;  %v8526_v50 = vld [vmem:[#allocation50_spill] sm:$0xff] }
 0x330   :  { %8517 = vst [vmem:[#allocation23_spill] sm:$0xff] %v6394_v30  ;;  %8519 = vst [vmem:[#allocation26_spill] sm:$0xff] %v6398_v29  ;;  %v6410_v2 = vadd.f32 %v6214_v35, %v8524_v34  ;;  %v6414_v11 = vadd.f32 %v6214_v35, %v8526_v50  ;;  %v8528_v30 = vld [vmem:[#allocation52_spill] sm:$0xff] }
 0x331   :  { %8521 = vst [vmem:[#allocation28_spill] sm:$0xff] %v6402_v42  ;;  %8523 = vst [vmem:[#allocation25_spill] sm:$0xff] %v6406_v1  ;;  %v6418_v49 = vadd.f32 %v6214_v35, %v8528_v30  ;;  %v8530_v29 = vld [vmem:[#allocation48_spill] sm:$0xff]  ;;  %v8532_v42 = vld [vmem:[#allocation51_spill] sm:$0xff] }
 0x332   :  { %8525 = vst [vmem:[#allocation27_spill] sm:$0xff] %v6410_v2  ;;  %8527 = vst [vmem:[#allocation30_spill] sm:$0xff] %v6414_v11  ;;  %v6422_v28 = vadd.f32 %v6214_v35, %v8530_v29  ;;  %v6426_v57 = vadd.f32 %v6214_v35, %v8532_v42  ;;  %v8534_v1 = vld [vmem:[#allocation58_spill] sm:$0xff]  ;;  %v8536_v2 = vld [vmem:[#allocation60_spill] sm:$0xff] }
 0x333   :  { %8529 = vst [vmem:[#allocation32_spill] sm:$0xff] %v6418_v49  ;;  %v6430_v34 = vadd.f32 %v6214_v35, %v8534_v1  ;;  %v6434_v50 = vadd.f32 %v6214_v35, %v8536_v2  ;;  %v8538_v11 = vld [vmem:[#allocation56_spill] sm:$0xff]  ;;  %v8540_v49 = vld [vmem:[#allocation59_spill] sm:$0xff] }
 0x334   :  { %8531 = vst [vmem:[#allocation29_spill] sm:$0xff] %v6422_v28  ;;  %8533 = vst [vmem:[#allocation31_spill] sm:$0xff] %v6426_v57  ;;  %v6438_v30 = vadd.f32 %v6214_v35, %v8538_v11  ;;  %v6442_v29 = vadd.f32 %v6214_v35, %v8540_v49  ;;  %v8542_v28 = vld [vmem:[#allocation66_spill] sm:$0xff]  ;;  %v8544_v57 = vld [vmem:[#allocation68_spill] sm:$0xff] }
 0x335   :  { %8535 = vst [vmem:[#allocation34_spill] sm:$0xff] %v6430_v34  ;;  %8537 = vst [vmem:[#allocation36_spill] sm:$0xff] %v6434_v50  ;;  %v6446_v42 = vadd.f32 %v6214_v35, %v8542_v28  ;;  %v6450_v1 = vadd.f32 %v6214_v35, %v8544_v57  ;;  %v8546_v34 = vld [vmem:[#allocation64_spill] sm:$0xff]  ;;  %v8548_v50 = vld [vmem:[#allocation67_spill] sm:$0xff] }
 0x336   :  { %8539 = vst [vmem:[#allocation33_spill] sm:$0xff] %v6438_v30  ;;  %8541 = vst [vmem:[#allocation35_spill] sm:$0xff] %v6442_v29  ;;  %v6454_v2 = vadd.f32 %v6214_v35, %v8546_v34  ;;  %v6458_v11 = vadd.f32 %v6214_v35, %v8548_v50  ;;  %v8550_v30 = vld [vmem:[#allocation74_spill] sm:$0xff]  ;;  %v8552_v29 = vld [vmem:[#allocation76_spill] sm:$0xff] }
 0x337   :  { %8543 = vst [vmem:[#allocation38_spill] sm:$0xff] %v6446_v42  ;;  %8545 = vst [vmem:[#allocation40_spill] sm:$0xff] %v6450_v1  ;;  %v6462_v49 = vadd.f32 %v6214_v35, %v8550_v30  ;;  %v6466_v28 = vadd.f32 %v6214_v35, %v8552_v29  ;;  %v8554_v42 = vld [vmem:[#allocation72_spill] sm:$0xff]  ;;  %v8556_v1 = vld [vmem:[#allocation75_spill] sm:$0xff] }
 0x338   :  { %8547 = vst [vmem:[#allocation37_spill] sm:$0xff] %v6454_v2  ;;  %8549 = vst [vmem:[#allocation39_spill] sm:$0xff] %v6458_v11  ;;  %v6470_v57 = vadd.f32 %v6214_v35, %v8554_v42  ;;  %v6474_v34 = vadd.f32 %v6214_v35, %v8556_v1  ;;  %v8558_v2 = vld [vmem:[#allocation82_spill] sm:$0xff]  ;;  %v8560_v11 = vld [vmem:[#allocation84_spill] sm:$0xff] }
 0x339   :  { %8551 = vst [vmem:[#allocation42_spill] sm:$0xff] %v6462_v49  ;;  %8553 = vst [vmem:[#allocation44_spill] sm:$0xff] %v6466_v28  ;;  %v6478_v50 = vadd.f32 %v6214_v35, %v8558_v2  ;;  %v6482_v30 = vadd.f32 %v6214_v35, %v8560_v11  ;;  %v8562_v49 = vld [vmem:[#allocation80_spill] sm:$0xff]  ;;  %v8564_v28 = vld [vmem:[#allocation83_spill] sm:$0xff] }
 0x33a   :  { %8555 = vst [vmem:[#allocation41_spill] sm:$0xff] %v6470_v57  ;;  %8557 = vst [vmem:[#allocation43_spill] sm:$0xff] %v6474_v34  ;;  %v6486_v29 = vadd.f32 %v6214_v35, %v8562_v49  ;;  %v6490_v42 = vadd.f32 %v6214_v35, %v8564_v28  ;;  %v8566_v57 = vld [vmem:[#allocation90_spill] sm:$0xff]  ;;  %v8568_v34 = vld [vmem:[#allocation92_spill] sm:$0xff] }
 0x33b   :  { %8559 = vst [vmem:[#allocation50_spill] sm:$0xff] %v6478_v50  ;;  %8561 = vst [vmem:[#allocation52_spill] sm:$0xff] %v6482_v30  ;;  %v6494_v1 = vadd.f32 %v6214_v35, %v8566_v57  ;;  %v6498_v2 = vadd.f32 %v6214_v35, %v8568_v34  ;;  %v8570_v50 = vld [vmem:[#allocation88_spill] sm:$0xff]  ;;  %v8572_v30 = vld [vmem:[#allocation91_spill] sm:$0xff] }
 0x33c   :  { %8563 = vst [vmem:[#allocation48_spill] sm:$0xff] %v6486_v29  ;;  %8565 = vst [vmem:[#allocation51_spill] sm:$0xff] %v6490_v42  ;;  %v6502_v11 = vadd.f32 %v6214_v35, %v8570_v50  ;;  %v6506_v49 = vadd.f32 %v6214_v35, %v8572_v30  ;;  %v8574_v29 = vld [vmem:[#allocation97_spill] sm:$0xff]  ;;  %v8576_v42 = vld [vmem:[#allocation99_spill] sm:$0xff] }
 0x33d   :  { %8567 = vst [vmem:[#allocation58_spill] sm:$0xff] %v6494_v1  ;;  %8569 = vst [vmem:[#allocation60_spill] sm:$0xff] %v6498_v2  ;;  %v6510_v28 = vadd.f32 %v6214_v35, %v8574_v29  ;;  %v6514_v57 = vadd.f32 %v6214_v35, %v8576_v42  ;;  %v8578_v1 = vld [vmem:[#allocation95_spill] sm:$0xff]  ;;  %v8580_v2 = vld [vmem:[#allocation98_spill] sm:$0xff] }
 0x33e   :  { %8571 = vst [vmem:[#allocation56_spill] sm:$0xff] %v6502_v11  ;;  %8573 = vst [vmem:[#allocation59_spill] sm:$0xff] %v6506_v49  ;;  %v6518_v34 = vadd.f32 %v6214_v35, %v8578_v1  ;;  %v6522_v50 = vadd.f32 %v6214_v35, %v8580_v2  ;;  %v8582_v11 = vld [vmem:[#allocation102_spill] sm:$0xff]  ;;  %v8584_v49 = vld [vmem:[#allocation104_spill] sm:$0xff] }
 0x33f   :  { %8575 = vst [vmem:[#allocation66_spill] sm:$0xff] %v6510_v28  ;;  %8577 = vst [vmem:[#allocation68_spill] sm:$0xff] %v6514_v57  ;;  %v6526_v30 = vadd.f32 %v6214_v35, %v8582_v11  ;;  %v6530_v29 = vadd.f32 %v6214_v35, %v8584_v49  ;;  %v8586_v28 = vld [vmem:[#allocation100_spill] sm:$0xff]  ;;  %v8588_v57 = vld [vmem:[#allocation103_spill] sm:$0xff] }
 0x340   :  { %8579 = vst [vmem:[#allocation64_spill] sm:$0xff] %v6518_v34  ;;  %8581 = vst [vmem:[#allocation67_spill] sm:$0xff] %v6522_v50  ;;  %v6534_v42 = vadd.f32 %v6214_v35, %v8586_v28  ;;  %v6538_v1 = vadd.f32 %v6214_v35, %v8588_v57  ;;  %v8590_v34 = vld [vmem:[#allocation106_spill] sm:$0xff]  ;;  %v8592_v50 = vld [vmem:[#allocation108_spill] sm:$0xff] }
 0x341   :  { %8583 = vst [vmem:[#allocation74_spill] sm:$0xff] %v6526_v30  ;;  %8585 = vst [vmem:[#allocation76_spill] sm:$0xff] %v6530_v29  ;;  %v6542_v2 = vadd.f32 %v6214_v35, %v8590_v34  ;;  %v6546_v11 = vadd.f32 %v6214_v35, %v8592_v50  ;;  %v8594_v30 = vld [vmem:[#allocation105_spill] sm:$0xff]  ;;  %v8596_v29 = vld [vmem:[#allocation107_spill] sm:$0xff] }
 0x342   :  { %8587 = vst [vmem:[#allocation72_spill] sm:$0xff] %v6534_v42  ;;  %8589 = vst [vmem:[#allocation75_spill] sm:$0xff] %v6538_v1  ;;  %v6550_v49 = vadd.f32 %v6214_v35, %v8594_v30  ;;  %v6554_v28 = vadd.f32 %v6214_v35, %v8596_v29  ;;  %v8598_v42 = vld [vmem:[#allocation110_spill] sm:$0xff]  ;;  %v8600_v1 = vld [vmem:[#allocation112_spill] sm:$0xff] }
 0x343   :  { %8591 = vst [vmem:[#allocation82_spill] sm:$0xff] %v6542_v2  ;;  %8593 = vst [vmem:[#allocation84_spill] sm:$0xff] %v6546_v11  ;;  %v6558_v57 = vadd.f32 %v6214_v35, %v8598_v42  ;;  %v6562_v34 = vadd.f32 %v6214_v35, %v8600_v1  ;;  %v8602_v2 = vld [vmem:[#allocation109_spill] sm:$0xff]  ;;  %v8604_v11 = vld [vmem:[#allocation111_spill] sm:$0xff] }
 0x344   :  { %8595 = vst [vmem:[#allocation80_spill] sm:$0xff] %v6550_v49  ;;  %8597 = vst [vmem:[#allocation83_spill] sm:$0xff] %v6554_v28  ;;  %v6566_v50 = vadd.f32 %v6214_v35, %v8602_v2  ;;  %v6570_v30 = vadd.f32 %v6214_v35, %v8604_v11  ;;  %v8606_v49 = vld [vmem:[#allocation115_spill] sm:$0xff]  ;;  %v8608_v28 = vld [vmem:[#allocation117_spill] sm:$0xff] }
 0x345   :  { %8599 = vst [vmem:[#allocation90_spill] sm:$0xff] %v6558_v57  ;;  %8601 = vst [vmem:[#allocation92_spill] sm:$0xff] %v6562_v34  ;;  %v6574_v29 = vadd.f32 %v6214_v35, %v8606_v49  ;;  %v6578_v42 = vadd.f32 %v6214_v35, %v8608_v28  ;;  %v8610_v57 = vld [vmem:[#allocation114_spill] sm:$0xff]  ;;  %v8612_v34 = vld [vmem:[#allocation116_spill] sm:$0xff] }
 0x346   :  { %8603 = vst [vmem:[#allocation88_spill] sm:$0xff] %v6566_v50  ;;  %8605 = vst [vmem:[#allocation91_spill] sm:$0xff] %v6570_v30  ;;  %v6582_v1 = vadd.f32 %v6214_v35, %v8610_v57  ;;  %v6586_v2 = vadd.f32 %v6214_v35, %v8612_v34  ;;  %v8614_v50 = vld [vmem:[#allocation123_spill] sm:$0xff]  ;;  %v8616_v30 = vld [vmem:[#allocation125_spill] sm:$0xff] }
 0x347   :  { %8607 = vst [vmem:[#allocation97_spill] sm:$0xff] %v6574_v29  ;;  %8609 = vst [vmem:[#allocation99_spill] sm:$0xff] %v6578_v42  ;;  %v6590_v11 = vadd.f32 %v6214_v35, %v8614_v50  ;;  %v6594_v49 = vadd.f32 %v6214_v35, %v8616_v30  ;;  %v8618_v29 = vld [vmem:[#allocation121_spill] sm:$0xff]  ;;  %v8620_v42 = vld [vmem:[#allocation124_spill] sm:$0xff] }
 0x348   :  { %8611 = vst [vmem:[#allocation95_spill] sm:$0xff] %v6582_v1  ;;  %8613 = vst [vmem:[#allocation98_spill] sm:$0xff] %v6586_v2  ;;  %v6598_v28 = vadd.f32 %v6214_v35, %v8618_v29  ;;  %v6602_v57 = vadd.f32 %v6214_v35, %v8620_v42  ;;  %v8622_v1 = vld [vmem:[#allocation131_spill] sm:$0xff]  ;;  %v8624_v2 = vld [vmem:[#allocation133_spill] sm:$0xff] }
 0x349   :  { %8615 = vst [vmem:[#allocation102_spill] sm:$0xff] %v6590_v11  ;;  %8617 = vst [vmem:[#allocation104_spill] sm:$0xff] %v6594_v49  ;;  %v6606_v34 = vadd.f32 %v6214_v35, %v8622_v1  ;;  %v6610_v50 = vadd.f32 %v6214_v35, %v8624_v2  ;;  %v8626_v11 = vld [vmem:[#allocation129_spill] sm:$0xff]  ;;  %v8628_v49 = vld [vmem:[#allocation132_spill] sm:$0xff] }
 0x34a   :  { %8619 = vst [vmem:[#allocation100_spill] sm:$0xff] %v6598_v28  ;;  %8621 = vst [vmem:[#allocation103_spill] sm:$0xff] %v6602_v57  ;;  %v6614_v30 = vadd.f32 %v6214_v35, %v8626_v11  ;;  %v6618_v29 = vadd.f32 %v6214_v35, %v8628_v49  ;;  %v8630_v28 = vld [vmem:[#allocation139_spill] sm:$0xff]  ;;  %v8632_v57 = vld [vmem:[#allocation141_spill] sm:$0xff] }
 0x34b   :  { %8623 = vst [vmem:[#allocation106_spill] sm:$0xff] %v6606_v34  ;;  %8625 = vst [vmem:[#allocation108_spill] sm:$0xff] %v6610_v50  ;;  %v6622_v42 = vadd.f32 %v6214_v35, %v8630_v28  ;;  %v6626_v1 = vadd.f32 %v6214_v35, %v8632_v57  ;;  %v8634_v34 = vld [vmem:[#allocation137_spill] sm:$0xff]  ;;  %v8636_v50 = vld [vmem:[#allocation140_spill] sm:$0xff] }
 0x34c   :  { %8627 = vst [vmem:[#allocation105_spill] sm:$0xff] %v6614_v30  ;;  %8629 = vst [vmem:[#allocation107_spill] sm:$0xff] %v6618_v29  ;;  %v6630_v2 = vadd.f32 %v6214_v35, %v8634_v34  ;;  %v6634_v11 = vadd.f32 %v6214_v35, %v8636_v50  ;;  %v8638_v30 = vld [vmem:[#allocation147_spill] sm:$0xff]  ;;  %v8640_v29 = vld [vmem:[#allocation149_spill] sm:$0xff] }
 0x34d   :  { %8631 = vst [vmem:[#allocation110_spill] sm:$0xff] %v6622_v42  ;;  %8633 = vst [vmem:[#allocation112_spill] sm:$0xff] %v6626_v1  ;;  %v6638_v49 = vadd.f32 %v6214_v35, %v8638_v30  ;;  %v6642_v28 = vadd.f32 %v6214_v35, %v8640_v29  ;;  %v8642_v42 = vld [vmem:[#allocation145_spill] sm:$0xff]  ;;  %v8644_v1 = vld [vmem:[#allocation148_spill] sm:$0xff] }
 0x34e   :  { %8635 = vst [vmem:[#allocation109_spill] sm:$0xff] %v6630_v2  ;;  %8637 = vst [vmem:[#allocation111_spill] sm:$0xff] %v6634_v11  ;;  %v6646_v57 = vadd.f32 %v6214_v35, %v8642_v42  ;;  %v6650_v34 = vadd.f32 %v6214_v35, %v8644_v1  ;;  %v8646_v2 = vld [vmem:[#allocation155_spill] sm:$0xff]  ;;  %v8648_v11 = vld [vmem:[#allocation157_spill] sm:$0xff] }
 0x34f   :  { %8639 = vst [vmem:[#allocation115_spill] sm:$0xff] %v6638_v49  ;;  %8641 = vst [vmem:[#allocation117_spill] sm:$0xff] %v6642_v28  ;;  %v6654_v50 = vadd.f32 %v6214_v35, %v8646_v2  ;;  %v6658_v30 = vadd.f32 %v6214_v35, %v8648_v11  ;;  %v8650_v49 = vld [vmem:[#allocation153_spill] sm:$0xff]  ;;  %v8652_v28 = vld [vmem:[#allocation156_spill] sm:$0xff] }
 0x350   :  { %8643 = vst [vmem:[#allocation114_spill] sm:$0xff] %v6646_v57  ;;  %8645 = vst [vmem:[#allocation116_spill] sm:$0xff] %v6650_v34  ;;  %v6662_v29 = vadd.f32 %v6214_v35, %v8650_v49  ;;  %v6666_v42 = vadd.f32 %v6214_v35, %v8652_v28  ;;  %v8653_v57 = vld [vmem:[#allocation46_spill] sm:$0xff]  ;;  %v8655_v34 = vld [vmem:[#allocation49_spill] sm:$0xff] }
 0x351   :  { %8647 = vst [vmem:[#allocation123_spill] sm:$0xff] %v6654_v50  ;;  %8649 = vst [vmem:[#allocation125_spill] sm:$0xff] %v6658_v30  ;;  %v6670_v1 = vadd.f32 %v6214_v35, %v8653_v57  ;;  %v6674_v2 = vadd.f32 %v6214_v35, %v8655_v34  ;;  %v8657_v50 = vld [vmem:[#allocation45_spill] sm:$0xff]  ;;  %v8659_v30 = vld [vmem:[#allocation47_spill] sm:$0xff]  ;;  %v6690_v57 = vadd.f32 %v6214_v35, %v5899_v31 }
 0x352   :  { %8651 = vst [vmem:[#allocation121_spill] sm:$0xff] %v6662_v29  ;;  %v6678_v11 = vadd.f32 %v6214_v35, %v8657_v50  ;;  %v6682_v49 = vadd.f32 %v6214_v35, %v8659_v30  ;;  %v8660_v29 = vld [vmem:[#allocation54_spill] sm:$0xff] }
 0x353   :  { %8654 = vst [vmem:[#allocation124_spill] sm:$0xff] %v6670_v1  ;;  %8656 = vst [vmem:[#allocation131_spill] sm:$0xff] %v6674_v2  ;;  %v6686_v28 = vadd.f32 %v6214_v35, %v8660_v29  ;;  %v8662_v1 = vld [vmem:[#allocation57_spill] sm:$0xff]  ;;  %v6706_v29 = vadd.f32 %v6214_v35, %v5915_v16  ;;  %v6726_v16 = vadd.f32 %v6214_v35, %v5935_v56 }
 0x354   :  { %8658 = vst [vmem:[#allocation133_spill] sm:$0xff] %v6678_v11  ;;  %v6694_v34 = vadd.f32 %v6214_v35, %v8662_v1  ;;  %v8663_v2 = vld [vmem:[#allocation53_spill] sm:$0xff]  ;;  %v8664_v11 = vld [vmem:[#allocation55_spill] sm:$0xff]  ;;  %v6714_v1 = vadd.f32 %v6214_v35, %v5923_v21  ;;  %v6734_v21 = vadd.f32 %v6214_v35, %v5943_v26  ;;  %v6746_v56 = vadd.f32 %v6214_v35, %v5955_v9 }
 0x355   :  { %8661 = vst [vmem:[#allocation129_spill] sm:$0xff] %v6686_v28  ;;  %v6698_v50 = vadd.f32 %v6214_v35, %v8663_v2  ;;  %v6702_v30 = vadd.f32 %v6214_v35, %v8664_v11  ;;  %v8665_v28 = vld [vmem:[#allocation62_spill] sm:$0xff]  ;;  %v6718_v2 = vadd.f32 %v6214_v35, %v5927_v61  ;;  %v6722_v11 = vadd.f32 %v6214_v35, %v5931_v33 }
 0x356   :  { %v6710_v31 = vadd.f32 %v6214_v35, %v8665_v28  ;;  %v6730_v28 = vadd.f32 %v6214_v35, %v5939_v58  ;;  %v6738_v61 = vadd.f32 %v6214_v35, %v5947_v53  ;;  %v6742_v33 = vadd.f32 %v6214_v35, %v5951_v63  ;;  %8667 = vst [vmem:[#allocation139_spill] sm:$0xff] %v6746_v56  ;;  %v8674_v56 = vld [vmem:[#allocation61_spill] sm:$0xff] }
 0x357   :  { %v6750_v58 = vadd.f32 %v6214_v35, %v5959_v6  ;;  %v6754_v26 = vadd.f32 %v6214_v35, %v5963_v62  ;;  %v6758_v53 = vadd.f32 %v6214_v35, %v5967_v52  ;;  %v6762_v63 = vadd.f32 %v6214_v35, %v5971_v15 }
 0x358   :  { %8666 = vst [vmem:[#allocation132_spill] sm:$0xff] %v6742_v33  ;;  %v8672_v33 = vld [vmem:[#allocation65_spill] sm:$0xff]  ;;  %v6770_v6 = vadd.f32 %v6214_v35, %v8674_v56 }
 0x359   :  { %8668 = vst [vmem:[#allocation141_spill] sm:$0xff] %v6750_v58  ;;  %8669 = vst [vmem:[#allocation137_spill] sm:$0xff] %v6754_v26  ;;  %v6766_v9 = vadd.f32 %v6214_v35, %v8672_v33  ;;  %v8676_v58 = vld [vmem:[#allocation63_spill] sm:$0xff]  ;;  %v8678_v26 = vld [vmem:[#allocation70_spill] sm:$0xff] }
 0x35a   :  { %8670 = vst [vmem:[#allocation140_spill] sm:$0xff] %v6758_v53  ;;  %8671 = vst [vmem:[#allocation147_spill] sm:$0xff] %v6762_v63  ;;  %v6774_v62 = vadd.f32 %v6214_v35, %v8676_v58  ;;  %v6778_v52 = vadd.f32 %v6214_v35, %v8678_v26  ;;  %v8680_v53 = vld [vmem:[#allocation73_spill] sm:$0xff] }
 0x35b   :  { %8673 = vst [vmem:[#allocation149_spill] sm:$0xff] %v6766_v9  ;;  %8675 = vst [vmem:[#allocation145_spill] sm:$0xff] %v6770_v6  ;;  %v6782_v15 = vadd.f32 %v6214_v35, %v8680_v53  ;;  %v8682_v63 = vld [vmem:[#allocation69_spill] sm:$0xff]  ;;  %v8684_v9 = vld [vmem:[#allocation71_spill] sm:$0xff] }
 0x35c   :  { %8677 = vst [vmem:[#allocation148_spill] sm:$0xff] %v6774_v62  ;;  %8679 = vst [vmem:[#allocation155_spill] sm:$0xff] %v6778_v52  ;;  %v6786_v33 = vadd.f32 %v6214_v35, %v8682_v63  ;;  %v6790_v56 = vadd.f32 %v6214_v35, %v8684_v9  ;;  %v8686_v6 = vld [vmem:[#allocation78_spill] sm:$0xff]  ;;  %v8688_v62 = vld [vmem:[#allocation81_spill] sm:$0xff] }
 0x35d   :  { %8681 = vst [vmem:[#allocation157_spill] sm:$0xff] %v6782_v15  ;;  %v6794_v58 = vadd.f32 %v6214_v35, %v8686_v6  ;;  %v6798_v26 = vadd.f32 %v6214_v35, %v8688_v62  ;;  %v8690_v52 = vld [vmem:[#allocation77_spill] sm:$0xff]  ;;  %v8692_v15 = vld [vmem:[#allocation79_spill] sm:$0xff] }
 0x35e   :  { %8683 = vst [vmem:[#allocation153_spill] sm:$0xff] %v6786_v33  ;;  %8685 = vst [vmem:[#allocation156_spill] sm:$0xff] %v6790_v56  ;;  %v6802_v53 = vadd.f32 %v6214_v35, %v8690_v52  ;;  %v6806_v63 = vadd.f32 %v6214_v35, %v8692_v15  ;;  %v8694_v33 = vld [vmem:[#allocation86_spill] sm:$0xff]  ;;  %v8695_v56 = vld [vmem:[#allocation89_spill] sm:$0xff] }
 0x35f   :  { %8687 = vst [vmem:[#allocation46_spill] sm:$0xff] %v6794_v58  ;;  %8689 = vst [vmem:[#allocation49_spill] sm:$0xff] %v6798_v26  ;;  %v6810_v9 = vadd.f32 %v6214_v35, %v8694_v33  ;;  %v6814_v6 = vadd.f32 %v6214_v35, %v8695_v56  ;;  %v8696_v58 = vld [vmem:[#allocation85_spill] sm:$0xff]  ;;  %v8698_v26 = vld [vmem:[#allocation87_spill] sm:$0xff]  ;;  %v6834_v56 = vadd.f32 %v6214_v35, %v6043_v48 }
 0x360   :  { %8691 = vst [vmem:[#allocation45_spill] sm:$0xff] %v6802_v53  ;;  %8693 = vst [vmem:[#allocation47_spill] sm:$0xff] %v6806_v63  ;;  %v6818_v62 = vadd.f32 %v6214_v35, %v8696_v58  ;;  %v6822_v52 = vadd.f32 %v6214_v35, %v8698_v26  ;;  %v8700_v53 = vld [vmem:[#allocation96_spill] sm:$0xff]  ;;  %v8701_v63 = vld [vmem:[#allocation93_spill] sm:$0xff]  ;;  %v6838_v58 = vadd.f32 %v6214_v35, %v6047_v27 }
 0x361   :  { %v6826_v15 = vadd.f32 %v6214_v35, %v8700_v53  ;;  %v6830_v33 = vadd.f32 %v6214_v35, %v8701_v63  ;;  %v6850_v63 = vadd.f32 %v6214_v35, %v6059_v20  ;;  %v6854_v48 = vadd.f32 %v6214_v35, %v6063_v45 }
 0x362   :  { %8697 = vst [vmem:[#allocation54_spill] sm:$0xff] %v6818_v62  ;;  %8699 = vst [vmem:[#allocation57_spill] sm:$0xff] %v6822_v52  ;;  %v8702_v62 = vld [vmem:[#allocation94_spill] sm:$0xff]  ;;  %v8703_v52 = vld [vmem:[#allocation101_spill] sm:$0xff]  ;;  %v6858_v27 = vadd.f32 %v6214_v35, %v6067_v19  ;;  %v6870_v20 = vadd.f32 %v6214_v35, %v6079_v22  ;;  %v6874_v45 = vadd.f32 %v6214_v35, %v6083_v60 }
 0x363   :  { %v6842_v26 = vadd.f32 %v6214_v35, %v8702_v62  ;;  %v6846_v53 = vadd.f32 %v6214_v35, %v8703_v52  ;;  %v6862_v62 = vadd.f32 %v6214_v35, %v6071_v10  ;;  %v6866_v52 = vadd.f32 %v6214_v35, %v6075_v55 }
 0x364   :  { %v6878_v19 = vadd.f32 %v6214_v35, %v6087_v47  ;;  %v6882_v10 = vadd.f32 %v6214_v35, %v6091_v41  ;;  %v6886_v55 = vadd.f32 %v6214_v35, %v6095_v4  ;;  %v6890_v22 = vadd.f32 %v6214_v35, %v6099_v38 }
 0x365   :  { %v6894_v60 = vadd.f32 %v6214_v35, %v6103_v46  ;;  %v6898_v47 = vadd.f32 %v6214_v35, %v6107_v32  ;;  %v6902_v41 = vadd.f32 %v6214_v35, %v6111_v43  ;;  %v6906_v4 = vadd.f32 %v6214_v35, %v6115_v44 }
 0x366   :  { %v6910_v38 = vadd.f32 %v6214_v35, %v6119_v12  ;;  %v6914_v46 = vadd.f32 %v6214_v35, %v6123_v51  ;;  %v6918_v32 = vadd.f32 %v6214_v35, %v6127_v40  ;;  %v6922_v43 = vadd.f32 %v6214_v35, %v6131_v23 }
 0x367   :  { %v6926_v44 = vadd.f32 %v6214_v35, %v6135_v36  ;;  %v6930_v12 = vadd.f32 %v6214_v35, %v6139_v18  ;;  %v6934_v51 = vadd.f32 %v6214_v35, %v6143_v25 }
 0x368   :  { %8704 = vst [vmem:[#allocation53_spill] sm:$0xff] %v6914_v46  ;;  %8705 = vst [vmem:[#allocation55_spill] sm:$0xff] %v6918_v32  ;;  %v8710_v46 = vld [vmem:[#allocation113_spill] sm:$0xff]  ;;  %v8712_v32 = vld [vmem:[#allocation119_spill] sm:$0xff] }
 0x369   :  { %8706 = vst [vmem:[#allocation62_spill] sm:$0xff] %v6922_v43  ;;  %8707 = vst [vmem:[#allocation65_spill] sm:$0xff] %v6926_v44  ;;  %v6938_v40 = vadd.f32 %v6214_v35, %v8710_v46  ;;  %v6942_v23 = vadd.f32 %v6214_v35, %v8712_v32  ;;  %v8714_v43 = vld [vmem:[#allocation122_spill] sm:$0xff] }
 0x36a   :  { %8708 = vst [vmem:[#allocation61_spill] sm:$0xff] %v6930_v12  ;;  %8709 = vst [vmem:[#allocation63_spill] sm:$0xff] %v6934_v51  ;;  %v6946_v36 = vadd.f32 %v6214_v35, %v8714_v43  ;;  %v8716_v44 = vld [vmem:[#allocation118_spill] sm:$0xff]  ;;  %v8717_v12 = vld [vmem:[#allocation120_spill] sm:$0xff] }
 0x36b   :  { %8711 = vst [vmem:[#allocation70_spill] sm:$0xff] %v6938_v40  ;;  %8713 = vst [vmem:[#allocation73_spill] sm:$0xff] %v6942_v23  ;;  %v6950_v18 = vadd.f32 %v6214_v35, %v8716_v44  ;;  %v6954_v25 = vadd.f32 %v6214_v35, %v8717_v12  ;;  %v8719_v51 = vld [vmem:[#allocation127_spill] sm:$0xff]  ;;  %v8721_v40 = vld [vmem:[#allocation130_spill] sm:$0xff]  ;;  %v6974_v12 = vadd.f32 %v6214_v35, %v6183_v39 }
 0x36c   :  { %8715 = vst [vmem:[#allocation69_spill] sm:$0xff] %v6946_v36  ;;  %v6958_v46 = vadd.f32 %v6214_v35, %v8719_v51  ;;  %v6962_v32 = vadd.f32 %v6214_v35, %v8721_v40  ;;  %v8722_v23 = vld [vmem:[#allocation126_spill] sm:$0xff]  ;;  %v8723_v36 = vld [vmem:[#allocation128_spill] sm:$0xff]  ;;  %v6994_v39 = vadd.f32 %v6214_v35, %v6203_v3  ;;  %v2895_v3 = vmax.f32 %v6246_v14, 0.0 }
 0x36d   :  { %8718 = vst [vmem:[#allocation71_spill] sm:$0xff] %v6954_v25  ;;  %v6966_v43 = vadd.f32 %v6214_v35, %v8722_v23  ;;  %v6970_v44 = vadd.f32 %v6214_v35, %v8723_v36  ;;  %8725 = vst [vmem:[#allocation77_spill] sm:$0xff] %v6974_v12  ;;  %v8726_v25 = vld [vmem:[#allocation135_spill] sm:$0xff]  ;;  %v6986_v23 = vadd.f32 %v6214_v35, %v6195_v17  ;;  %v2891_v17 = vmax.f32 %v6230_v54, 0.0 }
 0x36e   :  { %8720 = vst [vmem:[#allocation78_spill] sm:$0xff] %v6958_v46  ;;  %v6978_v51 = vadd.f32 %v6214_v35, %v8726_v25  ;;  %v8728_v46 = vld [vmem:[#allocation138_spill] sm:$0xff]  ;;  %v6990_v36 = vadd.f32 %v6214_v35, %v6199_v5  ;;  %8732 = vst [vmem:[#allocation87_spill] sm:$0xff] %v6994_v39  ;;  %v6998_v25 = vadd.f32 %v6214_v35, %v6207_v13  ;;  %v2893_v5 = vmax.f32 %v6238_v7, 0.0 }
 0x36f   :  { %8724 = vst [vmem:[#allocation81_spill] sm:$0xff] %v6970_v44  ;;  %v6982_v40 = vadd.f32 %v6214_v35, %v8728_v46  ;;  %8730 = vst [vmem:[#allocation89_spill] sm:$0xff] %v6986_v23  ;;  %v2889_v46 = vmax.f32 %v6222_v8, 0.0  ;;  %v2892_v23 = vmax.f32 %v6234_v59, 0.0  ;;  %v8734_v39 = vld [vmem:[#allocation134_spill] sm:$0xff]  ;;  %v8735_v35 = vld [vmem:[#allocation136_spill] sm:$0xff] }
 0x370   :  { %8727 = vst [vmem:[#allocation79_spill] sm:$0xff] %v6978_v51  ;;  %8731 = vst [vmem:[#allocation85_spill] sm:$0xff] %v6990_v36  ;;  %v2888_v51 = vmax.f32 %v6218_v0, 0.0  ;;  %v2894_v36 = vmax.f32 %v6242_v37, 0.0  ;;  %v2896_v12 = vmax.f32 %v8734_v39, 0.0  ;;  %v2897_v13 = vmax.f32 %v8735_v35, 0.0 }
 0x371   :  { %8729 = vst [vmem:[#allocation86_spill] sm:$0xff] %v6982_v40  ;;  %8733 = vst [vmem:[#allocation96_spill] sm:$0xff] %v6998_v25  ;;  %v2890_v40 = vmax.f32 %v6226_v24, 0.0  ;;  %v8736_v25 = vld [vmem:[#allocation143_spill] sm:$0xff]  ;;  %v8737_v44 = vld [vmem:[#allocation146_spill] sm:$0xff] }
 0x372   :  { %v2898_v0 = vmax.f32 %v8736_v25, 0.0  ;;  %v2899_v8 = vmax.f32 %v8737_v44, 0.0  ;;  %3084 = vst [vmem:[%s7788_s4] sm:$0xff] %v2888_v51  ;;  %3085 = vst [vmem:[%s7788_s4 + $0x8] sm:$0xff] %v2889_v46  ;;  %v8738_v24 = vld [vmem:[#allocation142_spill] sm:$0xff]  ;;  %v8739_v59 = vld [vmem:[#allocation144_spill] sm:$0xff] }
 0x373   :  { %3086 = vst [vmem:[%s7788_s4 + $0x10] sm:$0xff] %v2890_v40  ;;  %3087 = vst [vmem:[%s7788_s4 + $0x18] sm:$0xff] %v2891_v17  ;;  %v2900_v54 = vmax.f32 %v8738_v24, 0.0  ;;  %v2901_v7 = vmax.f32 %v8739_v59, 0.0  ;;  %v8740_v37 = vld [vmem:[#allocation150_spill] sm:$0xff]  ;;  %v8741_v44 = vld [vmem:[#allocation152_spill] sm:$0xff] }
 0x374   :  { %v2902_v14 = vmax.f32 %v8740_v37, 0.0  ;;  %v2903_v51 = vmax.f32 %v8741_v44, 0.0  ;;  %3088 = vst [vmem:[%s7788_s4 + $0x20] sm:$0xff] %v2892_v23  ;;  %3089 = vst [vmem:[%s7788_s4 + $0x28] sm:$0xff] %v2893_v5  ;;  %v8742_v40 = vld [vmem:[#allocation160_spill] sm:$0xff]  ;;  %v8743_v25 = vld [vmem:[#allocation161_spill] sm:$0xff] }
 0x375   :  { %3090 = vst [vmem:[%s7788_s4 + $0x30] sm:$0xff] %v2894_v36  ;;  %3091 = vst [vmem:[%s7788_s4 + $0x38] sm:$0xff] %v2895_v3  ;;  %v2904_v39 = vmax.f32 %v8742_v40, 0.0  ;;  %v2905_v46 = vmax.f32 %v8743_v25, 0.0  ;;  %v8744_v17 = vld [vmem:[#allocation163_spill] sm:$0xff]  ;;  %v8745_v24 = vld [vmem:[#allocation165_spill] sm:$0xff] }
 0x376   :  { %v2906_v35 = vmax.f32 %v8744_v17, 0.0  ;;  %v2907_v23 = vmax.f32 %v8745_v24, 0.0  ;;  %3092 = vst [vmem:[%s7788_s4 + $0x40] sm:$0xff] %v2896_v12  ;;  %3093 = vst [vmem:[%s7788_s4 + $0x48] sm:$0xff] %v2897_v13  ;;  %v8746_v36 = vld [vmem:[#allocation162_spill] sm:$0xff]  ;;  %v8747_v3 = vld [vmem:[#allocation164_spill] sm:$0xff] }
 0x377   :  { %3094 = vst [vmem:[%s7788_s4 + $0x50] sm:$0xff] %v2898_v0  ;;  %3095 = vst [vmem:[%s7788_s4 + $0x58] sm:$0xff] %v2899_v8  ;;  %v2908_v5 = vmax.f32 %v8746_v36, 0.0  ;;  %v2909_v59 = vmax.f32 %v8747_v3, 0.0  ;;  %v8748_v37 = vld [vmem:[#allocation167_spill] sm:$0xff]  ;;  %v8749_v40 = vld [vmem:[#allocation168_spill] sm:$0xff] }
 0x378   :  { %v2910_v44 = vmax.f32 %v8748_v37, 0.0  ;;  %v2911_v12 = vmax.f32 %v8749_v40, 0.0  ;;  %3096 = vst [vmem:[%s7788_s4 + $0x60] sm:$0xff] %v2900_v54  ;;  %3097 = vst [vmem:[%s7788_s4 + $0x68] sm:$0xff] %v2901_v7  ;;  %v8750_v13 = vld [vmem:[#allocation166_spill] sm:$0xff]  ;;  %v8751_v8 = vld [vmem:[#allocation151_spill] sm:$0xff] }
 0x379   :  { %3098 = vst [vmem:[%s7788_s4 + $0x70] sm:$0xff] %v2902_v14  ;;  %3099 = vst [vmem:[%s7788_s4 + $0x78] sm:$0xff] %v2903_v51  ;;  %v2912_v0 = vmax.f32 %v8750_v13, 0.0  ;;  %v2913_v25 = vmax.f32 %v8751_v8, 0.0  ;;  %v8752_v17 = vld [vmem:[#allocation154_spill] sm:$0xff]  ;;  %v8754_v7 = vld [vmem:[#allocation159_spill] sm:$0xff] }
 0x37a   :  { %v2914_v24 = vmax.f32 %v8752_v17, 0.0  ;;  %v8753_v36 = vld [vmem:[#allocation158_spill] sm:$0xff]  ;;  %3100 = vst [vmem:[%s7788_s4 + $0x80] sm:$0xff] %v2904_v39  ;;  %3101 = vst [vmem:[%s7788_s4 + $0x88] sm:$0xff] %v2905_v46  ;;  %v2916_v14 = vmax.f32 %v8754_v7, 0.0  ;;  %v8756_v37 = vld [vmem:[#allocation12_spill] sm:$0xff] }
 0x37b   :  { %v2915_v54 = vmax.f32 %v8753_v36, 0.0  ;;  %3102 = vst [vmem:[%s7788_s4 + $0x90] sm:$0xff] %v2906_v35  ;;  %3103 = vst [vmem:[%s7788_s4 + $0x98] sm:$0xff] %v2907_v23  ;;  %v8755_v51 = vld [vmem:[#allocation10_spill] sm:$0xff]  ;;  %v2918_v40 = vmax.f32 %v8756_v37, 0.0  ;;  %v8757_v13 = vld [vmem:[#allocation9_spill] sm:$0xff] }
 0x37c   :  { %v2917_v3 = vmax.f32 %v8755_v51, 0.0  ;;  %v2919_v39 = vmax.f32 %v8757_v13, 0.0  ;;  %3104 = vst [vmem:[%s7788_s4 + $0xa0] sm:$0xff] %v2908_v5  ;;  %3105 = vst [vmem:[%s7788_s4 + $0xa8] sm:$0xff] %v2909_v59  ;;  %v8758_v46 = vld [vmem:[#allocation11_spill] sm:$0xff]  ;;  %v8759_v23 = vld [vmem:[#allocation14_spill] sm:$0xff] }
 0x37d   :  { %3106 = vst [vmem:[%s7788_s4 + $0xb0] sm:$0xff] %v2910_v44  ;;  %3107 = vst [vmem:[%s7788_s4 + $0xb8] sm:$0xff] %v2911_v12  ;;  %v2920_v35 = vmax.f32 %v8758_v46, 0.0  ;;  %v2921_v8 = vmax.f32 %v8759_v23, 0.0  ;;  %v8760_v17 = vld [vmem:[#allocation16_spill] sm:$0xff]  ;;  %v8761_v7 = vld [vmem:[#allocation13_spill] sm:$0xff] }
 0x37e   :  { %v2922_v36 = vmax.f32 %v8760_v17, 0.0  ;;  %v2923_v5 = vmax.f32 %v8761_v7, 0.0  ;;  %3108 = vst [vmem:[%s7788_s4 + $0xc0] sm:$0xff] %v2912_v0  ;;  %3109 = vst [vmem:[%s7788_s4 + $0xc8] sm:$0xff] %v2913_v25  ;;  %v8762_v59 = vld [vmem:[#allocation15_spill] sm:$0xff]  ;;  %v8763_v12 = vld [vmem:[#allocation18_spill] sm:$0xff] }
 0x37f   :  { %3110 = vst [vmem:[%s7788_s4 + $0xd0] sm:$0xff] %v2914_v24  ;;  %3111 = vst [vmem:[%s7788_s4 + $0xd8] sm:$0xff] %v2915_v54  ;;  %v2924_v44 = vmax.f32 %v8762_v59, 0.0  ;;  %v2925_v51 = vmax.f32 %v8763_v12, 0.0  ;;  %v8764_v37 = vld [vmem:[#allocation20_spill] sm:$0xff]  ;;  %v8765_v46 = vld [vmem:[#allocation17_spill] sm:$0xff] }
 0x380   :  { %v2926_v13 = vmax.f32 %v8764_v37, 0.0  ;;  %v2927_v0 = vmax.f32 %v8765_v46, 0.0  ;;  %3112 = vst [vmem:[%s7788_s4 + $0xe0] sm:$0xff] %v2916_v14  ;;  %3113 = vst [vmem:[%s7788_s4 + $0xe8] sm:$0xff] %v2917_v3  ;;  %v8766_v25 = vld [vmem:[#allocation19_spill] sm:$0xff]  ;;  %v8767_v54 = vld [vmem:[#allocation22_spill] sm:$0xff] }
 0x381   :  { %3114 = vst [vmem:[%s7788_s4 + $0xf0] sm:$0xff] %v2918_v40  ;;  %3115 = vst [vmem:[%s7788_s4 + $0xf8] sm:$0xff] %v2919_v39  ;;  %v2928_v24 = vmax.f32 %v8766_v25, 0.0  ;;  %v2929_v23 = vmax.f32 %v8767_v54, 0.0  ;;  %v8768_v17 = vld [vmem:[#allocation24_spill] sm:$0xff]  ;;  %v8769_v59 = vld [vmem:[#allocation21_spill] sm:$0xff] }
 0x382   :  { %v2930_v7 = vmax.f32 %v8768_v17, 0.0  ;;  %v2931_v14 = vmax.f32 %v8769_v59, 0.0  ;;  %3116 = vst [vmem:[%s7788_s4 + $0x100] sm:$0xff] %v2920_v35  ;;  %3117 = vst [vmem:[%s7788_s4 + $0x108] sm:$0xff] %v2921_v8  ;;  %v8770_v3 = vld [vmem:[#allocation23_spill] sm:$0xff]  ;;  %v8771_v39 = vld [vmem:[#allocation26_spill] sm:$0xff] }
 0x383   :  { %3118 = vst [vmem:[%s7788_s4 + $0x110] sm:$0xff] %v2922_v36  ;;  %3119 = vst [vmem:[%s7788_s4 + $0x118] sm:$0xff] %v2923_v5  ;;  %v2932_v40 = vmax.f32 %v8770_v3, 0.0  ;;  %v2933_v12 = vmax.f32 %v8771_v39, 0.0  ;;  %v8772_v37 = vld [vmem:[#allocation28_spill] sm:$0xff]  ;;  %v8773_v25 = vld [vmem:[#allocation25_spill] sm:$0xff] }
 0x384   :  { %v2934_v46 = vmax.f32 %v8772_v37, 0.0  ;;  %v2935_v35 = vmax.f32 %v8773_v25, 0.0  ;;  %3120 = vst [vmem:[%s7788_s4 + $0x120] sm:$0xff] %v2924_v44  ;;  %3121 = vst [vmem:[%s7788_s4 + $0x128] sm:$0xff] %v2925_v51  ;;  %v8774_v8 = vld [vmem:[#allocation27_spill] sm:$0xff]  ;;  %v8775_v5 = vld [vmem:[#allocation30_spill] sm:$0xff] }
 0x385   :  { %3122 = vst [vmem:[%s7788_s4 + $0x130] sm:$0xff] %v2926_v13  ;;  %3123 = vst [vmem:[%s7788_s4 + $0x138] sm:$0xff] %v2927_v0  ;;  %v2936_v36 = vmax.f32 %v8774_v8, 0.0  ;;  %v2937_v54 = vmax.f32 %v8775_v5, 0.0  ;;  %v8776_v17 = vld [vmem:[#allocation32_spill] sm:$0xff]  ;;  %v8777_v3 = vld [vmem:[#allocation29_spill] sm:$0xff] }
 0x386   :  { %v2938_v59 = vmax.f32 %v8776_v17, 0.0  ;;  %v2939_v44 = vmax.f32 %v8777_v3, 0.0  ;;  %3124 = vst [vmem:[%s7788_s4 + $0x140] sm:$0xff] %v2928_v24  ;;  %3125 = vst [vmem:[%s7788_s4 + $0x148] sm:$0xff] %v2929_v23  ;;  %v8778_v51 = vld [vmem:[#allocation31_spill] sm:$0xff]  ;;  %v8779_v0 = vld [vmem:[#allocation34_spill] sm:$0xff] }
 0x387   :  { %3126 = vst [vmem:[%s7788_s4 + $0x150] sm:$0xff] %v2930_v7  ;;  %3127 = vst [vmem:[%s7788_s4 + $0x158] sm:$0xff] %v2931_v14  ;;  %v2940_v13 = vmax.f32 %v8778_v51, 0.0  ;;  %v2941_v39 = vmax.f32 %v8779_v0, 0.0  ;;  %v8780_v37 = vld [vmem:[#allocation36_spill] sm:$0xff]  ;;  %v8781_v8 = vld [vmem:[#allocation33_spill] sm:$0xff] }
 0x388   :  { %v2942_v25 = vmax.f32 %v8780_v37, 0.0  ;;  %v2943_v24 = vmax.f32 %v8781_v8, 0.0  ;;  %3128 = vst [vmem:[%s7788_s4 + $0x160] sm:$0xff] %v2932_v40  ;;  %3129 = vst [vmem:[%s7788_s4 + $0x168] sm:$0xff] %v2933_v12  ;;  %v8782_v23 = vld [vmem:[#allocation35_spill] sm:$0xff]  ;;  %v8783_v14 = vld [vmem:[#allocation38_spill] sm:$0xff] }
 0x389   :  { %3130 = vst [vmem:[%s7788_s4 + $0x170] sm:$0xff] %v2934_v46  ;;  %3131 = vst [vmem:[%s7788_s4 + $0x178] sm:$0xff] %v2935_v35  ;;  %v2944_v7 = vmax.f32 %v8782_v23, 0.0  ;;  %v2945_v5 = vmax.f32 %v8783_v14, 0.0  ;;  %v8784_v17 = vld [vmem:[#allocation40_spill] sm:$0xff]  ;;  %v8785_v51 = vld [vmem:[#allocation37_spill] sm:$0xff] }
 0x38a   :  { %v2946_v3 = vmax.f32 %v8784_v17, 0.0  ;;  %v2947_v40 = vmax.f32 %v8785_v51, 0.0  ;;  %3132 = vst [vmem:[%s7788_s4 + $0x180] sm:$0xff] %v2936_v36  ;;  %3133 = vst [vmem:[%s7788_s4 + $0x188] sm:$0xff] %v2937_v54  ;;  %v8786_v12 = vld [vmem:[#allocation39_spill] sm:$0xff]  ;;  %v8787_v35 = vld [vmem:[#allocation42_spill] sm:$0xff] }
 0x38b   :  { %3134 = vst [vmem:[%s7788_s4 + $0x190] sm:$0xff] %v2938_v59  ;;  %3135 = vst [vmem:[%s7788_s4 + $0x198] sm:$0xff] %v2939_v44  ;;  %v2948_v46 = vmax.f32 %v8786_v12, 0.0  ;;  %v2949_v0 = vmax.f32 %v8787_v35, 0.0  ;;  %v8788_v37 = vld [vmem:[#allocation44_spill] sm:$0xff]  ;;  %v8789_v23 = vld [vmem:[#allocation41_spill] sm:$0xff] }
 0x38c   :  { %v2950_v8 = vmax.f32 %v8788_v37, 0.0  ;;  %v2951_v36 = vmax.f32 %v8789_v23, 0.0  ;;  %3136 = vst [vmem:[%s7788_s4 + $0x1a0] sm:$0xff] %v2940_v13  ;;  %3137 = vst [vmem:[%s7788_s4 + $0x1a8] sm:$0xff] %v2941_v39  ;;  %v8790_v54 = vld [vmem:[#allocation43_spill] sm:$0xff]  ;;  %v8791_v44 = vld [vmem:[#allocation50_spill] sm:$0xff] }
 0x38d   :  { %3138 = vst [vmem:[%s7788_s4 + $0x1b0] sm:$0xff] %v2942_v25  ;;  %3139 = vst [vmem:[%s7788_s4 + $0x1b8] sm:$0xff] %v2943_v24  ;;  %v2952_v59 = vmax.f32 %v8790_v54, 0.0  ;;  %v2953_v14 = vmax.f32 %v8791_v44, 0.0  ;;  %v8792_v17 = vld [vmem:[#allocation52_spill] sm:$0xff]  ;;  %v8794_v39 = vld [vmem:[#allocation51_spill] sm:$0xff] }
 0x38e   :  { %v2954_v51 = vmax.f32 %v8792_v17, 0.0  ;;  %v8793_v12 = vld [vmem:[#allocation48_spill] sm:$0xff]  ;;  %3140 = vst [vmem:[%s7788_s4 + $0x1c0] sm:$0xff] %v2944_v7  ;;  %3141 = vst [vmem:[%s7788_s4 + $0x1c8] sm:$0xff] %v2945_v5  ;;  %v2956_v25 = vmax.f32 %v8794_v39, 0.0  ;;  %v8795_v24 = vld [vmem:[#allocation58_spill] sm:$0xff] }
 0x38f   :  { %v2955_v13 = vmax.f32 %v8793_v12, 0.0  ;;  %3142 = vst [vmem:[%s7788_s4 + $0x1d0] sm:$0xff] %v2946_v3  ;;  %3143 = vst [vmem:[%s7788_s4 + $0x1d8] sm:$0xff] %v2947_v40  ;;  %v2957_v35 = vmax.f32 %v8795_v24, 0.0  ;;  %v8796_v37 = vld [vmem:[#allocation60_spill] sm:$0xff]  ;;  %v8798_v5 = vld [vmem:[#allocation59_spill] sm:$0xff] }
 0x390   :  { %v2958_v23 = vmax.f32 %v8796_v37, 0.0  ;;  %v8797_v54 = vld [vmem:[#allocation56_spill] sm:$0xff]  ;;  %3144 = vst [vmem:[%s7788_s4 + $0x1e0] sm:$0xff] %v2948_v46  ;;  %3145 = vst [vmem:[%s7788_s4 + $0x1e8] sm:$0xff] %v2949_v0  ;;  %v2960_v3 = vmax.f32 %v8798_v5, 0.0  ;;  %v8799_v40 = vld [vmem:[#allocation66_spill] sm:$0xff] }
 0x391   :  { %v2959_v7 = vmax.f32 %v8797_v54, 0.0  ;;  %3146 = vst [vmem:[%s7788_s4 + $0x1f0] sm:$0xff] %v2950_v8  ;;  %3147 = vst [vmem:[%s7788_s4 + $0x1f8] sm:$0xff] %v2951_v36  ;;  %v2961_v44 = vmax.f32 %v8799_v40, 0.0  ;;  %v8800_v17 = vld [vmem:[#allocation68_spill] sm:$0xff]  ;;  %v8802_v0 = vld [vmem:[#allocation67_spill] sm:$0xff] }
 0x392   :  { %v2962_v12 = vmax.f32 %v8800_v17, 0.0  ;;  %v8801_v39 = vld [vmem:[#allocation64_spill] sm:$0xff]  ;;  %3148 = vst [vmem:[%s7788_s4 + $0x200] sm:$0xff] %v2952_v59  ;;  %3149 = vst [vmem:[%s7788_s4 + $0x208] sm:$0xff] %v2953_v14  ;;  %v2964_v8 = vmax.f32 %v8802_v0, 0.0  ;;  %v8803_v36 = vld [vmem:[#allocation74_spill] sm:$0xff] }
 0x393   :  { %v2963_v46 = vmax.f32 %v8801_v39, 0.0  ;;  %3150 = vst [vmem:[%s7788_s4 + $0x210] sm:$0xff] %v2954_v51  ;;  %3151 = vst [vmem:[%s7788_s4 + $0x218] sm:$0xff] %v2955_v13  ;;  %v2965_v24 = vmax.f32 %v8803_v36, 0.0  ;;  %v8804_v37 = vld [vmem:[#allocation76_spill] sm:$0xff]  ;;  %v8806_v14 = vld [vmem:[#allocation75_spill] sm:$0xff] }
 0x394   :  { %v2966_v54 = vmax.f32 %v8804_v37, 0.0  ;;  %v8805_v5 = vld [vmem:[#allocation72_spill] sm:$0xff]  ;;  %3152 = vst [vmem:[%s7788_s4 + $0x220] sm:$0xff] %v2956_v25  ;;  %3153 = vst [vmem:[%s7788_s4 + $0x228] sm:$0xff] %v2957_v35  ;;  %v2968_v51 = vmax.f32 %v8806_v14, 0.0  ;;  %v8807_v13 = vld [vmem:[#allocation82_spill] sm:$0xff] }
 0x395   :  { %v2967_v59 = vmax.f32 %v8805_v5, 0.0  ;;  %3154 = vst [vmem:[%s7788_s4 + $0x230] sm:$0xff] %v2958_v23  ;;  %3155 = vst [vmem:[%s7788_s4 + $0x238] sm:$0xff] %v2959_v7  ;;  %v2969_v40 = vmax.f32 %v8807_v13, 0.0  ;;  %v8808_v17 = vld [vmem:[#allocation84_spill] sm:$0xff]  ;;  %v8810_v35 = vld [vmem:[#allocation83_spill] sm:$0xff] }
 0x396   :  { %v2970_v39 = vmax.f32 %v8808_v17, 0.0  ;;  %v8809_v0 = vld [vmem:[#allocation80_spill] sm:$0xff]  ;;  %3156 = vst [vmem:[%s7788_s4 + $0x240] sm:$0xff] %v2960_v3  ;;  %3157 = vst [vmem:[%s7788_s4 + $0x248] sm:$0xff] %v2961_v44  ;;  %v2972_v23 = vmax.f32 %v8810_v35, 0.0  ;;  %v8811_v7 = vld [vmem:[#allocation90_spill] sm:$0xff] }
 0x397   :  { %v2971_v25 = vmax.f32 %v8809_v0, 0.0  ;;  %3158 = vst [vmem:[%s7788_s4 + $0x250] sm:$0xff] %v2962_v12  ;;  %3159 = vst [vmem:[%s7788_s4 + $0x258] sm:$0xff] %v2963_v46  ;;  %v2973_v36 = vmax.f32 %v8811_v7, 0.0  ;;  %v8812_v37 = vld [vmem:[#allocation92_spill] sm:$0xff]  ;;  %v8814_v44 = vld [vmem:[#allocation91_spill] sm:$0xff] }
 0x398   :  { %v2974_v5 = vmax.f32 %v8812_v37, 0.0  ;;  %v8813_v14 = vld [vmem:[#allocation88_spill] sm:$0xff]  ;;  %3160 = vst [vmem:[%s7788_s4 + $0x260] sm:$0xff] %v2964_v8  ;;  %3161 = vst [vmem:[%s7788_s4 + $0x268] sm:$0xff] %v2965_v24  ;;  %v2976_v12 = vmax.f32 %v8814_v44, 0.0  ;;  %v8815_v46 = vld [vmem:[#allocation97_spill] sm:$0xff] }
 0x399   :  { %v2975_v3 = vmax.f32 %v8813_v14, 0.0  ;;  %3162 = vst [vmem:[%s7788_s4 + $0x270] sm:$0xff] %v2966_v54  ;;  %3163 = vst [vmem:[%s7788_s4 + $0x278] sm:$0xff] %v2967_v59  ;;  %v2977_v13 = vmax.f32 %v8815_v46, 0.0  ;;  %v8816_v17 = vld [vmem:[#allocation99_spill] sm:$0xff]  ;;  %v8818_v24 = vld [vmem:[#allocation98_spill] sm:$0xff] }
 0x39a   :  { %v2978_v0 = vmax.f32 %v8816_v17, 0.0  ;;  %v8817_v35 = vld [vmem:[#allocation95_spill] sm:$0xff]  ;;  %3164 = vst [vmem:[%s7788_s4 + $0x280] sm:$0xff] %v2968_v51  ;;  %3165 = vst [vmem:[%s7788_s4 + $0x288] sm:$0xff] %v2969_v40  ;;  %v2980_v54 = vmax.f32 %v8818_v24, 0.0  ;;  %v8819_v59 = vld [vmem:[#allocation102_spill] sm:$0xff] }
 0x39b   :  { %v2979_v8 = vmax.f32 %v8817_v35, 0.0  ;;  %3166 = vst [vmem:[%s7788_s4 + $0x290] sm:$0xff] %v2970_v39  ;;  %3167 = vst [vmem:[%s7788_s4 + $0x298] sm:$0xff] %v2971_v25  ;;  %v2981_v7 = vmax.f32 %v8819_v59, 0.0  ;;  %v8820_v37 = vld [vmem:[#allocation104_spill] sm:$0xff]  ;;  %v8822_v40 = vld [vmem:[#allocation103_spill] sm:$0xff] }
 0x39c   :  { %v2982_v14 = vmax.f32 %v8820_v37, 0.0  ;;  %v8821_v44 = vld [vmem:[#allocation100_spill] sm:$0xff]  ;;  %3168 = vst [vmem:[%s7788_s4 + $0x2a0] sm:$0xff] %v2972_v23  ;;  %3169 = vst [vmem:[%s7788_s4 + $0x2a8] sm:$0xff] %v2973_v36  ;;  %v2984_v39 = vmax.f32 %v8822_v40, 0.0  ;;  %v8823_v25 = vld [vmem:[#allocation106_spill] sm:$0xff] }
 0x39d   :  { %v2983_v51 = vmax.f32 %v8821_v44, 0.0  ;;  %3170 = vst [vmem:[%s7788_s4 + $0x2b0] sm:$0xff] %v2974_v5  ;;  %3171 = vst [vmem:[%s7788_s4 + $0x2b8] sm:$0xff] %v2975_v3  ;;  %v2985_v46 = vmax.f32 %v8823_v25, 0.0  ;;  %v8824_v17 = vld [vmem:[#allocation108_spill] sm:$0xff]  ;;  %v8825_v24 = vld [vmem:[#allocation105_spill] sm:$0xff] }
 0x39e   :  { %v2986_v35 = vmax.f32 %v8824_v17, 0.0  ;;  %v2987_v23 = vmax.f32 %v8825_v24, 0.0  ;;  %3172 = vst [vmem:[%s7788_s4 + $0x2c0] sm:$0xff] %v2976_v12  ;;  %3173 = vst [vmem:[%s7788_s4 + $0x2c8] sm:$0xff] %v2977_v13  ;;  %v8826_v36 = vld [vmem:[#allocation107_spill] sm:$0xff]  ;;  %v8827_v3 = vld [vmem:[#allocation110_spill] sm:$0xff] }
 0x39f   :  { %3174 = vst [vmem:[%s7788_s4 + $0x2d0] sm:$0xff] %v2978_v0  ;;  %3175 = vst [vmem:[%s7788_s4 + $0x2d8] sm:$0xff] %v2979_v8  ;;  %v2988_v5 = vmax.f32 %v8826_v36, 0.0  ;;  %v2989_v59 = vmax.f32 %v8827_v3, 0.0  ;;  %v8828_v37 = vld [vmem:[#allocation112_spill] sm:$0xff]  ;;  %v8829_v40 = vld [vmem:[#allocation109_spill] sm:$0xff] }
 0x3a0   :  { %v2990_v44 = vmax.f32 %v8828_v37, 0.0  ;;  %v2991_v12 = vmax.f32 %v8829_v40, 0.0  ;;  %3176 = vst [vmem:[%s7788_s4 + $0x2e0] sm:$0xff] %v2980_v54  ;;  %3177 = vst [vmem:[%s7788_s4 + $0x2e8] sm:$0xff] %v2981_v7  ;;  %v8830_v13 = vld [vmem:[#allocation111_spill] sm:$0xff]  ;;  %v8832_v17 = vld [vmem:[#allocation117_spill] sm:$0xff] }
 0x3a1   :  { %3178 = vst [vmem:[%s7788_s4 + $0x2f0] sm:$0xff] %v2982_v14  ;;  %3179 = vst [vmem:[%s7788_s4 + $0x2f8] sm:$0xff] %v2983_v51  ;;  %v2992_v0 = vmax.f32 %v8830_v13, 0.0  ;;  %v8831_v8 = vld [vmem:[#allocation115_spill] sm:$0xff]  ;;  %v2994_v24 = vmax.f32 %v8832_v17, 0.0  ;;  %v8833_v36 = vld [vmem:[#allocation114_spill] sm:$0xff] }
 0x3a2   :  { %v2993_v25 = vmax.f32 %v8831_v8, 0.0  ;;  %v2995_v54 = vmax.f32 %v8833_v36, 0.0  ;;  %3180 = vst [vmem:[%s7788_s4 + $0x300] sm:$0xff] %v2984_v39  ;;  %3181 = vst [vmem:[%s7788_s4 + $0x308] sm:$0xff] %v2985_v46  ;;  %v8834_v7 = vld [vmem:[#allocation116_spill] sm:$0xff]  ;;  %v8835_v51 = vld [vmem:[#allocation123_spill] sm:$0xff] }
 0x3a3   :  { %3182 = vst [vmem:[%s7788_s4 + $0x310] sm:$0xff] %v2986_v35  ;;  %3183 = vst [vmem:[%s7788_s4 + $0x318] sm:$0xff] %v2987_v23  ;;  %v2996_v14 = vmax.f32 %v8834_v7, 0.0  ;;  %v2997_v3 = vmax.f32 %v8835_v51, 0.0  ;;  %v8836_v37 = vld [vmem:[#allocation125_spill] sm:$0xff]  ;;  %v3000_v46 = vmax.f32 %v6666_v42, 0.0 }
 0x3a4   :  { %v2998_v40 = vmax.f32 %v8836_v37, 0.0  ;;  %v8837_v13 = vld [vmem:[#allocation121_spill] sm:$0xff]  ;;  %3184 = vst [vmem:[%s7788_s4 + $0x320] sm:$0xff] %v2988_v5  ;;  %3185 = vst [vmem:[%s7788_s4 + $0x328] sm:$0xff] %v2989_v59  ;;  %v8838_v35 = vld [vmem:[#allocation124_spill] sm:$0xff]  ;;  %v3004_v42 = vmax.f32 %v6682_v49, 0.0 }
 0x3a5   :  { %v2999_v39 = vmax.f32 %v8837_v13, 0.0  ;;  %3186 = vst [vmem:[%s7788_s4 + $0x330] sm:$0xff] %v2990_v44  ;;  %3187 = vst [vmem:[%s7788_s4 + $0x338] sm:$0xff] %v2991_v12  ;;  %v3001_v23 = vmax.f32 %v8838_v35, 0.0  ;;  %v8839_v8 = vld [vmem:[#allocation131_spill] sm:$0xff]  ;;  %v8840_v36 = vld [vmem:[#allocation133_spill] sm:$0xff] }
 0x3a6   :  { %v3002_v17 = vmax.f32 %v8839_v8, 0.0  ;;  %v3003_v5 = vmax.f32 %v8840_v36, 0.0  ;;  %3188 = vst [vmem:[%s7788_s4 + $0x340] sm:$0xff] %v2992_v0  ;;  %3189 = vst [vmem:[%s7788_s4 + $0x348] sm:$0xff] %v2993_v25  ;;  %v8841_v59 = vld [vmem:[#allocation129_spill] sm:$0xff]  ;;  %v3006_v12 = vmax.f32 %v6690_v57, 0.0 }
 0x3a7   :  { %3190 = vst [vmem:[%s7788_s4 + $0x350] sm:$0xff] %v2994_v24  ;;  %3191 = vst [vmem:[%s7788_s4 + $0x358] sm:$0xff] %v2995_v54  ;;  %v3005_v44 = vmax.f32 %v8841_v59, 0.0  ;;  %v3007_v0 = vmax.f32 %v6694_v34, 0.0  ;;  %v3008_v49 = vmax.f32 %v6698_v50, 0.0  ;;  %v3009_v57 = vmax.f32 %v6702_v30, 0.0 }
 0x3a8   :  { %3192 = vst [vmem:[%s7788_s4 + $0x360] sm:$0xff] %v2996_v14  ;;  %3193 = vst [vmem:[%s7788_s4 + $0x368] sm:$0xff] %v2997_v3  ;;  %v3010_v34 = vmax.f32 %v6706_v29, 0.0  ;;  %v3011_v25 = vmax.f32 %v6710_v31, 0.0  ;;  %v3012_v50 = vmax.f32 %v6714_v1, 0.0  ;;  %v3013_v30 = vmax.f32 %v6718_v2, 0.0 }
 0x3a9   :  { %3194 = vst [vmem:[%s7788_s4 + $0x370] sm:$0xff] %v2998_v40  ;;  %3195 = vst [vmem:[%s7788_s4 + $0x378] sm:$0xff] %v2999_v39  ;;  %v3014_v29 = vmax.f32 %v6722_v11, 0.0  ;;  %v3015_v31 = vmax.f32 %v6726_v16, 0.0  ;;  %v3016_v1 = vmax.f32 %v6730_v28, 0.0  ;;  %v3017_v2 = vmax.f32 %v6734_v21, 0.0 }
 0x3aa   :  { %3196 = vst [vmem:[%s7788_s4 + $0x380] sm:$0xff] %v3000_v46  ;;  %3197 = vst [vmem:[%s7788_s4 + $0x388] sm:$0xff] %v3001_v23  ;;  %v3018_v11 = vmax.f32 %v6738_v61, 0.0  ;;  %v8842_v16 = vld [vmem:[#allocation132_spill] sm:$0xff]  ;;  %v8843_v28 = vld [vmem:[#allocation139_spill] sm:$0xff] }
 0x3ab   :  { %3198 = vst [vmem:[%s7788_s4 + $0x390] sm:$0xff] %v3002_v17  ;;  %3199 = vst [vmem:[%s7788_s4 + $0x398] sm:$0xff] %v3003_v5  ;;  %v3019_v24 = vmax.f32 %v8842_v16, 0.0  ;;  %v3020_v21 = vmax.f32 %v8843_v28, 0.0  ;;  %v8844_v61 = vld [vmem:[#allocation141_spill] sm:$0xff]  ;;  %v8846_v51 = vld [vmem:[#allocation140_spill] sm:$0xff] }
 0x3ac   :  { %3200 = vst [vmem:[%s7788_s4 + $0x3a0] sm:$0xff] %v3004_v42  ;;  %3201 = vst [vmem:[%s7788_s4 + $0x3a8] sm:$0xff] %v3005_v44  ;;  %v3021_v54 = vmax.f32 %v8844_v61, 0.0  ;;  %v8845_v7 = vld [vmem:[#allocation137_spill] sm:$0xff]  ;;  %v3023_v3 = vmax.f32 %v8846_v51, 0.0  ;;  %v8847_v37 = vld [vmem:[#allocation147_spill] sm:$0xff] }
 0x3ad   :  { %3202 = vst [vmem:[%s7788_s4 + $0x3b0] sm:$0xff] %v3006_v12  ;;  %3203 = vst [vmem:[%s7788_s4 + $0x3b8] sm:$0xff] %v3007_v0  ;;  %v3022_v14 = vmax.f32 %v8845_v7, 0.0  ;;  %v3024_v40 = vmax.f32 %v8847_v37, 0.0  ;;  %v8848_v13 = vld [vmem:[#allocation149_spill] sm:$0xff]  ;;  %v8850_v23 = vld [vmem:[#allocation148_spill] sm:$0xff] }
 0x3ae   :  { %3204 = vst [vmem:[%s7788_s4 + $0x3c0] sm:$0xff] %v3008_v49  ;;  %3205 = vst [vmem:[%s7788_s4 + $0x3c8] sm:$0xff] %v3009_v57  ;;  %v3025_v39 = vmax.f32 %v8848_v13, 0.0  ;;  %v8849_v46 = vld [vmem:[#allocation145_spill] sm:$0xff]  ;;  %v3027_v8 = vmax.f32 %v8850_v23, 0.0  ;;  %v8851_v17 = vld [vmem:[#allocation155_spill] sm:$0xff] }
 0x3af   :  { %3206 = vst [vmem:[%s7788_s4 + $0x3d0] sm:$0xff] %v3010_v34  ;;  %3207 = vst [vmem:[%s7788_s4 + $0x3d8] sm:$0xff] %v3011_v25  ;;  %v3026_v35 = vmax.f32 %v8849_v46, 0.0  ;;  %v3028_v36 = vmax.f32 %v8851_v17, 0.0  ;;  %v8852_v5 = vld [vmem:[#allocation157_spill] sm:$0xff]  ;;  %v8854_v12 = vld [vmem:[#allocation156_spill] sm:$0xff] }
 0x3b0   :  { %3208 = vst [vmem:[%s7788_s4 + $0x3e0] sm:$0xff] %v3012_v50  ;;  %3209 = vst [vmem:[%s7788_s4 + $0x3e8] sm:$0xff] %v3013_v30  ;;  %v3029_v42 = vmax.f32 %v8852_v5, 0.0  ;;  %v8853_v59 = vld [vmem:[#allocation153_spill] sm:$0xff]  ;;  %v3031_v0 = vmax.f32 %v8854_v12, 0.0  ;;  %v8855_v49 = vld [vmem:[#allocation46_spill] sm:$0xff] }
 0x3b1   :  { %3210 = vst [vmem:[%s7788_s4 + $0x3f0] sm:$0xff] %v3014_v29  ;;  %3211 = vst [vmem:[%s7788_s4 + $0x3f8] sm:$0xff] %v3015_v31  ;;  %v3030_v44 = vmax.f32 %v8853_v59, 0.0  ;;  %v3032_v57 = vmax.f32 %v8855_v49, 0.0  ;;  %v8856_v34 = vld [vmem:[#allocation49_spill] sm:$0xff]  ;;  %v8858_v29 = vld [vmem:[#allocation47_spill] sm:$0xff] }
 0x3b2   :  { %3212 = vst [vmem:[%s7788_s4 + $0x400] sm:$0xff] %v3016_v1  ;;  %3213 = vst [vmem:[%s7788_s4 + $0x408] sm:$0xff] %v3017_v2  ;;  %v3033_v25 = vmax.f32 %v8856_v34, 0.0  ;;  %v8857_v50 = vld [vmem:[#allocation45_spill] sm:$0xff]  ;;  %v3035_v31 = vmax.f32 %v8858_v29, 0.0  ;;  %v3036_v1 = vmax.f32 %v6810_v9, 0.0 }
 0x3b3   :  { %3214 = vst [vmem:[%s7788_s4 + $0x410] sm:$0xff] %v3018_v11  ;;  %3215 = vst [vmem:[%s7788_s4 + $0x418] sm:$0xff] %v3019_v24  ;;  %v3034_v30 = vmax.f32 %v8857_v50, 0.0  ;;  %v3037_v2 = vmax.f32 %v6814_v6, 0.0  ;;  %v8859_v11 = vld [vmem:[#allocation54_spill] sm:$0xff]  ;;  %v8860_v24 = vld [vmem:[#allocation57_spill] sm:$0xff] }
 0x3b4   :  { %3216 = vst [vmem:[%s7788_s4 + $0x420] sm:$0xff] %v3020_v21  ;;  %3217 = vst [vmem:[%s7788_s4 + $0x428] sm:$0xff] %v3021_v54  ;;  %v3038_v16 = vmax.f32 %v8859_v11, 0.0  ;;  %v3039_v28 = vmax.f32 %v8860_v24, 0.0  ;;  %v3040_v9 = vmax.f32 %v6826_v15, 0.0  ;;  %v3041_v6 = vmax.f32 %v6830_v33, 0.0 }
 0x3b5   :  { %3218 = vst [vmem:[%s7788_s4 + $0x430] sm:$0xff] %v3022_v14  ;;  %3219 = vst [vmem:[%s7788_s4 + $0x438] sm:$0xff] %v3023_v3  ;;  %v3042_v21 = vmax.f32 %v6834_v56, 0.0  ;;  %v3043_v61 = vmax.f32 %v6838_v58, 0.0  ;;  %v3044_v15 = vmax.f32 %v6842_v26, 0.0  ;;  %v3045_v33 = vmax.f32 %v6846_v53, 0.0 }
 0x3b6   :  { %3220 = vst [vmem:[%s7788_s4 + $0x440] sm:$0xff] %v3024_v40  ;;  %3221 = vst [vmem:[%s7788_s4 + $0x448] sm:$0xff] %v3025_v39  ;;  %v3046_v56 = vmax.f32 %v6850_v63, 0.0  ;;  %v3047_v58 = vmax.f32 %v6854_v48, 0.0  ;;  %v3048_v26 = vmax.f32 %v6858_v27, 0.0  ;;  %v3049_v53 = vmax.f32 %v6862_v62, 0.0 }
 0x3b7   :  { %3222 = vst [vmem:[%s7788_s4 + $0x450] sm:$0xff] %v3026_v35  ;;  %3223 = vst [vmem:[%s7788_s4 + $0x458] sm:$0xff] %v3027_v8  ;;  %v3050_v63 = vmax.f32 %v6866_v52, 0.0  ;;  %v3051_v48 = vmax.f32 %v6870_v20, 0.0  ;;  %v3052_v27 = vmax.f32 %v6874_v45, 0.0  ;;  %v3053_v62 = vmax.f32 %v6878_v19, 0.0 }
 0x3b8   :  { %3224 = vst [vmem:[%s7788_s4 + $0x460] sm:$0xff] %v3028_v36  ;;  %3225 = vst [vmem:[%s7788_s4 + $0x468] sm:$0xff] %v3029_v42  ;;  %v3054_v52 = vmax.f32 %v6882_v10, 0.0  ;;  %v3055_v20 = vmax.f32 %v6886_v55, 0.0  ;;  %v3056_v45 = vmax.f32 %v6890_v22, 0.0  ;;  %v3057_v19 = vmax.f32 %v6894_v60, 0.0 }
 0x3b9   :  { %3226 = vst [vmem:[%s7788_s4 + $0x470] sm:$0xff] %v3030_v44  ;;  %3227 = vst [vmem:[%s7788_s4 + $0x478] sm:$0xff] %v3031_v0  ;;  %v3058_v10 = vmax.f32 %v6898_v47, 0.0  ;;  %v3059_v55 = vmax.f32 %v6902_v41, 0.0  ;;  %v3060_v22 = vmax.f32 %v6906_v4, 0.0  ;;  %v3061_v60 = vmax.f32 %v6910_v38, 0.0 }
 0x3ba   :  { %3228 = vst [vmem:[%s7788_s4 + $0x480] sm:$0xff] %v3032_v57  ;;  %3229 = vst [vmem:[%s7788_s4 + $0x488] sm:$0xff] %v3033_v25  ;;  %v8861_v47 = vld [vmem:[#allocation53_spill] sm:$0xff]  ;;  %v8862_v54 = vld [vmem:[#allocation55_spill] sm:$0xff]  ;;  %v3071_v36 = vmax.f32 %v6950_v18, 0.0  ;;  %v3074_v44 = vmax.f32 %v6962_v32, 0.0 }
 0x3bb   :  { %3230 = vst [vmem:[%s7788_s4 + $0x490] sm:$0xff] %v3034_v30  ;;  %3231 = vst [vmem:[%s7788_s4 + $0x498] sm:$0xff] %v3035_v31  ;;  %v3062_v41 = vmax.f32 %v8861_v47, 0.0  ;;  %v3063_v7 = vmax.f32 %v8862_v54, 0.0  ;;  %v8863_v4 = vld [vmem:[#allocation62_spill] sm:$0xff]  ;;  %v8864_v14 = vld [vmem:[#allocation65_spill] sm:$0xff] }
 0x3bc   :  { %3232 = vst [vmem:[%s7788_s4 + $0x4a0] sm:$0xff] %v3036_v1  ;;  %3233 = vst [vmem:[%s7788_s4 + $0x4a8] sm:$0xff] %v3037_v2  ;;  %v3064_v38 = vmax.f32 %v8863_v4, 0.0  ;;  %v3065_v51 = vmax.f32 %v8864_v14, 0.0  ;;  %v8865_v3 = vld [vmem:[#allocation61_spill] sm:$0xff]  ;;  %v8866_v40 = vld [vmem:[#allocation63_spill] sm:$0xff] }
 0x3bd   :  { %3234 = vst [vmem:[%s7788_s4 + $0x4b0] sm:$0xff] %v3038_v16  ;;  %3235 = vst [vmem:[%s7788_s4 + $0x4b8] sm:$0xff] %v3039_v28  ;;  %v3066_v37 = vmax.f32 %v8865_v3, 0.0  ;;  %v3067_v13 = vmax.f32 %v8866_v40, 0.0  ;;  %v8867_v39 = vld [vmem:[#allocation70_spill] sm:$0xff]  ;;  %v8868_v35 = vld [vmem:[#allocation73_spill] sm:$0xff] }
 0x3be   :  { %3236 = vst [vmem:[%s7788_s4 + $0x4c0] sm:$0xff] %v3040_v9  ;;  %3237 = vst [vmem:[%s7788_s4 + $0x4c8] sm:$0xff] %v3041_v6  ;;  %v3068_v46 = vmax.f32 %v8867_v39, 0.0  ;;  %v3069_v23 = vmax.f32 %v8868_v35, 0.0  ;;  %v8869_v8 = vld [vmem:[#allocation69_spill] sm:$0xff]  ;;  %v8870_v5 = vld [vmem:[#allocation71_spill] sm:$0xff] }
 0x3bf   :  { %3238 = vst [vmem:[%s7788_s4 + $0x4d0] sm:$0xff] %v3042_v21  ;;  %3239 = vst [vmem:[%s7788_s4 + $0x4d8] sm:$0xff] %v3043_v61  ;;  %v3070_v17 = vmax.f32 %v8869_v8, 0.0  ;;  %v3072_v42 = vmax.f32 %v8870_v5, 0.0  ;;  %v8871_v59 = vld [vmem:[#allocation78_spill] sm:$0xff]  ;;  %v3075_v12 = vmax.f32 %v6966_v43, 0.0 }
 0x3c0   :  { %3240 = vst [vmem:[%s7788_s4 + $0x4e0] sm:$0xff] %v3044_v15  ;;  %3241 = vst [vmem:[%s7788_s4 + $0x4e8] sm:$0xff] %v3045_v33  ;;  %v3073_v18 = vmax.f32 %v8871_v59, 0.0  ;;  %v8872_v0 = vld [vmem:[#allocation81_spill] sm:$0xff]  ;;  %v8874_v57 = vld [vmem:[#allocation79_spill] sm:$0xff] }
 0x3c1   :  { %3242 = vst [vmem:[%s7788_s4 + $0x4f0] sm:$0xff] %v3046_v56  ;;  %3243 = vst [vmem:[%s7788_s4 + $0x4f8] sm:$0xff] %v3047_v58  ;;  %v3076_v32 = vmax.f32 %v8872_v0, 0.0  ;;  %v8873_v49 = vld [vmem:[#allocation77_spill] sm:$0xff]  ;;  %v3078_v34 = vmax.f32 %v8874_v57, 0.0  ;;  %v8875_v25 = vld [vmem:[#allocation86_spill] sm:$0xff] }
 0x3c2   :  { %3244 = vst [vmem:[%s7788_s4 + $0x500] sm:$0xff] %v3048_v26  ;;  %3245 = vst [vmem:[%s7788_s4 + $0x508] sm:$0xff] %v3049_v53  ;;  %v3077_v43 = vmax.f32 %v8873_v49, 0.0  ;;  %v3079_v50 = vmax.f32 %v8875_v25, 0.0  ;;  %v8876_v30 = vld [vmem:[#allocation89_spill] sm:$0xff]  ;;  %v8878_v2 = vld [vmem:[#allocation87_spill] sm:$0xff] }
 0x3c3   :  { %3246 = vst [vmem:[%s7788_s4 + $0x510] sm:$0xff] %v3050_v63  ;;  %3247 = vst [vmem:[%s7788_s4 + $0x518] sm:$0xff] %v3051_v48  ;;  %v3080_v29 = vmax.f32 %v8876_v30, 0.0  ;;  %v8877_v31 = vld [vmem:[#allocation85_spill] sm:$0xff]  ;;  %v3082_v11 = vmax.f32 %v8878_v2, 0.0  ;;  %v8879_v16 = vld [vmem:[#allocation96_spill] sm:$0xff] }
 0x3c4   :  { %3248 = vst [vmem:[%s7788_s4 + $0x520] sm:$0xff] %v3052_v27  ;;  %3249 = vst [vmem:[%s7788_s4 + $0x528] sm:$0xff] %v3053_v62  ;;  %v3081_v1 = vmax.f32 %v8877_v31, 0.0  ;;  %v3083_v24 = vmax.f32 %v8879_v16, 0.0 }
 0x3c5   :  { %3250 = vst [vmem:[%s7788_s4 + $0x530] sm:$0xff] %v3054_v52  ;;  %3251 = vst [vmem:[%s7788_s4 + $0x538] sm:$0xff] %v3055_v20 }
 0x3c6   :  { %3252 = vst [vmem:[%s7788_s4 + $0x540] sm:$0xff] %v3056_v45  ;;  %3253 = vst [vmem:[%s7788_s4 + $0x548] sm:$0xff] %v3057_v19 }
 0x3c7   :  { %3254 = vst [vmem:[%s7788_s4 + $0x550] sm:$0xff] %v3058_v10  ;;  %3255 = vst [vmem:[%s7788_s4 + $0x558] sm:$0xff] %v3059_v55 }
 0x3c8   :  { %3256 = vst [vmem:[%s7788_s4 + $0x560] sm:$0xff] %v3060_v22  ;;  %3257 = vst [vmem:[%s7788_s4 + $0x568] sm:$0xff] %v3061_v60 }
 0x3c9   :  { %3258 = vst [vmem:[%s7788_s4 + $0x570] sm:$0xff] %v3062_v41  ;;  %3259 = vst [vmem:[%s7788_s4 + $0x578] sm:$0xff] %v3063_v7 }
 0x3ca   :  { %3260 = vst [vmem:[%s7788_s4 + $0x580] sm:$0xff] %v3064_v38  ;;  %3261 = vst [vmem:[%s7788_s4 + $0x588] sm:$0xff] %v3065_v51 }
 0x3cb   :  { %3262 = vst [vmem:[%s7788_s4 + $0x590] sm:$0xff] %v3066_v37  ;;  %3263 = vst [vmem:[%s7788_s4 + $0x598] sm:$0xff] %v3067_v13 }
 0x3cc   :  { %3264 = vst [vmem:[%s7788_s4 + $0x5a0] sm:$0xff] %v3068_v46  ;;  %3265 = vst [vmem:[%s7788_s4 + $0x5a8] sm:$0xff] %v3069_v23 }
 0x3cd   :  { %3266 = vst [vmem:[%s7788_s4 + $0x5b0] sm:$0xff] %v3070_v17  ;;  %3267 = vst [vmem:[%s7788_s4 + $0x5b8] sm:$0xff] %v3071_v36 }
 0x3ce   :  { %3268 = vst [vmem:[%s7788_s4 + $0x5c0] sm:$0xff] %v3072_v42  ;;  %3269 = vst [vmem:[%s7788_s4 + $0x5c8] sm:$0xff] %v3073_v18 }
 0x3cf   :  { %3270 = vst [vmem:[%s7788_s4 + $0x5d0] sm:$0xff] %v3074_v44  ;;  %3271 = vst [vmem:[%s7788_s4 + $0x5d8] sm:$0xff] %v3075_v12 }
 0x3d0   :  { %3272 = vst [vmem:[%s7788_s4 + $0x5e0] sm:$0xff] %v3076_v32  ;;  %3273 = vst [vmem:[%s7788_s4 + $0x5e8] sm:$0xff] %v3077_v43 }
 0x3d1   :  { %3274 = vst [vmem:[%s7788_s4 + $0x5f0] sm:$0xff] %v3078_v34  ;;  %3275 = vst [vmem:[%s7788_s4 + $0x5f8] sm:$0xff] %v3079_v50 }
 0x3d2   :  { %3276 = vst [vmem:[%s7788_s4 + $0x600] sm:$0xff] %v3080_v29  ;;  %3277 = vst [vmem:[%s7788_s4 + $0x608] sm:$0xff] %v3081_v1 }
 0x3d3   :  { %3278 = vst [vmem:[%s7788_s4 + $0x610] sm:$0xff] %v3082_v11  ;;  %3279 = vst [vmem:[%s7788_s4 + $0x618] sm:$0xff] %v3083_v24 }
 0x3d4   :  { %3284 = vsyncpa [#allocation3], 1 }
 0x3d5   :  { %3285 = vsyncpa [#allocation5], 1 }

// kernel: cnn_forward.4
= control target key start
LH: loop header
LB: loop body
LE: loop exit
PB: predicated region body
PF: predicated region fallthrough
CT: control target
= control target key end

     0   :  { %v2080_v0 = vmov 0   ;;  %vm785_vm0 = vcmask 130048   ;;  %s3110_s1 = inlined_call_operand.vmem [shape: bf16[400,128], index: 1, kind: input, shape index: {}]   ;;  %s3111_s0 = inlined_call_operand.vmem [shape: bf16[392,400], index: 0, kind: input, shape index: {}]   ;;  %s3112_s2 = inlined_call_operand.vmem [shape: f32[1,128], index: 2, kind: input, shape index: {}]   ;;  %s3113_s3 = inlined_call_operand.vmem [shape: f32[1,128], index: 3, kind: input, shape index: {}]   ;;  %s3114_s4 = inlined_call_operand.vmem [shape: f32[392,128], index: 4, kind: output, shape index: {}]  }
   0x1   :  { %861 = vmatprep.subr.bf16.mxu1 %v2080_v0  ;;  %v1905_v1 = vld [vmem:[%s3110_s1] sm:$0xff]   ;;  %1093 = vmatprep.subr.bf16.mxu0 %v2080_v0  ;;  %v1906_v2 = vld [vmem:[%s3110_s1 + $0x8] sm:$0xff]   ;;  %v1907_v3 = vld [vmem:[%s3110_s1 + $0x10] sm:$0xff]  }
   0x2   :  { %862 = vmatpush1.bf16.msra.mxu1 %v1905_v1  ;;  %v1912_v4 = vld [vmem:[%s3110_s1 + $0x80] sm:$0xff]   ;;  %v1914_v5 = vld [vmem:[%s3110_s1 + $0x88] sm:$0xff]   ;;  %v1908_v6 = vld [vmem:[%s3110_s1 + $0x18] sm:$0xff]  }
   0x3   :  { %863 = vmatprep.subr.bf16.mxu1 %v2080_v0  ;;  %1094 = vmatpush1.bf16.msra.mxu0 %v1912_v4  ;;  %v1916_v7 = vld [vmem:[%s3110_s1 + $0x90] sm:$0xff]   ;;  %v1909_v8 = vld [vmem:[%s3110_s1 + $0x20] sm:$0xff]   ;;  %v1918_v9 = vld [vmem:[%s3110_s1 + $0x98] sm:$0xff]  }
   0x4   :  { %1095 = vmatprep.subr.bf16.mxu0 %v2080_v0  ;;  %v1910_v10 = vld [vmem:[%s3110_s1 + $0x28] sm:$0xff]   ;;  %v1920_v11 = vld [vmem:[%s3110_s1 + $0xa0] sm:$0xff]   ;;  %v1911_v12 = vld [vmem:[%s3110_s1 + $0x30] sm:$0xff]  }
   0x5   :  { %v1922_v13 = vld [vmem:[%s3110_s1 + $0xa8] sm:$0xff]   ;;  %v1913_v15 = vld [vmem:[%s3110_s1 + $0x38] sm:$0xff]   ;;  %v1935_v16 = vld [vmem:[%s3111_s0 + $0x4] ss:$16 sps:$4 sm:$0xff]  }
   0x6   :  { %864 = vmatpush1.bf16.msra.mxu1 %v1906_v2  ;;  %v1931_v14 = vld [vmem:[%s3111_s0 + $0xc] ss:$16 sps:$4 sm:$0xff]   ;;  %v1924_v17 = vld [vmem:[%s3110_s1 + $0xb0] sm:$0xff]   ;;  %893 = vmatprep.mubr.bf16.mxu1 %v1935_v16  ;;  %v1915_v18 = vld [vmem:[%s3110_s1 + $0x40] sm:$0xff]  }
   0x7   :  { %865 = vmatprep.subr.bf16.mxu1 %v2080_v0  ;;  %1096 = vmatpush1.bf16.msra.mxu0 %v1914_v5  ;;  %v1926_v19 = vld [vmem:[%s3110_s1 + $0xb8] sm:$0xff]   ;;  %v1917_v20 = vld [vmem:[%s3110_s1 + $0x48] sm:$0xff]   ;;  %v1928_v21 = vld [vmem:[%s3110_s1 + $0xc0] sm:$0xff]  }
   0x8   :  { %1097 = vmatprep.subr.bf16.mxu0 %v2080_v0  ;;  %1830 = vmatprep.mubr.msk.bf16.mxu0 %vm785_vm0, %v1931_v14  ;;  %v1919_v22 = vld [vmem:[%s3110_s1 + $0x50] sm:$0xff]   ;;  %v1929_v23 = vld [vmem:[%s3111_s0 + $0x8] ss:$16 sps:$4 sm:$0xff]   ;;  %v1936_v24 = vld [vmem:[%s3111_s0 + $0x2c] ss:$16 sps:$4 sm:$0xff]  }
   0x9   :  { %v1921_v25 = vld [vmem:[%s3110_s1 + $0x58] sm:$0xff]   ;;  %v1923_v26 = vld [vmem:[%s3110_s1 + $0x60] sm:$0xff]   ;;  %v1925_v29 = vld [vmem:[%s3110_s1 + $0x68] sm:$0xff]  }
   0xa   :  { %866 = vmatpush1.bf16.msra.mxu1 %v1907_v3  ;;  %v1938_v27 = vld [vmem:[%s3111_s0 + $0x28] ss:$16 sps:$4 sm:$0xff]   ;;  %v1942_v28 = vld [vmem:[%s3111_s0 + $0x4c] ss:$16 sps:$4 sm:$0xff]   ;;  %v1927_v30 = vld [vmem:[%s3110_s1 + $0x70] sm:$0xff]  }
   0xb   :  { %867 = vmatprep.subr.bf16.mxu1 %v2080_v0  ;;  %1098 = vmatpush1.bf16.msra.mxu0 %v1916_v7  ;;  %v1944_v31 = vld [vmem:[%s3111_s0 + $0x48] ss:$16 sps:$4 sm:$0xff]   ;;  %v1948_v32 = vld [vmem:[%s3111_s0 + $0x6c] ss:$16 sps:$4 sm:$0xff]   ;;  %v1933_v34 = vld [vmem:[%s3111_s0] ss:$16 sps:$4 sm:$0xff]  }
   0xc   :  { %1099 = vmatprep.subr.bf16.mxu0 %v2080_v0  ;;  %v1932_v33 = vld [vmem:[%s3110_s1 + $0x78] sm:$0xff]   ;;  %v1939_v35 = vld [vmem:[%s3111_s0 + $0x24] ss:$16 sps:$4 sm:$0xff]   ;;  %v1941_v38 = vld [vmem:[%s3111_s0 + $0x20] ss:$16 sps:$4 sm:$0xff]  }
   0xd   :  { %v1950_v36 = vld [vmem:[%s3111_s0 + $0x68] ss:$16 sps:$4 sm:$0xff]   ;;  %v1954_v37 = vld [vmem:[%s3111_s0 + $0x8c] ss:$16 sps:$4 sm:$0xff]   ;;  %v1945_v39 = vld [vmem:[%s3111_s0 + $0x44] ss:$16 sps:$4 sm:$0xff]  }
   0xe   :  { %868 = vmatpush1.bf16.msra.mxu1 %v1908_v6  ;;  %v1956_v40 = vld [vmem:[%s3111_s0 + $0x88] ss:$16 sps:$4 sm:$0xff]   ;;  %v1960_v41 = vld [vmem:[%s3111_s0 + $0xac] ss:$16 sps:$4 sm:$0xff]   ;;  %v1947_v42 = vld [vmem:[%s3111_s0 + $0x40] ss:$16 sps:$4 sm:$0xff]  }
   0xf   :  { %869 = vmatprep.subr.bf16.mxu1 %v2080_v0  ;;  %1100 = vmatpush1.bf16.msra.mxu0 %v1918_v9  ;;  %v1951_v43 = vld [vmem:[%s3111_s0 + $0x64] ss:$16 sps:$4 sm:$0xff]   ;;  %v1962_v44 = vld [vmem:[%s3111_s0 + $0xa8] ss:$16 sps:$4 sm:$0xff]   ;;  %v1966_v45 = vld [vmem:[%s3111_s0 + $0xcc] ss:$16 sps:$4 sm:$0xff]  }
  0x10   :  { %1101 = vmatprep.subr.bf16.mxu0 %v2080_v0  ;;  %v1953_v46 = vld [vmem:[%s3111_s0 + $0x60] ss:$16 sps:$4 sm:$0xff]   ;;  %v1957_v47 = vld [vmem:[%s3111_s0 + $0x84] ss:$16 sps:$4 sm:$0xff]   ;;  %v1968_v48 = vld [vmem:[%s3111_s0 + $0xc8] ss:$16 sps:$4 sm:$0xff]  }
  0x11   :  { %v1972_v49 = vld [vmem:[%s3111_s0 + $0xec] ss:$16 sps:$4 sm:$0xff]   ;;  %v1959_v50 = vld [vmem:[%s3111_s0 + $0x80] ss:$16 sps:$4 sm:$0xff]   ;;  %v1963_v51 = vld [vmem:[%s3111_s0 + $0xa4] ss:$16 sps:$4 sm:$0xff]  }
  0x12   :  { %870 = vmatpush1.bf16.msra.mxu1 %v1909_v8  ;;  %v1974_v52 = vld [vmem:[%s3111_s0 + $0xe8] ss:$16 sps:$4 sm:$0xff]   ;;  %v1978_v53 = vld [vmem:[%s3111_s0 + $0x10c] ss:$16 sps:$4 sm:$0xff]   ;;  %v1965_v54 = vld [vmem:[%s3111_s0 + $0xa0] ss:$16 sps:$4 sm:$0xff]  }
  0x13   :  { %871 = vmatprep.subr.bf16.mxu1 %v2080_v0  ;;  %1102 = vmatpush1.bf16.msra.mxu0 %v1920_v11  ;;  %v1969_v55 = vld [vmem:[%s3111_s0 + $0xc4] ss:$16 sps:$4 sm:$0xff]   ;;  %v1980_v56 = vld [vmem:[%s3111_s0 + $0x108] ss:$16 sps:$4 sm:$0xff]   ;;  %v1984_v57 = vld [vmem:[%s3111_s0 + $0x12c] ss:$16 sps:$4 sm:$0xff]  }
  0x14   :  { %1103 = vmatprep.subr.bf16.mxu0 %v2080_v0  ;;  %v1971_v58 = vld [vmem:[%s3111_s0 + $0xc0] ss:$16 sps:$4 sm:$0xff]   ;;  %v1975_v59 = vld [vmem:[%s3111_s0 + $0xe4] ss:$16 sps:$4 sm:$0xff]   ;;  %v1986_v60 = vld [vmem:[%s3111_s0 + $0x128] ss:$16 sps:$4 sm:$0xff]  }
  0x15   :  { %v1990_v61 = vld [vmem:[%s3111_s0 + $0x14c] ss:$16 sps:$4 sm:$0xff]   ;;  %v1977_v62 = vld [vmem:[%s3111_s0 + $0xe0] ss:$16 sps:$4 sm:$0xff]   ;;  %v1981_v63 = vld [vmem:[%s3111_s0 + $0x104] ss:$16 sps:$4 sm:$0xff]  }
  0x16   :  { %872 = vmatpush1.bf16.msra.mxu1 %v1910_v10  ;;  %v1996_v1 = vld [vmem:[%s3111_s0 + $0x16c] ss:$16 sps:$4 sm:$0xff]   ;;  %v1983_v2 = vld [vmem:[%s3111_s0 + $0x100] ss:$16 sps:$4 sm:$0xff]   ;;  %v1987_v3 = vld [vmem:[%s3111_s0 + $0x124] ss:$16 sps:$4 sm:$0xff]  }
  0x17   :  { %873 = vmatprep.subr.bf16.mxu1 %v2080_v0  ;;  %1104 = vmatpush1.bf16.msra.mxu0 %v1922_v13  ;;  %v1998_v4 = vld [vmem:[%s3111_s0 + $0x168] ss:$16 sps:$4 sm:$0xff]   ;;  %v2002_v5 = vld [vmem:[%s3111_s0 + $0x18c] ss:$16 sps:$4 sm:$0xff]   ;;  %v1989_v6 = vld [vmem:[%s3111_s0 + $0x120] ss:$16 sps:$4 sm:$0xff]  }
  0x18   :  { %1105 = vmatprep.subr.bf16.mxu0 %v2080_v0  ;;  %v1993_v7 = vld [vmem:[%s3111_s0 + $0x144] ss:$16 sps:$4 sm:$0xff]   ;;  %v2004_v8 = vld [vmem:[%s3111_s0 + $0x188] ss:$16 sps:$4 sm:$0xff]   ;;  %v2008_v9 = vld [vmem:[%s3111_s0 + $0x1ac] ss:$16 sps:$4 sm:$0xff]  }
  0x19   :  { %v1995_v10 = vld [vmem:[%s3111_s0 + $0x140] ss:$16 sps:$4 sm:$0xff]   ;;  %v1999_v11 = vld [vmem:[%s3111_s0 + $0x164] ss:$16 sps:$4 sm:$0xff]   ;;  %v2014_v13 = vld [vmem:[%s3111_s0 + $0x1cc] ss:$16 sps:$4 sm:$0xff]  }
  0x1a   :  { %874 = vmatpush1.bf16.msra.mxu1 %v1911_v12  ;;  %v2010_v12 = vld [vmem:[%s3111_s0 + $0x1a8] ss:$16 sps:$4 sm:$0xff]   ;;  %v2001_v14 = vld [vmem:[%s3111_s0 + $0x160] ss:$16 sps:$4 sm:$0xff]  }
  0x1b   :  { %875 = vmatprep.subr.bf16.mxu1 %v2080_v0  ;;  %1106 = vmatpush1.bf16.msra.mxu0 %v1924_v17  ;;  %v2016_v16 = vld [vmem:[%s3111_s0 + $0x1c8] ss:$16 sps:$4 sm:$0xff]   ;;  %v2020_v17 = vld [vmem:[%s3111_s0 + $0x1ec] ss:$16 sps:$4 sm:$0xff]  }
  0x1c   :  { %1107 = vmatprep.subr.bf16.mxu0 %v2080_v0 }
  0x1e   :  { %876 = vmatpush1.bf16.msra.mxu1 %v1913_v15  ;;  %v2005_v15 = vld [vmem:[%s3111_s0 + $0x184] ss:$16 sps:$4 sm:$0xff]  }
  0x1f   :  { %877 = vmatprep.subr.bf16.mxu1 %v2080_v0  ;;  %1108 = vmatpush1.bf16.msra.mxu0 %v1926_v19  ;;  %v2011_v19 = vld [vmem:[%s3111_s0 + $0x1a4] ss:$16 sps:$4 sm:$0xff]  }
  0x20   :  { %1109 = vmatprep.subr.bf16.mxu0 %v2080_v0 }
  0x22   :  { %878 = vmatpush1.bf16.msra.mxu1 %v1915_v18  ;;  %v2007_v18 = vld [vmem:[%s3111_s0 + $0x180] ss:$16 sps:$4 sm:$0xff]  }
  0x23   :  { %879 = vmatprep.subr.bf16.mxu1 %v2080_v0  ;;  %1110 = vmatpush1.bf16.msra.mxu0 %v1928_v21  ;;  %v2026_v21 = vld [vmem:[%s3111_s0 + $0x20c] ss:$16 sps:$4 sm:$0xff]  }
  0x26   :  { %880 = vmatpush1.bf16.msra.mxu1 %v1917_v20  ;;  %1126 = vmatmul.mubr.bf16.vlgmr.msra.gmra.mrb[0].mxu0 %v1929_v23  ;;  %v2022_v20 = vld [vmem:[%s3111_s0 + $0x1e8] ss:$16 sps:$4 sm:$0xff]   ;;  %v2017_v23 = vld [vmem:[%s3111_s0 + $0x1c4] ss:$16 sps:$4 sm:$0xff]  }
  0x27   :  { %881 = vmatprep.subr.bf16.mxu1 %v2080_v0  ;;  %1831 = vmatprep.mubr.msk.bf16.mxu0 %vm785_vm0, %v1936_v24  ;;  %v2028_v24 = vld [vmem:[%s3111_s0 + $0x208] ss:$16 sps:$4 sm:$0xff]  }
  0x2a   :  { %882 = vmatpush1.bf16.msra.mxu1 %v1919_v22  ;;  %v2013_v22 = vld [vmem:[%s3111_s0 + $0x1a0] ss:$16 sps:$4 sm:$0xff]  }
  0x2b   :  { %883 = vmatprep.subr.bf16.mxu1 %v2080_v0 }
  0x2e   :  { %884 = vmatpush1.bf16.msra.mxu1 %v1921_v25  ;;  %1134 = vmatmul.mubr.bf16.gmra.mrb[4].mxu0 %v1938_v27  ;;  %v2032_v25 = vld [vmem:[%s3111_s0 + $0x22c] ss:$16 sps:$4 sm:$0xff]   ;;  %v2023_v27 = vld [vmem:[%s3111_s0 + $0x1e4] ss:$16 sps:$4 sm:$0xff]  }
  0x2f   :  { %885 = vmatprep.subr.bf16.mxu1 %v2080_v0  ;;  %1832 = vmatprep.mubr.msk.bf16.mxu0 %vm785_vm0, %v1942_v28  ;;  %v2034_v28 = vld [vmem:[%s3111_s0 + $0x228] ss:$16 sps:$4 sm:$0xff]  }
  0x32   :  { %886 = vmatpush1.bf16.msra.mxu1 %v1923_v26  ;;  %v2019_v26 = vld [vmem:[%s3111_s0 + $0x1c0] ss:$16 sps:$4 sm:$0xff]  }
  0x33   :  { %887 = vmatprep.subr.bf16.mxu1 %v2080_v0 }
  0x36   :  { %888 = vmatpush1.bf16.msra.mxu1 %v1925_v29  ;;  %1142 = vmatmul.mubr.bf16.gmra.mrb[8].mxu0 %v1944_v31  ;;  %v2038_v29 = vld [vmem:[%s3111_s0 + $0x24c] ss:$16 sps:$4 sm:$0xff]   ;;  %v2029_v31 = vld [vmem:[%s3111_s0 + $0x204] ss:$16 sps:$4 sm:$0xff]  }
  0x37   :  { %889 = vmatprep.subr.bf16.mxu1 %v2080_v0  ;;  %1833 = vmatprep.mubr.msk.bf16.mxu0 %vm785_vm0, %v1948_v32  ;;  %v2040_v32 = vld [vmem:[%s3111_s0 + $0x248] ss:$16 sps:$4 sm:$0xff]  }
  0x3a   :  { %890 = vmatpush1.bf16.msra.mxu1 %v1927_v30  ;;  %v2025_v30 = vld [vmem:[%s3111_s0 + $0x1e0] ss:$16 sps:$4 sm:$0xff]  }
  0x3b   :  { %891 = vmatprep.subr.bf16.mxu1 %v2080_v0  ;;  %v1992_v0 = vld [vmem:[%s3111_s0 + $0x148] ss:$16 sps:$4 sm:$0xff]  }
  0x3e   :  { %892 = vmatpush1.bf16.msra.mxu1 %v1932_v33  ;;  %1150 = vmatmul.mubr.bf16.gmra.mrb[12].mxu0 %v1950_v36  ;;  %v2044_v33 = vld [vmem:[%s3111_s0 + $0x26c] ss:$16 sps:$4 sm:$0xff]   ;;  %v2046_v36 = vld [vmem:[%s3111_s0 + $0x268] ss:$16 sps:$4 sm:$0xff]  }
  0x3f   :  { %1834 = vmatprep.mubr.msk.bf16.mxu0 %vm785_vm0, %v1954_v37  ;;  %v2050_v37 = vld [vmem:[%s3111_s0 + $0x28c] ss:$16 sps:$4 sm:$0xff]  }
  0x41   :  { %894 = vmatmul.mubr.bf16.vlgmr.msra.gmra.mrb[0].mxu1 %v1933_v34  ;;  %v2031_v34 = vld [vmem:[%s3111_s0 + $0x200] ss:$16 sps:$4 sm:$0xff]  }
  0x42   :  { %901 = vmatprep.mubr.bf16.mxu1 %v1939_v35  ;;  %v2035_v35 = vld [vmem:[%s3111_s0 + $0x224] ss:$16 sps:$4 sm:$0xff]  }
  0x46   :  { %1158 = vmatmul.mubr.bf16.gmra.mrb[16].mxu0 %v1956_v40  ;;  %v2052_v40 = vld [vmem:[%s3111_s0 + $0x288] ss:$16 sps:$4 sm:$0xff]  }
  0x47   :  { %1835 = vmatprep.mubr.msk.bf16.mxu0 %vm785_vm0, %v1960_v41  ;;  %v2056_v41 = vld [vmem:[%s3111_s0 + $0x2ac] ss:$16 sps:$4 sm:$0xff]  }
  0x49   :  { %902 = vmatmul.mubr.bf16.gmra.mrb[4].mxu1 %v1941_v38  ;;  %v2037_v38 = vld [vmem:[%s3111_s0 + $0x220] ss:$16 sps:$4 sm:$0xff]  }
  0x4a   :  { %909 = vmatprep.mubr.bf16.mxu1 %v1945_v39  ;;  %v2041_v39 = vld [vmem:[%s3111_s0 + $0x244] ss:$16 sps:$4 sm:$0xff]  }
  0x4e   :  { %1166 = vmatmul.mubr.bf16.gmra.mrb[20].mxu0 %v1962_v44  ;;  %v2058_v44 = vld [vmem:[%s3111_s0 + $0x2a8] ss:$16 sps:$4 sm:$0xff]  }
  0x4f   :  { %1836 = vmatprep.mubr.msk.bf16.mxu0 %vm785_vm0, %v1966_v45  ;;  %v2062_v45 = vld [vmem:[%s3111_s0 + $0x2cc] ss:$16 sps:$4 sm:$0xff]  }
  0x51   :  { %910 = vmatmul.mubr.bf16.gmra.mrb[8].mxu1 %v1947_v42  ;;  %v2043_v42 = vld [vmem:[%s3111_s0 + $0x240] ss:$16 sps:$4 sm:$0xff]  }
  0x52   :  { %917 = vmatprep.mubr.bf16.mxu1 %v1951_v43  ;;  %v2047_v43 = vld [vmem:[%s3111_s0 + $0x264] ss:$16 sps:$4 sm:$0xff]  }
  0x56   :  { %1174 = vmatmul.mubr.bf16.gmra.mrb[24].mxu0 %v1968_v48  ;;  %v2064_v48 = vld [vmem:[%s3111_s0 + $0x2c8] ss:$16 sps:$4 sm:$0xff]  }
  0x57   :  { %1837 = vmatprep.mubr.msk.bf16.mxu0 %vm785_vm0, %v1972_v49  ;;  %v2068_v49 = vld [vmem:[%s3111_s0 + $0x2ec] ss:$16 sps:$4 sm:$0xff]  }
  0x59   :  { %918 = vmatmul.mubr.bf16.gmra.mrb[12].mxu1 %v1953_v46  ;;  %v2049_v46 = vld [vmem:[%s3111_s0 + $0x260] ss:$16 sps:$4 sm:$0xff]  }
  0x5a   :  { %925 = vmatprep.mubr.bf16.mxu1 %v1957_v47  ;;  %v2053_v47 = vld [vmem:[%s3111_s0 + $0x284] ss:$16 sps:$4 sm:$0xff]  }
  0x5e   :  { %1182 = vmatmul.mubr.bf16.gmra.mrb[28].mxu0 %v1974_v52  ;;  %v115_v52 = vld [vmem:[%s3111_s0 + $0x308] sm:$0xff] }
  0x5f   :  { %1838 = vmatprep.mubr.msk.bf16.mxu0 %vm785_vm0, %v1978_v53  ;;  %v2070_v53 = vld [vmem:[%s3111_s0 + $0x2e8] ss:$16 sps:$4 sm:$0xff]  }
  0x61   :  { %926 = vmatmul.mubr.bf16.gmra.mrb[16].mxu1 %v1959_v50  ;;  %v2055_v50 = vld [vmem:[%s3111_s0 + $0x280] ss:$16 sps:$4 sm:$0xff]  }
  0x62   :  { %933 = vmatprep.mubr.bf16.mxu1 %v1963_v51  ;;  %v2059_v51 = vld [vmem:[%s3111_s0 + $0x2a4] ss:$16 sps:$4 sm:$0xff]  }
  0x66   :  { %1190 = vmatmul.mubr.bf16.gmra.mrb[32].mxu0 %v1980_v56  ;;  %v2065_v56 = vld [vmem:[%s3111_s0 + $0x2c4] ss:$16 sps:$4 sm:$0xff]  }
  0x67   :  { %1839 = vmatprep.mubr.msk.bf16.mxu0 %vm785_vm0, %v1984_v57  ;;  %v1803_v57 = vcombine.low %v115_v52, %v115_v52 }
  0x69   :  { %934 = vmatmul.mubr.bf16.gmra.mrb[20].mxu1 %v1965_v54  ;;  %v1804_v54 = vcombine.high %v115_v52, %v115_v52 }
  0x6a   :  { %941 = vmatprep.mubr.bf16.mxu1 %v1969_v55  ;;  %v2061_v55 = vld [vmem:[%s3111_s0 + $0x2a0] ss:$16 sps:$4 sm:$0xff]  }
  0x6e   :  { %1198 = vmatmul.mubr.bf16.gmra.mrb[36].mxu0 %v1986_v60  ;;  %v114_v60 = vld [vmem:[%s3111_s0 + $0x300] sm:$0xff] }
  0x6f   :  { %1840 = vmatprep.mubr.msk.bf16.mxu0 %vm785_vm0, %v1990_v61  ;;  %v2073_v61 = vld [vmem:[%s3111_s0 + $0x2e0] ss:$16 sps:$4 sm:$0xff]  }
  0x71   :  { %942 = vmatmul.mubr.bf16.gmra.mrb[24].mxu1 %v1971_v58  ;;  %v2067_v58 = vld [vmem:[%s3111_s0 + $0x2c0] ss:$16 sps:$4 sm:$0xff]  }
  0x72   :  { %949 = vmatprep.mubr.bf16.mxu1 %v1975_v59  ;;  %v2071_v59 = vld [vmem:[%s3111_s0 + $0x2e4] ss:$16 sps:$4 sm:$0xff]  }
  0x76   :  { %1206 = vmatmul.mubr.bf16.gmra.mrb[40].mxu0 %v1992_v0 }
  0x77   :  { %1841 = vmatprep.mubr.msk.bf16.mxu0 %vm785_vm0, %v1996_v1 }
  0x79   :  { %950 = vmatmul.mubr.bf16.gmra.mrb[28].mxu1 %v1977_v62  ;;  %v1802_v62 = vcombine.high %v114_v60, %v114_v60 }
  0x7a   :  { %957 = vmatprep.mubr.bf16.mxu1 %v1981_v63  ;;  %v1801_v63 = vcombine.low %v114_v60, %v114_v60 }
  0x7e   :  { %1214 = vmatmul.mubr.bf16.gmra.mrb[44].mxu0 %v1998_v4 }
  0x7f   :  { %1842 = vmatprep.mubr.msk.bf16.mxu0 %vm785_vm0, %v2002_v5 }
  0x81   :  { %958 = vmatmul.mubr.bf16.gmra.mrb[32].mxu1 %v1983_v2 }
  0x82   :  { %965 = vmatprep.mubr.bf16.mxu1 %v1987_v3 }
  0x86   :  { %1222 = vmatmul.mubr.bf16.gmra.mrb[48].mxu0 %v2004_v8 }
  0x87   :  { %1843 = vmatprep.mubr.msk.bf16.mxu0 %vm785_vm0, %v2008_v9 }
  0x89   :  { %966 = vmatmul.mubr.bf16.gmra.mrb[36].mxu1 %v1989_v6 }
  0x8a   :  { %973 = vmatprep.mubr.bf16.mxu1 %v1993_v7 }
  0x8e   :  { %1230 = vmatmul.mubr.bf16.gmra.mrb[52].mxu0 %v2010_v12 }
  0x8f   :  { %1844 = vmatprep.mubr.msk.bf16.mxu0 %vm785_vm0, %v2014_v13 }
  0x91   :  { %974 = vmatmul.mubr.bf16.gmra.mrb[40].mxu1 %v1995_v10 }
  0x92   :  { %981 = vmatprep.mubr.bf16.mxu1 %v1999_v11 }
  0x96   :  { %1238 = vmatmul.mubr.bf16.gmra.mrb[56].mxu0 %v2016_v16 }
  0x97   :  { %1845 = vmatprep.mubr.msk.bf16.mxu0 %vm785_vm0, %v2020_v17 }
  0x99   :  { %982 = vmatmul.mubr.bf16.gmra.mrb[44].mxu1 %v2001_v14 }
  0x9a   :  { %989 = vmatprep.mubr.bf16.mxu1 %v2005_v15 }
  0x9e   :  { %1246 = vmatmul.mubr.bf16.gmra.mrb[60].mxu0 %v2022_v20 }
  0x9f   :  { %1846 = vmatprep.mubr.msk.bf16.mxu0 %vm785_vm0, %v2026_v21 }
  0xa1   :  { %990 = vmatmul.mubr.bf16.gmra.mrb[48].mxu1 %v2007_v18 }
  0xa2   :  { %997 = vmatprep.mubr.bf16.mxu1 %v2011_v19 }
  0xa6   :  { %1254 = vmatmul.mubr.bf16.gmra.mrb[64].mxu0 %v2028_v24 }
  0xa7   :  { %1847 = vmatprep.mubr.msk.bf16.mxu0 %vm785_vm0, %v2032_v25 }
  0xa9   :  { %998 = vmatmul.mubr.bf16.gmra.mrb[52].mxu1 %v2013_v22 }
  0xaa   :  { %1005 = vmatprep.mubr.bf16.mxu1 %v2017_v23 }
  0xae   :  { %1262 = vmatmul.mubr.bf16.gmra.mrb[68].mxu0 %v2034_v28 }
  0xaf   :  { %1848 = vmatprep.mubr.msk.bf16.mxu0 %vm785_vm0, %v2038_v29 }
  0xb1   :  { %1006 = vmatmul.mubr.bf16.gmra.mrb[56].mxu1 %v2019_v26 }
  0xb2   :  { %1013 = vmatprep.mubr.bf16.mxu1 %v2023_v27 }
  0xb6   :  { %1270 = vmatmul.mubr.bf16.gmra.mrb[72].mxu0 %v2040_v32 }
  0xb7   :  { %1849 = vmatprep.mubr.msk.bf16.mxu0 %vm785_vm0, %v2044_v33 }
  0xb9   :  { %1014 = vmatmul.mubr.bf16.gmra.mrb[60].mxu1 %v2025_v30 }
  0xba   :  { %1021 = vmatprep.mubr.bf16.mxu1 %v2029_v31 }
  0xbe   :  { %1278 = vmatmul.mubr.bf16.gmra.mrb[76].mxu0 %v2046_v36 }
  0xbf   :  { %1850 = vmatprep.mubr.msk.bf16.mxu0 %vm785_vm0, %v2050_v37 }
  0xc1   :  { %1022 = vmatmul.mubr.bf16.gmra.mrb[64].mxu1 %v2031_v34 }
  0xc2   :  { %1029 = vmatprep.mubr.bf16.mxu1 %v2035_v35 }
  0xc6   :  { %1286 = vmatmul.mubr.bf16.gmra.mrb[80].mxu0 %v2052_v40 }
  0xc7   :  { %1851 = vmatprep.mubr.msk.bf16.mxu0 %vm785_vm0, %v2056_v41 }
  0xc9   :  { %1030 = vmatmul.mubr.bf16.gmra.mrb[68].mxu1 %v2037_v38 }
  0xca   :  { %1037 = vmatprep.mubr.bf16.mxu1 %v2041_v39 }
  0xce   :  { %1294 = vmatmul.mubr.bf16.gmra.mrb[84].mxu0 %v2058_v44 }
  0xcf   :  { %1852 = vmatprep.mubr.msk.bf16.mxu0 %vm785_vm0, %v2062_v45 }
  0xd1   :  { %1038 = vmatmul.mubr.bf16.gmra.mrb[72].mxu1 %v2043_v42 }
  0xd2   :  { %1045 = vmatprep.mubr.bf16.mxu1 %v2047_v43 }
  0xd6   :  { %1302 = vmatmul.mubr.bf16.gmra.mrb[88].mxu0 %v2064_v48 }
  0xd7   :  { %1853 = vmatprep.mubr.msk.bf16.mxu0 %vm785_vm0, %v2068_v49 }
  0xd9   :  { %1046 = vmatmul.mubr.bf16.gmra.mrb[76].mxu1 %v2049_v46 }
  0xda   :  { %1053 = vmatprep.mubr.bf16.mxu1 %v2053_v47 }
  0xde   :  { %1310 = vmatmul.mubr.bf16.gmra.mrb[92].mxu0 %v2070_v53 }
  0xdf   :  { %1854 = vmatprep.mubr.msk.bf16.mxu0 %vm785_vm0, %v1804_v54 }
  0xe1   :  { %1054 = vmatmul.mubr.bf16.gmra.mrb[80].mxu1 %v2055_v50 }
  0xe2   :  { %1061 = vmatprep.mubr.bf16.mxu1 %v2059_v51 }
  0xe6   :  { %1318 = vmatmul.mubr.bf16.gmra.mrb[96].mxu0 %v1803_v57 }
  0xe9   :  { %1062 = vmatmul.mubr.bf16.gmra.mrb[84].mxu1 %v2061_v55 }
  0xea   :  { %1069 = vmatprep.mubr.bf16.mxu1 %v2065_v56 }
  0xf1   :  { %1070 = vmatmul.mubr.bf16.gmra.mrb[88].mxu1 %v2067_v58 }
  0xf2   :  { %1077 = vmatprep.mubr.bf16.mxu1 %v2071_v59 }
  0xf9   :  { %1078 = vmatmul.mubr.bf16.gmra.mrb[92].mxu1 %v2073_v61  ;;  %v1127_v0 = vpop.f32.mrb[0].mxu0 }
  0xfa   :  { %1085 = vmatprep.mubr.bf16.mxu1 %v1802_v62  ;;  %v1129_v1 = vpop.f32.mrb[1].mxu0 }
  0xfb   :  { %v1130_v2 = vpop.f32.mrb[2].mxu0 }
  0xfc   :  { %v1132_v3 = vpop.f32.mrb[3].mxu0 }
 0x101   :  { %1086 = vmatmul.mubr.bf16.gmra.mrb[96].mxu1 %v1801_v63  ;;  %v1135_v4 = vpop.f32.mrb[4].mxu0 }
 0x102   :  { %v1137_v5 = vpop.f32.mrb[5].mxu0 }
 0x103   :  { %v1138_v6 = vpop.f32.mrb[6].mxu0 }
 0x104   :  { %v1140_v7 = vpop.f32.mrb[7].mxu0 }
 0x109   :  { %v1143_v8 = vpop.f32.mrb[8].mxu0 }
 0x10a   :  { %v1145_v9 = vpop.f32.mrb[9].mxu0 }
 0x10b   :  { %v1146_v10 = vpop.f32.mrb[10].mxu0 }
 0x10c   :  { %v1148_v11 = vpop.f32.mrb[11].mxu0 }
 0x111   :  { %v1151_v18 = vpop.f32.mrb[12].mxu0 }
 0x112   :  { %v1153_v19 = vpop.f32.mrb[13].mxu0 }
 0x113   :  { %v1154_v20 = vpop.f32.mrb[14].mxu0 }
 0x114   :  { %v895_v12 = vpop.f32.mrb[0].mxu1  ;;  %v1156_v21 = vpop.f32.mrb[15].mxu0 }
 0x115   :  { %v2525_v13 = vadd.f32 %v1127_v0, %v895_v12  ;;  %v897_v14 = vpop.f32.mrb[1].mxu1 }
 0x116   :  { %v898_v15 = vpop.f32.mrb[2].mxu1 }
 0x117   :  { %v2527_v16 = vadd.f32 %v1130_v2, %v898_v15  ;;  %v900_v17 = vpop.f32.mrb[3].mxu1 }
 0x119   :  { %v1159_v28 = vpop.f32.mrb[16].mxu0  ;;  %v1325_v11 = vadd.f32 %v2527_v16, %v2525_v13 }
 0x11a   :  { %v1161_v29 = vpop.f32.mrb[17].mxu0 }
 0x11b   :  { %v1162_v30 = vpop.f32.mrb[18].mxu0 }
 0x11c   :  { %v903_v22 = vpop.f32.mrb[4].mxu1  ;;  %v1164_v31 = vpop.f32.mrb[19].mxu0 }
 0x11d   :  { %v2529_v23 = vadd.f32 %v1135_v4, %v903_v22  ;;  %v905_v24 = vpop.f32.mrb[5].mxu1 }
 0x11e   :  { %v906_v25 = vpop.f32.mrb[6].mxu1 }
 0x11f   :  { %v2531_v26 = vadd.f32 %v1138_v6, %v906_v25  ;;  %v908_v27 = vpop.f32.mrb[7].mxu1  ;;  %v1382_v12 = vmul.f32 %v2529_v23, %v2529_v23  ;;  %v1326_v19 = vadd.f32 %v1325_v11, %v2529_v23 }
 0x121   :  { %v1167_v38 = vpop.f32.mrb[20].mxu0  ;;  %v1383_v27 = vmul.f32 %v2531_v26, %v2531_v26 }
 0x122   :  { %v1169_v39 = vpop.f32.mrb[21].mxu0 }
 0x123   :  { %v1170_v40 = vpop.f32.mrb[22].mxu0 }
 0x124   :  { %v911_v32 = vpop.f32.mrb[8].mxu1  ;;  %v1172_v41 = vpop.f32.mrb[23].mxu0 }
 0x125   :  { %v2533_v33 = vadd.f32 %v1143_v8, %v911_v32  ;;  %v913_v34 = vpop.f32.mrb[9].mxu1  ;;  %v1381_v8 = vmul.f32 %v2527_v16, %v2527_v16 }
 0x126   :  { %v914_v35 = vpop.f32.mrb[10].mxu1 }
 0x127   :  { %v2535_v36 = vadd.f32 %v1146_v10, %v914_v35  ;;  %v916_v37 = vpop.f32.mrb[11].mxu1  ;;  %v1380_v10 = vmul.f32 %v2525_v13, %v2525_v13  ;;  %v1384_v31 = vmul.f32 %v2533_v33, %v2533_v33 }
 0x129   :  { %v1175_v48 = vpop.f32.mrb[24].mxu0  ;;  %v1385_v41 = vmul.f32 %v2535_v36, %v2535_v36 }
 0x12a   :  { %v1177_v49 = vpop.f32.mrb[25].mxu0 }
 0x12b   :  { %v1178_v50 = vpop.f32.mrb[26].mxu0 }
 0x12c   :  { %v919_v42 = vpop.f32.mrb[12].mxu1  ;;  %v1180_v51 = vpop.f32.mrb[27].mxu0 }
 0x12d   :  { %v2537_v43 = vadd.f32 %v1151_v18, %v919_v42  ;;  %v921_v44 = vpop.f32.mrb[13].mxu1  ;;  %v1429_v18 = vadd.f32 %v1381_v8, %v1380_v10 }
 0x12e   :  { %v922_v45 = vpop.f32.mrb[14].mxu1 }
 0x12f   :  { %v2539_v46 = vadd.f32 %v1154_v20, %v922_v45  ;;  %v924_v47 = vpop.f32.mrb[15].mxu1  ;;  %v1430_v25 = vadd.f32 %v1429_v18, %v1382_v12  ;;  %v1386_v49 = vmul.f32 %v2537_v43, %v2537_v43 }
 0x131   :  { %v1183_v58 = vpop.f32.mrb[28].mxu0  ;;  %v1431_v34 = vadd.f32 %v1430_v25, %v1383_v27 }
 0x132   :  { %v1185_v59 = vpop.f32.mrb[29].mxu0 }
 0x133   :  { %v1186_v60 = vpop.f32.mrb[30].mxu0 }
 0x134   :  { %v927_v52 = vpop.f32.mrb[16].mxu1  ;;  %v1188_v61 = vpop.f32.mrb[31].mxu0 }
 0x135   :  { %v2541_v53 = vadd.f32 %v1159_v28, %v927_v52  ;;  %v929_v54 = vpop.f32.mrb[17].mxu1 }
 0x136   :  { %v930_v55 = vpop.f32.mrb[18].mxu1 }
 0x137   :  { %v2543_v56 = vadd.f32 %v1162_v30, %v930_v55  ;;  %v932_v57 = vpop.f32.mrb[19].mxu1  ;;  %v1327_v30 = vadd.f32 %v1326_v19, %v2531_v26 }
 0x139   :  { %v1191_v4 = vpop.f32.mrb[32].mxu0  ;;  %v1328_v35 = vadd.f32 %v1327_v30, %v2533_v33 }
 0x13a   :  { %v1193_v5 = vpop.f32.mrb[33].mxu0 }
 0x13b   :  { %v1194_v6 = vpop.f32.mrb[34].mxu0 }
 0x13c   :  { %v935_v62 = vpop.f32.mrb[20].mxu1  ;;  %v1196_v7 = vpop.f32.mrb[35].mxu0 }
 0x13d   :  { %v2545_v63 = vadd.f32 %v1167_v38, %v935_v62  ;;  %v937_v0 = vpop.f32.mrb[21].mxu1 }
 0x13e   :  { %v938_v1 = vpop.f32.mrb[22].mxu1  ;;  %v1388_v0 = vmul.f32 %v2541_v53, %v2541_v53 }
 0x13f   :  { %v2547_v2 = vadd.f32 %v1170_v40, %v938_v1  ;;  %v940_v3 = vpop.f32.mrb[23].mxu1  ;;  %v1432_v40 = vadd.f32 %v1431_v34, %v1384_v31  ;;  %v1390_v18 = vmul.f32 %v2545_v63, %v2545_v63 }
 0x141   :  { %v1199_v22 = vpop.f32.mrb[36].mxu0  ;;  %v1433_v52 = vadd.f32 %v1432_v40, %v1385_v41  ;;  %v1391_v34 = vmul.f32 %v2547_v2, %v2547_v2 }
 0x142   :  { %v1201_v24 = vpop.f32.mrb[37].mxu0 }
 0x143   :  { %v1202_v28 = vpop.f32.mrb[38].mxu0  ;;  %v1434_v57 = vadd.f32 %v1433_v52, %v1386_v49 }
 0x144   :  { %v943_v9 = vpop.f32.mrb[24].mxu1  ;;  %v1204_v29 = vpop.f32.mrb[39].mxu0 }
 0x145   :  { %v2557_v14 = vadd.f32 %v1175_v48, %v943_v9  ;;  %v945_v15 = vpop.f32.mrb[25].mxu1  ;;  %v1329_v48 = vadd.f32 %v1328_v35, %v2535_v36 }
 0x146   :  { %v946_v17 = vpop.f32.mrb[26].mxu1 }
 0x147   :  { %v2560_v20 = vadd.f32 %v1178_v50, %v946_v17  ;;  %v948_v21 = vpop.f32.mrb[27].mxu1  ;;  %v1330_v54 = vadd.f32 %v1329_v48, %v2537_v43 }
 0x149   :  { %v1207_v45 = vpop.f32.mrb[40].mxu0  ;;  %v1331_v62 = vadd.f32 %v1330_v54, %v2539_v46 }
 0x14a   :  { %v1209_v47 = vpop.f32.mrb[41].mxu0 }
 0x14b   :  { %v1210_v50 = vpop.f32.mrb[42].mxu0  ;;  %v1332_v9 = vadd.f32 %v1331_v62, %v2541_v53 }
 0x14c   :  { %v951_v32 = vpop.f32.mrb[28].mxu1  ;;  %v1212_v51 = vpop.f32.mrb[43].mxu0 }
 0x14d   :  { %v2568_v37 = vadd.f32 %v1183_v58, %v951_v32  ;;  %v953_v38 = vpop.f32.mrb[29].mxu1  ;;  %v1387_v58 = vmul.f32 %v2539_v46, %v2539_v46  ;;  %v1333_v17 = vadd.f32 %v1332_v9, %v2543_v56  ;;  %v1393_v51 = vmul.f32 %v2560_v20, %v2560_v20 }
 0x14e   :  { %v954_v39 = vpop.f32.mrb[30].mxu1 }
 0x14f   :  { %v2572_v42 = vadd.f32 %v1186_v60, %v954_v39  ;;  %v956_v44 = vpop.f32.mrb[31].mxu1  ;;  %v1435_v8 = vadd.f32 %v1434_v57, %v1387_v58  ;;  %v1334_v25 = vadd.f32 %v1333_v17, %v2545_v63 }
 0x151   :  { %v1215_v5 = vpop.f32.mrb[44].mxu0  ;;  %v1436_v12 = vadd.f32 %v1435_v8, %v1388_v0  ;;  %v1335_v39 = vadd.f32 %v1334_v25, %v2547_v2  ;;  %v1395_v8 = vmul.f32 %v2572_v42, %v2572_v42 }
 0x152   :  { %v1217_v7 = vpop.f32.mrb[45].mxu0 }
 0x153   :  { %v1218_v10 = vpop.f32.mrb[46].mxu0  ;;  %v1336_v44 = vadd.f32 %v1335_v39, %v2557_v14 }
 0x154   :  { %v959_v55 = vpop.f32.mrb[32].mxu1  ;;  %v1220_v11 = vpop.f32.mrb[47].mxu0 }
 0x155   :  { %v2580_v59 = vadd.f32 %v1191_v4, %v959_v55  ;;  %v961_v60 = vpop.f32.mrb[33].mxu1  ;;  %v1389_v4 = vmul.f32 %v2543_v56, %v2543_v56  ;;  %v1337_v58 = vadd.f32 %v1336_v44, %v2560_v20 }
 0x156   :  { %v962_v61 = vpop.f32.mrb[34].mxu1  ;;  %v1394_v60 = vmul.f32 %v2568_v37, %v2568_v37 }
 0x157   :  { %v2585_v1 = vadd.f32 %v1194_v6, %v962_v61  ;;  %v964_v3 = vpop.f32.mrb[35].mxu1  ;;  %v1437_v24 = vadd.f32 %v1436_v12, %v1389_v4  ;;  %v1338_v0 = vadd.f32 %v1337_v58, %v2568_v37  ;;  %v1396_v4 = vmul.f32 %v2580_v59, %v2580_v59 }
 0x159   :  { %v1223_v30 = vpop.f32.mrb[48].mxu0  ;;  %v1438_v32 = vadd.f32 %v1437_v24, %v1390_v18  ;;  %v1339_v12 = vadd.f32 %v1338_v0, %v2572_v42 }
 0x15a   :  { %v1225_v31 = vpop.f32.mrb[49].mxu0 }
 0x15b   :  { %v1226_v35 = vpop.f32.mrb[50].mxu0  ;;  %v1439_v41 = vadd.f32 %v1438_v32, %v1391_v34  ;;  %v1340_v24 = vadd.f32 %v1339_v12, %v2580_v59 }
 0x15c   :  { %v967_v15 = vpop.f32.mrb[36].mxu1  ;;  %v1228_v38 = vpop.f32.mrb[51].mxu0 }
 0x15d   :  { %v2593_v6 = vadd.f32 %v1199_v22, %v967_v15  ;;  %v969_v19 = vpop.f32.mrb[37].mxu1  ;;  %v1392_v22 = vmul.f32 %v2557_v14, %v2557_v14  ;;  %v1341_v34 = vadd.f32 %v1340_v24, %v2585_v1 }
 0x15e   :  { %v970_v21 = vpop.f32.mrb[38].mxu1 }
 0x15f   :  { %v2596_v27 = vadd.f32 %v1202_v28, %v970_v21  ;;  %v972_v29 = vpop.f32.mrb[39].mxu1  ;;  %v1440_v49 = vadd.f32 %v1439_v41, %v1392_v22  ;;  %v1398_v38 = vmul.f32 %v2593_v6, %v2593_v6  ;;  %v1342_v41 = vadd.f32 %v1341_v34, %v2593_v6 }
 0x161   :  { %v1231_v55 = vpop.f32.mrb[52].mxu0 }
 0x162   :  { %v1233_v57 = vpop.f32.mrb[53].mxu0 }
 0x163   :  { %v1234_v61 = vpop.f32.mrb[54].mxu0 }
 0x164   :  { %v975_v40 = vpop.f32.mrb[40].mxu1  ;;  %v1236_v62 = vpop.f32.mrb[55].mxu0 }
 0x165   :  { %v2604_v28 = vadd.f32 %v1207_v45, %v975_v40  ;;  %v977_v47 = vpop.f32.mrb[41].mxu1  ;;  %v1441_v45 = vadd.f32 %v1440_v49, %v1393_v51 }
 0x166   :  { %v978_v48 = vpop.f32.mrb[42].mxu1 }
 0x167   :  { %v2608_v52 = vadd.f32 %v1210_v50, %v978_v48  ;;  %v980_v54 = vpop.f32.mrb[43].mxu1  ;;  %v1442_v7 = vadd.f32 %v1441_v45, %v1394_v60  ;;  %v1343_v60 = vadd.f32 %v1342_v41, %v2596_v27 }
 0x168   :  { %v1399_v54 = vmul.f32 %v2596_v27, %v2596_v27 }
 0x169   :  { %v1239_v18 = vpop.f32.mrb[56].mxu0  ;;  %v1443_v21 = vadd.f32 %v1442_v7, %v1395_v8  ;;  %v1344_v0 = vadd.f32 %v1343_v60, %v2604_v28 }
 0x16a   :  { %v1241_v19 = vpop.f32.mrb[57].mxu0 }
 0x16b   :  { %v1242_v25 = vpop.f32.mrb[58].mxu0  ;;  %v1444_v31 = vadd.f32 %v1443_v21, %v1396_v4  ;;  %v1345_v19 = vadd.f32 %v1344_v0, %v2608_v52 }
 0x16c   :  { %v983_v3 = vpop.f32.mrb[44].mxu1  ;;  %v1244_v29 = vpop.f32.mrb[59].mxu0 }
 0x16d   :  { %v2616_v50 = vadd.f32 %v1215_v5, %v983_v3  ;;  %v985_v9 = vpop.f32.mrb[45].mxu1  ;;  %v1397_v5 = vmul.f32 %v2585_v1, %v2585_v1 }
 0x16e   :  { %v986_v11 = vpop.f32.mrb[46].mxu1  ;;  %v1401_v9 = vmul.f32 %v2608_v52, %v2608_v52 }
 0x16f   :  { %v2621_v15 = vadd.f32 %v1218_v10, %v986_v11  ;;  %v988_v17 = vpop.f32.mrb[47].mxu1  ;;  %v1445_v40 = vadd.f32 %v1444_v31, %v1397_v5  ;;  %v1402_v21 = vmul.f32 %v2616_v50, %v2616_v50  ;;  %v1346_v31 = vadd.f32 %v1345_v19, %v2616_v50 }
 0x171   :  { %v1247_v48 = vpop.f32.mrb[60].mxu0  ;;  %v1446_v51 = vadd.f32 %v1445_v40, %v1398_v38  ;;  %v1403_v34 = vmul.f32 %v2621_v15, %v2621_v15 }
 0x172   :  { %v1249_v49 = vpop.f32.mrb[61].mxu0 }
 0x173   :  { %v1250_v57 = vpop.f32.mrb[62].mxu0  ;;  %v1447_v45 = vadd.f32 %v1446_v51, %v1399_v54 }
 0x174   :  { %v991_v32 = vpop.f32.mrb[48].mxu1  ;;  %v1252_v58 = vpop.f32.mrb[63].mxu0 }
 0x175   :  { %v2629_v10 = vadd.f32 %v1223_v30, %v991_v32  ;;  %v993_v39 = vpop.f32.mrb[49].mxu1  ;;  %v1400_v30 = vmul.f32 %v2604_v28, %v2604_v28 }
 0x176   :  { %v994_v22 = vpop.f32.mrb[50].mxu1 }
 0x177   :  { %v2632_v44 = vadd.f32 %v1226_v35, %v994_v22  ;;  %v996_v47 = vpop.f32.mrb[51].mxu1  ;;  %v1448_v8 = vadd.f32 %v1447_v45, %v1400_v30  ;;  %v1347_v22 = vadd.f32 %v1346_v31, %v2621_v15  ;;  %v1404_v40 = vmul.f32 %v2629_v10, %v2629_v10 }
 0x179   :  { %v1255_v4 = vpop.f32.mrb[64].mxu0  ;;  %v1348_v58 = vadd.f32 %v1347_v22, %v2629_v10 }
 0x17a   :  { %v1257_v17 = vpop.f32.mrb[65].mxu0 }
 0x17b   :  { %v1258_v24 = vpop.f32.mrb[66].mxu0  ;;  %v1349_v0 = vadd.f32 %v1348_v58, %v2632_v44 }
 0x17c   :  { %v999_v62 = vpop.f32.mrb[52].mxu1  ;;  %v1260_v29 = vpop.f32.mrb[67].mxu0 }
 0x17d   :  { %v2640_v35 = vadd.f32 %v1231_v55, %v999_v62  ;;  %v1001_v3 = vpop.f32.mrb[53].mxu1  ;;  %v1449_v55 = vadd.f32 %v1448_v8, %v1401_v9 }
 0x17e   :  { %v1002_v7 = vpop.f32.mrb[54].mxu1 }
 0x17f   :  { %v2644_v11 = vadd.f32 %v1234_v61, %v1002_v7  ;;  %v1004_v12 = vpop.f32.mrb[55].mxu1  ;;  %v1450_v32 = vadd.f32 %v1449_v55, %v1402_v21  ;;  %v1406_v3 = vmul.f32 %v2640_v35, %v2640_v35 }
 0x180   :  { %v1350_v12 = vadd.f32 %v1349_v0, %v2640_v35 }
 0x181   :  { %v1263_v49 = vpop.f32.mrb[68].mxu0  ;;  %v1451_v54 = vadd.f32 %v1450_v32, %v1403_v34  ;;  %v1407_v31 = vmul.f32 %v2644_v11, %v2644_v11 }
 0x182   :  { %v1265_v51 = vpop.f32.mrb[69].mxu0  ;;  %v1351_v34 = vadd.f32 %v1350_v12, %v2644_v11 }
 0x183   :  { %v1266_v60 = vpop.f32.mrb[70].mxu0  ;;  %v1452_v62 = vadd.f32 %v1451_v54, %v1404_v40 }
 0x184   :  { %v1007_v5 = vpop.f32.mrb[56].mxu1  ;;  %v1268_v30 = vpop.f32.mrb[71].mxu0 }
 0x185   :  { %v2652_v61 = vadd.f32 %v1239_v18, %v1007_v5  ;;  %v1009_v38 = vpop.f32.mrb[57].mxu1  ;;  %v1405_v18 = vmul.f32 %v2632_v44, %v2632_v44 }
 0x186   :  { %v1010_v39 = vpop.f32.mrb[58].mxu1 }
 0x187   :  { %v2657_v41 = vadd.f32 %v1242_v25, %v1010_v39  ;;  %v1012_v47 = vpop.f32.mrb[59].mxu1  ;;  %v1453_v9 = vadd.f32 %v1452_v62, %v1405_v18  ;;  %v1352_v22 = vadd.f32 %v1351_v34, %v2652_v61 }
 0x189   :  { %v1271_v21 = vpop.f32.mrb[72].mxu0  ;;  %v1454_v55 = vadd.f32 %v1453_v9, %v1406_v3  ;;  %v1409_v54 = vmul.f32 %v2657_v41, %v2657_v41 }
 0x18a   :  { %v1273_v29 = vpop.f32.mrb[73].mxu0 }
 0x18b   :  { %v1274_v5 = vpop.f32.mrb[74].mxu0  ;;  %v1455_v39 = vadd.f32 %v1454_v55, %v1407_v31 }
 0x18c   :  { %v1015_v45 = vpop.f32.mrb[60].mxu1  ;;  %v1276_v32 = vpop.f32.mrb[75].mxu0 }
 0x18d   :  { %v2665_v25 = vadd.f32 %v1247_v48, %v1015_v45  ;;  %v1017_v7 = vpop.f32.mrb[61].mxu1  ;;  %v1408_v48 = vmul.f32 %v2652_v61, %v2652_v61  ;;  %v1353_v45 = vadd.f32 %v1352_v22, %v2657_v41 }
 0x18e   :  { %v1018_v8 = vpop.f32.mrb[62].mxu1 }
 0x18f   :  { %v2668_v17 = vadd.f32 %v1250_v57, %v1018_v8  ;;  %v1020_v19 = vpop.f32.mrb[63].mxu1  ;;  %v1456_v51 = vadd.f32 %v1455_v39, %v1408_v48  ;;  %v1410_v0 = vmul.f32 %v2665_v25, %v2665_v25  ;;  %v1354_v8 = vadd.f32 %v1353_v45, %v2665_v25 }
 0x191   :  { %v1279_v62 = vpop.f32.mrb[76].mxu0  ;;  %v1411_v19 = vmul.f32 %v2668_v17, %v2668_v17  ;;  %v1355_v31 = vadd.f32 %v1354_v8, %v2668_v17 }
 0x192   :  { %v1281_v18 = vpop.f32.mrb[77].mxu0 }
 0x193   :  { %v1282_v3 = vpop.f32.mrb[78].mxu0 }
 0x194   :  { %v1023_v38 = vpop.f32.mrb[64].mxu1  ;;  %v1284_v7 = vpop.f32.mrb[79].mxu0 }
 0x195   :  { %v2676_v57 = vadd.f32 %v1255_v4, %v1023_v38  ;;  %v1025_v40 = vpop.f32.mrb[65].mxu1  ;;  %v1457_v4 = vadd.f32 %v1456_v51, %v1409_v54 }
 0x196   :  { %v1026_v47 = vpop.f32.mrb[66].mxu1 }
 0x197   :  { %v2680_v58 = vadd.f32 %v1258_v24, %v1026_v47  ;;  %v1028_v30 = vpop.f32.mrb[67].mxu1  ;;  %v1458_v12 = vadd.f32 %v1457_v4, %v1410_v0  ;;  %v1412_v32 = vmul.f32 %v2676_v57, %v2676_v57  ;;  %v1356_v40 = vadd.f32 %v1355_v31, %v2676_v57 }
 0x199   :  { %v1287_v38 = vpop.f32.mrb[80].mxu0  ;;  %v1459_v22 = vadd.f32 %v1458_v12, %v1411_v19  ;;  %v1357_v18 = vadd.f32 %v1356_v40, %v2680_v58 }
 0x19a   :  { %v1289_v39 = vpop.f32.mrb[81].mxu0 }
 0x19b   :  { %v1290_v47 = vpop.f32.mrb[82].mxu0  ;;  %v1460_v54 = vadd.f32 %v1459_v22, %v1412_v32 }
 0x19c   :  { %v1031_v9 = vpop.f32.mrb[68].mxu1  ;;  %v1292_v51 = vpop.f32.mrb[83].mxu0 }
 0x19d   :  { %v2688_v24 = vadd.f32 %v1263_v49, %v1031_v9  ;;  %v1033_v29 = vpop.f32.mrb[69].mxu1  ;;  %v1413_v49 = vmul.f32 %v2680_v58, %v2680_v58 }
 0x19e   :  { %v1034_v55 = vpop.f32.mrb[70].mxu1 }
 0x19f   :  { %v2693_v34 = vadd.f32 %v1266_v60, %v1034_v55  ;;  %v1036_v48 = vpop.f32.mrb[71].mxu1  ;;  %v1414_v45 = vmul.f32 %v2688_v24, %v2688_v24  ;;  %v1461_v4 = vadd.f32 %v1460_v54, %v1413_v49  ;;  %v1358_v8 = vadd.f32 %v1357_v18, %v2688_v24 }
 0x1a1   :  { %v1295_v19 = vpop.f32.mrb[84].mxu0  ;;  %v1462_v55 = vadd.f32 %v1461_v4, %v1414_v45  ;;  %v1415_v31 = vmul.f32 %v2693_v34, %v2693_v34  ;;  %v1359_v39 = vadd.f32 %v1358_v8, %v2693_v34 }
 0x1a2   :  { %v1297_v29 = vpop.f32.mrb[85].mxu0 }
 0x1a3   :  { %v1298_v32 = vpop.f32.mrb[86].mxu0  ;;  %v1463_v40 = vadd.f32 %v1462_v55, %v1415_v31 }
 0x1a4   :  { %v1039_v30 = vpop.f32.mrb[72].mxu1  ;;  %v1300_v48 = vpop.f32.mrb[87].mxu0 }
 0x1a5   :  { %v2701_v60 = vadd.f32 %v1271_v21, %v1039_v30  ;;  %v1041_v0 = vpop.f32.mrb[73].mxu1 }
 0x1a6   :  { %v1042_v7 = vpop.f32.mrb[74].mxu1 }
 0x1a7   :  { %3123 = vst [vmem:[#allocation2_spill] sm:$0xff] %v2701_v60  ;;  %v2704_v9 = vadd.f32 %v1274_v5, %v1042_v7  ;;  %v1044_v12 = vpop.f32.mrb[75].mxu1  ;;  %v1416_v21 = vmul.f32 %v2701_v60, %v2701_v60  ;;  %v1360_v51 = vadd.f32 %v1359_v39, %v2701_v60 }
 0x1a9   :  { %3124 = vst [vmem:[#allocation3_spill] sm:$0xff] %v2704_v9  ;;  %v1464_v30 = vadd.f32 %v1463_v40, %v1416_v21  ;;  %v1417_v18 = vmul.f32 %v2704_v9, %v2704_v9  ;;  %v1303_v7 = vpop.f32.mrb[88].mxu0  ;;  %v1361_v8 = vadd.f32 %v1360_v51, %v2704_v9 }
 0x1aa   :  { %v1305_v4 = vpop.f32.mrb[89].mxu0 }
 0x1ab   :  { %v1306_v29 = vpop.f32.mrb[90].mxu0 }
 0x1ac   :  { %v1047_v22 = vpop.f32.mrb[76].mxu1  ;;  %v1308_v55 = vpop.f32.mrb[91].mxu0 }
 0x1ad   :  { %v2712_v5 = vadd.f32 %v1279_v62, %v1047_v22  ;;  %v1049_v54 = vpop.f32.mrb[77].mxu1  ;;  %v1465_v62 = vadd.f32 %v1464_v30, %v1417_v18 }
 0x1ae   :  { %v1050_v49 = vpop.f32.mrb[78].mxu1 }
 0x1af   :  { %3125 = vst [vmem:[#allocation4_spill] sm:$0xff] %v2712_v5  ;;  %v2716_v45 = vadd.f32 %v1282_v3, %v1050_v49  ;;  %v1052_v0 = vpop.f32.mrb[79].mxu1  ;;  %v1418_v12 = vmul.f32 %v2712_v5, %v2712_v5  ;;  %v1362_v31 = vadd.f32 %v1361_v8, %v2712_v5 }
 0x1b1   :  { %3126 = vst [vmem:[#allocation5_spill] sm:$0xff] %v2716_v45  ;;  %v1466_v39 = vadd.f32 %v1465_v62, %v1418_v12  ;;  %v1419_v21 = vmul.f32 %v2716_v45, %v2716_v45  ;;  %v1363_v54 = vadd.f32 %v1362_v31, %v2716_v45  ;;  %v1311_v30 = vpop.f32.mrb[92].mxu0 }
 0x1b2   :  { %v1313_v18 = vpop.f32.mrb[93].mxu0 }
 0x1b3   :  { %v1467_v4 = vadd.f32 %v1466_v39, %v1419_v21  ;;  %v1314_v12 = vpop.f32.mrb[94].mxu0 }
 0x1b4   :  { %v1055_v48 = vpop.f32.mrb[80].mxu1  ;;  %v1316_v55 = vpop.f32.mrb[95].mxu0 }
 0x1b5   :  { %v2724_v3 = vadd.f32 %v1287_v38, %v1055_v48  ;;  %v1057_v22 = vpop.f32.mrb[81].mxu1 }
 0x1b6   :  { %v1058_v40 = vpop.f32.mrb[82].mxu1 }
 0x1b7   :  { %3127 = vst [vmem:[#allocation6_spill] sm:$0xff] %v2724_v3  ;;  %v1420_v51 = vmul.f32 %v2724_v3, %v2724_v3  ;;  %v2729_v49 = vadd.f32 %v1290_v47, %v1058_v40  ;;  %v1060_v0 = vpop.f32.mrb[83].mxu1  ;;  %v1364_v8 = vadd.f32 %v1363_v54, %v2724_v3 }
 0x1b9   :  { %v1468_v62 = vadd.f32 %v1467_v4, %v1420_v51  ;;  %v1421_v38 = vmul.f32 %v2729_v49, %v2729_v49  ;;  %v1365_v31 = vadd.f32 %v1364_v8, %v2729_v49  ;;  %v1319_v51 = vpop.f32.mrb[96].mxu0 }
 0x1ba   :  { %v1321_v18 = vpop.f32.mrb[97].mxu0 }
 0x1bb   :  { %v1469_v40 = vadd.f32 %v1468_v62, %v1421_v38  ;;  %v1322_v8 = vpop.f32.mrb[98].mxu0 }
 0x1bc   :  { %v1063_v48 = vpop.f32.mrb[84].mxu1 }
 0x1bd   :  { %v2735_v22 = vadd.f32 %v1295_v19, %v1063_v48  ;;  %v1065_v45 = vpop.f32.mrb[85].mxu1 }
 0x1be   :  { %v1066_v47 = vpop.f32.mrb[86].mxu1  ;;  %v1323_v45 = vpop.f32.mrb[99].mxu0 }
 0x1bf   :  { %v1366_v0 = vadd.f32 %v1365_v31, %v2735_v22  ;;  %v1422_v39 = vmul.f32 %v2735_v22, %v2735_v22  ;;  %v2740_v21 = vadd.f32 %v1298_v32, %v1066_v47  ;;  %v1068_v54 = vpop.f32.mrb[87].mxu1 }
 0x1c1   :  { %v1470_v4 = vadd.f32 %v1469_v40, %v1422_v39  ;;  %v1367_v55 = vadd.f32 %v1366_v0, %v2740_v21  ;;  %v1423_v19 = vmul.f32 %v2740_v21, %v2740_v21 }
 0x1c3   :  { %v1471_v48 = vadd.f32 %v1470_v4, %v1423_v19 }
 0x1c4   :  { %v1071_v62 = vpop.f32.mrb[88].mxu1 }
 0x1c5   :  { %v2745_v38 = vadd.f32 %v1303_v7, %v1071_v62  ;;  %v1073_v31 = vpop.f32.mrb[89].mxu1 }
 0x1c6   :  { %v1074_v3 = vpop.f32.mrb[90].mxu1 }
 0x1c7   :  { %v1368_v32 = vadd.f32 %v1367_v55, %v2745_v38  ;;  %v1424_v47 = vmul.f32 %v2745_v38, %v2745_v38  ;;  %v2750_v54 = vadd.f32 %v1306_v29, %v1074_v3  ;;  %v1076_v40 = vpop.f32.mrb[91].mxu1 }
 0x1c9   :  { %v1472_v0 = vadd.f32 %v1471_v48, %v1424_v47  ;;  %v1369_v39 = vadd.f32 %v1368_v32, %v2750_v54  ;;  %v1425_v18 = vmul.f32 %v2750_v54, %v2750_v54 }
 0x1cb   :  { %v1473_v4 = vadd.f32 %v1472_v0, %v1425_v18 }
 0x1cc   :  { %v1079_v19 = vpop.f32.mrb[92].mxu1 }
 0x1cd   :  { %v2755_v7 = vadd.f32 %v1311_v30, %v1079_v19  ;;  %v1081_v8 = vpop.f32.mrb[93].mxu1 }
 0x1ce   :  { %v1082_v45 = vpop.f32.mrb[94].mxu1 }
 0x1cf   :  { %3128 = vst [vmem:[#allocation7_spill] sm:$0xff] %v2755_v7  ;;  %v1370_v55 = vadd.f32 %v1369_v39, %v2755_v7  ;;  %v1426_v62 = vmul.f32 %v2755_v7, %v2755_v7  ;;  %v2760_v29 = vadd.f32 %v1314_v12, %v1082_v45  ;;  %v1084_v3 = vpop.f32.mrb[95].mxu1 }
 0x1d1   :  { %3129 = vst [vmem:[#allocation8_spill] sm:$0xff] %v2760_v29  ;;  %v1474_v48 = vadd.f32 %v1473_v4, %v1426_v62  ;;  %v1371_v31 = vadd.f32 %v1370_v55, %v2760_v29  ;;  %v1427_v32 = vmul.f32 %v2760_v29, %v2760_v29 }
 0x1d3   :  { %v1475_v47 = vadd.f32 %v1474_v48, %v1427_v32 }
 0x1d4   :  { %v1087_v40 = vpop.f32.mrb[96].mxu1 }
 0x1d5   :  { %v2765_v30 = vadd.f32 %v1319_v51, %v1087_v40  ;;  %v1089_v0 = vpop.f32.mrb[97].mxu1 }
 0x1d6   :  { %v1090_v18 = vpop.f32.mrb[98].mxu1 }
 0x1d7   :  { %3130 = vst [vmem:[#allocation9_spill] sm:$0xff] %v2765_v30  ;;  %v1372_v39 = vadd.f32 %v1371_v31, %v2765_v30  ;;  %v1428_v19 = vmul.f32 %v2765_v30, %v2765_v30  ;;  %v1091_v12 = vpop.f32.mrb[99].mxu1 }
 0x1d8   :  { %v1494_v12 = vlaneseq }
 0x1d9   :  { %v1373_v8 = vrot.slane %v1372_v39, 4  ;;  %v1476_v45 = vadd.f32 %v1475_v47, %v1428_v19  ;;  %v1486_v47 = vld [vmem:[%s3112_s2] sm:$0x1] }
 0x1da   :  { %v1495_v30 = vshrl.u32 %v1494_v12, 7 }
 0x1db   :  { %v1374_v4 = vadd.f32 %v1373_v8, %v1372_v39  ;;  %v1477_v62 = vrot.slane %v1476_v45, 4 }
 0x1dc   :  { %v1496_v39 = vsub.s32 0, %v1495_v30 }
 0x1dd   :  { %v1375_v55 = vrot.slane %v1374_v4, 2  ;;  %v1478_v3 = vadd.f32 %v1477_v62, %v1476_v45 }
 0x1df   :  { %v1376_v5 = vadd.f32 %v1375_v55, %v1374_v4  ;;  %v1479_v9 = vrot.slane %v1478_v3, 2 }
 0x1e1   :  { %v1377_v48 = vrot.slane %v1376_v5, 1  ;;  %v1480_v32 = vadd.f32 %v1479_v9, %v1478_v3  ;;  %v1490_v9 = vld [vmem:[%s3113_s3] sm:$0x1] }
 0x1e3   :  { %v1378_v51 = vadd.f32 %v1377_v48, %v1376_v5  ;;  %v1481_v40 = vrot.slane %v1480_v32, 1 }
 0x1e5   :  { %v1379_v0 = vmul.f32 0.0025510204, %v1378_v51  ;;  %v1482_v18 = vadd.f32 %v1481_v40, %v1480_v32  ;;  %v3131_v40 = vld [vmem:[#allocation7_spill] sm:$0xff] }
 0x1e7   :  { %v1483_v29 = vmul.f32 0.0025510204, %v1482_v18  ;;  %v1484_v31 = vmul.f32 %v1379_v0, %v1379_v0  ;;  %v3133_v18 = vld [vmem:[#allocation8_spill] sm:$0xff] }
 0x1e9   :  { %v1485_v60 = vsub.f32 %v1483_v29, %v1484_v31  ;;  %v3134_v31 = vld [vmem:[#allocation9_spill] sm:$0xff] }
 0x1eb   :  { %v1487_v7 = vadd.f32 1e-05, %v1485_v60 }
 0x1ed   :  { %2078 = vrsqrt.f32 %v1487_v7 }
 0x1f7   :  { %v2079_v19 = vpop.eup %2078 }
 0x1f8   :  { %v1489_v8 = vmul.f32 %v2079_v19, %v1486_v47 }
 0x1fa   :  { %v1491_v5 = vmul.f32 %v1489_v8, %v1379_v0  ;;  %v1497_v45 = vrot.slane %v1489_v8, %v1496_v39  ;;  %v3132_v0 = vld [vmem:[#allocation2_spill] sm:$0xff] }
 0x1fc   :  { %v1492_v4 = vsub.f32 %v1490_v9, %v1491_v5  ;;  %v1499_v29 = vmul.f32 %v1497_v45, %v2525_v13  ;;  %v1500_v60 = vmul.f32 %v1497_v45, %v2527_v16  ;;  %v1501_v7 = vmul.f32 %v1497_v45, %v2529_v23 }
 0x1fd   :  { %v1502_v62 = vmul.f32 %v1497_v45, %v2531_v26  ;;  %v1503_v55 = vmul.f32 %v1497_v45, %v2533_v33  ;;  %v1504_v30 = vmul.f32 %v1497_v45, %v2535_v36  ;;  %v1505_v3 = vmul.f32 %v1497_v45, %v2537_v43 }
 0x1fe   :  { %v1506_v48 = vmul.f32 %v1497_v45, %v2539_v46  ;;  %v1507_v32 = vmul.f32 %v1497_v45, %v2541_v53  ;;  %v1508_v51 = vmul.f32 %v1497_v45, %v2543_v56  ;;  %v1509_v13 = vmul.f32 %v1497_v45, %v2545_v63 }
 0x1ff   :  { %v1510_v16 = vmul.f32 %v1497_v45, %v2547_v2  ;;  %v1511_v23 = vmul.f32 %v1497_v45, %v2557_v14  ;;  %v1512_v26 = vmul.f32 %v1497_v45, %v2560_v20  ;;  %v1513_v33 = vmul.f32 %v1497_v45, %v2568_v37 }
 0x200   :  { %v1514_v36 = vmul.f32 %v1497_v45, %v2572_v42  ;;  %v1515_v43 = vmul.f32 %v1497_v45, %v2580_v59  ;;  %v1516_v46 = vmul.f32 %v1497_v45, %v2585_v1  ;;  %v1517_v53 = vmul.f32 %v1497_v45, %v2593_v6 }
 0x201   :  { %v1518_v56 = vmul.f32 %v1497_v45, %v2596_v27  ;;  %v1519_v63 = vmul.f32 %v1497_v45, %v2604_v28  ;;  %v1520_v2 = vmul.f32 %v1497_v45, %v2608_v52  ;;  %v1521_v14 = vmul.f32 %v1497_v45, %v2616_v50 }
 0x202   :  { %v1522_v20 = vmul.f32 %v1497_v45, %v2621_v15  ;;  %v1523_v37 = vmul.f32 %v1497_v45, %v2629_v10  ;;  %v1524_v42 = vmul.f32 %v1497_v45, %v2632_v44  ;;  %v1525_v59 = vmul.f32 %v1497_v45, %v2640_v35 }
 0x203   :  { %v1526_v1 = vmul.f32 %v1497_v45, %v2644_v11  ;;  %v1527_v6 = vmul.f32 %v1497_v45, %v2652_v61  ;;  %v1528_v27 = vmul.f32 %v1497_v45, %v2657_v41  ;;  %v1529_v28 = vmul.f32 %v1497_v45, %v2665_v25 }
 0x204   :  { %v1530_v52 = vmul.f32 %v1497_v45, %v2668_v17  ;;  %v1531_v50 = vmul.f32 %v1497_v45, %v2676_v57  ;;  %v1532_v15 = vmul.f32 %v1497_v45, %v2680_v58  ;;  %v1533_v10 = vmul.f32 %v1497_v45, %v2688_v24 }
 0x205   :  { %v1534_v44 = vmul.f32 %v1497_v45, %v2693_v34  ;;  %v1540_v35 = vmul.f32 %v1497_v45, %v2729_v49  ;;  %v1541_v11 = vmul.f32 %v1497_v45, %v2735_v22  ;;  %v1542_v61 = vmul.f32 %v1497_v45, %v2740_v21  ;;  %v3135_v34 = vld [vmem:[#allocation3_spill] sm:$0xff]  ;;  %v3136_v49 = vld [vmem:[#allocation4_spill] sm:$0xff]  ;;  %v3137_v22 = vld [vmem:[#allocation5_spill] sm:$0xff] }
 0x206   :  { %v1543_v41 = vmul.f32 %v1497_v45, %v2745_v38  ;;  %v1544_v25 = vmul.f32 %v1497_v45, %v2750_v54  ;;  %v1545_v17 = vmul.f32 %v1497_v45, %v3131_v40  ;;  %v1535_v57 = vmul.f32 %v1497_v45, %v3132_v0  ;;  %v3138_v21 = vld [vmem:[#allocation6_spill] sm:$0xff] }
 0x207   :  { %v1546_v58 = vmul.f32 %v1497_v45, %v3133_v18  ;;  %v1547_v24 = vmul.f32 %v1497_v45, %v3134_v31  ;;  %v1552_v12 = vrot.slane %v1492_v4, %v1496_v39  ;;  %v1536_v47 = vmul.f32 %v1497_v45, %v3135_v34 }
 0x208   :  { %v1537_v19 = vmul.f32 %v1497_v45, %v3136_v49  ;;  %v1538_v8 = vmul.f32 %v1497_v45, %v3137_v22  ;;  %v1539_v9 = vmul.f32 %v1497_v45, %v3138_v21 }
 0x209   :  { %v1554_v38 = vadd.f32 %v1552_v12, %v1499_v29  ;;  %v1555_v5 = vadd.f32 %v1552_v12, %v1500_v60  ;;  %v1556_v54 = vadd.f32 %v1552_v12, %v1501_v7  ;;  %v2825_v40 = vadd.f32 %v1552_v12, %v1502_v62 }
 0x20a   :  { %v2827_v0 = vadd.f32 %v1552_v12, %v1503_v55  ;;  %v2829_v18 = vadd.f32 %v1552_v12, %v1504_v30  ;;  %v2831_v31 = vadd.f32 %v1552_v12, %v1505_v3  ;;  %v2833_v39 = vadd.f32 %v1552_v12, %v1506_v48 }
 0x20b   :  { %v2835_v4 = vadd.f32 %v1552_v12, %v1507_v32  ;;  %v2837_v34 = vadd.f32 %v1552_v12, %v1508_v51  ;;  %v2839_v49 = vadd.f32 %v1552_v12, %v1509_v13  ;;  %v2841_v45 = vadd.f32 %v1552_v12, %v1510_v16 }
 0x20c   :  { %v2843_v29 = vadd.f32 %v1552_v12, %v1511_v23  ;;  %v2845_v60 = vadd.f32 %v1552_v12, %v1512_v26  ;;  %v2847_v7 = vadd.f32 %v1552_v12, %v1513_v33  ;;  %v2849_v62 = vadd.f32 %v1552_v12, %v1514_v36 }
 0x20d   :  { %v2851_v55 = vadd.f32 %v1552_v12, %v1515_v43  ;;  %v2853_v30 = vadd.f32 %v1552_v12, %v1516_v46  ;;  %v2855_v3 = vadd.f32 %v1552_v12, %v1517_v53  ;;  %v2857_v48 = vadd.f32 %v1552_v12, %v1518_v56 }
 0x20e   :  { %v2859_v32 = vadd.f32 %v1552_v12, %v1519_v63  ;;  %v2861_v51 = vadd.f32 %v1552_v12, %v1520_v2  ;;  %v2863_v13 = vadd.f32 %v1552_v12, %v1521_v14  ;;  %v2865_v16 = vadd.f32 %v1552_v12, %v1522_v20 }
 0x20f   :  { %v2867_v23 = vadd.f32 %v1552_v12, %v1523_v37  ;;  %v2869_v26 = vadd.f32 %v1552_v12, %v1524_v42  ;;  %v2871_v33 = vadd.f32 %v1552_v12, %v1525_v59  ;;  %v2873_v36 = vadd.f32 %v1552_v12, %v1526_v1 }
 0x210   :  { %v2875_v43 = vadd.f32 %v1552_v12, %v1527_v6  ;;  %v2877_v46 = vadd.f32 %v1552_v12, %v1528_v27  ;;  %v2879_v53 = vadd.f32 %v1552_v12, %v1529_v28  ;;  %v2881_v56 = vadd.f32 %v1552_v12, %v1530_v52 }
 0x211   :  { %v2883_v63 = vadd.f32 %v1552_v12, %v1531_v50  ;;  %v2885_v2 = vadd.f32 %v1552_v12, %v1532_v15  ;;  %v2887_v14 = vadd.f32 %v1552_v12, %v1533_v10  ;;  %v2889_v20 = vadd.f32 %v1552_v12, %v1534_v44 }
 0x212   :  { %v2891_v37 = vadd.f32 %v1552_v12, %v1535_v57  ;;  %v2893_v42 = vadd.f32 %v1552_v12, %v1536_v47  ;;  %v2895_v59 = vadd.f32 %v1552_v12, %v1537_v19  ;;  %v2897_v1 = vadd.f32 %v1552_v12, %v1538_v8 }
 0x213   :  { %v2899_v6 = vadd.f32 %v1552_v12, %v1539_v9  ;;  %v2901_v27 = vadd.f32 %v1552_v12, %v1540_v35  ;;  %v2903_v28 = vadd.f32 %v1552_v12, %v1541_v11  ;;  %v2905_v52 = vadd.f32 %v1552_v12, %v1542_v61 }
 0x214   :  { %v2907_v50 = vadd.f32 %v1552_v12, %v1543_v41  ;;  %v2909_v15 = vadd.f32 %v1552_v12, %v1544_v25  ;;  %v2911_v10 = vadd.f32 %v1552_v12, %v1545_v17  ;;  %v2913_v44 = vadd.f32 %v1552_v12, %v1546_v58 }
 0x215   :  { %v2915_v57 = vadd.f32 %v1552_v12, %v1547_v24  ;;  %v1603_v47 = vmax.f32 %v1554_v38, 0.0  ;;  %v1604_v19 = vmax.f32 %v1555_v5, 0.0  ;;  %v1605_v22 = vmax.f32 %v1556_v54, 0.0 }
 0x216   :  { %v1606_v35 = vmax.f32 %v2825_v40, 0.0  ;;  %v1607_v11 = vmax.f32 %v2827_v0, 0.0  ;;  %v1608_v61 = vmax.f32 %v2829_v18, 0.0  ;;  %v1609_v41 = vmax.f32 %v2831_v31, 0.0 }
 0x217   :  { %v1610_v25 = vmax.f32 %v2833_v39, 0.0  ;;  %v1611_v17 = vmax.f32 %v2835_v4, 0.0  ;;  %v1612_v58 = vmax.f32 %v2837_v34, 0.0  ;;  %v1613_v24 = vmax.f32 %v2839_v49, 0.0  ;;  %1652 = vst [vmem:[%s3114_s4] sm:$0xff] %v1603_v47  ;;  %1653 = vst [vmem:[%s3114_s4 + $0x8] sm:$0xff] %v1604_v19 }
 0x218   :  { %1654 = vst [vmem:[%s3114_s4 + $0x10] sm:$0xff] %v1605_v22  ;;  %v1614_v12 = vmax.f32 %v2841_v45, 0.0  ;;  %v1615_v8 = vmax.f32 %v2843_v29, 0.0  ;;  %v1616_v21 = vmax.f32 %v2845_v60, 0.0  ;;  %v1617_v9 = vmax.f32 %v2847_v7, 0.0  ;;  %1655 = vst [vmem:[%s3114_s4 + $0x18] sm:$0xff] %v1606_v35 }
 0x219   :  { %1656 = vst [vmem:[%s3114_s4 + $0x20] sm:$0xff] %v1607_v11  ;;  %1657 = vst [vmem:[%s3114_s4 + $0x28] sm:$0xff] %v1608_v61  ;;  %v1618_v38 = vmax.f32 %v2849_v62, 0.0  ;;  %v1619_v5 = vmax.f32 %v2851_v55, 0.0  ;;  %v1620_v54 = vmax.f32 %v2853_v30, 0.0  ;;  %v1621_v40 = vmax.f32 %v2855_v3, 0.0 }
 0x21a   :  { %1658 = vst [vmem:[%s3114_s4 + $0x30] sm:$0xff] %v1609_v41  ;;  %1659 = vst [vmem:[%s3114_s4 + $0x38] sm:$0xff] %v1610_v25  ;;  %v1622_v0 = vmax.f32 %v2857_v48, 0.0  ;;  %v1623_v18 = vmax.f32 %v2859_v32, 0.0  ;;  %v1624_v31 = vmax.f32 %v2861_v51, 0.0  ;;  %v1625_v39 = vmax.f32 %v2863_v13, 0.0 }
 0x21b   :  { %1660 = vst [vmem:[%s3114_s4 + $0x40] sm:$0xff] %v1611_v17  ;;  %1661 = vst [vmem:[%s3114_s4 + $0x48] sm:$0xff] %v1612_v58  ;;  %v1626_v4 = vmax.f32 %v2865_v16, 0.0  ;;  %v1627_v34 = vmax.f32 %v2867_v23, 0.0  ;;  %v1628_v49 = vmax.f32 %v2869_v26, 0.0  ;;  %v1629_v45 = vmax.f32 %v2871_v33, 0.0 }
 0x21c   :  { %1662 = vst [vmem:[%s3114_s4 + $0x50] sm:$0xff] %v1613_v24  ;;  %1663 = vst [vmem:[%s3114_s4 + $0x58] sm:$0xff] %v1614_v12  ;;  %v1630_v29 = vmax.f32 %v2873_v36, 0.0  ;;  %v1631_v60 = vmax.f32 %v2875_v43, 0.0  ;;  %v1632_v7 = vmax.f32 %v2877_v46, 0.0  ;;  %v1633_v62 = vmax.f32 %v2879_v53, 0.0 }
 0x21d   :  { %1664 = vst [vmem:[%s3114_s4 + $0x60] sm:$0xff] %v1615_v8  ;;  %1665 = vst [vmem:[%s3114_s4 + $0x68] sm:$0xff] %v1616_v21  ;;  %v1634_v55 = vmax.f32 %v2881_v56, 0.0  ;;  %v1635_v30 = vmax.f32 %v2883_v63, 0.0  ;;  %v1636_v3 = vmax.f32 %v2885_v2, 0.0  ;;  %v1637_v48 = vmax.f32 %v2887_v14, 0.0 }
 0x21e   :  { %1666 = vst [vmem:[%s3114_s4 + $0x70] sm:$0xff] %v1617_v9  ;;  %1667 = vst [vmem:[%s3114_s4 + $0x78] sm:$0xff] %v1618_v38  ;;  %v1638_v32 = vmax.f32 %v2889_v20, 0.0  ;;  %v1639_v51 = vmax.f32 %v2891_v37, 0.0  ;;  %v1640_v13 = vmax.f32 %v2893_v42, 0.0  ;;  %v1641_v16 = vmax.f32 %v2895_v59, 0.0 }
 0x21f   :  { %1668 = vst [vmem:[%s3114_s4 + $0x80] sm:$0xff] %v1619_v5  ;;  %1669 = vst [vmem:[%s3114_s4 + $0x88] sm:$0xff] %v1620_v54  ;;  %v1642_v23 = vmax.f32 %v2897_v1, 0.0  ;;  %v1643_v26 = vmax.f32 %v2899_v6, 0.0  ;;  %v1644_v33 = vmax.f32 %v2901_v27, 0.0  ;;  %v1645_v36 = vmax.f32 %v2903_v28, 0.0 }
 0x220   :  { %1670 = vst [vmem:[%s3114_s4 + $0x90] sm:$0xff] %v1621_v40  ;;  %1671 = vst [vmem:[%s3114_s4 + $0x98] sm:$0xff] %v1622_v0  ;;  %v1646_v43 = vmax.f32 %v2905_v52, 0.0  ;;  %v1647_v46 = vmax.f32 %v2907_v50, 0.0  ;;  %v1648_v53 = vmax.f32 %v2909_v15, 0.0  ;;  %v1649_v56 = vmax.f32 %v2911_v10, 0.0 }
 0x221   :  { %1672 = vst [vmem:[%s3114_s4 + $0xa0] sm:$0xff] %v1623_v18  ;;  %1673 = vst [vmem:[%s3114_s4 + $0xa8] sm:$0xff] %v1624_v31  ;;  %v1650_v63 = vmax.f32 %v2913_v44, 0.0  ;;  %v1651_v2 = vmax.f32 %v2915_v57, 0.0 }
 0x222   :  { %1674 = vst [vmem:[%s3114_s4 + $0xb0] sm:$0xff] %v1625_v39  ;;  %1675 = vst [vmem:[%s3114_s4 + $0xb8] sm:$0xff] %v1626_v4 }
 0x223   :  { %1676 = vst [vmem:[%s3114_s4 + $0xc0] sm:$0xff] %v1627_v34  ;;  %1677 = vst [vmem:[%s3114_s4 + $0xc8] sm:$0xff] %v1628_v49 }
 0x224   :  { %1678 = vst [vmem:[%s3114_s4 + $0xd0] sm:$0xff] %v1629_v45  ;;  %1679 = vst [vmem:[%s3114_s4 + $0xd8] sm:$0xff] %v1630_v29 }
 0x225   :  { %1680 = vst [vmem:[%s3114_s4 + $0xe0] sm:$0xff] %v1631_v60  ;;  %1681 = vst [vmem:[%s3114_s4 + $0xe8] sm:$0xff] %v1632_v7 }
 0x226   :  { %1682 = vst [vmem:[%s3114_s4 + $0xf0] sm:$0xff] %v1633_v62  ;;  %1683 = vst [vmem:[%s3114_s4 + $0xf8] sm:$0xff] %v1634_v55 }
 0x227   :  { %1684 = vst [vmem:[%s3114_s4 + $0x100] sm:$0xff] %v1635_v30  ;;  %1685 = vst [vmem:[%s3114_s4 + $0x108] sm:$0xff] %v1636_v3 }
 0x228   :  { %1686 = vst [vmem:[%s3114_s4 + $0x110] sm:$0xff] %v1637_v48  ;;  %1687 = vst [vmem:[%s3114_s4 + $0x118] sm:$0xff] %v1638_v32 }
 0x229   :  { %1688 = vst [vmem:[%s3114_s4 + $0x120] sm:$0xff] %v1639_v51  ;;  %1689 = vst [vmem:[%s3114_s4 + $0x128] sm:$0xff] %v1640_v13 }
 0x22a   :  { %1690 = vst [vmem:[%s3114_s4 + $0x130] sm:$0xff] %v1641_v16  ;;  %1691 = vst [vmem:[%s3114_s4 + $0x138] sm:$0xff] %v1642_v23 }
 0x22b   :  { %1692 = vst [vmem:[%s3114_s4 + $0x140] sm:$0xff] %v1643_v26  ;;  %1693 = vst [vmem:[%s3114_s4 + $0x148] sm:$0xff] %v1644_v33 }
 0x22c   :  { %1694 = vst [vmem:[%s3114_s4 + $0x150] sm:$0xff] %v1645_v36  ;;  %1695 = vst [vmem:[%s3114_s4 + $0x158] sm:$0xff] %v1646_v43 }
 0x22d   :  { %1696 = vst [vmem:[%s3114_s4 + $0x160] sm:$0xff] %v1647_v46  ;;  %1697 = vst [vmem:[%s3114_s4 + $0x168] sm:$0xff] %v1648_v53 }
 0x22e   :  { %1698 = vst [vmem:[%s3114_s4 + $0x170] sm:$0xff] %v1649_v56  ;;  %1699 = vst [vmem:[%s3114_s4 + $0x178] sm:$0xff] %v1650_v63 }
 0x22f   :  { %1700 = vst [vmem:[%s3114_s4 + $0x180] sm:$0xff] %v1651_v2 }

// kernel: cnn_forward.5
= control target key start
LH: loop header
LB: loop body
LE: loop exit
PB: predicated region body
PF: predicated region fallthrough
CT: control target
= control target key end

     0   :  { %v227_v29 = vlaneseq  ;;  %v1581_v35 = vmov 1966171168   ;;  %s1938_s0 = inlined_call_operand.vmem [shape: bf16[2,1568], index: 0, kind: input, shape index: {}]   ;;  %s1939_s1 = inlined_call_operand.vmem [shape: bf16[1568,128], index: 1, kind: input, shape index: {}]   ;;  %s1940_s2 = inlined_call_operand.vmem [shape: f32[1,128], index: 2, kind: input, shape index: {}]   ;;  %s1941_s3 = inlined_call_operand.hbm [shape: f32[2,128], index: 3, kind: output, shape index: {}]  }
   0x1   :  { %v1457_v0 = vld [vmem:[%s1939_s1 + $0x40] sm:$0xff]   ;;  %v1461_v4 = vld [vmem:[%s1939_s1 + $0x48] sm:$0xff]   ;;  %v1465_v8 = vld [vmem:[%s1939_s1 + $0x50] sm:$0xff]   ;;  %v225_v36 = vunpack.c.l.s4 %v1581_v35 }
   0x2   :  { %v1458_v1 = vld [vmem:[%s1939_s1] sm:$0xff]   ;;  %1310 = vmatprep.subr.bf16.mxu0 %v1457_v0  ;;  %v1462_v5 = vld [vmem:[%s1939_s1 + $0x8] sm:$0xff]   ;;  %v1466_v9 = vld [vmem:[%s1939_s1 + $0x10] sm:$0xff]   ;;  %v228_v33 = vshrl.u32 %v227_v29, 7 }
   0x3   :  { %v1459_v2 = vld [vmem:[%s1939_s1 + $0xc0] sm:$0xff]   ;;  %1311 = vmatpush3.bf16.msra.mxu0 %v1458_v1  ;;  %v1463_v6 = vld [vmem:[%s1939_s1 + $0xc8] sm:$0xff]   ;;  %v1467_v10 = vld [vmem:[%s1939_s1 + $0xd0] sm:$0xff]   ;;  %v226_v39 = vunpack.c.0.s8 %v225_v36 }
   0x4   :  { %v1460_v3 = vld [vmem:[%s1939_s1 + $0x80] sm:$0xff]   ;;  %1332 = vmatprep.subr.bf16.mxu1 %v1459_v2  ;;  %1312 = vmatprep.subr.bf16.mxu0 %v1461_v4  ;;  %v1464_v7 = vld [vmem:[%s1939_s1 + $0x88] sm:$0xff]   ;;  %v1468_v11 = vld [vmem:[%s1939_s1 + $0x90] sm:$0xff]  }
   0x5   :  { %1333 = vmatpush3.bf16.msra.mxu1 %v1460_v3  ;;  %v1469_v12 = vld [vmem:[%s1939_s1 + $0x58] sm:$0xff]   ;;  %v1473_v16 = vld [vmem:[%s1939_s1 + $0x60] sm:$0xff]   ;;  %v1477_v20 = vld [vmem:[%s1939_s1 + $0x68] sm:$0xff]   ;;  %v1710_v41 = vsub.s32 %v226_v39, %v228_v33 }
   0x6   :  { %1334 = vmatprep.subr.bf16.mxu1 %v1463_v6  ;;  %v1470_v13 = vld [vmem:[%s1939_s1 + $0x18] sm:$0xff]   ;;  %v1474_v17 = vld [vmem:[%s1939_s1 + $0x20] sm:$0xff]   ;;  %v1478_v21 = vld [vmem:[%s1939_s1 + $0x28] sm:$0xff]  }
   0x7   :  { %1313 = vmatpush3.bf16.msra.mxu0 %v1462_v5  ;;  %v1471_v14 = vld [vmem:[%s1939_s1 + $0xd8] sm:$0xff]   ;;  %v1475_v18 = vld [vmem:[%s1939_s1 + $0xe0] sm:$0xff]   ;;  %v1479_v22 = vld [vmem:[%s1939_s1 + $0xe8] sm:$0xff]  }
   0x8   :  { %1314 = vmatprep.subr.bf16.mxu0 %v1465_v8  ;;  %v1472_v15 = vld [vmem:[%s1939_s1 + $0x98] sm:$0xff]   ;;  %v1476_v19 = vld [vmem:[%s1939_s1 + $0xa0] sm:$0xff]   ;;  %v1480_v23 = vld [vmem:[%s1939_s1 + $0xa8] sm:$0xff]  }
   0x9   :  { %1335 = vmatpush3.bf16.msra.mxu1 %v1464_v7  ;;  %v1481_v24 = vld [vmem:[%s1939_s1 + $0x70] sm:$0xff]   ;;  %v1485_v28 = vld [vmem:[%s1939_s1 + $0x78] sm:$0xff]   ;;  %v1490_v34 = vld [vmem:[%s1939_s1 + $0x140] sm:$0xff]  }
   0xa   :  { %1336 = vmatprep.subr.bf16.mxu1 %v1467_v10  ;;  %v1482_v25 = vld [vmem:[%s1939_s1 + $0x30] sm:$0xff]   ;;  %v1486_v30 = vld [vmem:[%s1939_s1 + $0x38] sm:$0xff]   ;;  %v16_v37 = vld [vmem:[%s1938_s0] sm:$0xff] }
   0xb   :  { %1315 = vmatpush3.bf16.msra.mxu0 %v1466_v9  ;;  %v1483_v26 = vld [vmem:[%s1939_s1 + $0xf0] sm:$0xff]   ;;  %v1487_v31 = vld [vmem:[%s1939_s1 + $0xf8] sm:$0xff]   ;;  %v223_v38 = vcombine.high %v16_v37, %v16_v37  ;;  %v1492_v40 = vld [vmem:[%s1939_s1 + $0x1c0] sm:$0xff]   ;;  %v230_v42 = vrot.slane %v16_v37, %v1710_v41 }
   0xc   :  { %1316 = vmatprep.subr.bf16.mxu0 %v1469_v12  ;;  %v1484_v27 = vld [vmem:[%s1939_s1 + $0xb0] sm:$0xff]   ;;  %v1488_v32 = vld [vmem:[%s1939_s1 + $0xb8] sm:$0xff]   ;;  %v1491_v48 = vld [vmem:[%s1939_s1 + $0x100] sm:$0xff]  }
   0xd   :  { %1337 = vmatpush3.bf16.msra.mxu1 %v1468_v11  ;;  %v1714_v43 = vrot.slane %v223_v38, %v1710_v41  ;;  %v238_v44 = vcombine.high %v230_v42, %v230_v42  ;;  %v246_v45 = vrot.slane %v230_v42, %v1710_v41  ;;  %v1494_v51 = vld [vmem:[%s1939_s1 + $0x148] sm:$0xff]   ;;  %v1493_v53 = vld [vmem:[%s1939_s1 + $0x180] sm:$0xff]   ;;  %v1498_v57 = vld [vmem:[%s1939_s1 + $0x150] sm:$0xff]  }
   0xe   :  { %1338 = vmatprep.subr.bf16.mxu1 %v1471_v14  ;;  %v1496_v54 = vld [vmem:[%s1939_s1 + $0x1c8] sm:$0xff]   ;;  %v1500_v59 = vld [vmem:[%s1939_s1 + $0x1d0] sm:$0xff]   ;;  %v1502_v61 = vld [vmem:[%s1939_s1 + $0x158] sm:$0xff]  }
   0xf   :  { %1317 = vmatpush3.bf16.msra.mxu0 %v1470_v13  ;;  %v239_v46 = vcombine.high %v1714_v43, %v1714_v43  ;;  %v260_v47 = vrot.slane %v238_v44, %v1710_v41  ;;  %v268_v50 = vcombine.high %v246_v45, %v246_v45  ;;  %v1495_v56 = vld [vmem:[%s1939_s1 + $0x108] sm:$0xff]   ;;  %v1499_v60 = vld [vmem:[%s1939_s1 + $0x110] sm:$0xff]   ;;  %v1504_v63 = vld [vmem:[%s1939_s1 + $0x1d8] sm:$0xff]  }
  0x10   :  { %1318 = vmatprep.subr.bf16.mxu0 %v1473_v16  ;;  %v1497_v58 = vld [vmem:[%s1939_s1 + $0x188] sm:$0xff]   ;;  %v1501_v62 = vld [vmem:[%s1939_s1 + $0x190] sm:$0xff]   ;;  %v1503_v0 = vld [vmem:[%s1939_s1 + $0x118] sm:$0xff]  }
  0x11   :  { %1339 = vmatpush3.bf16.msra.mxu1 %v1472_v15  ;;  %v267_v49 = vrot.slane %v239_v46, %v1710_v41  ;;  %947 = vmatprep.mubr.bf16.mxu0 %v260_v47  ;;  %v270_v52 = vcombine.high %v260_v47, %v260_v47  ;;  %v1506_v1 = vld [vmem:[%s1939_s1 + $0x160] sm:$0xff]   ;;  %v1505_v2 = vld [vmem:[%s1939_s1 + $0x198] sm:$0xff]   ;;  %v1510_v5 = vld [vmem:[%s1939_s1 + $0x168] sm:$0xff]  }
  0x12   :  { %1340 = vmatprep.subr.bf16.mxu1 %v1475_v18  ;;  %v1508_v3 = vld [vmem:[%s1939_s1 + $0x1e0] sm:$0xff]   ;;  %v1512_v7 = vld [vmem:[%s1939_s1 + $0x1e8] sm:$0xff]   ;;  %v1514_v9 = vld [vmem:[%s1939_s1 + $0x170] sm:$0xff]  }
  0x13   :  { %1319 = vmatpush3.bf16.msra.mxu0 %v1474_v17  ;;  %v271_v55 = vcombine.high %v267_v49, %v267_v49  ;;  %987 = vmatprep.mubr.bf16.mxu1 %v270_v52  ;;  %v1507_v4 = vld [vmem:[%s1939_s1 + $0x120] sm:$0xff]   ;;  %v1511_v8 = vld [vmem:[%s1939_s1 + $0x128] sm:$0xff]   ;;  %v1516_v11 = vld [vmem:[%s1939_s1 + $0x1f0] sm:$0xff]   ;;  %v253_v17 = vrot.slane %v1714_v43, %v1710_v41 }
  0x14   :  { %1320 = vmatprep.subr.bf16.mxu0 %v1477_v20  ;;  %v1509_v6 = vld [vmem:[%s1939_s1 + $0x1a0] sm:$0xff]   ;;  %v1513_v10 = vld [vmem:[%s1939_s1 + $0x1a8] sm:$0xff]   ;;  %v1515_v12 = vld [vmem:[%s1939_s1 + $0x130] sm:$0xff]  }
  0x15   :  { %1341 = vmatpush3.bf16.msra.mxu1 %v1476_v19  ;;  %v1518_v13 = vld [vmem:[%s1939_s1 + $0x178] sm:$0xff]   ;;  %v1517_v14 = vld [vmem:[%s1939_s1 + $0x1b0] sm:$0xff]   ;;  %v1522_v18 = vld [vmem:[%s1939_s1 + $0x240] sm:$0xff]  }
  0x16   :  { %1342 = vmatprep.subr.bf16.mxu1 %v1479_v22  ;;  %v1520_v15 = vld [vmem:[%s1939_s1 + $0x1f8] sm:$0xff]   ;;  %v1524_v20 = vld [vmem:[%s1939_s1 + $0x2c0] sm:$0xff]   ;;  %v269_v22 = vcombine.high %v253_v17, %v253_v17  ;;  %v1532_v29 = vld [vmem:[%s1939_s1 + $0x2d0] sm:$0xff]  }
  0x17   :  { %1321 = vmatpush3.bf16.msra.mxu0 %v1478_v21  ;;  %v1519_v16 = vld [vmem:[%s1939_s1 + $0x138] sm:$0xff]   ;;  %v1523_v21 = vld [vmem:[%s1939_s1 + $0x200] sm:$0xff]   ;;  %v1542_v39 = vld [vmem:[%s1939_s1 + $0x268] sm:$0xff]  }
  0x18   :  { %1322 = vmatprep.subr.bf16.mxu0 %v1481_v24  ;;  %v1521_v19 = vld [vmem:[%s1939_s1 + $0x1b8] sm:$0xff]   ;;  %v1525_v24 = vld [vmem:[%s1939_s1 + $0x280] sm:$0xff]   ;;  %v1544_v42 = vld [vmem:[%s1939_s1 + $0x2e8] sm:$0xff]  }
  0x19   :  { %1343 = vmatpush3.bf16.msra.mxu1 %v1480_v23  ;;  %v1526_v23 = vld [vmem:[%s1939_s1 + $0x248] sm:$0xff]   ;;  %v1536_v33 = vld [vmem:[%s1939_s1 + $0x2d8] sm:$0xff]   ;;  %v1538_v35 = vld [vmem:[%s1939_s1 + $0x260] sm:$0xff]  }
  0x1a   :  { %1344 = vmatprep.subr.bf16.mxu1 %v1483_v26  ;;  %v1527_v26 = vld [vmem:[%s1939_s1 + $0x208] sm:$0xff]   ;;  %v1537_v36 = vld [vmem:[%s1939_s1 + $0x298] sm:$0xff]   ;;  %v1540_v37 = vld [vmem:[%s1939_s1 + $0x2e0] sm:$0xff]  }
  0x1b   :  { %1323 = vmatpush3.bf16.msra.mxu0 %v1482_v25  ;;  %v1528_v25 = vld [vmem:[%s1939_s1 + $0x2c8] sm:$0xff]   ;;  %v1539_v38 = vld [vmem:[%s1939_s1 + $0x220] sm:$0xff]   ;;  %v1546_v44 = vld [vmem:[%s1939_s1 + $0x270] sm:$0xff]  }
  0x1c   :  { %1324 = vmatprep.subr.bf16.mxu0 %v1485_v28  ;;  %v1529_v28 = vld [vmem:[%s1939_s1 + $0x288] sm:$0xff]  }
  0x1d   :  { %1345 = vmatpush3.bf16.msra.mxu1 %v1484_v27  ;;  %v1530_v27 = vld [vmem:[%s1939_s1 + $0x250] sm:$0xff]   ;;  %v1543_v43 = vld [vmem:[%s1939_s1 + $0x228] sm:$0xff]  }
  0x1e   :  { %1346 = vmatprep.subr.bf16.mxu1 %v1487_v31  ;;  %v1534_v31 = vld [vmem:[%s1939_s1 + $0x258] sm:$0xff]   ;;  %v1545_v46 = vld [vmem:[%s1939_s1 + $0x2a8] sm:$0xff]  }
  0x1f   :  { %1325 = vmatpush3.bf16.msra.mxu0 %v1486_v30  ;;  %v1531_v30 = vld [vmem:[%s1939_s1 + $0x210] sm:$0xff]  }
  0x20   :  { %1354 = vmatprep.subr.bf16.mxu0 %v1490_v34  ;;  %v1535_v34 = vld [vmem:[%s1939_s1 + $0x218] sm:$0xff]  }
  0x21   :  { %1347 = vmatpush3.bf16.msra.mxu1 %v1488_v32  ;;  %v1533_v32 = vld [vmem:[%s1939_s1 + $0x290] sm:$0xff]  }
  0x22   :  { %1376 = vmatprep.subr.bf16.mxu1 %v1492_v40  ;;  %948 = vmatmul.mubr.bf16.vlgmr.msra.gmra.mrb[0].mxu0 %v246_v45  ;;  %v1541_v40 = vld [vmem:[%s1939_s1 + $0x2a0] sm:$0xff]   ;;  %v17_v45 = vld [vmem:[%s1938_s0 + $0x8] sm:$0x1f] }
  0x23   :  { %1355 = vmatpush3.bf16.msra.mxu0 %v1491_v48  ;;  %1027 = vmatprep.mubr.bf16.mxu0 %v267_v49  ;;  %v279_v47 = vrot.slane %v17_v45, %v1710_v41  ;;  %v1548_v48 = vld [vmem:[%s1939_s1 + $0x2f0] sm:$0xff]  }
  0x24   :  { %988 = vmatmul.mubr.bf16.vlgmr.msra.gmra.mrb[0].mxu1 %v268_v50  ;;  %1356 = vmatprep.subr.bf16.mxu0 %v1494_v51 }
  0x25   :  { %1377 = vmatpush3.bf16.msra.mxu1 %v1493_v53  ;;  %1067 = vmatprep.mubr.bf16.mxu1 %v271_v55 }
  0x26   :  { %1378 = vmatprep.subr.bf16.mxu1 %v1496_v54 }
  0x27   :  { %1357 = vmatpush3.bf16.msra.mxu0 %v1495_v56 }
  0x28   :  { %1358 = vmatprep.subr.bf16.mxu0 %v1498_v57 }
  0x29   :  { %1379 = vmatpush3.bf16.msra.mxu1 %v1497_v58 }
  0x2a   :  { %1380 = vmatprep.subr.bf16.mxu1 %v1500_v59 }
  0x2b   :  { %1359 = vmatpush3.bf16.msra.mxu0 %v1499_v60 }
  0x2c   :  { %1360 = vmatprep.subr.bf16.mxu0 %v1502_v61 }
  0x2d   :  { %1381 = vmatpush3.bf16.msra.mxu1 %v1501_v62 }
  0x2e   :  { %1382 = vmatprep.subr.bf16.mxu1 %v1504_v63 }
  0x2f   :  { %1361 = vmatpush3.bf16.msra.mxu0 %v1503_v0 }
  0x30   :  { %1362 = vmatprep.subr.bf16.mxu0 %v1506_v1 }
  0x31   :  { %1383 = vmatpush3.bf16.msra.mxu1 %v1505_v2 }
  0x32   :  { %1384 = vmatprep.subr.bf16.mxu1 %v1508_v3 }
  0x33   :  { %1363 = vmatpush3.bf16.msra.mxu0 %v1507_v4 }
  0x34   :  { %1364 = vmatprep.subr.bf16.mxu0 %v1510_v5 }
  0x35   :  { %1385 = vmatpush3.bf16.msra.mxu1 %v1509_v6 }
  0x36   :  { %1386 = vmatprep.subr.bf16.mxu1 %v1512_v7 }
  0x37   :  { %1365 = vmatpush3.bf16.msra.mxu0 %v1511_v8 }
  0x38   :  { %1366 = vmatprep.subr.bf16.mxu0 %v1514_v9 }
  0x39   :  { %1387 = vmatpush3.bf16.msra.mxu1 %v1513_v10 }
  0x3a   :  { %1388 = vmatprep.subr.bf16.mxu1 %v1516_v11 }
  0x3b   :  { %1367 = vmatpush3.bf16.msra.mxu0 %v1515_v12 }
  0x3c   :  { %1368 = vmatprep.subr.bf16.mxu0 %v1518_v13 }
  0x3d   :  { %1389 = vmatpush3.bf16.msra.mxu1 %v1517_v14 }
  0x3e   :  { %1390 = vmatprep.subr.bf16.mxu1 %v1520_v15 }
  0x3f   :  { %1369 = vmatpush3.bf16.msra.mxu0 %v1519_v16 }
  0x40   :  { %1398 = vmatprep.subr.bf16.mxu0 %v1522_v18 }
  0x41   :  { %1391 = vmatpush3.bf16.msra.mxu1 %v1521_v19 }
  0x42   :  { %1028 = vmatmul.mubr.bf16.vlgmr.msra.gmra.mrb[4].mxu0 %v253_v17  ;;  %1420 = vmatprep.subr.bf16.mxu1 %v1524_v20 }
  0x43   :  { %1399 = vmatpush3.bf16.msra.mxu0 %v1523_v21 }
  0x44   :  { %1068 = vmatmul.mubr.bf16.vlgmr.msra.gmra.mrb[4].mxu1 %v269_v22  ;;  %1400 = vmatprep.subr.bf16.mxu0 %v1526_v23 }
  0x45   :  { %1421 = vmatpush3.bf16.msra.mxu1 %v1525_v24 }
  0x46   :  { %1422 = vmatprep.subr.bf16.mxu1 %v1528_v25 }
  0x47   :  { %1401 = vmatpush3.bf16.msra.mxu0 %v1527_v26 }
  0x48   :  { %1402 = vmatprep.subr.bf16.mxu0 %v1530_v27 }
  0x49   :  { %1423 = vmatpush3.bf16.msra.mxu1 %v1529_v28 }
  0x4a   :  { %1424 = vmatprep.subr.bf16.mxu1 %v1532_v29 }
  0x4b   :  { %1403 = vmatpush3.bf16.msra.mxu0 %v1531_v30 }
  0x4c   :  { %1404 = vmatprep.subr.bf16.mxu0 %v1534_v31 }
  0x4d   :  { %1425 = vmatpush3.bf16.msra.mxu1 %v1533_v32 }
  0x4e   :  { %1426 = vmatprep.subr.bf16.mxu1 %v1536_v33 }
  0x4f   :  { %1405 = vmatpush3.bf16.msra.mxu0 %v1535_v34 }
  0x50   :  { %1406 = vmatprep.subr.bf16.mxu0 %v1538_v35 }
  0x51   :  { %1427 = vmatpush3.bf16.msra.mxu1 %v1537_v36 }
  0x52   :  { %1428 = vmatprep.subr.bf16.mxu1 %v1540_v37 }
  0x53   :  { %1407 = vmatpush3.bf16.msra.mxu0 %v1539_v38 }
  0x54   :  { %1408 = vmatprep.subr.bf16.mxu0 %v1542_v39 }
  0x55   :  { %1429 = vmatpush3.bf16.msra.mxu1 %v1541_v40 }
  0x56   :  { %1430 = vmatprep.subr.bf16.mxu1 %v1544_v42 }
  0x57   :  { %8 = vsyncpa [#allocation3], 0  ;;  %1409 = vmatpush3.bf16.msra.mxu0 %v1543_v43  ;;  %v1547_v49 = vld [vmem:[%s1939_s1 + $0x230] sm:$0xff]   ;;  %v287_v50 = vcombine.high %v279_v47, %v279_v47  ;;  %v1550_v51 = vld [vmem:[%s1939_s1 + $0x278] sm:$0xff]   ;;  %v294_v57 = vrot.slane %v279_v47, %v1710_v41  ;;  %v272_v59 = vcombine.high %v17_v45, %v17_v45  ;;  %v1582_v61 = vmov 0.0  }
  0x58   :  { %1410 = vmatprep.subr.bf16.mxu0 %v1546_v44  ;;  %v1549_v52 = vld [vmem:[%s1939_s1 + $0x2b0] sm:$0xff]   ;;  %v1552_v54 = vld [vmem:[%s1939_s1 + $0x2f8] sm:$0xff]   ;;  %v1555_v60 = vld [vmem:[%s1939_s1 + $0x300] sm:$0xff]   ;;  %vm1583_vm0 = vmmov 0   ;;  %vm911_vm1 = vcmask 261120  }
  0x59   :  { %1431 = vmatpush3.bf16.msra.mxu1 %v1545_v46  ;;  %v308_v53 = vrot.slane %v287_v50, %v1710_v41  ;;  %v1551_v55 = vld [vmem:[%s1939_s1 + $0x238] sm:$0xff]   ;;  %v309_v62 = vcombine.high %v294_v57, %v294_v57  ;;  %v286_v63 = vrot.slane %v272_v59, %v1710_v41  ;;  %v1556_v0 = vld [vmem:[%s1939_s1 + $0x308] sm:$0xff]   ;;  %v1210_v3 = vld [vmem:[%s1940_s2] ss:$0 sm:$0xff] }
  0x5a   :  { %1432 = vmatprep.subr.bf16.mxu1 %v1548_v48  ;;  %v1553_v58 = vld [vmem:[%s1939_s1 + $0x2b8] sm:$0xff]   ;;  %s1584_s1 = smov [#allocation2]  }
  0x5b   :  { %1411 = vmatpush3.bf16.msra.mxu0 %v1547_v49  ;;  %1107 = vmatprep.mubr.bf16.mxu0 %v308_v53  ;;  %v310_v56 = vcombine.high %v308_v53, %v308_v53  ;;  %v301_v1 = vrot.slane %v286_v63, %v1710_v41  ;;  %s1202_s2 = sshll.u32 %s1584_s1, 4  ;;  %s1203_s2 = int_to_ptr.vmem [resolvable:$true] %s1202_s2 }
  0x5c   :  { %1412 = vmatprep.subr.bf16.mxu0 %v1550_v51  ;;  %s1557_s24 = scalar_lea.vmem %s1203_s2, 32  ;;  %p1562_p1 = scmp.lt.s32.totalorder %s1203_s2, %s1203_s2 }
  0x5d   :  { %1433 = vmatpush3.bf16.msra.mxu1 %v1549_v52  ;;  %1147 = vmatprep.mubr.bf16.mxu1 %v310_v56  ;;  %p1558_p0 = scmp.ne.s32.totalorder %s1203_s2, %s1557_s24  ;;  %p1563_p2 = scmp.lt.s32.totalorder %s1557_s24, %s1557_s24 }
  0x5e   :  { %1434 = vmatprep.subr.bf16.mxu1 %v1552_v54 }
  0x5f   :  { %1413 = vmatpush3.bf16.msra.mxu0 %v1551_v55  ;;  %p1564_p3 = por %p1563_p2, %p1562_p1 }
  0x60   :  { %1445 = vmatprep.subr.bf16.mxu0 %v1582_v61 }
  0x61   :  { %1435 = vmatpush3.bf16.msra.mxu1 %v1553_v58  ;;  %p1565_p4 = pnand %p1564_p3, %p1558_p0 }
  0x62   :  { %1108 = vmatmul.mubr.bf16.vlgmr.msra.gmra.mrb[8].mxu0 %v294_v57 }
  0x63   :  { %1446 = vmatpush3.bf16.msra.mxu0 %v1555_v60  ;;  %1449 = vmatprep.mubr.msk.bf16.mxu0 %vm1583_vm0, %v1582_v61 }
  0x64   :  { %1148 = vmatmul.mubr.bf16.vlgmr.msra.gmra.mrb[8].mxu1 %v309_v62  ;;  %1447 = vmatprep.subr.bf16.mxu0 %v1582_v61 }
  0x67   :  { %1448 = vmatpush3.bf16.msra.mxu0 %v1556_v0 }
  0x6a   :  { %1450 = vmatmul.mubr.msk.bf16.vlgmr.msra.gmra.mrb[12].mxu0 %vm911_vm1, %v301_v1 }
  0xf5   :  { %v1326_v2 = vpop.f32.mrb[0].mxu0 }
  0xf6   :  { %v1327_v4 = vpop.f32.mrb[1].mxu0 }
  0xf7   :  { %v1328_v5 = vadd.f32 %v1327_v4, %v1326_v2  ;;  %v1329_v6 = vpop.f32.mrb[2].mxu0  ;;  %v1348_v7 = vpop.f32.mrb[0].mxu1 }
  0xf8   :  { %v1330_v8 = vpop.f32.mrb[3].mxu0  ;;  %v1349_v9 = vpop.f32.mrb[1].mxu1 }
  0xf9   :  { %v950_v10 = vadd.f32 %v1328_v5, %v1210_v3  ;;  %v1350_v11 = vadd.f32 %v1349_v9, %v1348_v7  ;;  %v1351_v12 = vpop.f32.mrb[2].mxu1 }
  0xfa   :  { %v1352_v13 = vpop.f32.mrb[3].mxu1 }
  0xfb   :  { %v990_v14 = vadd.f32 %v1350_v11, %v950_v10 }
 0x115   :  { %v1370_v41 = vpop.f32.mrb[4].mxu0 }
 0x116   :  { %v1371_v15 = vpop.f32.mrb[5].mxu0 }
 0x117   :  { %v1372_v16 = vadd.f32 %v1371_v15, %v1370_v41  ;;  %v1373_v17 = vpop.f32.mrb[6].mxu0  ;;  %v1392_v18 = vpop.f32.mrb[4].mxu1 }
 0x118   :  { %v1374_v19 = vpop.f32.mrb[7].mxu0  ;;  %v1393_v20 = vpop.f32.mrb[5].mxu1 }
 0x119   :  { %v1030_v21 = vadd.f32 %v1372_v16, %v990_v14  ;;  %v1394_v22 = vadd.f32 %v1393_v20, %v1392_v18  ;;  %v1395_v23 = vpop.f32.mrb[6].mxu1 }
 0x11a   :  { %v1396_v24 = vpop.f32.mrb[7].mxu1 }
 0x11b   :  { %v1070_v25 = vadd.f32 %v1394_v22, %v1030_v21 }
 0x135   :  { %v1414_v26 = vpop.f32.mrb[8].mxu0 }
 0x136   :  { %v1415_v27 = vpop.f32.mrb[9].mxu0 }
 0x137   :  { %v1416_v28 = vadd.f32 %v1415_v27, %v1414_v26  ;;  %v1436_v29 = vpop.f32.mrb[8].mxu1  ;;  %v1417_v30 = vpop.f32.mrb[10].mxu0 }
 0x138   :  { %v1437_v31 = vpop.f32.mrb[9].mxu1  ;;  %v1418_v32 = vpop.f32.mrb[11].mxu0 }
 0x139   :  { %v1110_v33 = vadd.f32 %v1416_v28, %v1070_v25  ;;  %v1438_v34 = vadd.f32 %v1437_v31, %v1436_v29  ;;  %v1439_v35 = vpop.f32.mrb[10].mxu1 }
 0x13a   :  { %v1440_v36 = vpop.f32.mrb[11].mxu1 }
 0x13b   :  { %v1150_v37 = vadd.f32 %v1438_v34, %v1110_v33 }
 0x13d   :  { %v1189_v38 = vpop.f32.mrb[12].mxu0 }
 0x13e   :  { %v1190_v39 = vadd.f32 %v1189_v38, %v1150_v37  ;;  %v1451_v40 = vpop.f32.mrb[13].mxu0 }
 0x13f   :  { %v1192_v42 = vpop.f32.mrb[14].mxu0 }
 0x140   :  { %1195 = vst [vmem:[#allocation2] sm:$0x3] %v1190_v39  ;;  %v1452_v43 = vpop.f32.mrb[15].mxu0 }
 0x141   :  { %1568 = shalt.err (!%p1565_p4)
}
 0x142   :  { %s1569_s27 = scalar_lea.hbm %s1941_s3, 32 }
 0x143   :  { %p1570_p5 = scmp.ne.s32.totalorder %s1941_s3, %s1569_s27  ;;  %p1573_p6 = scmp.lt.u32.totalorder %s1569_s27, %s1941_s3 }
 0x145   :  { %p1575_p7 = pnand %p1573_p6, %p1570_p5 }
 0x147   :  { %1578 = shalt.err (!%p1575_p7)
}
 0x148   :  { %1205 = dma.vmem_to_hbm [thread:$0]  %s1203_s2, 32, %s1941_s3, [#allocation3]  }
 0x149   :  { %1579 = dma.done.wait [#allocation3], 32  }
 0x14a   :  { %1580 = vsyncadd [#allocation3], 4294967264 }
 0x14b   :  { %1209 = vsyncpa [#allocation3], 1 }

</bundles_post_ra>
